<compile_context>
chip_gen: v6e
topology: v6e:2x2x1
jax: 0.10.0
libtpu: 0.0.40
codegen_flags: <defaults>
</compile_context>

<pallas_src>
import functools

import jax
import jax.numpy as jnp
from jax import lax
from jax.experimental import pallas as pl
from jax.experimental.pallas import tpu as pltpu


# ----------------------------- Pallas kernel --------------------------------

def _fused_forward_kernel(*refs, layers, dims0, k, p):
    """All layers of Conv3d+BN+ReLU+MaxPool3d for one batch element.

    refs layout (L = number of layers):
      refs[0]          x      (1, Cin0, D0*H0*W0)   channels-first, flat spatial
      refs[1 + 2i]     w_i    (Cout_i, k^3*Cin_i)   BN-scale-folded conv weights
      refs[2 + 2i]     off_i  (Cout_i, 1)           folded conv-bias + BN offset
      refs[1 + 2L]     out    (1, Cout_last, Sp)    dense pooled output
      refs[2 + 2L + i] slab_i (k^3*Cin_i, M_i)      VMEM im2col slab scratch

    Spatial values for logical (d, h, w) live at lane d*sd + h*sh + w*sw of the
    current working array.  After each MaxPool3d(p) the strides simply scale by
    p (sparse layout) — no compaction between layers is needed because the next
    layer's tap shifts are expressed in the same strided coordinates.
    """
    nl = len(layers)
    x_ref = refs[0]
    o_ref = refs[1 + 2 * nl]
    slab_refs = refs[2 + 2 * nl:]

    D, H, W = dims0
    sd, sh, sw = H * W, W, 1          # lane strides of the current layout
    cur = None                        # previous layer's pooled output (value)

    for li, (cin, cout) in enumerate(layers):
        w_ref = refs[1 + 2 * li]
        off_ref = refs[2 + 2 * li]
        slab = slab_refs[li]
        Do, Ho, Wo = D - k + 1, H - k + 1, W - k + 1
        Mo = (Do - 1) * sd + (Ho - 1) * sh + (Wo - 1) * sw + 1

        # --- im2col slab: k^3 shifted lane-slices stacked along sublanes ----
        t = 0
        for kd in range(k):
            for kh in range(k):
                for kw in range(k):
                    off = kd * sd + kh * sh + kw * sw
                    if li == 0:
                        src = x_ref[0, :, off:off + Mo]       # (Cin, Mo)
                    else:
                        src = cur[:, off:off + Mo]            # (Cin, Mo)
                    slab[t * cin:(t + 1) * cin, :] = src
                    t += 1

        # --- conv = ONE lane-dense matmul with K = k^3*Cin, then BN + ReLU ---
        y = jnp.dot(w_ref[...], slab[...],
                    preferred_element_type=jnp.float32)       # (Cout, Mo)
        y = jnp.maximum(y + off_ref[...], 0.0)

        # --- MaxPool3d(p): one full-width shifted max per spatial axis -------
        # Pooled value for (dp, hp, wp) ends up at lane p*(dp*sd+hp*sh+wp*sw);
        # junk lanes (invalid h/w) are finite and never read downstream.
        for shift in (sw, sh, sd):
            L = y.shape[1] - (p - 1) * shift
            z = y[:, :L]
            for q in range(1, p):
                z = jnp.maximum(z, y[:, q * shift:q * shift + L])
            y = z
        cur = y
        D, H, W = Do // p, Ho // p, Wo // p
        sd, sh, sw = p * sd, p * sh, p * sw

    # --- compact only the tiny final head to a dense (Cout, Dp*Hp*Wp) block --
    cols = []
    for d in range(D):
        for h in range(H):
            for w in range(W):
                l = d * sd + h * sh + w * sw
                cols.append(cur[:, l:l + 1])
    res = cols[0] if len(cols) == 1 else jnp.concatenate(cols, axis=1)
    o_ref[0, :, :] = res                        # single dense store per step


# ------------------------------- wrapper -------------------------------------

def conv3d_forward(x_ncdhw, params, *, kernel_size, pool_size):
    """NCDHW input -> (N, Cout_last * Dp*Hp*Wp), matching the torch module."""
    k, p = kernel_size, pool_size
    N, C0, D0, H0, W0 = x_ncdhw.shape
    S0 = D0 * H0 * W0
    x = x_ncdhw.reshape(N, C0, S0)            # channels-first throughout (free)

    inputs = [x]
    in_specs = [pl.BlockSpec((1, C0, S0), lambda b: (b, 0, 0))]
    scratch_shapes = []
    layers = []

    D, H, W = D0, H0, W0
    sd, sh, sw = H0 * W0, W0, 1
    for layer in params:
        wgt = layer["w"]                      # (Cout, Cin, k, k, k) torch layout
        cout, cin = int(wgt.shape[0]), int(wgt.shape[1])
        inv_std = 1.0 / jnp.sqrt(layer["bn_var"] + 1e-5)
        scale = layer["bn_gamma"] * inv_std                             # (Cout,)
        offset = (layer["bn_beta"]
                  + (layer["b"] - layer["bn_mean"]) * scale).reshape(cout, 1)
        # lane-dense 2-D weights with BN scale folded in: (Cout, k^3*Cin),
        # column index = tap*Cin + cin matching the slab row order.
        w2d = (jnp.transpose(wgt, (0, 2, 3, 4, 1)).reshape(cout, k ** 3 * cin)
               * scale[:, None])
        inputs += [w2d, offset]
        in_specs += [pl.BlockSpec((cout, k ** 3 * cin), lambda b: (0, 0)),
                     pl.BlockSpec((cout, 1), lambda b: (0, 0))]

        Do, Ho, Wo = D - k + 1, H - k + 1, W - k + 1
        Mo = (Do - 1) * sd + (Ho - 1) * sh + (Wo - 1) * sw + 1
        scratch_shapes.append(pltpu.VMEM((k ** 3 * cin, Mo), jnp.float32))
        layers.append((cin, cout))
        D, H, W = Do // p, Ho // p, Wo // p
        sd, sh, sw = p * sd, p * sh, p * sw

    c_last = layers[-1][1]
    sp = D * H * W
    kernel = functools.partial(_fused_forward_kernel, layers=tuple(layers),
                               dims0=(D0, H0, W0), k=k, p=p)
    out = pl.pallas_call(
        kernel,
        out_shape=jax.ShapeDtypeStruct((N, c_last, sp), jnp.float32),
        grid=(N,),
        in_specs=in_specs,
        out_specs=pl.BlockSpec((1, c_last, sp), lambda b: (b, 0, 0)),
        scratch_shapes=scratch_shapes,
        compiler_params=pltpu.CompilerParams(
            dimension_semantics=("parallel",)),   # batch across TCs on v7x
    )(*inputs)
    return out.reshape(N, -1)                     # matches torch's NCDHW flatten


# --------------------------- pure-JAX reference ------------------------------

def reference_forward(x, params, k, p):
    for layer in params:
        y = lax.conv_general_dilated(
            x, layer["w"], window_strides=(1, 1, 1), padding="VALID",
            dimension_numbers=("NCDHW", "OIDHW", "NCDHW"))
        y = y + layer["b"].reshape(1, -1, 1, 1, 1)
        inv_std = 1.0 / jnp.sqrt(layer["bn_var"] + 1e-5)
        y = ((y - layer["bn_mean"].reshape(1, -1, 1, 1, 1))
             * (layer["bn_gamma"] * inv_std).reshape(1, -1, 1, 1, 1)
             + layer["bn_beta"].reshape(1, -1, 1, 1, 1))
        y = jnp.maximum(y, 0.0)
        N, C, D, H, W = y.shape
        Dp, Hp, Wp = D // p, H // p, W // p
        y = y[:, :, :Dp * p, :Hp * p, :Wp * p]
        x = y.reshape(N, C, Dp, p, Hp, p, Wp, p).max(axis=(3, 5, 7))
    return x.reshape(x.shape[0], -1)


# ------------------------------ param init -----------------------------------

def init_params(key, n_channels, k):
    params = []
    for cin, cout in zip(n_channels[:-1], n_channels[1:]):
        key, k1, k2, k3, k4, k5, k6 = jax.random.split(key, 7)
        bound = 1.0 / float(cin * k ** 3) ** 0.5
        params.append(dict(
            w=jax.random.uniform(k1, (cout, cin, k, k, k), jnp.float32, -bound, bound),
            b=jax.random.uniform(k2, (cout,), jnp.float32, -bound, bound),
            bn_gamma=1.0 + 0.1 * jax.random.normal(k3, (cout,), jnp.float32),
            bn_beta=0.1 * jax.random.normal(k4, (cout,), jnp.float32),
            bn_mean=0.1 * jax.random.normal(k5, (cout,), jnp.float32),
            bn_var=jax.random.uniform(k6, (cout,), jnp.float32, 0.5, 1.5),
        ))
    return params


if __name__ == "__main__":
    key = jax.random.PRNGKey(0)
    kx, kp = jax.random.split(key)

    n_channels = [4, 8, 16]   # config.n_channels
    kernel_size = 3           # config.kernel_size
    pool_size = 2             # config.max_pooling_size

    # PyTorch-style NCDHW input: (batch=2, C=4, D=H=W=16)
    x = jax.random.normal(kx, (2, 4, 16, 16, 16), jnp.float32)
    params = init_params(kp, n_channels, kernel_size)

    fwd = jax.jit(functools.partial(conv3d_forward,
                                    kernel_size=kernel_size, pool_size=pool_size))
    out = jax.block_until_ready(fwd(x, params))

    ref = reference_forward(x, params, kernel_size, pool_size)
    assert out.shape == (2, 16 * 2 * 2 * 2), out.shape
    max_err = float(jnp.max(jnp.abs(out - ref)))
    assert jnp.allclose(out, ref, atol=1e-4, rtol=1e-4), max_err
    print("KERNEL_OK")
</pallas_src>

<mosaic_0001>
module attributes {stable_mosaic.version = 11 : i64} {
  func.func @_fused_forward_kernel(%arg0: i32, %arg1: memref<1x4x4096xf32, #tpu.memory_space<vmem>>, %arg2: memref<8x108xf32, #tpu.memory_space<vmem>>, %arg3: memref<8x1xf32, #tpu.memory_space<vmem>>, %arg4: memref<16x216xf32, #tpu.memory_space<vmem>>, %arg5: memref<16x1xf32, #tpu.memory_space<vmem>>, %arg6: memref<1x16x8xf32, #tpu.memory_space<vmem>>, %arg7: memref<108x3550xf32, #tpu.memory_space<vmem>>, %arg8: memref<216x2185xf32, #tpu.memory_space<vmem>>) attributes {dimension_semantics = [#tpu.dimension_semantics<parallel>], iteration_bounds = array<i64: 2>, scalar_prefetch = 0 : i64, scratch_operands = 2 : i64, tpu.core_type = #tpu.core_type<tc>, window_params = [{transform_indices = @transform_0, window_bounds = array<i64: 1, 4, 4096>}, {pipeline_mode = #tpu.pipeline_mode<synchronous>, transform_indices = @transform_1, window_bounds = array<i64: 8, 108>}, {pipeline_mode = #tpu.pipeline_mode<synchronous>, transform_indices = @transform_2, window_bounds = array<i64: 8, 1>}, {pipeline_mode = #tpu.pipeline_mode<synchronous>, transform_indices = @transform_3, window_bounds = array<i64: 16, 216>}, {pipeline_mode = #tpu.pipeline_mode<synchronous>, transform_indices = @transform_4, window_bounds = array<i64: 16, 1>}, {transform_indices = @transform_5, window_bounds = array<i64: 1, 16, 8>}]} {
    %c0 = arith.constant 0 : index
    %c0_0 = arith.constant 0 : index
    %c0_1 = arith.constant 0 : index
    %0 = vector.load %arg1[%c0, %c0_0, %c0_1] : memref<1x4x4096xf32, #tpu.memory_space<vmem>>, vector<1x4x3550xf32>
    %1 = vector.shape_cast %0 : vector<1x4x3550xf32> to vector<4x3550xf32>
    %c0_2 = arith.constant 0 : index
    %c0_3 = arith.constant 0 : index
    %2 = vector.load %arg7[%c0_2, %c0_3] : memref<108x3550xf32, #tpu.memory_space<vmem>>, vector<4x3550xf32>
    tpu.vector_store %arg7[%c0_2, %c0_3], %1 {strides = array<i32>} : memref<108x3550xf32, #tpu.memory_space<vmem>>, vector<4x3550xf32>,
    %c0_4 = arith.constant 0 : index
    %c0_5 = arith.constant 0 : index
    %c1 = arith.constant 1 : index
    %3 = vector.load %arg1[%c0_4, %c0_5, %c1] : memref<1x4x4096xf32, #tpu.memory_space<vmem>>, vector<1x4x3550xf32>
    %4 = vector.shape_cast %3 : vector<1x4x3550xf32> to vector<4x3550xf32>
    %c4 = arith.constant 4 : index
    %c0_6 = arith.constant 0 : index
    %5 = vector.load %arg7[%c4, %c0_6] : memref<108x3550xf32, #tpu.memory_space<vmem>>, vector<4x3550xf32>
    tpu.vector_store %arg7[%c4, %c0_6], %4 {strides = array<i32>} : memref<108x3550xf32, #tpu.memory_space<vmem>>, vector<4x3550xf32>,
    %c0_7 = arith.constant 0 : index
    %c0_8 = arith.constant 0 : index
    %c2 = arith.constant 2 : index
    %6 = vector.load %arg1[%c0_7, %c0_8, %c2] : memref<1x4x4096xf32, #tpu.memory_space<vmem>>, vector<1x4x3550xf32>
    %7 = vector.shape_cast %6 : vector<1x4x3550xf32> to vector<4x3550xf32>
    %c8 = arith.constant 8 : index
    %c0_9 = arith.constant 0 : index
    %8 = vector.load %arg7[%c8, %c0_9] : memref<108x3550xf32, #tpu.memory_space<vmem>>, vector<4x3550xf32>
    tpu.vector_store %arg7[%c8, %c0_9], %7 {strides = array<i32>} : memref<108x3550xf32, #tpu.memory_space<vmem>>, vector<4x3550xf32>,
    %c0_10 = arith.constant 0 : index
    %c0_11 = arith.constant 0 : index
    %c16 = arith.constant 16 : index
    %9 = vector.load %arg1[%c0_10, %c0_11, %c16] : memref<1x4x4096xf32, #tpu.memory_space<vmem>>, vector<1x4x3550xf32>
    %10 = vector.shape_cast %9 : vector<1x4x3550xf32> to vector<4x3550xf32>
    %c12 = arith.constant 12 : index
    %c0_12 = arith.constant 0 : index
    %11 = vector.load %arg7[%c12, %c0_12] : memref<108x3550xf32, #tpu.memory_space<vmem>>, vector<4x3550xf32>
    tpu.vector_store %arg7[%c12, %c0_12], %10 {strides = array<i32>} : memref<108x3550xf32, #tpu.memory_space<vmem>>, vector<4x3550xf32>,
    %c0_13 = arith.constant 0 : index
    %c0_14 = arith.constant 0 : index
    %c17 = arith.constant 17 : index
    %12 = vector.load %arg1[%c0_13, %c0_14, %c17] : memref<1x4x4096xf32, #tpu.memory_space<vmem>>, vector<1x4x3550xf32>
    %13 = vector.shape_cast %12 : vector<1x4x3550xf32> to vector<4x3550xf32>
    %c16_15 = arith.constant 16 : index
    %c0_16 = arith.constant 0 : index
    %14 = vector.load %arg7[%c16_15, %c0_16] : memref<108x3550xf32, #tpu.memory_space<vmem>>, vector<4x3550xf32>
    tpu.vector_store %arg7[%c16_15, %c0_16], %13 {strides = array<i32>} : memref<108x3550xf32, #tpu.memory_space<vmem>>, vector<4x3550xf32>,
    %c0_17 = arith.constant 0 : index
    %c0_18 = arith.constant 0 : index
    %c18 = arith.constant 18 : index
    %15 = vector.load %arg1[%c0_17, %c0_18, %c18] : memref<1x4x4096xf32, #tpu.memory_space<vmem>>, vector<1x4x3550xf32>
    %16 = vector.shape_cast %15 : vector<1x4x3550xf32> to vector<4x3550xf32>
    %c20 = arith.constant 20 : index
    %c0_19 = arith.constant 0 : index
    %17 = vector.load %arg7[%c20, %c0_19] : memref<108x3550xf32, #tpu.memory_space<vmem>>, vector<4x3550xf32>
    tpu.vector_store %arg7[%c20, %c0_19], %16 {strides = array<i32>} : memref<108x3550xf32, #tpu.memory_space<vmem>>, vector<4x3550xf32>,
    %c0_20 = arith.constant 0 : index
    %c0_21 = arith.constant 0 : index
    %c32 = arith.constant 32 : index
    %18 = vector.load %arg1[%c0_20, %c0_21, %c32] : memref<1x4x4096xf32, #tpu.memory_space<vmem>>, vector<1x4x3550xf32>
    %19 = vector.shape_cast %18 : vector<1x4x3550xf32> to vector<4x3550xf32>
    %c24 = arith.constant 24 : index
    %c0_22 = arith.constant 0 : index
    %20 = vector.load %arg7[%c24, %c0_22] : memref<108x3550xf32, #tpu.memory_space<vmem>>, vector<4x3550xf32>
    tpu.vector_store %arg7[%c24, %c0_22], %19 {strides = array<i32>} : memref<108x3550xf32, #tpu.memory_space<vmem>>, vector<4x3550xf32>,
    %c0_23 = arith.constant 0 : index
    %c0_24 = arith.constant 0 : index
    %c33 = arith.constant 33 : index
    %21 = vector.load %arg1[%c0_23, %c0_24, %c33] : memref<1x4x4096xf32, #tpu.memory_space<vmem>>, vector<1x4x3550xf32>
    %22 = vector.shape_cast %21 : vector<1x4x3550xf32> to vector<4x3550xf32>
    %c28 = arith.constant 28 : index
    %c0_25 = arith.constant 0 : index
    %23 = vector.load %arg7[%c28, %c0_25] : memref<108x3550xf32, #tpu.memory_space<vmem>>, vector<4x3550xf32>
    tpu.vector_store %arg7[%c28, %c0_25], %22 {strides = array<i32>} : memref<108x3550xf32, #tpu.memory_space<vmem>>, vector<4x3550xf32>,
    %c0_26 = arith.constant 0 : index
    %c0_27 = arith.constant 0 : index
    %c34 = arith.constant 34 : index
    %24 = vector.load %arg1[%c0_26, %c0_27, %c34] : memref<1x4x4096xf32, #tpu.memory_space<vmem>>, vector<1x4x3550xf32>
    %25 = vector.shape_cast %24 : vector<1x4x3550xf32> to vector<4x3550xf32>
    %c32_28 = arith.constant 32 : index
    %c0_29 = arith.constant 0 : index
    %26 = vector.load %arg7[%c32_28, %c0_29] : memref<108x3550xf32, #tpu.memory_space<vmem>>, vector<4x3550xf32>
    tpu.vector_store %arg7[%c32_28, %c0_29], %25 {strides = array<i32>} : memref<108x3550xf32, #tpu.memory_space<vmem>>, vector<4x3550xf32>,
    %c0_30 = arith.constant 0 : index
    %c0_31 = arith.constant 0 : index
    %c256 = arith.constant 256 : index
    %27 = vector.load %arg1[%c0_30, %c0_31, %c256] : memref<1x4x4096xf32, #tpu.memory_space<vmem>>, vector<1x4x3550xf32>
    %28 = vector.shape_cast %27 : vector<1x4x3550xf32> to vector<4x3550xf32>
    %c36 = arith.constant 36 : index
    %c0_32 = arith.constant 0 : index
    %29 = vector.load %arg7[%c36, %c0_32] : memref<108x3550xf32, #tpu.memory_space<vmem>>, vector<4x3550xf32>
    tpu.vector_store %arg7[%c36, %c0_32], %28 {strides = array<i32>} : memref<108x3550xf32, #tpu.memory_space<vmem>>, vector<4x3550xf32>,
    %c0_33 = arith.constant 0 : index
    %c0_34 = arith.constant 0 : index
    %c257 = arith.constant 257 : index
    %30 = vector.load %arg1[%c0_33, %c0_34, %c257] : memref<1x4x4096xf32, #tpu.memory_space<vmem>>, vector<1x4x3550xf32>
    %31 = vector.shape_cast %30 : vector<1x4x3550xf32> to vector<4x3550xf32>
    %c40 = arith.constant 40 : index
    %c0_35 = arith.constant 0 : index
    %32 = vector.load %arg7[%c40, %c0_35] : memref<108x3550xf32, #tpu.memory_space<vmem>>, vector<4x3550xf32>
    tpu.vector_store %arg7[%c40, %c0_35], %31 {strides = array<i32>} : memref<108x3550xf32, #tpu.memory_space<vmem>>, vector<4x3550xf32>,
    %c0_36 = arith.constant 0 : index
    %c0_37 = arith.constant 0 : index
    %c258 = arith.constant 258 : index
    %33 = vector.load %arg1[%c0_36, %c0_37, %c258] : memref<1x4x4096xf32, #tpu.memory_space<vmem>>, vector<1x4x3550xf32>
    %34 = vector.shape_cast %33 : vector<1x4x3550xf32> to vector<4x3550xf32>
    %c44 = arith.constant 44 : index
    %c0_38 = arith.constant 0 : index
    %35 = vector.load %arg7[%c44, %c0_38] : memref<108x3550xf32, #tpu.memory_space<vmem>>, vector<4x3550xf32>
    tpu.vector_store %arg7[%c44, %c0_38], %34 {strides = array<i32>} : memref<108x3550xf32, #tpu.memory_space<vmem>>, vector<4x3550xf32>,
    %c0_39 = arith.constant 0 : index
    %c0_40 = arith.constant 0 : index
    %c272 = arith.constant 272 : index
    %36 = vector.load %arg1[%c0_39, %c0_40, %c272] : memref<1x4x4096xf32, #tpu.memory_space<vmem>>, vector<1x4x3550xf32>
    %37 = vector.shape_cast %36 : vector<1x4x3550xf32> to vector<4x3550xf32>
    %c48 = arith.constant 48 : index
    %c0_41 = arith.constant 0 : index
    %38 = vector.load %arg7[%c48, %c0_41] : memref<108x3550xf32, #tpu.memory_space<vmem>>, vector<4x3550xf32>
    tpu.vector_store %arg7[%c48, %c0_41], %37 {strides = array<i32>} : memref<108x3550xf32, #tpu.memory_space<vmem>>, vector<4x3550xf32>,
    %c0_42 = arith.constant 0 : index
    %c0_43 = arith.constant 0 : index
    %c273 = arith.constant 273 : index
    %39 = vector.load %arg1[%c0_42, %c0_43, %c273] : memref<1x4x4096xf32, #tpu.memory_space<vmem>>, vector<1x4x3550xf32>
    %40 = vector.shape_cast %39 : vector<1x4x3550xf32> to vector<4x3550xf32>
    %c52 = arith.constant 52 : index
    %c0_44 = arith.constant 0 : index
    %41 = vector.load %arg7[%c52, %c0_44] : memref<108x3550xf32, #tpu.memory_space<vmem>>, vector<4x3550xf32>
    tpu.vector_store %arg7[%c52, %c0_44], %40 {strides = array<i32>} : memref<108x3550xf32, #tpu.memory_space<vmem>>, vector<4x3550xf32>,
    %c0_45 = arith.constant 0 : index
    %c0_46 = arith.constant 0 : index
    %c274 = arith.constant 274 : index
    %42 = vector.load %arg1[%c0_45, %c0_46, %c274] : memref<1x4x4096xf32, #tpu.memory_space<vmem>>, vector<1x4x3550xf32>
    %43 = vector.shape_cast %42 : vector<1x4x3550xf32> to vector<4x3550xf32>
    %c56 = arith.constant 56 : index
    %c0_47 = arith.constant 0 : index
    %44 = vector.load %arg7[%c56, %c0_47] : memref<108x3550xf32, #tpu.memory_space<vmem>>, vector<4x3550xf32>
    tpu.vector_store %arg7[%c56, %c0_47], %43 {strides = array<i32>} : memref<108x3550xf32, #tpu.memory_space<vmem>>, vector<4x3550xf32>,
    %c0_48 = arith.constant 0 : index
    %c0_49 = arith.constant 0 : index
    %c288 = arith.constant 288 : index
    %45 = vector.load %arg1[%c0_48, %c0_49, %c288] : memref<1x4x4096xf32, #tpu.memory_space<vmem>>, vector<1x4x3550xf32>
    %46 = vector.shape_cast %45 : vector<1x4x3550xf32> to vector<4x3550xf32>
    %c60 = arith.constant 60 : index
    %c0_50 = arith.constant 0 : index
    %47 = vector.load %arg7[%c60, %c0_50] : memref<108x3550xf32, #tpu.memory_space<vmem>>, vector<4x3550xf32>
    tpu.vector_store %arg7[%c60, %c0_50], %46 {strides = array<i32>} : memref<108x3550xf32, #tpu.memory_space<vmem>>, vector<4x3550xf32>,
    %c0_51 = arith.constant 0 : index
    %c0_52 = arith.constant 0 : index
    %c289 = arith.constant 289 : index
    %48 = vector.load %arg1[%c0_51, %c0_52, %c289] : memref<1x4x4096xf32, #tpu.memory_space<vmem>>, vector<1x4x3550xf32>
    %49 = vector.shape_cast %48 : vector<1x4x3550xf32> to vector<4x3550xf32>
    %c64 = arith.constant 64 : index
    %c0_53 = arith.constant 0 : index
    %50 = vector.load %arg7[%c64, %c0_53] : memref<108x3550xf32, #tpu.memory_space<vmem>>, vector<4x3550xf32>
    tpu.vector_store %arg7[%c64, %c0_53], %49 {strides = array<i32>} : memref<108x3550xf32, #tpu.memory_space<vmem>>, vector<4x3550xf32>,
    %c0_54 = arith.constant 0 : index
    %c0_55 = arith.constant 0 : index
    %c290 = arith.constant 290 : index
    %51 = vector.load %arg1[%c0_54, %c0_55, %c290] : memref<1x4x4096xf32, #tpu.memory_space<vmem>>, vector<1x4x3550xf32>
    %52 = vector.shape_cast %51 : vector<1x4x3550xf32> to vector<4x3550xf32>
    %c68 = arith.constant 68 : index
    %c0_56 = arith.constant 0 : index
    %53 = vector.load %arg7[%c68, %c0_56] : memref<108x3550xf32, #tpu.memory_space<vmem>>, vector<4x3550xf32>
    tpu.vector_store %arg7[%c68, %c0_56], %52 {strides = array<i32>} : memref<108x3550xf32, #tpu.memory_space<vmem>>, vector<4x3550xf32>,
    %c0_57 = arith.constant 0 : index
    %c0_58 = arith.constant 0 : index
    %c512 = arith.constant 512 : index
    %54 = vector.load %arg1[%c0_57, %c0_58, %c512] : memref<1x4x4096xf32, #tpu.memory_space<vmem>>, vector<1x4x3550xf32>
    %55 = vector.shape_cast %54 : vector<1x4x3550xf32> to vector<4x3550xf32>
    %c72 = arith.constant 72 : index
    %c0_59 = arith.constant 0 : index
    %56 = vector.load %arg7[%c72, %c0_59] : memref<108x3550xf32, #tpu.memory_space<vmem>>, vector<4x3550xf32>
    tpu.vector_store %arg7[%c72, %c0_59], %55 {strides = array<i32>} : memref<108x3550xf32, #tpu.memory_space<vmem>>, vector<4x3550xf32>,
    %c0_60 = arith.constant 0 : index
    %c0_61 = arith.constant 0 : index
    %c513 = arith.constant 513 : index
    %57 = vector.load %arg1[%c0_60, %c0_61, %c513] : memref<1x4x4096xf32, #tpu.memory_space<vmem>>, vector<1x4x3550xf32>
    %58 = vector.shape_cast %57 : vector<1x4x3550xf32> to vector<4x3550xf32>
    %c76 = arith.constant 76 : index
    %c0_62 = arith.constant 0 : index
    %59 = vector.load %arg7[%c76, %c0_62] : memref<108x3550xf32, #tpu.memory_space<vmem>>, vector<4x3550xf32>
    tpu.vector_store %arg7[%c76, %c0_62], %58 {strides = array<i32>} : memref<108x3550xf32, #tpu.memory_space<vmem>>, vector<4x3550xf32>,
    %c0_63 = arith.constant 0 : index
    %c0_64 = arith.constant 0 : index
    %c514 = arith.constant 514 : index
    %60 = vector.load %arg1[%c0_63, %c0_64, %c514] : memref<1x4x4096xf32, #tpu.memory_space<vmem>>, vector<1x4x3550xf32>
    %61 = vector.shape_cast %60 : vector<1x4x3550xf32> to vector<4x3550xf32>
    %c80 = arith.constant 80 : index
    %c0_65 = arith.constant 0 : index
    %62 = vector.load %arg7[%c80, %c0_65] : memref<108x3550xf32, #tpu.memory_space<vmem>>, vector<4x3550xf32>
    tpu.vector_store %arg7[%c80, %c0_65], %61 {strides = array<i32>} : memref<108x3550xf32, #tpu.memory_space<vmem>>, vector<4x3550xf32>,
    %c0_66 = arith.constant 0 : index
    %c0_67 = arith.constant 0 : index
    %c528 = arith.constant 528 : index
    %63 = vector.load %arg1[%c0_66, %c0_67, %c528] : memref<1x4x4096xf32, #tpu.memory_space<vmem>>, vector<1x4x3550xf32>
    %64 = vector.shape_cast %63 : vector<1x4x3550xf32> to vector<4x3550xf32>
    %c84 = arith.constant 84 : index
    %c0_68 = arith.constant 0 : index
    %65 = vector.load %arg7[%c84, %c0_68] : memref<108x3550xf32, #tpu.memory_space<vmem>>, vector<4x3550xf32>
    tpu.vector_store %arg7[%c84, %c0_68], %64 {strides = array<i32>} : memref<108x3550xf32, #tpu.memory_space<vmem>>, vector<4x3550xf32>,
    %c0_69 = arith.constant 0 : index
    %c0_70 = arith.constant 0 : index
    %c529 = arith.constant 529 : index
    %66 = vector.load %arg1[%c0_69, %c0_70, %c529] : memref<1x4x4096xf32, #tpu.memory_space<vmem>>, vector<1x4x3550xf32>
    %67 = vector.shape_cast %66 : vector<1x4x3550xf32> to vector<4x3550xf32>
    %c88 = arith.constant 88 : index
    %c0_71 = arith.constant 0 : index
    %68 = vector.load %arg7[%c88, %c0_71] : memref<108x3550xf32, #tpu.memory_space<vmem>>, vector<4x3550xf32>
    tpu.vector_store %arg7[%c88, %c0_71], %67 {strides = array<i32>} : memref<108x3550xf32, #tpu.memory_space<vmem>>, vector<4x3550xf32>,
    %c0_72 = arith.constant 0 : index
    %c0_73 = arith.constant 0 : index
    %c530 = arith.constant 530 : index
    %69 = vector.load %arg1[%c0_72, %c0_73, %c530] : memref<1x4x4096xf32, #tpu.memory_space<vmem>>, vector<1x4x3550xf32>
    %70 = vector.shape_cast %69 : vector<1x4x3550xf32> to vector<4x3550xf32>
    %c92 = arith.constant 92 : index
    %c0_74 = arith.constant 0 : index
    %71 = vector.load %arg7[%c92, %c0_74] : memref<108x3550xf32, #tpu.memory_space<vmem>>, vector<4x3550xf32>
    tpu.vector_store %arg7[%c92, %c0_74], %70 {strides = array<i32>} : memref<108x3550xf32, #tpu.memory_space<vmem>>, vector<4x3550xf32>,
    %c0_75 = arith.constant 0 : index
    %c0_76 = arith.constant 0 : index
    %c544 = arith.constant 544 : index
    %72 = vector.load %arg1[%c0_75, %c0_76, %c544] : memref<1x4x4096xf32, #tpu.memory_space<vmem>>, vector<1x4x3550xf32>
    %73 = vector.shape_cast %72 : vector<1x4x3550xf32> to vector<4x3550xf32>
    %c96 = arith.constant 96 : index
    %c0_77 = arith.constant 0 : index
    %74 = vector.load %arg7[%c96, %c0_77] : memref<108x3550xf32, #tpu.memory_space<vmem>>, vector<4x3550xf32>
    tpu.vector_store %arg7[%c96, %c0_77], %73 {strides = array<i32>} : memref<108x3550xf32, #tpu.memory_space<vmem>>, vector<4x3550xf32>,
    %c0_78 = arith.constant 0 : index
    %c0_79 = arith.constant 0 : index
    %c545 = arith.constant 545 : index
    %75 = vector.load %arg1[%c0_78, %c0_79, %c545] : memref<1x4x4096xf32, #tpu.memory_space<vmem>>, vector<1x4x3550xf32>
    %76 = vector.shape_cast %75 : vector<1x4x3550xf32> to vector<4x3550xf32>
    %c100 = arith.constant 100 : index
    %c0_80 = arith.constant 0 : index
    %77 = vector.load %arg7[%c100, %c0_80] : memref<108x3550xf32, #tpu.memory_space<vmem>>, vector<4x3550xf32>
    tpu.vector_store %arg7[%c100, %c0_80], %76 {strides = array<i32>} : memref<108x3550xf32, #tpu.memory_space<vmem>>, vector<4x3550xf32>,
    %c0_81 = arith.constant 0 : index
    %c0_82 = arith.constant 0 : index
    %c546 = arith.constant 546 : index
    %78 = vector.load %arg1[%c0_81, %c0_82, %c546] : memref<1x4x4096xf32, #tpu.memory_space<vmem>>, vector<1x4x3550xf32>
    %79 = vector.shape_cast %78 : vector<1x4x3550xf32> to vector<4x3550xf32>
    %c104 = arith.constant 104 : index
    %c0_83 = arith.constant 0 : index
    %80 = vector.load %arg7[%c104, %c0_83] : memref<108x3550xf32, #tpu.memory_space<vmem>>, vector<4x3550xf32>
    tpu.vector_store %arg7[%c104, %c0_83], %79 {strides = array<i32>} : memref<108x3550xf32, #tpu.memory_space<vmem>>, vector<4x3550xf32>,
    %c0_84 = arith.constant 0 : index
    %c0_85 = arith.constant 0 : index
    %81 = vector.load %arg2[%c0_84, %c0_85] : memref<8x108xf32, #tpu.memory_space<vmem>>, vector<8x108xf32>
    %c0_86 = arith.constant 0 : index
    %c0_87 = arith.constant 0 : index
    %82 = vector.load %arg7[%c0_86, %c0_87] : memref<108x3550xf32, #tpu.memory_space<vmem>>, vector<108x3550xf32>
    %cst = arith.constant dense<0.000000e+00> : vector<8x3550xf32>
    %83 = tpu.matmul %81, %82, %cst {dimension_numbers = #tpu.dot_dimension_numbers<[1], [0], [0], [1], [0, 0, 1, 1], [], []>} : vector<8x108xf32>, vector<108x3550xf32>, vector<8x3550xf32> -> vector<8x3550xf32>
    %c0_88 = arith.constant 0 : index
    %c0_89 = arith.constant 0 : index
    %84 = vector.load %arg3[%c0_88, %c0_89] : memref<8x1xf32, #tpu.memory_space<vmem>>, vector<8x1xf32>
    %85 = vector.broadcast %84 : vector<8x1xf32> to vector<8x3550xf32>
    %86 = arith.addf %83, %85 : vector<8x3550xf32>
    %cst_90 = arith.constant 0.000000e+00 : f32
    %87 = vector.broadcast %cst_90 : f32 to vector<8x3550xf32>
    %88 = arith.maximumf %86, %87 : vector<8x3550xf32>
    %89 = vector.extract_strided_slice %88 {offsets = [0, 0], sizes = [8, 3549], strides = [1, 1]} : vector<8x3550xf32> to vector<8x3549xf32>
    %90 = vector.extract_strided_slice %88 {offsets = [0, 1], sizes = [8, 3549], strides = [1, 1]} : vector<8x3550xf32> to vector<8x3549xf32>
    %91 = arith.maximumf %89, %90 : vector<8x3549xf32>
    %92 = vector.extract_strided_slice %91 {offsets = [0, 0], sizes = [8, 3533], strides = [1, 1]} : vector<8x3549xf32> to vector<8x3533xf32>
    %93 = vector.extract_strided_slice %91 {offsets = [0, 16], sizes = [8, 3533], strides = [1, 1]} : vector<8x3549xf32> to vector<8x3533xf32>
    %94 = arith.maximumf %92, %93 : vector<8x3533xf32>
    %95 = vector.extract_strided_slice %94 {offsets = [0, 0], sizes = [8, 3277], strides = [1, 1]} : vector<8x3533xf32> to vector<8x3277xf32>
    %96 = vector.extract_strided_slice %94 {offsets = [0, 256], sizes = [8, 3277], strides = [1, 1]} : vector<8x3533xf32> to vector<8x3277xf32>
    %97 = arith.maximumf %95, %96 : vector<8x3277xf32>
    %98 = vector.extract_strided_slice %97 {offsets = [0, 0], sizes = [8, 2185], strides = [1, 1]} : vector<8x3277xf32> to vector<8x2185xf32>
    %c0_91 = arith.constant 0 : index
    %c0_92 = arith.constant 0 : index
    %99 = vector.load %arg8[%c0_91, %c0_92] : memref<216x2185xf32, #tpu.memory_space<vmem>>, vector<8x2185xf32>
    tpu.vector_store %arg8[%c0_91, %c0_92], %98 {strides = array<i32>} : memref<216x2185xf32, #tpu.memory_space<vmem>>, vector<8x2185xf32>,
    %100 = vector.extract_strided_slice %97 {offsets = [0, 2], sizes = [8, 2185], strides = [1, 1]} : vector<8x3277xf32> to vector<8x2185xf32>
    %c8_93 = arith.constant 8 : index
    %c0_94 = arith.constant 0 : index
    %101 = vector.load %arg8[%c8_93, %c0_94] : memref<216x2185xf32, #tpu.memory_space<vmem>>, vector<8x2185xf32>
    tpu.vector_store %arg8[%c8_93, %c0_94], %100 {strides = array<i32>} : memref<216x2185xf32, #tpu.memory_space<vmem>>, vector<8x2185xf32>,
    %102 = vector.extract_strided_slice %97 {offsets = [0, 4], sizes = [8, 2185], strides = [1, 1]} : vector<8x3277xf32> to vector<8x2185xf32>
    %c16_95 = arith.constant 16 : index
    %c0_96 = arith.constant 0 : index
    %103 = vector.load %arg8[%c16_95, %c0_96] : memref<216x2185xf32, #tpu.memory_space<vmem>>, vector<8x2185xf32>
    tpu.vector_store %arg8[%c16_95, %c0_96], %102 {strides = array<i32>} : memref<216x2185xf32, #tpu.memory_space<vmem>>, vector<8x2185xf32>,
    %104 = vector.extract_strided_slice %97 {offsets = [0, 32], sizes = [8, 2185], strides = [1, 1]} : vector<8x3277xf32> to vector<8x2185xf32>
    %c24_97 = arith.constant 24 : index
    %c0_98 = arith.constant 0 : index
    %105 = vector.load %arg8[%c24_97, %c0_98] : memref<216x2185xf32, #tpu.memory_space<vmem>>, vector<8x2185xf32>
    tpu.vector_store %arg8[%c24_97, %c0_98], %104 {strides = array<i32>} : memref<216x2185xf32, #tpu.memory_space<vmem>>, vector<8x2185xf32>,
    %106 = vector.extract_strided_slice %97 {offsets = [0, 34], sizes = [8, 2185], strides = [1, 1]} : vector<8x3277xf32> to vector<8x2185xf32>
    %c32_99 = arith.constant 32 : index
    %c0_100 = arith.constant 0 : index
    %107 = vector.load %arg8[%c32_99, %c0_100] : memref<216x2185xf32, #tpu.memory_space<vmem>>, vector<8x2185xf32>
    tpu.vector_store %arg8[%c32_99, %c0_100], %106 {strides = array<i32>} : memref<216x2185xf32, #tpu.memory_space<vmem>>, vector<8x2185xf32>,
    %108 = vector.extract_strided_slice %97 {offsets = [0, 36], sizes = [8, 2185], strides = [1, 1]} : vector<8x3277xf32> to vector<8x2185xf32>
    %c40_101 = arith.constant 40 : index
    %c0_102 = arith.constant 0 : index
    %109 = vector.load %arg8[%c40_101, %c0_102] : memref<216x2185xf32, #tpu.memory_space<vmem>>, vector<8x2185xf32>
    tpu.vector_store %arg8[%c40_101, %c0_102], %108 {strides = array<i32>} : memref<216x2185xf32, #tpu.memory_space<vmem>>, vector<8x2185xf32>,
    %110 = vector.extract_strided_slice %97 {offsets = [0, 64], sizes = [8, 2185], strides = [1, 1]} : vector<8x3277xf32> to vector<8x2185xf32>
    %c48_103 = arith.constant 48 : index
    %c0_104 = arith.constant 0 : index
    %111 = vector.load %arg8[%c48_103, %c0_104] : memref<216x2185xf32, #tpu.memory_space<vmem>>, vector<8x2185xf32>
    tpu.vector_store %arg8[%c48_103, %c0_104], %110 {strides = array<i32>} : memref<216x2185xf32, #tpu.memory_space<vmem>>, vector<8x2185xf32>,
    %112 = vector.extract_strided_slice %97 {offsets = [0, 66], sizes = [8, 2185], strides = [1, 1]} : vector<8x3277xf32> to vector<8x2185xf32>
    %c56_105 = arith.constant 56 : index
    %c0_106 = arith.constant 0 : index
    %113 = vector.load %arg8[%c56_105, %c0_106] : memref<216x2185xf32, #tpu.memory_space<vmem>>, vector<8x2185xf32>
    tpu.vector_store %arg8[%c56_105, %c0_106], %112 {strides = array<i32>} : memref<216x2185xf32, #tpu.memory_space<vmem>>, vector<8x2185xf32>,
    %114 = vector.extract_strided_slice %97 {offsets = [0, 68], sizes = [8, 2185], strides = [1, 1]} : vector<8x3277xf32> to vector<8x2185xf32>
    %c64_107 = arith.constant 64 : index
    %c0_108 = arith.constant 0 : index
    %115 = vector.load %arg8[%c64_107, %c0_108] : memref<216x2185xf32, #tpu.memory_space<vmem>>, vector<8x2185xf32>
    tpu.vector_store %arg8[%c64_107, %c0_108], %114 {strides = array<i32>} : memref<216x2185xf32, #tpu.memory_space<vmem>>, vector<8x2185xf32>,
    %116 = vector.extract_strided_slice %97 {offsets = [0, 512], sizes = [8, 2185], strides = [1, 1]} : vector<8x3277xf32> to vector<8x2185xf32>
    %c72_109 = arith.constant 72 : index
    %c0_110 = arith.constant 0 : index
    %117 = vector.load %arg8[%c72_109, %c0_110] : memref<216x2185xf32, #tpu.memory_space<vmem>>, vector<8x2185xf32>
    tpu.vector_store %arg8[%c72_109, %c0_110], %116 {strides = array<i32>} : memref<216x2185xf32, #tpu.memory_space<vmem>>, vector<8x2185xf32>,
    %118 = vector.extract_strided_slice %97 {offsets = [0, 514], sizes = [8, 2185], strides = [1, 1]} : vector<8x3277xf32> to vector<8x2185xf32>
    %c80_111 = arith.constant 80 : index
    %c0_112 = arith.constant 0 : index
    %119 = vector.load %arg8[%c80_111, %c0_112] : memref<216x2185xf32, #tpu.memory_space<vmem>>, vector<8x2185xf32>
    tpu.vector_store %arg8[%c80_111, %c0_112], %118 {strides = array<i32>} : memref<216x2185xf32, #tpu.memory_space<vmem>>, vector<8x2185xf32>,
    %120 = vector.extract_strided_slice %97 {offsets = [0, 516], sizes = [8, 2185], strides = [1, 1]} : vector<8x3277xf32> to vector<8x2185xf32>
    %c88_113 = arith.constant 88 : index
    %c0_114 = arith.constant 0 : index
    %121 = vector.load %arg8[%c88_113, %c0_114] : memref<216x2185xf32, #tpu.memory_space<vmem>>, vector<8x2185xf32>
    tpu.vector_store %arg8[%c88_113, %c0_114], %120 {strides = array<i32>} : memref<216x2185xf32, #tpu.memory_space<vmem>>, vector<8x2185xf32>,
    %122 = vector.extract_strided_slice %97 {offsets = [0, 544], sizes = [8, 2185], strides = [1, 1]} : vector<8x3277xf32> to vector<8x2185xf32>
    %c96_115 = arith.constant 96 : index
    %c0_116 = arith.constant 0 : index
    %123 = vector.load %arg8[%c96_115, %c0_116] : memref<216x2185xf32, #tpu.memory_space<vmem>>, vector<8x2185xf32>
    tpu.vector_store %arg8[%c96_115, %c0_116], %122 {strides = array<i32>} : memref<216x2185xf32, #tpu.memory_space<vmem>>, vector<8x2185xf32>,
    %124 = vector.extract_strided_slice %97 {offsets = [0, 546], sizes = [8, 2185], strides = [1, 1]} : vector<8x3277xf32> to vector<8x2185xf32>
    %c104_117 = arith.constant 104 : index
    %c0_118 = arith.constant 0 : index
    %125 = vector.load %arg8[%c104_117, %c0_118] : memref<216x2185xf32, #tpu.memory_space<vmem>>, vector<8x2185xf32>
    tpu.vector_store %arg8[%c104_117, %c0_118], %124 {strides = array<i32>} : memref<216x2185xf32, #tpu.memory_space<vmem>>, vector<8x2185xf32>,
    %126 = vector.extract_strided_slice %97 {offsets = [0, 548], sizes = [8, 2185], strides = [1, 1]} : vector<8x3277xf32> to vector<8x2185xf32>
    %c112 = arith.constant 112 : index
    %c0_119 = arith.constant 0 : index
    %127 = vector.load %arg8[%c112, %c0_119] : memref<216x2185xf32, #tpu.memory_space<vmem>>, vector<8x2185xf32>
    tpu.vector_store %arg8[%c112, %c0_119], %126 {strides = array<i32>} : memref<216x2185xf32, #tpu.memory_space<vmem>>, vector<8x2185xf32>,
    %128 = vector.extract_strided_slice %97 {offsets = [0, 576], sizes = [8, 2185], strides = [1, 1]} : vector<8x3277xf32> to vector<8x2185xf32>
    %c120 = arith.constant 120 : index
    %c0_120 = arith.constant 0 : index
    %129 = vector.load %arg8[%c120, %c0_120] : memref<216x2185xf32, #tpu.memory_space<vmem>>, vector<8x2185xf32>
    tpu.vector_store %arg8[%c120, %c0_120], %128 {strides = array<i32>} : memref<216x2185xf32, #tpu.memory_space<vmem>>, vector<8x2185xf32>,
    %130 = vector.extract_strided_slice %97 {offsets = [0, 578], sizes = [8, 2185], strides = [1, 1]} : vector<8x3277xf32> to vector<8x2185xf32>
    %c128 = arith.constant 128 : index
    %c0_121 = arith.constant 0 : index
    %131 = vector.load %arg8[%c128, %c0_121] : memref<216x2185xf32, #tpu.memory_space<vmem>>, vector<8x2185xf32>
    tpu.vector_store %arg8[%c128, %c0_121], %130 {strides = array<i32>} : memref<216x2185xf32, #tpu.memory_space<vmem>>, vector<8x2185xf32>,
    %132 = vector.extract_strided_slice %97 {offsets = [0, 580], sizes = [8, 2185], strides = [1, 1]} : vector<8x3277xf32> to vector<8x2185xf32>
    %c136 = arith.constant 136 : index
    %c0_122 = arith.constant 0 : index
    %133 = vector.load %arg8[%c136, %c0_122] : memref<216x2185xf32, #tpu.memory_space<vmem>>, vector<8x2185xf32>
    tpu.vector_store %arg8[%c136, %c0_122], %132 {strides = array<i32>} : memref<216x2185xf32, #tpu.memory_space<vmem>>, vector<8x2185xf32>,
    %134 = vector.extract_strided_slice %97 {offsets = [0, 1024], sizes = [8, 2185], strides = [1, 1]} : vector<8x3277xf32> to vector<8x2185xf32>
    %c144 = arith.constant 144 : index
    %c0_123 = arith.constant 0 : index
    %135 = vector.load %arg8[%c144, %c0_123] : memref<216x2185xf32, #tpu.memory_space<vmem>>, vector<8x2185xf32>
    tpu.vector_store %arg8[%c144, %c0_123], %134 {strides = array<i32>} : memref<216x2185xf32, #tpu.memory_space<vmem>>, vector<8x2185xf32>,
    %136 = vector.extract_strided_slice %97 {offsets = [0, 1026], sizes = [8, 2185], strides = [1, 1]} : vector<8x3277xf32> to vector<8x2185xf32>
    %c152 = arith.constant 152 : index
    %c0_124 = arith.constant 0 : index
    %137 = vector.load %arg8[%c152, %c0_124] : memref<216x2185xf32, #tpu.memory_space<vmem>>, vector<8x2185xf32>
    tpu.vector_store %arg8[%c152, %c0_124], %136 {strides = array<i32>} : memref<216x2185xf32, #tpu.memory_space<vmem>>, vector<8x2185xf32>,
    %138 = vector.extract_strided_slice %97 {offsets = [0, 1028], sizes = [8, 2185], strides = [1, 1]} : vector<8x3277xf32> to vector<8x2185xf32>
    %c160 = arith.constant 160 : index
    %c0_125 = arith.constant 0 : index
    %139 = vector.load %arg8[%c160, %c0_125] : memref<216x2185xf32, #tpu.memory_space<vmem>>, vector<8x2185xf32>
    tpu.vector_store %arg8[%c160, %c0_125], %138 {strides = array<i32>} : memref<216x2185xf32, #tpu.memory_space<vmem>>, vector<8x2185xf32>,
    %140 = vector.extract_strided_slice %97 {offsets = [0, 1056], sizes = [8, 2185], strides = [1, 1]} : vector<8x3277xf32> to vector<8x2185xf32>
    %c168 = arith.constant 168 : index
    %c0_126 = arith.constant 0 : index
    %141 = vector.load %arg8[%c168, %c0_126] : memref<216x2185xf32, #tpu.memory_space<vmem>>, vector<8x2185xf32>
    tpu.vector_store %arg8[%c168, %c0_126], %140 {strides = array<i32>} : memref<216x2185xf32, #tpu.memory_space<vmem>>, vector<8x2185xf32>,
    %142 = vector.extract_strided_slice %97 {offsets = [0, 1058], sizes = [8, 2185], strides = [1, 1]} : vector<8x3277xf32> to vector<8x2185xf32>
    %c176 = arith.constant 176 : index
    %c0_127 = arith.constant 0 : index
    %143 = vector.load %arg8[%c176, %c0_127] : memref<216x2185xf32, #tpu.memory_space<vmem>>, vector<8x2185xf32>
    tpu.vector_store %arg8[%c176, %c0_127], %142 {strides = array<i32>} : memref<216x2185xf32, #tpu.memory_space<vmem>>, vector<8x2185xf32>,
    %144 = vector.extract_strided_slice %97 {offsets = [0, 1060], sizes = [8, 2185], strides = [1, 1]} : vector<8x3277xf32> to vector<8x2185xf32>
    %c184 = arith.constant 184 : index
    %c0_128 = arith.constant 0 : index
    %145 = vector.load %arg8[%c184, %c0_128] : memref<216x2185xf32, #tpu.memory_space<vmem>>, vector<8x2185xf32>
    tpu.vector_store %arg8[%c184, %c0_128], %144 {strides = array<i32>} : memref<216x2185xf32, #tpu.memory_space<vmem>>, vector<8x2185xf32>,
    %146 = vector.extract_strided_slice %97 {offsets = [0, 1088], sizes = [8, 2185], strides = [1, 1]} : vector<8x3277xf32> to vector<8x2185xf32>
    %c192 = arith.constant 192 : index
    %c0_129 = arith.constant 0 : index
    %147 = vector.load %arg8[%c192, %c0_129] : memref<216x2185xf32, #tpu.memory_space<vmem>>, vector<8x2185xf32>
    tpu.vector_store %arg8[%c192, %c0_129], %146 {strides = array<i32>} : memref<216x2185xf32, #tpu.memory_space<vmem>>, vector<8x2185xf32>,
    %148 = vector.extract_strided_slice %97 {offsets = [0, 1090], sizes = [8, 2185], strides = [1, 1]} : vector<8x3277xf32> to vector<8x2185xf32>
    %c200 = arith.constant 200 : index
    %c0_130 = arith.constant 0 : index
    %149 = vector.load %arg8[%c200, %c0_130] : memref<216x2185xf32, #tpu.memory_space<vmem>>, vector<8x2185xf32>
    tpu.vector_store %arg8[%c200, %c0_130], %148 {strides = array<i32>} : memref<216x2185xf32, #tpu.memory_space<vmem>>, vector<8x2185xf32>,
    %150 = vector.extract_strided_slice %97 {offsets = [0, 1092], sizes = [8, 2185], strides = [1, 1]} : vector<8x3277xf32> to vector<8x2185xf32>
    %c208 = arith.constant 208 : index
    %c0_131 = arith.constant 0 : index
    %151 = vector.load %arg8[%c208, %c0_131] : memref<216x2185xf32, #tpu.memory_space<vmem>>, vector<8x2185xf32>
    tpu.vector_store %arg8[%c208, %c0_131], %150 {strides = array<i32>} : memref<216x2185xf32, #tpu.memory_space<vmem>>, vector<8x2185xf32>,
    %c0_132 = arith.constant 0 : index
    %c0_133 = arith.constant 0 : index
    %152 = vector.load %arg4[%c0_132, %c0_133] : memref<16x216xf32, #tpu.memory_space<vmem>>, vector<16x216xf32>
    %c0_134 = arith.constant 0 : index
    %c0_135 = arith.constant 0 : index
    %153 = vector.load %arg8[%c0_134, %c0_135] : memref<216x2185xf32, #tpu.memory_space<vmem>>, vector<216x2185xf32>
    %cst_136 = arith.constant dense<0.000000e+00> : vector<16x2185xf32>
    %154 = tpu.matmul %152, %153, %cst_136 {dimension_numbers = #tpu.dot_dimension_numbers<[1], [0], [0], [1], [0, 0, 1, 1], [], []>} : vector<16x216xf32>, vector<216x2185xf32>, vector<16x2185xf32> -> vector<16x2185xf32>
    %c0_137 = arith.constant 0 : index
    %c0_138 = arith.constant 0 : index
    %155 = vector.load %arg5[%c0_137, %c0_138] : memref<16x1xf32, #tpu.memory_space<vmem>>, vector<16x1xf32>
    %156 = vector.broadcast %155 : vector<16x1xf32> to vector<16x2185xf32>
    %157 = arith.addf %154, %156 : vector<16x2185xf32>
    %cst_139 = arith.constant 0.000000e+00 : f32
    %158 = vector.broadcast %cst_139 : f32 to vector<16x2185xf32>
    %159 = arith.maximumf %157, %158 : vector<16x2185xf32>
    %160 = vector.extract_strided_slice %159 {offsets = [0, 0], sizes = [16, 2183], strides = [1, 1]} : vector<16x2185xf32> to vector<16x2183xf32>
    %161 = vector.extract_strided_slice %159 {offsets = [0, 2], sizes = [16, 2183], strides = [1, 1]} : vector<16x2185xf32> to vector<16x2183xf32>
    %162 = arith.maximumf %160, %161 : vector<16x2183xf32>
    %163 = vector.extract_strided_slice %162 {offsets = [0, 0], sizes = [16, 2151], strides = [1, 1]} : vector<16x2183xf32> to vector<16x2151xf32>
    %164 = vector.extract_strided_slice %162 {offsets = [0, 32], sizes = [16, 2151], strides = [1, 1]} : vector<16x2183xf32> to vector<16x2151xf32>
    %165 = arith.maximumf %163, %164 : vector<16x2151xf32>
    %166 = vector.extract_strided_slice %165 {offsets = [0, 0], sizes = [16, 1639], strides = [1, 1]} : vector<16x2151xf32> to vector<16x1639xf32>
    %167 = vector.extract_strided_slice %165 {offsets = [0, 512], sizes = [16, 1639], strides = [1, 1]} : vector<16x2151xf32> to vector<16x1639xf32>
    %168 = arith.maximumf %166, %167 : vector<16x1639xf32>
    %169 = vector.extract_strided_slice %168 {offsets = [0, 0], sizes = [16, 1], strides = [1, 1]} : vector<16x1639xf32> to vector<16x1xf32>
    %170 = vector.extract_strided_slice %168 {offsets = [0, 4], sizes = [16, 1], strides = [1, 1]} : vector<16x1639xf32> to vector<16x1xf32>
    %171 = vector.extract_strided_slice %168 {offsets = [0, 64], sizes = [16, 1], strides = [1, 1]} : vector<16x1639xf32> to vector<16x1xf32>
    %172 = vector.extract_strided_slice %168 {offsets = [0, 68], sizes = [16, 1], strides = [1, 1]} : vector<16x1639xf32> to vector<16x1xf32>
    %173 = vector.extract_strided_slice %168 {offsets = [0, 1024], sizes = [16, 1], strides = [1, 1]} : vector<16x1639xf32> to vector<16x1xf32>
    %174 = vector.extract_strided_slice %168 {offsets = [0, 1028], sizes = [16, 1], strides = [1, 1]} : vector<16x1639xf32> to vector<16x1xf32>
    %175 = vector.extract_strided_slice %168 {offsets = [0, 1088], sizes = [16, 1], strides = [1, 1]} : vector<16x1639xf32> to vector<16x1xf32>
    %176 = vector.extract_strided_slice %168 {offsets = [0, 1092], sizes = [16, 1], strides = [1, 1]} : vector<16x1639xf32> to vector<16x1xf32>
    %177 = tpu.concatenate %169, %170, %171, %172, %173, %174, %175, %176 in 1 : vector<16x1xf32>, vector<16x1xf32>, vector<16x1xf32>, vector<16x1xf32>, vector<16x1xf32>, vector<16x1xf32>, vector<16x1xf32>, vector<16x1xf32> -> vector<16x8xf32>
    %c0_140 = arith.constant 0 : index
    %c0_141 = arith.constant 0 : index
    %c0_142 = arith.constant 0 : index
    %178 = vector.load %arg6[%c0_140, %c0_141, %c0_142] : memref<1x16x8xf32, #tpu.memory_space<vmem>>, vector<1x16x8xf32>
    %179 = vector.shape_cast %178 : vector<1x16x8xf32> to vector<16x8xf32>
    %180 = vector.shape_cast %177 : vector<16x8xf32> to vector<1x16x8xf32>
    tpu.vector_store %arg6[%c0_140, %c0_141, %c0_142], %180 {strides = array<i32>} : memref<1x16x8xf32, #tpu.memory_space<vmem>>, vector<1x16x8xf32>,
    return
  }
  func.func @transform_0(%arg0: i32) -> (i32, i32, i32) {
    %c0_i32 = arith.constant 0 : i32
    %c0_i32_0 = arith.constant 0 : i32
    %c0_i32_1 = arith.constant 0 : i32
    return %arg0, %c0_i32, %c0_i32_0 : i32, i32, i32
  }
  func.func @transform_1(%arg0: i32) -> (i32, i32) {
    %c0_i32 = arith.constant 0 : i32
    %c0_i32_0 = arith.constant 0 : i32
    %c0_i32_1 = arith.constant 0 : i32
    return %c0_i32, %c0_i32_0 : i32, i32
  }
  func.func @transform_2(%arg0: i32) -> (i32, i32) {
    %c0_i32 = arith.constant 0 : i32
    %c0_i32_0 = arith.constant 0 : i32
    %c0_i32_1 = arith.constant 0 : i32
    return %c0_i32, %c0_i32_0 : i32, i32
  }
  func.func @transform_3(%arg0: i32) -> (i32, i32) {
    %c0_i32 = arith.constant 0 : i32
    %c0_i32_0 = arith.constant 0 : i32
    %c0_i32_1 = arith.constant 0 : i32
    return %c0_i32, %c0_i32_0 : i32, i32
  }
  func.func @transform_4(%arg0: i32) -> (i32, i32) {
    %c0_i32 = arith.constant 0 : i32
    %c0_i32_0 = arith.constant 0 : i32
    %c0_i32_1 = arith.constant 0 : i32
    return %c0_i32, %c0_i32_0 : i32, i32
  }
  func.func @transform_5(%arg0: i32) -> (i32, i32, i32) {
    %c0_i32 = arith.constant 0 : i32
    %c0_i32_0 = arith.constant 0 : i32
    %c0_i32_1 = arith.constant 0 : i32
    return %arg0, %c0_i32, %c0_i32_0 : i32, i32, i32
  }
}

</mosaic_0001>

<bundles_post_ra>
// kernel: conv3d_forward.1
= control target key start
LH: loop header
LB: loop body
LE: loop exit
PB: predicated region body
PF: predicated region fallthrough
CT: control target
= control target key end

     0   :  { %s9768_s18 = smov 0   ;;  %s15202_s0 = inlined_call_operand.vmem [shape: f32[2,4,4096], index: 0, kind: input, shape index: {}]   ;;  %s15203_s1 = inlined_call_operand.vmem [shape: f32[8,108], index: 1, kind: input, shape index: {}]   ;;  %s15204_s2 = inlined_call_operand.vmem [shape: f32[8,1], index: 2, kind: input, shape index: {}]   ;;  %s15205_s3 = inlined_call_operand.vmem [shape: f32[16,216], index: 3, kind: input, shape index: {}]   ;;  %s15206_s4 = inlined_call_operand.vmem [shape: f32[16,1], index: 4, kind: input, shape index: {}]   ;;  %s15207_s5 = inlined_call_operand.vmem [shape: f32[2,16,8], index: 5, kind: output, shape index: {}]  }
   0x1 LB: > { %s9467_s19 = sadd.s32 4294967295, %s9714_s18   ;;  %p9471_p0 = scmp.ge.s32.totalorder %s9714_s18, 1  ;;  %s9714_s18 = sphi %s9768_s18, %s15_s18  }
   0x2   : > { %p187_p1 = scmp.lt.s32.totalorder %s9714_s18, 3 }
   0x4   : > { %p188_p2 = pnand %p9471_p0, %p187_p1 }
   0x6   : > { %191 = sbr.rel (%p188_p2) target bundleno = 2988 (0xbac), region = 40 }
   0xb   : > { %p215_p3 = scmp.lt.s32.totalorder %s9467_s19, 1  ;;  %s9716_s24 = smov 127   ;;  %vm308_vm0 = vcmask 764928   ;;  %vm408_vm1 = vcmask 1039360   ;;  %vm491_vm2 = vcmask 769028   ;;  %vm591_vm3 = vcmask 1031168  }
   0xc   : > { %s9717_s25 = smov 126   ;;  %s9718_s26 = smov 112   ;;  %vm773_vm4 = vcmask 916480   ;;  %vm955_vm5 = vcmask 908288   ;;  %vm1137_vm6 = vcmask 900096   ;;  %vm1319_vm7 = vcmask 785408  }
   0xd   : > { %s15215_s19 = smov (!%p215_p3, %s9467_s19), 1  ;;  %s9719_s27 = smov 111   ;;  %vm1501_vm8 = vcmask 777216   ;;  %vm1683_vm9 = vcmask 769024   ;;  %vm5234_vm10 = vcmask 1043456   ;;  %vm5230_vm11 = vcmask 883712  }
   0xe   : > { %s9536_s20 = sshll.u32 %s15215_s19, 7  ;;  %s9720_s28 = smov 110   ;;  %vm7221_vm12 = vcmask 523264   ;;  %vm7131_vm13 = vcmask 752640   ;;  %vm6863_vm14 = vcmask 1014784   ;;  %vm7401_vm15 = vcmask 490496  }
   0xf   : > { %s9782_s23 = scalar_lea.vmem %s15202_s0, %s9536_s20  ;;  %s9721_s29 = smov 96  }
  0x10   : > { %v9785_v0 = vld [vmem:[%s9782_s23 + $0x8] sm:$0xff]  ;;  %v9788_v1 = vld [vmem:[%s9782_s23] sm:$0xff]  ;;  %v9799_v3 = vld [vmem:[%s9782_s23 + $0x10] sm:$0xff]  ;;  %s9722_s30 = smov 95   ;;  %s9723_s6 = smov 94  }
  0x11   : > { %358 = vrot.lane.b32.xlu1 %v9785_v0, %s9716_s24  ;;  %354 = vrot.lane.b32.xlu0 %v9788_v1, %s9716_s24  ;;  %v9796_v2 = vcombine.low %v9788_v1, %v9788_v1  ;;  %v9803_v4 = vcombine.low %v9785_v0, %v9785_v0  ;;  %v9807_v5 = vcombine.low %v9799_v3, %v9799_v3  ;;  %v9814_v6 = vld [vmem:[%s9782_s23 + $0x10] sm:$0xff]  ;;  %v9817_v7 = vld [vmem:[%s9782_s23 + $0x8] sm:$0xff]  ;;  %s9726_s17 = smov 64   ;;  %s9727_s20 = smov 92  }
  0x12   : > { %v9820_v8 = vld [vmem:[%s9782_s23 + $0x18] sm:$0xff]  ;;  %3355 = vst [vmem:[#allocation2 + $0x7e0] sm:$0xf] %v9814_v6  ;;  %1824 = vst [vmem:[#allocation2 + $0x388] sm:$0xf0] %v9817_v7  ;;  %v225_v9 = vld [vmem:[%s9782_s23] sm:$0xff]  ;;  %v3327_v11 = vcombine.high %v9814_v6, %v9814_v6  ;;  %v254_v15 = vcombine.high %v9817_v7, %v9817_v7  ;;  %v10037_v55 = vcombine.high %v9788_v1, %v9788_v1 }
  0x13   : > { %v9826_v10 = vld [vmem:[%s9782_s23 + $0x18] sm:$0xff]  ;;  %1826 = vst [vmem:[#allocation2 + $0x398] sm:$0xf0] %v9814_v6  ;;  %283 = vst [vmem:[#allocation2 + $0x10] sm:$0xf] %v9817_v7  ;;  %v253_v12 = vcombine.high %v225_v9, %v225_v9  ;;  %v9842_v13 = vcombine.low %v9820_v8, %v9820_v8  ;;  %v9849_v16 = vld [vmem:[%s9782_s23 + $0x20] sm:$0xff]  ;;  %v10045_v56 = vcombine.high %v9785_v0, %v9785_v0 }
  0x14   : > { %285 = vst [vmem:[#allocation2 + $0x20] sm:$0xf] %v9814_v6  ;;  %281 = vst [vmem:[#allocation2] sm:$0xf] %v225_v9  ;;  %v3328_v14 = vcombine.high %v9826_v10, %v9826_v10  ;;  %v9852_v17 = vld [vmem:[%s9782_s23 + $0x20] sm:$0xff]  ;;  %v9865_v19 = vld [vmem:[%s9782_s23 + $0x28] sm:$0xff]  ;;  %v257_v20 = vcombine.high %v9849_v16, %v9849_v16  ;;  %v10053_v57 = vcombine.high %v9799_v3, %v9799_v3 }
  0x15   : > { %362 = vrot.lane.b32.xlu1 %v9799_v3, %s9716_s24  ;;  %352 = vrot.lane.b32.xlu0 %v9796_v2, %s9716_s24  ;;  %3357 = vst [vmem:[#allocation2 + $0x7f0] sm:$0xf] %v9826_v10  ;;  %1828 = vst [vmem:[#allocation2 + $0x3a8] sm:$0xf0] %v9826_v10  ;;  %v9862_v18 = vcombine.low %v9852_v17, %v9852_v17  ;;  %v9870_v21 = vld [vmem:[%s9782_s23 + $0x28] sm:$0xff]  ;;  %v9883_v23 = vld [vmem:[%s9782_s23 + $0x30] sm:$0xff]  ;;  %v258_v25 = vcombine.high %v9865_v19, %v9865_v19 }
  0x16   : > { %287 = vst [vmem:[#allocation2 + $0x30] sm:$0xf] %v9826_v10  ;;  %3356 = vst [vmem:[#allocation2 + $0x7e8] sm:$0xf] %v3327_v11  ;;  %v9880_v22 = vcombine.low %v9870_v21, %v9870_v21  ;;  %v9886_v24 = vld [vmem:[%s9782_s23 + $0x30] sm:$0xff]  ;;  %v3331_v26 = vcombine.high %v9883_v23, %v9883_v23  ;;  %v9904_v28 = vld [vmem:[%s9782_s23 + $0x38] sm:$0xff]  ;;  %v10061_v58 = vcombine.high %v9820_v8, %v9820_v8 }
  0x17   : > { %282 = vst [vmem:[#allocation2 + $0x8] sm:$0xf] %v253_v12  ;;  %286 = vst [vmem:[#allocation2 + $0x28] sm:$0xf] %v3327_v11  ;;  %v9901_v27 = vcombine.low %v9886_v24, %v9886_v24  ;;  %v9907_v29 = vld [vmem:[%s9782_s23 + $0x38] sm:$0xff]  ;;  %v9918_v30 = vcombine.low %v9904_v28, %v9904_v28  ;;  %v9923_v32 = vld [vmem:[%s9782_s23 + $0x40] sm:$0xff]  ;;  %v10069_v59 = vcombine.high %v9852_v17, %v9852_v17 }
  0x18   : > { %1830 = vst [vmem:[#allocation2 + $0x3b8] sm:$0xf0] %v9849_v16  ;;  %289 = vst [vmem:[#allocation2 + $0x40] sm:$0xf] %v9849_v16  ;;  %v3332_v31 = vcombine.high %v9907_v29, %v9907_v29  ;;  %v9926_v33 = vld [vmem:[%s9782_s23 + $0x40] sm:$0xff]  ;;  %v9937_v34 = vcombine.low %v9923_v32, %v9923_v32  ;;  %v9942_v36 = vld [vmem:[%s9782_s23 + $0x48] sm:$0xff]  ;;  %v10077_v60 = vcombine.high %v9870_v21, %v9870_v21 }
  0x19   : > { %356 = vrot.lane.b32.xlu1 %v9803_v4, %s9716_s24  ;;  %360 = vrot.lane.b32.xlu0 %v9807_v5, %s9716_s24  ;;  %3358 = vst [vmem:[#allocation2 + $0x7f8] sm:$0xf] %v3328_v14  ;;  %284 = vst [vmem:[#allocation2 + $0x18] sm:$0xf] %v254_v15  ;;  %v3333_v35 = vcombine.high %v9926_v33, %v9926_v33  ;;  %v9950_v37 = vcombine.low %v9942_v36, %v9942_v36  ;;  %v9953_v38 = vld [vmem:[%s9782_s23 + $0x50] sm:$0xff]  ;;  %v9956_v39 = vld [vmem:[%s9782_s23 + $0x48] sm:$0xff] }
  0x1a   : > { %288 = vst [vmem:[#allocation2 + $0x38] sm:$0xf] %v3328_v14  ;;  %1832 = vst [vmem:[#allocation2 + $0x3c8] sm:$0xf0] %v9865_v19  ;;  %v9966_v40 = vcombine.low %v9953_v38, %v9953_v38  ;;  %v262_v41 = vcombine.high %v9956_v39, %v9956_v39  ;;  %v9971_v42 = vld [vmem:[%s9782_s23 + $0x58] sm:$0xff]  ;;  %v9974_v43 = vld [vmem:[%s9782_s23 + $0x50] sm:$0xff]  ;;  %v10085_v61 = vcombine.high %v9886_v24, %v9886_v24 }
  0x1b   : > { %291 = vst [vmem:[#allocation2 + $0x50] sm:$0xf] %v9865_v19  ;;  %290 = vst [vmem:[#allocation2 + $0x48] sm:$0xf] %v257_v20  ;;  %v9985_v44 = vcombine.low %v9971_v42, %v9971_v42  ;;  %v3335_v45 = vcombine.high %v9974_v43, %v9974_v43  ;;  %v9990_v46 = vld [vmem:[%s9782_s23 + $0x60] sm:$0xff]  ;;  %v9993_v47 = vld [vmem:[%s9782_s23 + $0x58] sm:$0xff]  ;;  %v10093_v62 = vcombine.high %v9904_v28, %v9904_v28 }
  0x1c   : > { %3363 = vst [vmem:[#allocation2 + $0x820] sm:$0xf] %v9883_v23  ;;  %1834 = vst [vmem:[#allocation2 + $0x3d8] sm:$0xf0] %v9883_v23  ;;  %v10003_v48 = vcombine.low %v9990_v46, %v9990_v46  ;;  %v264_v49 = vcombine.high %v9993_v47, %v9993_v47  ;;  %v10008_v50 = vld [vmem:[%s9782_s23 + $0x68] sm:$0xff]  ;;  %v10011_v51 = vld [vmem:[%s9782_s23 + $0x60] sm:$0xff]  ;;  %v10101_v63 = vcombine.high %v9923_v32, %v9923_v32 }
  0x1d   : > { %366 = vrot.lane.b32.xlu1 %v9820_v8, %s9716_s24  ;;  %364 = vrot.lane.b32.xlu0 %v9842_v13, %s9716_s24  ;;  %293 = vst [vmem:[#allocation2 + $0x60] sm:$0xf] %v9883_v23  ;;  %292 = vst [vmem:[#allocation2 + $0x58] sm:$0xf] %v258_v25  ;;  %v10022_v52 = vcombine.low %v10008_v50, %v10008_v50  ;;  %v3337_v53 = vcombine.high %v10011_v51, %v10011_v51  ;;  %v10027_v54 = vld [vmem:[%s9782_s23 + $0x68] sm:$0xff]  ;;  %s9728_s21 = smov 124  }
  0x1e   : > { %3364 = vst [vmem:[#allocation2 + $0x828] sm:$0xf] %v3331_v26  ;;  %294 = vst [vmem:[#allocation2 + $0x68] sm:$0xf] %v3331_v26  ;;  %v10109_v9 = vcombine.high %v9942_v36, %v9942_v36  ;;  %v10117_v11 = vcombine.high %v9953_v38, %v9953_v38  ;;  %v10125_v12 = vcombine.high %v9971_v42, %v9971_v42  ;;  %s9729_s22 = smov 60   ;;  %s9731_s9 = smov 125  }
  0x1f   : > { %3365 = vst [vmem:[#allocation2 + $0x830] sm:$0xf] %v9907_v29  ;;  %1836 = vst [vmem:[#allocation2 + $0x3e8] sm:$0xf0] %v9907_v29  ;;  %v10133_v14 = vcombine.high %v9990_v46, %v9990_v46  ;;  %v10141_v15 = vcombine.high %v10008_v50, %v10008_v50  ;;  %v266_v20 = vcombine.high %v10027_v54, %v10027_v54  ;;  %s9732_s10 = smov 66   ;;  %s9733_s11 = smov 63  }
  0x20   : > { %295 = vst [vmem:[#allocation2 + $0x70] sm:$0xf] %v9907_v29  ;;  %3366 = vst [vmem:[#allocation2 + $0x838] sm:$0xf] %v3332_v31  ;;  %s9734_s12 = smov 4   ;;  %s9735_s13 = smov 1  }
  0x21   : > { %370 = vrot.lane.b32.xlu1 %v9852_v17, %s9716_s24  ;;  %368 = vrot.lane.b32.xlu0 %v9862_v18, %s9716_s24  ;;  %3367 = vst [vmem:[#allocation2 + $0x840] sm:$0xf] %v9926_v33  ;;  %1838 = vst [vmem:[#allocation2 + $0x3f8] sm:$0xf0] %v9926_v33  ;;  %s9736_s14 = smov 70   ;;  %s9737_s15 = smov 67  }
  0x22   : > { %296 = vst [vmem:[#allocation2 + $0x78] sm:$0xf] %v3332_v31  ;;  %297 = vst [vmem:[#allocation2 + $0x80] sm:$0xf] %v9926_v33 }
  0x23   : > { %3368 = vst [vmem:[#allocation2 + $0x848] sm:$0xf] %v3333_v35  ;;  %298 = vst [vmem:[#allocation2 + $0x88] sm:$0xf] %v3333_v35 }
  0x24   : > { %1840 = vst [vmem:[#allocation2 + $0x408] sm:$0xf0] %v9956_v39  ;;  %299 = vst [vmem:[#allocation2 + $0x90] sm:$0xf] %v9956_v39 }
  0x25   : > { %374 = vrot.lane.b32.xlu1 %v9870_v21, %s9716_s24  ;;  %372 = vrot.lane.b32.xlu0 %v9880_v22, %s9716_s24  ;;  %3371 = vst [vmem:[#allocation2 + $0x860] sm:$0xf] %v9974_v43  ;;  %1842 = vst [vmem:[#allocation2 + $0x418] sm:$0xf0] %v9974_v43 }
  0x26   : > { %300 = vst [vmem:[#allocation2 + $0x98] sm:$0xf] %v262_v41  ;;  %301 = vst [vmem:[#allocation2 + $0xa0] sm:$0xf] %v9974_v43 }
  0x27   : > { %3372 = vst [vmem:[#allocation2 + $0x868] sm:$0xf] %v3335_v45  ;;  %1844 = vst [vmem:[#allocation2 + $0x428] sm:$0xf0] %v9993_v47 }
  0x28   : > { %302 = vst [vmem:[#allocation2 + $0xa8] sm:$0xf] %v3335_v45  ;;  %303 = vst [vmem:[#allocation2 + $0xb0] sm:$0xf] %v9993_v47 }
  0x29   : > { %378 = vrot.lane.b32.xlu1 %v9886_v24, %s9716_s24  ;;  %376 = vrot.lane.b32.xlu0 %v9901_v27, %s9716_s24  ;;  %15210 = vst [vmem:[#allocation4_spill] sm:$0xff] %v10011_v51  ;;  %3375 = vst [vmem:[#allocation2 + $0x880] sm:$0xf] %v10011_v51 }
  0x2a   : > { %1846 = vst [vmem:[#allocation2 + $0x438] sm:$0xf0] %v10011_v51  ;;  %304 = vst [vmem:[#allocation2 + $0xb8] sm:$0xf] %v264_v49 }
  0x2b   : > { %305 = vst [vmem:[#allocation2 + $0xc0] sm:$0xf] %v10011_v51  ;;  %3376 = vst [vmem:[#allocation2 + $0x888] sm:$0xf] %v3337_v53 }
  0x2c   : > { %15211 = vst [vmem:[#allocation5_spill] sm:$0xff] %v10027_v54  ;;  %306 = vst [vmem:[#allocation2 + $0xc8] sm:$0xf] %v3337_v53 }
  0x2d   : > { %382 = vrot.lane.b32.xlu1 %v9904_v28, %s9716_s24  ;;  %380 = vrot.lane.b32.xlu0 %v9918_v30, %s9716_s24  ;;  %1848 = vst [vmem:[#allocation2 + $0x448] sm:$0xf0] %v10027_v54  ;;  %307 = vst [vmem:[#allocation2 + $0xd0] sm:$0xf] %v10027_v54 }
  0x2e   : > { %309 = vst.msk [vmem:[#allocation2 + $0xd8] sm:$0xf] %vm308_vm0, %v266_v20 }
  0x31   : > { %386 = vrot.lane.b32.xlu1 %v9923_v32, %s9716_s24  ;;  %384 = vrot.lane.b32.xlu0 %v9937_v34, %s9716_s24 }
  0x35   : > { %390 = vrot.lane.b32.xlu1 %v9942_v36, %s9716_s24  ;;  %388 = vrot.lane.b32.xlu0 %v9950_v37, %s9716_s24 }
  0x39   : > { %394 = vrot.lane.b32.xlu1 %v9953_v38, %s9716_s24  ;;  %392 = vrot.lane.b32.xlu0 %v9966_v40, %s9716_s24 }
  0x3d   : > { %398 = vrot.lane.b32.xlu1 %v9971_v42, %s9716_s24  ;;  %396 = vrot.lane.b32.xlu0 %v9985_v44, %s9716_s24 }
  0x41   : > { %402 = vrot.lane.b32.xlu1 %v9990_v46, %s9716_s24  ;;  %400 = vrot.lane.b32.xlu0 %v10003_v48, %s9716_s24 }
  0x45   : > { %406 = vrot.lane.b32.xlu1 %v10008_v50, %s9716_s24  ;;  %404 = vrot.lane.b32.xlu0 %v10022_v52, %s9716_s24 }
  0x49   : > { %537 = vrot.lane.b32.xlu1 %v10037_v55, %s9717_s25  ;;  %535 = vrot.lane.b32.xlu0 %v9788_v1, %s9717_s25 }
  0x4d   : > { %541 = vrot.lane.b32.xlu1 %v10045_v56, %s9717_s25  ;;  %539 = vrot.lane.b32.xlu0 %v9785_v0, %s9717_s25 }
  0x51   : > { %545 = vrot.lane.b32.xlu1 %v10053_v57, %s9717_s25  ;;  %543 = vrot.lane.b32.xlu0 %v9799_v3, %s9717_s25 }
  0x55   : > { %549 = vrot.lane.b32.xlu1 %v10061_v58, %s9717_s25  ;;  %547 = vrot.lane.b32.xlu0 %v9820_v8, %s9717_s25 }
  0x59   : > { %553 = vrot.lane.b32.xlu1 %v10069_v59, %s9717_s25  ;;  %551 = vrot.lane.b32.xlu0 %v9852_v17, %s9717_s25 }
  0x5d   : > { %557 = vrot.lane.b32.xlu1 %v10077_v60, %s9717_s25  ;;  %555 = vrot.lane.b32.xlu0 %v9870_v21, %s9717_s25 }
  0x61   : > { %561 = vrot.lane.b32.xlu1 %v10085_v61, %s9717_s25  ;;  %559 = vrot.lane.b32.xlu0 %v9886_v24, %s9717_s25 }
  0x65   : > { %565 = vrot.lane.b32.xlu1 %v10093_v62, %s9717_s25  ;;  %563 = vrot.lane.b32.xlu0 %v9904_v28, %s9717_s25 }
  0x69   : > { %569 = vrot.lane.b32.xlu1 %v10101_v63, %s9717_s25  ;;  %567 = vrot.lane.b32.xlu0 %v9923_v32, %s9717_s25 }
  0x6d   : > { %573 = vrot.lane.b32.xlu1 %v10109_v9, %s9717_s25  ;;  %571 = vrot.lane.b32.xlu0 %v9942_v36, %s9717_s25 }
  0x71   : > { %577 = vrot.lane.b32.xlu1 %v10117_v11, %s9717_s25  ;;  %575 = vrot.lane.b32.xlu0 %v9953_v38, %s9717_s25 }
  0x75   : > { %581 = vrot.lane.b32.xlu1 %v10125_v12, %s9717_s25  ;;  %579 = vrot.lane.b32.xlu0 %v9971_v42, %s9717_s25 }
  0x79   : > { %585 = vrot.lane.b32.xlu1 %v10133_v14, %s9717_s25  ;;  %583 = vrot.lane.b32.xlu0 %v9990_v46, %s9717_s25 }
  0x7d   : > { %589 = vrot.lane.b32.xlu1 %v10141_v15, %s9717_s25  ;;  %587 = vrot.lane.b32.xlu0 %v10008_v50, %s9717_s25 }
  0x81   : > { %719 = vrot.lane.b32.xlu1 %v9788_v1, %s9718_s26  ;;  %717 = vrot.lane.b32.xlu0 %v9796_v2, %s9718_s26 }
  0x83   : > { %v359_v25 = vpop.permute.xlu1 %358  ;;  %v355_v26 = vpop.permute.xlu0 %354 }
  0x85   : > { %723 = vrot.lane.b32.xlu1 %v9785_v0, %s9718_s26  ;;  %721 = vrot.lane.b32.xlu0 %v9803_v4, %s9718_s26 }
  0x87   : > { %v363_v31 = vpop.permute.xlu1 %362  ;;  %v353_v35 = vpop.permute.xlu0 %352 }
  0x88   : > { %v409_v41 = vsel %vm408_vm1, %v353_v35, %v355_v26 }
  0x89   : > { %464 = vst [vmem:[#allocation2] sm:$0xf0] %v409_v41  ;;  %727 = vrot.lane.b32.xlu1 %v9799_v3, %s9718_s26  ;;  %725 = vrot.lane.b32.xlu0 %v9807_v5, %s9718_s26 }
  0x8b   : > { %v357_v45 = vpop.permute.xlu1 %356  ;;  %v361_v49 = vpop.permute.xlu0 %360 }
  0x8c   : > { %v410_v53 = vsel %vm408_vm1, %v355_v26, %v357_v45  ;;  %v411_v20 = vsel %vm408_vm1, %v357_v45, %v359_v25  ;;  %v412_v54 = vsel %vm408_vm1, %v359_v25, %v361_v49  ;;  %v413_v51 = vsel %vm408_vm1, %v361_v49, %v363_v31 }
  0x8d   : > { %465 = vst [vmem:[#allocation2 + $0x8] sm:$0xf0] %v410_v53  ;;  %466 = vst [vmem:[#allocation2 + $0x10] sm:$0xf0] %v411_v20  ;;  %731 = vrot.lane.b32.xlu1 %v9820_v8, %s9718_s26  ;;  %729 = vrot.lane.b32.xlu0 %v9842_v13, %s9718_s26 }
  0x8e   : > { %467 = vst [vmem:[#allocation2 + $0x18] sm:$0xf0] %v412_v54  ;;  %468 = vst [vmem:[#allocation2 + $0x20] sm:$0xf0] %v413_v51 }
  0x8f   : > { %v367_v35 = vpop.permute.xlu1 %366  ;;  %v365_v41 = vpop.permute.xlu0 %364 }
  0x90   : > { %v414_v26 = vsel %vm408_vm1, %v363_v31, %v365_v41  ;;  %v415_v45 = vsel %vm408_vm1, %v365_v41, %v367_v35 }
  0x91   : > { %469 = vst [vmem:[#allocation2 + $0x28] sm:$0xf0] %v414_v26  ;;  %470 = vst [vmem:[#allocation2 + $0x30] sm:$0xf0] %v415_v45  ;;  %735 = vrot.lane.b32.xlu1 %v9852_v17, %s9718_s26  ;;  %733 = vrot.lane.b32.xlu0 %v9862_v18, %s9718_s26 }
  0x93   : > { %v371_v51 = vpop.permute.xlu1 %370  ;;  %v369_v54 = vpop.permute.xlu0 %368 }
  0x94   : > { %v416_v25 = vsel %vm408_vm1, %v367_v35, %v369_v54  ;;  %v417_v49 = vsel %vm408_vm1, %v369_v54, %v371_v51 }
  0x95   : > { %471 = vst [vmem:[#allocation2 + $0x38] sm:$0xf0] %v416_v25  ;;  %472 = vst [vmem:[#allocation2 + $0x40] sm:$0xf0] %v417_v49  ;;  %739 = vrot.lane.b32.xlu1 %v9870_v21, %s9718_s26  ;;  %737 = vrot.lane.b32.xlu0 %v9880_v22, %s9718_s26 }
  0x97   : > { %v375_v31 = vpop.permute.xlu1 %374  ;;  %v373_v53 = vpop.permute.xlu0 %372 }
  0x98   : > { %v418_v20 = vsel %vm408_vm1, %v371_v51, %v373_v53  ;;  %v419_v41 = vsel %vm408_vm1, %v373_v53, %v375_v31 }
  0x99   : > { %473 = vst [vmem:[#allocation2 + $0x48] sm:$0xf0] %v418_v20  ;;  %474 = vst [vmem:[#allocation2 + $0x50] sm:$0xf0] %v419_v41  ;;  %743 = vrot.lane.b32.xlu1 %v9886_v24, %s9718_s26  ;;  %741 = vrot.lane.b32.xlu0 %v9901_v27, %s9718_s26 }
  0x9b   : > { %v379_v35 = vpop.permute.xlu1 %378  ;;  %v377_v26 = vpop.permute.xlu0 %376 }
  0x9c   : > { %v420_v45 = vsel %vm408_vm1, %v375_v31, %v377_v26  ;;  %v421_v54 = vsel %vm408_vm1, %v377_v26, %v379_v35 }
  0x9d   : > { %475 = vst [vmem:[#allocation2 + $0x58] sm:$0xf0] %v420_v45  ;;  %476 = vst [vmem:[#allocation2 + $0x60] sm:$0xf0] %v421_v54  ;;  %747 = vrot.lane.b32.xlu1 %v9904_v28, %s9718_s26  ;;  %745 = vrot.lane.b32.xlu0 %v9918_v30, %s9718_s26 }
  0x9f   : > { %v383_v51 = vpop.permute.xlu1 %382  ;;  %v381_v25 = vpop.permute.xlu0 %380 }
  0xa0   : > { %v422_v49 = vsel %vm408_vm1, %v379_v35, %v381_v25  ;;  %v423_v53 = vsel %vm408_vm1, %v381_v25, %v383_v51 }
  0xa1   : > { %477 = vst [vmem:[#allocation2 + $0x68] sm:$0xf0] %v422_v49  ;;  %478 = vst [vmem:[#allocation2 + $0x70] sm:$0xf0] %v423_v53  ;;  %751 = vrot.lane.b32.xlu1 %v9923_v32, %s9718_s26  ;;  %749 = vrot.lane.b32.xlu0 %v9937_v34, %s9718_s26 }
  0xa3   : > { %v387_v31 = vpop.permute.xlu1 %386  ;;  %v385_v20 = vpop.permute.xlu0 %384 }
  0xa4   : > { %v424_v41 = vsel %vm408_vm1, %v383_v51, %v385_v20  ;;  %v425_v26 = vsel %vm408_vm1, %v385_v20, %v387_v31 }
  0xa5   : > { %479 = vst [vmem:[#allocation2 + $0x78] sm:$0xf0] %v424_v41  ;;  %480 = vst [vmem:[#allocation2 + $0x80] sm:$0xf0] %v425_v26  ;;  %755 = vrot.lane.b32.xlu1 %v9942_v36, %s9718_s26  ;;  %753 = vrot.lane.b32.xlu0 %v9950_v37, %s9718_s26 }
  0xa7   : > { %v391_v35 = vpop.permute.xlu1 %390  ;;  %v389_v45 = vpop.permute.xlu0 %388 }
  0xa8   : > { %v426_v54 = vsel %vm408_vm1, %v387_v31, %v389_v45  ;;  %v427_v25 = vsel %vm408_vm1, %v389_v45, %v391_v35 }
  0xa9   : > { %481 = vst [vmem:[#allocation2 + $0x88] sm:$0xf0] %v426_v54  ;;  %482 = vst [vmem:[#allocation2 + $0x90] sm:$0xf0] %v427_v25  ;;  %759 = vrot.lane.b32.xlu1 %v9953_v38, %s9718_s26  ;;  %757 = vrot.lane.b32.xlu0 %v9966_v40, %s9718_s26 }
  0xab   : > { %v395_v51 = vpop.permute.xlu1 %394  ;;  %v393_v49 = vpop.permute.xlu0 %392 }
  0xac   : > { %v428_v53 = vsel %vm408_vm1, %v391_v35, %v393_v49  ;;  %v429_v20 = vsel %vm408_vm1, %v393_v49, %v395_v51 }
  0xad   : > { %483 = vst [vmem:[#allocation2 + $0x98] sm:$0xf0] %v428_v53  ;;  %484 = vst [vmem:[#allocation2 + $0xa0] sm:$0xf0] %v429_v20  ;;  %763 = vrot.lane.b32.xlu1 %v9971_v42, %s9718_s26  ;;  %761 = vrot.lane.b32.xlu0 %v9985_v44, %s9718_s26 }
  0xaf   : > { %v399_v31 = vpop.permute.xlu1 %398  ;;  %v397_v41 = vpop.permute.xlu0 %396 }
  0xb0   : > { %v430_v26 = vsel %vm408_vm1, %v395_v51, %v397_v41  ;;  %v431_v45 = vsel %vm408_vm1, %v397_v41, %v399_v31 }
  0xb1   : > { %485 = vst [vmem:[#allocation2 + $0xa8] sm:$0xf0] %v430_v26  ;;  %486 = vst [vmem:[#allocation2 + $0xb0] sm:$0xf0] %v431_v45  ;;  %767 = vrot.lane.b32.xlu1 %v9990_v46, %s9718_s26  ;;  %765 = vrot.lane.b32.xlu0 %v10003_v48, %s9718_s26 }
  0xb3   : > { %v403_v35 = vpop.permute.xlu1 %402  ;;  %v401_v54 = vpop.permute.xlu0 %400 }
  0xb4   : > { %v432_v25 = vsel %vm408_vm1, %v399_v31, %v401_v54  ;;  %v433_v49 = vsel %vm408_vm1, %v401_v54, %v403_v35 }
  0xb5   : > { %487 = vst [vmem:[#allocation2 + $0xb8] sm:$0xf0] %v432_v25  ;;  %488 = vst [vmem:[#allocation2 + $0xc0] sm:$0xf0] %v433_v49  ;;  %771 = vrot.lane.b32.xlu1 %v10008_v50, %s9718_s26  ;;  %769 = vrot.lane.b32.xlu0 %v10022_v52, %s9718_s26 }
  0xb7   : > { %v407_v51 = vpop.permute.xlu1 %406  ;;  %v405_v53 = vpop.permute.xlu0 %404 }
  0xb8   : > { %492 = vst.msk [vmem:[#allocation2 + $0xd8] sm:$0xf0] %vm491_vm2, %v407_v51  ;;  %v434_v20 = vsel %vm408_vm1, %v403_v35, %v405_v53  ;;  %v435_v41 = vsel %vm408_vm1, %v405_v53, %v407_v51 }
  0xb9   : > { %489 = vst [vmem:[#allocation2 + $0xc8] sm:$0xf0] %v434_v20  ;;  %490 = vst [vmem:[#allocation2 + $0xd0] sm:$0xf0] %v435_v41  ;;  %901 = vrot.lane.b32.xlu1 %v10037_v55, %s9719_s27  ;;  %899 = vrot.lane.b32.xlu0 %v9788_v1, %s9719_s27 }
  0xbb   : > { %v538_v31 = vpop.permute.xlu1 %537  ;;  %v536_v26 = vpop.permute.xlu0 %535 }
  0xbc   : > { %v592_v45 = vsel %vm591_vm3, %v536_v26, %v538_v31 }
  0xbd   : > { %647 = vst [vmem:[#allocation2 + $0xe0] sm:$0xf] %v592_v45  ;;  %905 = vrot.lane.b32.xlu1 %v10045_v56, %s9719_s27  ;;  %903 = vrot.lane.b32.xlu0 %v9785_v0, %s9719_s27 }
  0xbf   : > { %v542_v35 = vpop.permute.xlu1 %541  ;;  %v540_v54 = vpop.permute.xlu0 %539 }
  0xc0   : > { %v593_v25 = vsel %vm591_vm3, %v538_v31, %v540_v54  ;;  %v594_v55 = vsel %vm591_vm3, %v540_v54, %v542_v35 }
  0xc1   : > { %648 = vst [vmem:[#allocation2 + $0xe8] sm:$0xf] %v593_v25  ;;  %649 = vst [vmem:[#allocation2 + $0xf0] sm:$0xf] %v594_v55  ;;  %909 = vrot.lane.b32.xlu1 %v10053_v57, %s9719_s27  ;;  %907 = vrot.lane.b32.xlu0 %v9799_v3, %s9719_s27 }
  0xc3   : > { %v546_v49 = vpop.permute.xlu1 %545  ;;  %v544_v51 = vpop.permute.xlu0 %543 }
  0xc4   : > { %v595_v56 = vsel %vm591_vm3, %v542_v35, %v544_v51  ;;  %v596_v53 = vsel %vm591_vm3, %v544_v51, %v546_v49 }
  0xc5   : > { %650 = vst [vmem:[#allocation2 + $0xf8] sm:$0xf] %v595_v56  ;;  %651 = vst [vmem:[#allocation2 + $0x100] sm:$0xf] %v596_v53  ;;  %913 = vrot.lane.b32.xlu1 %v10061_v58, %s9719_s27  ;;  %911 = vrot.lane.b32.xlu0 %v9820_v8, %s9719_s27 }
  0xc7   : > { %v550_v20 = vpop.permute.xlu1 %549  ;;  %v548_v41 = vpop.permute.xlu0 %547 }
  0xc8   : > { %v597_v57 = vsel %vm591_vm3, %v546_v49, %v548_v41  ;;  %v598_v31 = vsel %vm591_vm3, %v548_v41, %v550_v20 }
  0xc9   : > { %652 = vst [vmem:[#allocation2 + $0x108] sm:$0xf] %v597_v57  ;;  %653 = vst [vmem:[#allocation2 + $0x110] sm:$0xf] %v598_v31  ;;  %917 = vrot.lane.b32.xlu1 %v10069_v59, %s9719_s27  ;;  %915 = vrot.lane.b32.xlu0 %v9852_v17, %s9719_s27 }
  0xcb   : > { %v554_v26 = vpop.permute.xlu1 %553  ;;  %v552_v45 = vpop.permute.xlu0 %551 }
  0xcc   : > { %v599_v58 = vsel %vm591_vm3, %v550_v20, %v552_v45  ;;  %v600_v35 = vsel %vm591_vm3, %v552_v45, %v554_v26 }
  0xcd   : > { %654 = vst [vmem:[#allocation2 + $0x118] sm:$0xf] %v599_v58  ;;  %655 = vst [vmem:[#allocation2 + $0x120] sm:$0xf] %v600_v35  ;;  %921 = vrot.lane.b32.xlu1 %v10077_v60, %s9719_s27  ;;  %919 = vrot.lane.b32.xlu0 %v9870_v21, %s9719_s27 }
  0xcf   : > { %v558_v54 = vpop.permute.xlu1 %557  ;;  %v556_v25 = vpop.permute.xlu0 %555 }
  0xd0   : > { %v601_v59 = vsel %vm591_vm3, %v554_v26, %v556_v25  ;;  %v602_v55 = vsel %vm591_vm3, %v556_v25, %v558_v54 }
  0xd1   : > { %656 = vst [vmem:[#allocation2 + $0x128] sm:$0xf] %v601_v59  ;;  %657 = vst [vmem:[#allocation2 + $0x130] sm:$0xf] %v602_v55  ;;  %925 = vrot.lane.b32.xlu1 %v10085_v61, %s9719_s27  ;;  %923 = vrot.lane.b32.xlu0 %v9886_v24, %s9719_s27 }
  0xd3   : > { %v562_v49 = vpop.permute.xlu1 %561  ;;  %v560_v51 = vpop.permute.xlu0 %559 }
  0xd4   : > { %v603_v60 = vsel %vm591_vm3, %v558_v54, %v560_v51  ;;  %v604_v56 = vsel %vm591_vm3, %v560_v51, %v562_v49 }
  0xd5   : > { %658 = vst [vmem:[#allocation2 + $0x138] sm:$0xf] %v603_v60  ;;  %659 = vst [vmem:[#allocation2 + $0x140] sm:$0xf] %v604_v56  ;;  %929 = vrot.lane.b32.xlu1 %v10093_v62, %s9719_s27  ;;  %927 = vrot.lane.b32.xlu0 %v9904_v28, %s9719_s27 }
  0xd7   : > { %v566_v53 = vpop.permute.xlu1 %565  ;;  %v564_v20 = vpop.permute.xlu0 %563 }
  0xd8   : > { %v605_v61 = vsel %vm591_vm3, %v562_v49, %v564_v20  ;;  %v606_v41 = vsel %vm591_vm3, %v564_v20, %v566_v53 }
  0xd9   : > { %660 = vst [vmem:[#allocation2 + $0x148] sm:$0xf] %v605_v61  ;;  %661 = vst [vmem:[#allocation2 + $0x150] sm:$0xf] %v606_v41  ;;  %933 = vrot.lane.b32.xlu1 %v10101_v63, %s9719_s27  ;;  %931 = vrot.lane.b32.xlu0 %v9923_v32, %s9719_s27 }
  0xdb   : > { %v570_v57 = vpop.permute.xlu1 %569  ;;  %v568_v31 = vpop.permute.xlu0 %567 }
  0xdc   : > { %v607_v62 = vsel %vm591_vm3, %v566_v53, %v568_v31  ;;  %v608_v26 = vsel %vm591_vm3, %v568_v31, %v570_v57 }
  0xdd   : > { %662 = vst [vmem:[#allocation2 + $0x158] sm:$0xf] %v607_v62  ;;  %663 = vst [vmem:[#allocation2 + $0x160] sm:$0xf] %v608_v26  ;;  %937 = vrot.lane.b32.xlu1 %v10109_v9, %s9719_s27  ;;  %935 = vrot.lane.b32.xlu0 %v9942_v36, %s9719_s27 }
  0xdf   : > { %v574_v45 = vpop.permute.xlu1 %573  ;;  %v572_v58 = vpop.permute.xlu0 %571 }
  0xe0   : > { %v609_v63 = vsel %vm591_vm3, %v570_v57, %v572_v58  ;;  %v610_v35 = vsel %vm591_vm3, %v572_v58, %v574_v45 }
  0xe1   : > { %664 = vst [vmem:[#allocation2 + $0x168] sm:$0xf] %v609_v63  ;;  %665 = vst [vmem:[#allocation2 + $0x170] sm:$0xf] %v610_v35  ;;  %941 = vrot.lane.b32.xlu1 %v10117_v11, %s9719_s27  ;;  %939 = vrot.lane.b32.xlu0 %v9953_v38, %s9719_s27 }
  0xe3   : > { %v578_v54 = vpop.permute.xlu1 %577  ;;  %v576_v25 = vpop.permute.xlu0 %575 }
  0xe4   : > { %v611_v9 = vsel %vm591_vm3, %v574_v45, %v576_v25  ;;  %v612_v59 = vsel %vm591_vm3, %v576_v25, %v578_v54 }
  0xe5   : > { %666 = vst [vmem:[#allocation2 + $0x178] sm:$0xf] %v611_v9  ;;  %667 = vst [vmem:[#allocation2 + $0x180] sm:$0xf] %v612_v59  ;;  %945 = vrot.lane.b32.xlu1 %v10125_v12, %s9719_s27  ;;  %943 = vrot.lane.b32.xlu0 %v9971_v42, %s9719_s27 }
  0xe7   : > { %v582_v55 = vpop.permute.xlu1 %581  ;;  %v580_v49 = vpop.permute.xlu0 %579 }
  0xe8   : > { %v613_v11 = vsel %vm591_vm3, %v578_v54, %v580_v49  ;;  %v614_v51 = vsel %vm591_vm3, %v580_v49, %v582_v55 }
  0xe9   : > { %668 = vst [vmem:[#allocation2 + $0x188] sm:$0xf] %v613_v11  ;;  %669 = vst [vmem:[#allocation2 + $0x190] sm:$0xf] %v614_v51  ;;  %949 = vrot.lane.b32.xlu1 %v10133_v14, %s9719_s27  ;;  %947 = vrot.lane.b32.xlu0 %v9990_v46, %s9719_s27 }
  0xeb   : > { %v586_v60 = vpop.permute.xlu1 %585  ;;  %v584_v56 = vpop.permute.xlu0 %583 }
  0xec   : > { %v615_v12 = vsel %vm591_vm3, %v582_v55, %v584_v56  ;;  %v616_v53 = vsel %vm591_vm3, %v584_v56, %v586_v60 }
  0xed   : > { %670 = vst [vmem:[#allocation2 + $0x198] sm:$0xf] %v615_v12  ;;  %671 = vst [vmem:[#allocation2 + $0x1a0] sm:$0xf] %v616_v53  ;;  %953 = vrot.lane.b32.xlu1 %v10141_v15, %s9719_s27  ;;  %951 = vrot.lane.b32.xlu0 %v10008_v50, %s9719_s27 }
  0xef   : > { %v590_v20 = vpop.permute.xlu1 %589  ;;  %v588_v61 = vpop.permute.xlu0 %587 }
  0xf0   : > { %674 = vst.msk [vmem:[#allocation2 + $0x1b8] sm:$0xf] %vm308_vm0, %v590_v20  ;;  %v617_v14 = vsel %vm591_vm3, %v586_v60, %v588_v61  ;;  %v618_v41 = vsel %vm591_vm3, %v588_v61, %v590_v20 }
  0xf1   : > { %672 = vst [vmem:[#allocation2 + $0x1a8] sm:$0xf] %v617_v14  ;;  %673 = vst [vmem:[#allocation2 + $0x1b0] sm:$0xf] %v618_v41  ;;  %1083 = vrot.lane.b32.xlu1 %v9788_v1, %s9720_s28  ;;  %1081 = vrot.lane.b32.xlu0 %v9796_v2, %s9720_s28 }
  0xf3   : > { %v720_v15 = vpop.permute.xlu1 %719  ;;  %v718_v57 = vpop.permute.xlu0 %717 }
  0xf4   : > { %v774_v31 = vsel %vm773_vm4, %v718_v57, %v720_v15 }
  0xf5   : > { %829 = vst [vmem:[#allocation2 + $0xe0] sm:$0xf0] %v774_v31  ;;  %1087 = vrot.lane.b32.xlu1 %v9785_v0, %s9720_s28  ;;  %1085 = vrot.lane.b32.xlu0 %v9803_v4, %s9720_s28 }
  0xf7   : > { %v724_v62 = vpop.permute.xlu1 %723  ;;  %v722_v26 = vpop.permute.xlu0 %721 }
  0xf8   : > { %v775_v45 = vsel %vm773_vm4, %v720_v15, %v722_v26  ;;  %v776_v1 = vsel %vm773_vm4, %v722_v26, %v724_v62  ;;  %v10394_v15 = vld [vmem:[%s9782_s23] sm:$0xff] }
  0xf9   : > { %830 = vst [vmem:[#allocation2 + $0xe8] sm:$0xf0] %v775_v45  ;;  %831 = vst [vmem:[#allocation2 + $0xf0] sm:$0xf0] %v776_v1  ;;  %1091 = vrot.lane.b32.xlu1 %v9799_v3, %s9720_s28  ;;  %1089 = vrot.lane.b32.xlu0 %v9807_v5, %s9720_s28 }
  0xfb   : > { %v728_v2 = vpop.permute.xlu1 %727  ;;  %v726_v58 = vpop.permute.xlu0 %725 }
  0xfc   : > { %v777_v0 = vsel %vm773_vm4, %v724_v62, %v726_v58  ;;  %v778_v4 = vsel %vm773_vm4, %v726_v58, %v728_v2 }
  0xfd   : > { %832 = vst [vmem:[#allocation2 + $0xf8] sm:$0xf0] %v777_v0  ;;  %833 = vst [vmem:[#allocation2 + $0x100] sm:$0xf0] %v778_v4  ;;  %1095 = vrot.lane.b32.xlu1 %v9820_v8, %s9720_s28  ;;  %1093 = vrot.lane.b32.xlu0 %v9842_v13, %s9720_s28 }
  0xff   : > { %v732_v63 = vpop.permute.xlu1 %731  ;;  %v730_v35 = vpop.permute.xlu0 %729 }
 0x100   : > { %v779_v3 = vsel %vm773_vm4, %v728_v2, %v730_v35  ;;  %v780_v5 = vsel %vm773_vm4, %v730_v35, %v732_v63 }
 0x101   : > { %834 = vst [vmem:[#allocation2 + $0x108] sm:$0xf0] %v779_v3  ;;  %835 = vst [vmem:[#allocation2 + $0x110] sm:$0xf0] %v780_v5  ;;  %1099 = vrot.lane.b32.xlu1 %v9852_v17, %s9720_s28  ;;  %1097 = vrot.lane.b32.xlu0 %v9862_v18, %s9720_s28 }
 0x103   : > { %v736_v54 = vpop.permute.xlu1 %735  ;;  %v734_v25 = vpop.permute.xlu0 %733 }
 0x104   : > { %v781_v8 = vsel %vm773_vm4, %v732_v63, %v734_v25  ;;  %v782_v13 = vsel %vm773_vm4, %v734_v25, %v736_v54  ;;  %v10433_v63 = vld [vmem:[%s9782_s23 + $0x18] sm:$0xff] }
 0x105   : > { %836 = vst [vmem:[#allocation2 + $0x118] sm:$0xf0] %v781_v8  ;;  %837 = vst [vmem:[#allocation2 + $0x120] sm:$0xf0] %v782_v13  ;;  %1103 = vrot.lane.b32.xlu1 %v9870_v21, %s9720_s28  ;;  %1101 = vrot.lane.b32.xlu0 %v9880_v22, %s9720_s28  ;;  %v10443_v25 = vcombine.high %v10433_v63, %v10433_v63  ;;  %v10446_v8 = vld [vmem:[%s9782_s23 + $0x20] sm:$0xff] }
 0x107   : > { %v740_v9 = vpop.permute.xlu1 %739  ;;  %v738_v59 = vpop.permute.xlu0 %737 }
 0x108   : > { %v783_v17 = vsel %vm773_vm4, %v736_v54, %v738_v59  ;;  %v784_v18 = vsel %vm773_vm4, %v738_v59, %v740_v9 }
 0x109   : > { %838 = vst [vmem:[#allocation2 + $0x128] sm:$0xf0] %v783_v17  ;;  %839 = vst [vmem:[#allocation2 + $0x130] sm:$0xf0] %v784_v18  ;;  %1107 = vrot.lane.b32.xlu1 %v9886_v24, %s9720_s28  ;;  %1105 = vrot.lane.b32.xlu0 %v9901_v27, %s9720_s28  ;;  %v10456_v18 = vcombine.high %v10446_v8, %v10446_v8 }
 0x10b   : > { %v744_v55 = vpop.permute.xlu1 %743  ;;  %v742_v49 = vpop.permute.xlu0 %741 }
 0x10c   : > { %v785_v21 = vsel %vm773_vm4, %v740_v9, %v742_v49  ;;  %v786_v22 = vsel %vm773_vm4, %v742_v49, %v744_v55 }
 0x10d   : > { %840 = vst [vmem:[#allocation2 + $0x138] sm:$0xf0] %v785_v21  ;;  %841 = vst [vmem:[#allocation2 + $0x140] sm:$0xf0] %v786_v22  ;;  %1111 = vrot.lane.b32.xlu1 %v9904_v28, %s9720_s28  ;;  %1109 = vrot.lane.b32.xlu0 %v9918_v30, %s9720_s28 }
 0x10f   : > { %v748_v11 = vpop.permute.xlu1 %747  ;;  %v746_v51 = vpop.permute.xlu0 %745 }
 0x110   : > { %v787_v24 = vsel %vm773_vm4, %v744_v55, %v746_v51  ;;  %v788_v27 = vsel %vm773_vm4, %v746_v51, %v748_v11  ;;  %v10459_v55 = vld [vmem:[%s9782_s23 + $0x28] sm:$0xff] }
 0x111   : > { %842 = vst [vmem:[#allocation2 + $0x148] sm:$0xf0] %v787_v24  ;;  %843 = vst [vmem:[#allocation2 + $0x150] sm:$0xf0] %v788_v27  ;;  %1115 = vrot.lane.b32.xlu1 %v9923_v32, %s9720_s28  ;;  %1113 = vrot.lane.b32.xlu0 %v9937_v34, %s9720_s28  ;;  %v10469_v51 = vcombine.high %v10459_v55, %v10459_v55  ;;  %v10472_v24 = vld [vmem:[%s9782_s23 + $0x30] sm:$0xff] }
 0x113   : > { %v752_v60 = vpop.permute.xlu1 %751  ;;  %v750_v56 = vpop.permute.xlu0 %749 }
 0x114   : > { %v789_v28 = vsel %vm773_vm4, %v748_v11, %v750_v56  ;;  %v790_v30 = vsel %vm773_vm4, %v750_v56, %v752_v60 }
 0x115   : > { %844 = vst [vmem:[#allocation2 + $0x158] sm:$0xf0] %v789_v28  ;;  %845 = vst [vmem:[#allocation2 + $0x160] sm:$0xf0] %v790_v30  ;;  %1119 = vrot.lane.b32.xlu1 %v9942_v36, %s9720_s28  ;;  %1117 = vrot.lane.b32.xlu0 %v9950_v37, %s9720_s28  ;;  %v10482_v30 = vcombine.high %v10472_v24, %v10472_v24 }
 0x117   : > { %v756_v12 = vpop.permute.xlu1 %755  ;;  %v754_v53 = vpop.permute.xlu0 %753 }
 0x118   : > { %v791_v32 = vsel %vm773_vm4, %v752_v60, %v754_v53  ;;  %v792_v34 = vsel %vm773_vm4, %v754_v53, %v756_v12 }
 0x119   : > { %846 = vst [vmem:[#allocation2 + $0x168] sm:$0xf0] %v791_v32  ;;  %847 = vst [vmem:[#allocation2 + $0x170] sm:$0xf0] %v792_v34  ;;  %1123 = vrot.lane.b32.xlu1 %v9953_v38, %s9720_s28  ;;  %1121 = vrot.lane.b32.xlu0 %v9966_v40, %s9720_s28 }
 0x11b   : > { %v760_v20 = vpop.permute.xlu1 %759  ;;  %v758_v36 = vpop.permute.xlu0 %757 }
 0x11c   : > { %v793_v61 = vsel %vm773_vm4, %v756_v12, %v758_v36  ;;  %v794_v37 = vsel %vm773_vm4, %v758_v36, %v760_v20  ;;  %v10485_v12 = vld [vmem:[%s9782_s23 + $0x38] sm:$0xff] }
 0x11d   : > { %848 = vst [vmem:[#allocation2 + $0x178] sm:$0xf0] %v793_v61  ;;  %849 = vst [vmem:[#allocation2 + $0x180] sm:$0xf0] %v794_v37  ;;  %1127 = vrot.lane.b32.xlu1 %v9971_v42, %s9720_s28  ;;  %1125 = vrot.lane.b32.xlu0 %v9985_v44, %s9720_s28  ;;  %v10495_v36 = vcombine.high %v10485_v12, %v10485_v12  ;;  %v10498_v61 = vld [vmem:[%s9782_s23 + $0x40] sm:$0xff] }
 0x11f   : > { %v764_v14 = vpop.permute.xlu1 %763  ;;  %v762_v38 = vpop.permute.xlu0 %761 }
 0x120   : > { %v795_v41 = vsel %vm773_vm4, %v760_v20, %v762_v38  ;;  %v796_v40 = vsel %vm773_vm4, %v762_v38, %v764_v14 }
 0x121   : > { %850 = vst [vmem:[#allocation2 + $0x188] sm:$0xf0] %v795_v41  ;;  %851 = vst [vmem:[#allocation2 + $0x190] sm:$0xf0] %v796_v40  ;;  %1131 = vrot.lane.b32.xlu1 %v9990_v46, %s9720_s28  ;;  %1129 = vrot.lane.b32.xlu0 %v10003_v48, %s9720_s28  ;;  %v10404_v46 = vcombine.high %v10394_v15, %v10394_v15  ;;  %v10407_v48 = vld [vmem:[%s9782_s23 + $0x8] sm:$0xff]  ;;  %v10508_v40 = vcombine.high %v10498_v61, %v10498_v61 }
 0x123   : > { %v768_v42 = vpop.permute.xlu1 %767  ;;  %v766_v57 = vpop.permute.xlu0 %765 }
 0x124   : > { %v797_v44 = vsel %vm773_vm4, %v764_v14, %v766_v57  ;;  %v798_v31 = vsel %vm773_vm4, %v766_v57, %v768_v42 }
 0x125   : > { %852 = vst [vmem:[#allocation2 + $0x198] sm:$0xf0] %v797_v44  ;;  %853 = vst [vmem:[#allocation2 + $0x1a0] sm:$0xf0] %v798_v31  ;;  %1135 = vrot.lane.b32.xlu1 %v10008_v50, %s9720_s28  ;;  %1133 = vrot.lane.b32.xlu0 %v10022_v52, %s9720_s28  ;;  %v10418_v50 = vcombine.high %v10407_v48, %v10407_v48  ;;  %v10421_v52 = vld [vmem:[%s9782_s23 + $0x10] sm:$0xff] }
 0x126   : > { %v10430_v4 = vcombine.high %v10421_v52, %v10421_v52 }
 0x127   : > { %v772_v62 = vpop.permute.xlu1 %771  ;;  %v770_v26 = vpop.permute.xlu0 %769 }
 0x128   : > { %856 = vst.msk [vmem:[#allocation2 + $0x1b8] sm:$0xf0] %vm491_vm2, %v772_v62  ;;  %v799_v45 = vsel %vm773_vm4, %v768_v42, %v770_v26  ;;  %v800_v1 = vsel %vm773_vm4, %v770_v26, %v772_v62  ;;  %v10511_v42 = vld [vmem:[%s9782_s23 + $0x48] sm:$0xff] }
 0x129   : > { %854 = vst [vmem:[#allocation2 + $0x1a8] sm:$0xf0] %v799_v45  ;;  %855 = vst [vmem:[#allocation2 + $0x1b0] sm:$0xf0] %v800_v1  ;;  %1265 = vrot.lane.b32.xlu1 %v10404_v46, %s9721_s29  ;;  %1263 = vrot.lane.b32.xlu0 %v10394_v15, %s9721_s29  ;;  %v10521_v26 = vcombine.high %v10511_v42, %v10511_v42  ;;  %v10524_v45 = vld [vmem:[%s9782_s23 + $0x50] sm:$0xff] }
 0x12b   : > { %v902_v2 = vpop.permute.xlu1 %901  ;;  %v900_v58 = vpop.permute.xlu0 %899 }
 0x12c   : > { %v956_v0 = vsel %vm955_vm5, %v900_v58, %v902_v2 }
 0x12d   : > { %1011 = vst [vmem:[#allocation2 + $0x1c0] sm:$0xf] %v956_v0  ;;  %1269 = vrot.lane.b32.xlu1 %v10418_v50, %s9721_s29  ;;  %1267 = vrot.lane.b32.xlu0 %v10407_v48, %s9721_s29 }
 0x12f   : > { %v906_v35 = vpop.permute.xlu1 %905  ;;  %v904_v3 = vpop.permute.xlu0 %903 }
 0x130   : > { %v957_v5 = vsel %vm955_vm5, %v902_v2, %v904_v3  ;;  %v958_v54 = vsel %vm955_vm5, %v904_v3, %v906_v35  ;;  %v10537_v3 = vld [vmem:[%s9782_s23 + $0x58] sm:$0xff] }
 0x131   : > { %1012 = vst [vmem:[#allocation2 + $0x1c8] sm:$0xf] %v957_v5  ;;  %1013 = vst [vmem:[#allocation2 + $0x1d0] sm:$0xf] %v958_v54  ;;  %1273 = vrot.lane.b32.xlu1 %v10430_v4, %s9721_s29  ;;  %1271 = vrot.lane.b32.xlu0 %v10421_v52, %s9721_s29 }
 0x133   : > { %v910_v13 = vpop.permute.xlu1 %909  ;;  %v908_v9 = vpop.permute.xlu0 %907 }
 0x134   : > { %v959_v59 = vsel %vm955_vm5, %v906_v35, %v908_v9  ;;  %v960_v17 = vsel %vm955_vm5, %v908_v9, %v910_v13  ;;  %v10534_v35 = vcombine.high %v10524_v45, %v10524_v45 }
 0x135   : > { %1014 = vst [vmem:[#allocation2 + $0x1d8] sm:$0xf] %v959_v59  ;;  %1015 = vst [vmem:[#allocation2 + $0x1e0] sm:$0xf] %v960_v17  ;;  %1277 = vrot.lane.b32.xlu1 %v10443_v25, %s9721_s29  ;;  %1275 = vrot.lane.b32.xlu0 %v10433_v63, %s9721_s29  ;;  %v10547_v59 = vcombine.high %v10537_v3, %v10537_v3  ;;  %v10550_v17 = vld [vmem:[%s9782_s23 + $0x60] sm:$0xff] }
 0x137   : > { %v914_v49 = vpop.permute.xlu1 %913  ;;  %v912_v21 = vpop.permute.xlu0 %911 }
 0x138   : > { %v961_v22 = vsel %vm955_vm5, %v910_v13, %v912_v21  ;;  %v962_v11 = vsel %vm955_vm5, %v912_v21, %v914_v49 }
 0x139   : > { %1016 = vst [vmem:[#allocation2 + $0x1e8] sm:$0xf] %v961_v22  ;;  %1017 = vst [vmem:[#allocation2 + $0x1f0] sm:$0xf] %v962_v11  ;;  %1281 = vrot.lane.b32.xlu1 %v10456_v18, %s9721_s29  ;;  %1279 = vrot.lane.b32.xlu0 %v10446_v8, %s9721_s29 }
 0x13b   : > { %v918_v27 = vpop.permute.xlu1 %917  ;;  %v916_v60 = vpop.permute.xlu0 %915 }
 0x13c   : > { %v963_v56 = vsel %vm955_vm5, %v914_v49, %v916_v60  ;;  %v964_v28 = vsel %vm955_vm5, %v916_v60, %v918_v27  ;;  %v10563_v60 = vld [vmem:[%s9782_s23 + $0x68] sm:$0xff] }
 0x13d   : > { %1018 = vst [vmem:[#allocation2 + $0x1f8] sm:$0xf] %v963_v56  ;;  %1019 = vst [vmem:[#allocation2 + $0x200] sm:$0xf] %v964_v28  ;;  %1285 = vrot.lane.b32.xlu1 %v10469_v51, %s9721_s29  ;;  %1283 = vrot.lane.b32.xlu0 %v10459_v55, %s9721_s29 }
 0x13f   : > { %v922_v53 = vpop.permute.xlu1 %921  ;;  %v920_v32 = vpop.permute.xlu0 %919 }
 0x140   : > { %v965_v34 = vsel %vm955_vm5, %v918_v27, %v920_v32  ;;  %v966_v20 = vsel %vm955_vm5, %v920_v32, %v922_v53  ;;  %v10560_v27 = vcombine.high %v10550_v17, %v10550_v17 }
 0x141   : > { %1020 = vst [vmem:[#allocation2 + $0x208] sm:$0xf] %v965_v34  ;;  %1021 = vst [vmem:[#allocation2 + $0x210] sm:$0xf] %v966_v20  ;;  %1289 = vrot.lane.b32.xlu1 %v10482_v30, %s9721_s29  ;;  %1287 = vrot.lane.b32.xlu0 %v10472_v24, %s9721_s29  ;;  %v10573_v34 = vcombine.high %v10563_v60, %v10563_v60 }
 0x143   : > { %v926_v37 = vpop.permute.xlu1 %925  ;;  %v924_v14 = vpop.permute.xlu0 %923 }
 0x144   : > { %v967_v38 = vsel %vm955_vm5, %v922_v53, %v924_v14  ;;  %v968_v41 = vsel %vm955_vm5, %v924_v14, %v926_v37 }
 0x145   : > { %1022 = vst [vmem:[#allocation2 + $0x218] sm:$0xf] %v967_v38  ;;  %1023 = vst [vmem:[#allocation2 + $0x220] sm:$0xf] %v968_v41  ;;  %1293 = vrot.lane.b32.xlu1 %v10495_v36, %s9721_s29  ;;  %1291 = vrot.lane.b32.xlu0 %v10485_v12, %s9721_s29  ;;  %v1431_v41 = vcombine.low %v10394_v15, %v10394_v15 }
 0x147   : > { %v930_v57 = vpop.permute.xlu1 %929  ;;  %v928_v44 = vpop.permute.xlu0 %927 }
 0x148   : > { %v969_v31 = vsel %vm955_vm5, %v926_v37, %v928_v44  ;;  %v970_v62 = vsel %vm955_vm5, %v928_v44, %v930_v57 }
 0x149   : > { %1024 = vst [vmem:[#allocation2 + $0x228] sm:$0xf] %v969_v31  ;;  %1025 = vst [vmem:[#allocation2 + $0x230] sm:$0xf] %v970_v62  ;;  %1297 = vrot.lane.b32.xlu1 %v10508_v40, %s9721_s29  ;;  %1295 = vrot.lane.b32.xlu0 %v10498_v61, %s9721_s29 }
 0x14b   : > { %v934_v1 = vpop.permute.xlu1 %933  ;;  %v932_v2 = vpop.permute.xlu0 %931 }
 0x14c   : > { %v971_v58 = vsel %vm955_vm5, %v930_v57, %v932_v2  ;;  %v972_v0 = vsel %vm955_vm5, %v932_v2, %v934_v1 }
 0x14d   : > { %1026 = vst [vmem:[#allocation2 + $0x238] sm:$0xf] %v971_v58  ;;  %1027 = vst [vmem:[#allocation2 + $0x240] sm:$0xf] %v972_v0  ;;  %1301 = vrot.lane.b32.xlu1 %v10521_v26, %s9721_s29  ;;  %1299 = vrot.lane.b32.xlu0 %v10511_v42, %s9721_s29 }
 0x14f   : > { %v938_v5 = vpop.permute.xlu1 %937  ;;  %v936_v54 = vpop.permute.xlu0 %935 }
 0x150   : > { %v973_v13 = vsel %vm955_vm5, %v934_v1, %v936_v54  ;;  %v974_v9 = vsel %vm955_vm5, %v936_v54, %v938_v5  ;;  %v1432_v1 = vcombine.low %v10407_v48, %v10407_v48 }
 0x151   : > { %1028 = vst [vmem:[#allocation2 + $0x248] sm:$0xf] %v973_v13  ;;  %1029 = vst [vmem:[#allocation2 + $0x250] sm:$0xf] %v974_v9  ;;  %1305 = vrot.lane.b32.xlu1 %v10534_v35, %s9721_s29  ;;  %1303 = vrot.lane.b32.xlu0 %v10524_v45, %s9721_s29 }
 0x153   : > { %v942_v49 = vpop.permute.xlu1 %941  ;;  %v940_v21 = vpop.permute.xlu0 %939 }
 0x154   : > { %v975_v22 = vsel %vm955_vm5, %v938_v5, %v940_v21  ;;  %v976_v11 = vsel %vm955_vm5, %v940_v21, %v942_v49  ;;  %v1433_v5 = vcombine.low %v10421_v52, %v10421_v52  ;;  %v1434_v21 = vcombine.low %v10433_v63, %v10433_v63 }
 0x155   : > { %1030 = vst [vmem:[#allocation2 + $0x258] sm:$0xf] %v975_v22  ;;  %1031 = vst [vmem:[#allocation2 + $0x260] sm:$0xf] %v976_v11  ;;  %1309 = vrot.lane.b32.xlu1 %v10547_v59, %s9721_s29  ;;  %1307 = vrot.lane.b32.xlu0 %v10537_v3, %s9721_s29 }
 0x157   : > { %v946_v56 = vpop.permute.xlu1 %945  ;;  %v944_v28 = vpop.permute.xlu0 %943 }
 0x158   : > { %v977_v53 = vsel %vm955_vm5, %v942_v49, %v944_v28  ;;  %v978_v32 = vsel %vm955_vm5, %v944_v28, %v946_v56 }
 0x159   : > { %1032 = vst [vmem:[#allocation2 + $0x268] sm:$0xf] %v977_v53  ;;  %1033 = vst [vmem:[#allocation2 + $0x270] sm:$0xf] %v978_v32  ;;  %1313 = vrot.lane.b32.xlu1 %v10560_v27, %s9721_s29  ;;  %1311 = vrot.lane.b32.xlu0 %v10550_v17, %s9721_s29  ;;  %v1435_v53 = vcombine.low %v10446_v8, %v10446_v8 }
 0x15b   : > { %v950_v20 = vpop.permute.xlu1 %949  ;;  %v948_v37 = vpop.permute.xlu0 %947 }
 0x15c   : > { %v979_v14 = vsel %vm955_vm5, %v946_v56, %v948_v37  ;;  %v980_v38 = vsel %vm955_vm5, %v948_v37, %v950_v20 }
 0x15d   : > { %1034 = vst [vmem:[#allocation2 + $0x278] sm:$0xf] %v979_v14  ;;  %1035 = vst [vmem:[#allocation2 + $0x280] sm:$0xf] %v980_v38  ;;  %1317 = vrot.lane.b32.xlu1 %v10573_v34, %s9721_s29  ;;  %1315 = vrot.lane.b32.xlu0 %v10563_v60, %s9721_s29  ;;  %v1436_v38 = vcombine.low %v10459_v55, %v10459_v55 }
 0x15f   : > { %v954_v57 = vpop.permute.xlu1 %953  ;;  %v952_v44 = vpop.permute.xlu0 %951 }
 0x160   : > { %1038 = vst.msk [vmem:[#allocation2 + $0x298] sm:$0xf] %vm308_vm0, %v954_v57  ;;  %v981_v31 = vsel %vm955_vm5, %v950_v20, %v952_v44  ;;  %v982_v62 = vsel %vm955_vm5, %v952_v44, %v954_v57 }
 0x161   : > { %1036 = vst [vmem:[#allocation2 + $0x288] sm:$0xf] %v981_v31  ;;  %1037 = vst [vmem:[#allocation2 + $0x290] sm:$0xf] %v982_v62  ;;  %1447 = vrot.lane.b32.xlu1 %v10394_v15, %s9722_s30  ;;  %1445 = vrot.lane.b32.xlu0 %v1431_v41, %s9722_s30  ;;  %v1437_v62 = vcombine.low %v10472_v24, %v10472_v24 }
 0x163   : > { %v1084_v2 = vpop.permute.xlu1 %1083  ;;  %v1082_v58 = vpop.permute.xlu0 %1081 }
 0x164   : > { %v1138_v0 = vsel %vm1137_vm6, %v1082_v58, %v1084_v2 }
 0x165   : > { %1193 = vst [vmem:[#allocation2 + $0x1c0] sm:$0xf0] %v1138_v0  ;;  %1451 = vrot.lane.b32.xlu1 %v10407_v48, %s9722_s30  ;;  %1449 = vrot.lane.b32.xlu0 %v1432_v1, %s9722_s30 }
 0x167   : > { %v1088_v54 = vpop.permute.xlu1 %1087  ;;  %v1086_v13 = vpop.permute.xlu0 %1085 }
 0x168   : > { %v1139_v9 = vsel %vm1137_vm6, %v1084_v2, %v1086_v13  ;;  %v1140_v49 = vsel %vm1137_vm6, %v1086_v13, %v1088_v54 }
 0x169   : > { %1194 = vst [vmem:[#allocation2 + $0x1c8] sm:$0xf0] %v1139_v9  ;;  %1195 = vst [vmem:[#allocation2 + $0x1d0] sm:$0xf0] %v1140_v49  ;;  %1455 = vrot.lane.b32.xlu1 %v10421_v52, %s9722_s30  ;;  %1453 = vrot.lane.b32.xlu0 %v1433_v5, %s9722_s30  ;;  %v1438_v5 = vcombine.low %v10485_v12, %v10485_v12 }
 0x16b   : > { %v1092_v22 = vpop.permute.xlu1 %1091  ;;  %v1090_v11 = vpop.permute.xlu0 %1089 }
 0x16c   : > { %v1141_v56 = vsel %vm1137_vm6, %v1088_v54, %v1090_v11  ;;  %v1142_v28 = vsel %vm1137_vm6, %v1090_v11, %v1092_v22 }
 0x16d   : > { %1196 = vst [vmem:[#allocation2 + $0x1d8] sm:$0xf0] %v1141_v56  ;;  %1197 = vst [vmem:[#allocation2 + $0x1e0] sm:$0xf0] %v1142_v28  ;;  %1459 = vrot.lane.b32.xlu1 %v10433_v63, %s9722_s30  ;;  %1457 = vrot.lane.b32.xlu0 %v1434_v21, %s9722_s30  ;;  %v1439_v21 = vcombine.low %v10498_v61, %v10498_v61 }
 0x16f   : > { %v1096_v32 = vpop.permute.xlu1 %1095  ;;  %v1094_v20 = vpop.permute.xlu0 %1093 }
 0x170   : > { %v1143_v37 = vsel %vm1137_vm6, %v1092_v22, %v1094_v20  ;;  %v1144_v14 = vsel %vm1137_vm6, %v1094_v20, %v1096_v32 }
 0x171   : > { %1198 = vst [vmem:[#allocation2 + $0x1e8] sm:$0xf0] %v1143_v37  ;;  %1199 = vst [vmem:[#allocation2 + $0x1f0] sm:$0xf0] %v1144_v14  ;;  %1463 = vrot.lane.b32.xlu1 %v10446_v8, %s9722_s30  ;;  %1461 = vrot.lane.b32.xlu0 %v1435_v53, %s9722_s30  ;;  %v1440_v53 = vcombine.low %v10511_v42, %v10511_v42 }
 0x173   : > { %v1100_v41 = vpop.permute.xlu1 %1099  ;;  %v1098_v57 = vpop.permute.xlu0 %1097 }
 0x174   : > { %v1145_v44 = vsel %vm1137_vm6, %v1096_v32, %v1098_v57  ;;  %v1146_v31 = vsel %vm1137_vm6, %v1098_v57, %v1100_v41 }
 0x175   : > { %1200 = vst [vmem:[#allocation2 + $0x1f8] sm:$0xf0] %v1145_v44  ;;  %1201 = vst [vmem:[#allocation2 + $0x200] sm:$0xf0] %v1146_v31  ;;  %1467 = vrot.lane.b32.xlu1 %v10459_v55, %s9722_s30  ;;  %1465 = vrot.lane.b32.xlu0 %v1436_v38, %s9722_s30  ;;  %v1441_v38 = vcombine.low %v10524_v45, %v10524_v45 }
 0x177   : > { %v1104_v1 = vpop.permute.xlu1 %1103  ;;  %v1102_v2 = vpop.permute.xlu0 %1101 }
 0x178   : > { %v1147_v58 = vsel %vm1137_vm6, %v1100_v41, %v1102_v2  ;;  %v1148_v0 = vsel %vm1137_vm6, %v1102_v2, %v1104_v1 }
 0x179   : > { %1202 = vst [vmem:[#allocation2 + $0x208] sm:$0xf0] %v1147_v58  ;;  %1203 = vst [vmem:[#allocation2 + $0x210] sm:$0xf0] %v1148_v0  ;;  %1471 = vrot.lane.b32.xlu1 %v10472_v24, %s9722_s30  ;;  %1469 = vrot.lane.b32.xlu0 %v1437_v62, %s9722_s30  ;;  %v1442_v62 = vcombine.low %v10537_v3, %v10537_v3 }
 0x17b   : > { %v1108_v54 = vpop.permute.xlu1 %1107  ;;  %v1106_v13 = vpop.permute.xlu0 %1105 }
 0x17c   : > { %v1149_v9 = vsel %vm1137_vm6, %v1104_v1, %v1106_v13  ;;  %v1150_v49 = vsel %vm1137_vm6, %v1106_v13, %v1108_v54 }
 0x17d   : > { %1204 = vst [vmem:[#allocation2 + $0x218] sm:$0xf0] %v1149_v9  ;;  %1205 = vst [vmem:[#allocation2 + $0x220] sm:$0xf0] %v1150_v49  ;;  %1475 = vrot.lane.b32.xlu1 %v10485_v12, %s9722_s30  ;;  %1473 = vrot.lane.b32.xlu0 %v1438_v5, %s9722_s30  ;;  %v1443_v5 = vcombine.low %v10550_v17, %v10550_v17 }
 0x17f   : > { %v1112_v22 = vpop.permute.xlu1 %1111  ;;  %v1110_v11 = vpop.permute.xlu0 %1109 }
 0x180   : > { %v1151_v56 = vsel %vm1137_vm6, %v1108_v54, %v1110_v11  ;;  %v1152_v28 = vsel %vm1137_vm6, %v1110_v11, %v1112_v22  ;;  %v1795_v54 = vcombine.low %v9817_v7, %v9817_v7  ;;  %v1796_v7 = vcombine.low %v9814_v6, %v9814_v6 }
 0x181   : > { %1206 = vst [vmem:[#allocation2 + $0x228] sm:$0xf0] %v1151_v56  ;;  %1207 = vst [vmem:[#allocation2 + $0x230] sm:$0xf0] %v1152_v28  ;;  %1479 = vrot.lane.b32.xlu1 %v10498_v61, %s9722_s30  ;;  %1477 = vrot.lane.b32.xlu0 %v1439_v21, %s9722_s30 }
 0x182   : > { %1823 = vst [vmem:[#allocation2 + $0x380] sm:$0xf0] %v1795_v54  ;;  %1825 = vst [vmem:[#allocation2 + $0x390] sm:$0xf0] %v1796_v7 }
 0x183   : > { %v1116_v32 = vpop.permute.xlu1 %1115  ;;  %v1114_v20 = vpop.permute.xlu0 %1113 }
 0x184   : > { %v1153_v37 = vsel %vm1137_vm6, %v1112_v22, %v1114_v20  ;;  %v1154_v14 = vsel %vm1137_vm6, %v1114_v20, %v1116_v32  ;;  %v1444_v22 = vcombine.low %v10563_v60, %v10563_v60 }
 0x185   : > { %1208 = vst [vmem:[#allocation2 + $0x238] sm:$0xf0] %v1153_v37  ;;  %1209 = vst [vmem:[#allocation2 + $0x240] sm:$0xf0] %v1154_v14  ;;  %1483 = vrot.lane.b32.xlu1 %v10511_v42, %s9722_s30  ;;  %1481 = vrot.lane.b32.xlu0 %v1440_v53, %s9722_s30 }
 0x187   : > { %v1120_v41 = vpop.permute.xlu1 %1119  ;;  %v1118_v57 = vpop.permute.xlu0 %1117 }
 0x188   : > { %v1155_v44 = vsel %vm1137_vm6, %v1116_v32, %v1118_v57  ;;  %v1156_v31 = vsel %vm1137_vm6, %v1118_v57, %v1120_v41  ;;  %v1797_v32 = vcombine.low %v9826_v10, %v9826_v10  ;;  %v1798_v57 = vcombine.low %v9849_v16, %v9849_v16 }
 0x189   : > { %1210 = vst [vmem:[#allocation2 + $0x248] sm:$0xf0] %v1155_v44  ;;  %1211 = vst [vmem:[#allocation2 + $0x250] sm:$0xf0] %v1156_v31  ;;  %1487 = vrot.lane.b32.xlu1 %v10524_v45, %s9722_s30  ;;  %1485 = vrot.lane.b32.xlu0 %v1441_v38, %s9722_s30 }
 0x18a   : > { %1827 = vst [vmem:[#allocation2 + $0x3a0] sm:$0xf0] %v1797_v32  ;;  %1829 = vst [vmem:[#allocation2 + $0x3b0] sm:$0xf0] %v1798_v57 }
 0x18b   : > { %v1124_v1 = vpop.permute.xlu1 %1123  ;;  %v1122_v2 = vpop.permute.xlu0 %1121 }
 0x18c   : > { %v1157_v58 = vsel %vm1137_vm6, %v1120_v41, %v1122_v2  ;;  %v1158_v0 = vsel %vm1137_vm6, %v1122_v2, %v1124_v1 }
 0x18d   : > { %1212 = vst [vmem:[#allocation2 + $0x258] sm:$0xf0] %v1157_v58  ;;  %1213 = vst [vmem:[#allocation2 + $0x260] sm:$0xf0] %v1158_v0  ;;  %1491 = vrot.lane.b32.xlu1 %v10537_v3, %s9722_s30  ;;  %1489 = vrot.lane.b32.xlu0 %v1442_v62, %s9722_s30  ;;  %v1799_v62 = vcombine.low %v9865_v19, %v9865_v19  ;;  %v1800_v19 = vcombine.low %v9883_v23, %v9883_v23 }
 0x18e   : > { %v1801_v23 = vcombine.low %v9907_v29, %v9907_v29  ;;  %v1802_v29 = vcombine.low %v9926_v33, %v9926_v33 }
 0x18f   : > { %v1128_v13 = vpop.permute.xlu1 %1127  ;;  %v1126_v9 = vpop.permute.xlu0 %1125  ;;  %1831 = vst [vmem:[#allocation2 + $0x3c0] sm:$0xf0] %v1799_v62  ;;  %1833 = vst [vmem:[#allocation2 + $0x3d0] sm:$0xf0] %v1800_v19 }
 0x190   : > { %v1159_v49 = vsel %vm1137_vm6, %v1124_v1, %v1126_v9  ;;  %v1160_v21 = vsel %vm1137_vm6, %v1126_v9, %v1128_v13  ;;  %1835 = vst [vmem:[#allocation2 + $0x3e0] sm:$0xf0] %v1801_v23  ;;  %1837 = vst [vmem:[#allocation2 + $0x3f0] sm:$0xf0] %v1802_v29 }
 0x191   : > { %1214 = vst [vmem:[#allocation2 + $0x268] sm:$0xf0] %v1159_v49  ;;  %1215 = vst [vmem:[#allocation2 + $0x270] sm:$0xf0] %v1160_v21  ;;  %1495 = vrot.lane.b32.xlu1 %v10550_v17, %s9722_s30  ;;  %1493 = vrot.lane.b32.xlu0 %v1443_v5, %s9722_s30 }
 0x193   : > { %v1132_v11 = vpop.permute.xlu1 %1131  ;;  %v1130_v56 = vpop.permute.xlu0 %1129 }
 0x194   : > { %v1161_v28 = vsel %vm1137_vm6, %v1128_v13, %v1130_v56  ;;  %v1162_v53 = vsel %vm1137_vm6, %v1130_v56, %v1132_v11 }
 0x195   : > { %1216 = vst [vmem:[#allocation2 + $0x278] sm:$0xf0] %v1161_v28  ;;  %1217 = vst [vmem:[#allocation2 + $0x280] sm:$0xf0] %v1162_v53  ;;  %1499 = vrot.lane.b32.xlu1 %v10563_v60, %s9722_s30  ;;  %1497 = vrot.lane.b32.xlu0 %v1444_v22, %s9722_s30 }
 0x197   : > { %v1136_v20 = vpop.permute.xlu1 %1135  ;;  %v1134_v37 = vpop.permute.xlu0 %1133 }
 0x198   : > { %1220 = vst.msk [vmem:[#allocation2 + $0x298] sm:$0xf0] %vm491_vm2, %v1136_v20  ;;  %v1163_v6 = vsel %vm1137_vm6, %v1132_v11, %v1134_v37  ;;  %v1164_v14 = vsel %vm1137_vm6, %v1134_v37, %v1136_v20 }
 0x199   : > { %1218 = vst [vmem:[#allocation2 + $0x288] sm:$0xf0] %v1163_v6  ;;  %1219 = vst [vmem:[#allocation2 + $0x290] sm:$0xf0] %v1164_v14  ;;  %1629 = vrot.lane.b32.xlu1 %v10404_v46, %s9723_s6  ;;  %1627 = vrot.lane.b32.xlu0 %v10394_v15, %s9723_s6  ;;  %v1803_v6 = vcombine.low %v9956_v39, %v9956_v39 }
 0x19b   : > { %v1266_v10 = vpop.permute.xlu1 %1265  ;;  %v1264_v38 = vpop.permute.xlu0 %1263  ;;  %1839 = vst [vmem:[#allocation2 + $0x400] sm:$0xf0] %v1803_v6 }
 0x19c   : > { %v1320_v41 = vsel %vm1319_vm7, %v1264_v38, %v1266_v10 }
 0x19d   : > { %1375 = vst [vmem:[#allocation2 + $0x2a0] sm:$0xf] %v1320_v41  ;;  %1633 = vrot.lane.b32.xlu1 %v10418_v50, %s9723_s6  ;;  %1631 = vrot.lane.b32.xlu0 %v10407_v48, %s9723_s6  ;;  %v1804_v41 = vcombine.low %v9974_v43, %v9974_v43 }
 0x19f   : > { %v1270_v46 = vpop.permute.xlu1 %1269  ;;  %v1268_v44 = vpop.permute.xlu0 %1267  ;;  %1841 = vst [vmem:[#allocation2 + $0x410] sm:$0xf0] %v1804_v41 }
 0x1a0   : > { %v1321_v15 = vsel %vm1319_vm7, %v1266_v10, %v1268_v44  ;;  %v1322_v31 = vsel %vm1319_vm7, %v1268_v44, %v1270_v46 }
 0x1a1   : > { %1376 = vst [vmem:[#allocation2 + $0x2a8] sm:$0xf] %v1321_v15  ;;  %1377 = vst [vmem:[#allocation2 + $0x2b0] sm:$0xf] %v1322_v31  ;;  %1637 = vrot.lane.b32.xlu1 %v10430_v4, %s9723_s6  ;;  %1635 = vrot.lane.b32.xlu0 %v10421_v52, %s9723_s6  ;;  %v1805_v15 = vcombine.low %v9993_v47, %v9993_v47 }
 0x1a3   : > { %v1274_v16 = vpop.permute.xlu1 %1273  ;;  %v1272_v1 = vpop.permute.xlu0 %1271  ;;  %1843 = vst [vmem:[#allocation2 + $0x420] sm:$0xf0] %v1805_v15 }
 0x1a4   : > { %v1323_v2 = vsel %vm1319_vm7, %v1270_v46, %v1272_v1  ;;  %v1324_v58 = vsel %vm1319_vm7, %v1272_v1, %v1274_v16  ;;  %v15212_v1 = vld [vmem:[#allocation4_spill] sm:$0xff] }
 0x1a5   : > { %1378 = vst [vmem:[#allocation2 + $0x2b8] sm:$0xf] %v1323_v2  ;;  %1379 = vst [vmem:[#allocation2 + $0x2c0] sm:$0xf] %v1324_v58  ;;  %1641 = vrot.lane.b32.xlu1 %v10443_v25, %s9723_s6  ;;  %1639 = vrot.lane.b32.xlu0 %v10433_v63, %s9723_s6  ;;  %v1806_v2 = vcombine.low %v15212_v1, %v15212_v1 }
 0x1a7   : > { %v1278_v0 = vpop.permute.xlu1 %1277  ;;  %v1276_v5 = vpop.permute.xlu0 %1275  ;;  %1845 = vst [vmem:[#allocation2 + $0x430] sm:$0xf0] %v1806_v2 }
 0x1a8   : > { %v1325_v54 = vsel %vm1319_vm7, %v1274_v16, %v1276_v5  ;;  %v1326_v13 = vsel %vm1319_vm7, %v1276_v5, %v1278_v0  ;;  %v15213_v5 = vld [vmem:[#allocation5_spill] sm:$0xff] }
 0x1a9   : > { %1380 = vst [vmem:[#allocation2 + $0x2c8] sm:$0xf] %v1325_v54  ;;  %1381 = vst [vmem:[#allocation2 + $0x2d0] sm:$0xf] %v1326_v13  ;;  %1645 = vrot.lane.b32.xlu1 %v10456_v18, %s9723_s6  ;;  %1643 = vrot.lane.b32.xlu0 %v10446_v8, %s9723_s6  ;;  %v1807_v54 = vcombine.low %v15213_v5, %v15213_v5 }
 0x1ab   : > { %v1282_v9 = vpop.permute.xlu1 %1281  ;;  %v1280_v49 = vpop.permute.xlu0 %1279  ;;  %1847 = vst [vmem:[#allocation2 + $0x440] sm:$0xf0] %v1807_v54  ;;  %v10870_v54 = vld [vmem:[%s9782_s23 + $0x70] sm:$0xff] }
 0x1ac   : > { %v1327_v21 = vsel %vm1319_vm7, %v1278_v0, %v1280_v49  ;;  %v1328_v22 = vsel %vm1319_vm7, %v1280_v49, %v1282_v9 }
 0x1ad   : > { %1382 = vst [vmem:[#allocation2 + $0x2d8] sm:$0xf] %v1327_v21  ;;  %1383 = vst [vmem:[#allocation2 + $0x2e0] sm:$0xf] %v1328_v22  ;;  %1649 = vrot.lane.b32.xlu1 %v10469_v51, %s9723_s6  ;;  %1647 = vrot.lane.b32.xlu0 %v10459_v55, %s9723_s6  ;;  %v10780_v21 = vld [vmem:[%s9782_s23 + $0x70] sm:$0xff] }
 0x1ae   : > { %3379 = vst [vmem:[#allocation2 + $0x8a0] sm:$0xf] %v10780_v21  ;;  %1850 = vst.msk [vmem:[#allocation2 + $0x458] sm:$0xf0] %vm491_vm2, %v10780_v21  ;;  %v1808_v22 = vcombine.low %v10780_v21, %v10780_v21 }
 0x1af   : > { %v1286_v7 = vpop.permute.xlu1 %1285  ;;  %v1284_v11 = vpop.permute.xlu0 %1283 }
 0x1b0   : > { %v1329_v56 = vsel %vm1319_vm7, %v1282_v9, %v1284_v11  ;;  %v1330_v28 = vsel %vm1319_vm7, %v1284_v11, %v1286_v7  ;;  %1849 = vst [vmem:[#allocation2 + $0x450] sm:$0xf0] %v1808_v22 }
 0x1b1   : > { %1384 = vst [vmem:[#allocation2 + $0x2e8] sm:$0xf] %v1329_v56  ;;  %1385 = vst [vmem:[#allocation2 + $0x2f0] sm:$0xf] %v1330_v28  ;;  %1653 = vrot.lane.b32.xlu1 %v10482_v30, %s9723_s6  ;;  %1651 = vrot.lane.b32.xlu0 %v10472_v24, %s9723_s6 }
 0x1b3   : > { %v1290_v53 = vpop.permute.xlu1 %1289  ;;  %v1288_v32 = vpop.permute.xlu0 %1287 }
 0x1b4   : > { %v1331_v20 = vsel %vm1319_vm7, %v1286_v7, %v1288_v32  ;;  %v1332_v37 = vsel %vm1319_vm7, %v1288_v32, %v1290_v53 }
 0x1b5   : > { %1386 = vst [vmem:[#allocation2 + $0x2f8] sm:$0xf] %v1331_v20  ;;  %1387 = vst [vmem:[#allocation2 + $0x300] sm:$0xf] %v1332_v37  ;;  %1657 = vrot.lane.b32.xlu1 %v10495_v36, %s9723_s6  ;;  %1655 = vrot.lane.b32.xlu0 %v10485_v12, %s9723_s6 }
 0x1b7   : > { %v1294_v14 = vpop.permute.xlu1 %1293  ;;  %v1292_v33 = vpop.permute.xlu0 %1291 }
 0x1b8   : > { %v1333_v10 = vsel %vm1319_vm7, %v1290_v53, %v1292_v33  ;;  %v1334_v38 = vsel %vm1319_vm7, %v1292_v33, %v1294_v14 }
 0x1b9   : > { %1388 = vst [vmem:[#allocation2 + $0x308] sm:$0xf] %v1333_v10  ;;  %1389 = vst [vmem:[#allocation2 + $0x310] sm:$0xf] %v1334_v38  ;;  %1661 = vrot.lane.b32.xlu1 %v10508_v40, %s9723_s6  ;;  %1659 = vrot.lane.b32.xlu0 %v10498_v61, %s9723_s6 }
 0x1bb   : > { %v1298_v57 = vpop.permute.xlu1 %1297  ;;  %v1296_v39 = vpop.permute.xlu0 %1295 }
 0x1bc   : > { %v1335_v46 = vsel %vm1319_vm7, %v1294_v14, %v1296_v39  ;;  %v1336_v44 = vsel %vm1319_vm7, %v1296_v39, %v1298_v57 }
 0x1bd   : > { %1390 = vst [vmem:[#allocation2 + $0x318] sm:$0xf] %v1335_v46  ;;  %1391 = vst [vmem:[#allocation2 + $0x320] sm:$0xf] %v1336_v44  ;;  %1665 = vrot.lane.b32.xlu1 %v10521_v26, %s9723_s6  ;;  %1663 = vrot.lane.b32.xlu0 %v10511_v42, %s9723_s6 }
 0x1bf   : > { %v1302_v31 = vpop.permute.xlu1 %1301  ;;  %v1300_v43 = vpop.permute.xlu0 %1299 }
 0x1c0   : > { %v1337_v62 = vsel %vm1319_vm7, %v1298_v57, %v1300_v43  ;;  %v1338_v16 = vsel %vm1319_vm7, %v1300_v43, %v1302_v31 }
 0x1c1   : > { %1392 = vst [vmem:[#allocation2 + $0x328] sm:$0xf] %v1337_v62  ;;  %1393 = vst [vmem:[#allocation2 + $0x330] sm:$0xf] %v1338_v16  ;;  %1669 = vrot.lane.b32.xlu1 %v10534_v35, %s9723_s6  ;;  %1667 = vrot.lane.b32.xlu0 %v10524_v45, %s9723_s6 }
 0x1c3   : > { %v1306_v47 = vpop.permute.xlu1 %1305  ;;  %v1304_v58 = vpop.permute.xlu0 %1303 }
 0x1c4   : > { %v1339_v19 = vsel %vm1319_vm7, %v1302_v31, %v1304_v58  ;;  %v1340_v0 = vsel %vm1319_vm7, %v1304_v58, %v1306_v47 }
 0x1c5   : > { %1394 = vst [vmem:[#allocation2 + $0x338] sm:$0xf] %v1339_v19  ;;  %1395 = vst [vmem:[#allocation2 + $0x340] sm:$0xf] %v1340_v0  ;;  %1673 = vrot.lane.b32.xlu1 %v10547_v59, %s9723_s6  ;;  %1671 = vrot.lane.b32.xlu0 %v10537_v3, %s9723_s6 }
 0x1c7   : > { %v1310_v13 = vpop.permute.xlu1 %1309  ;;  %v1308_v9 = vpop.permute.xlu0 %1307 }
 0x1c8   : > { %v1341_v49 = vsel %vm1319_vm7, %v1306_v47, %v1308_v9  ;;  %v1342_v23 = vsel %vm1319_vm7, %v1308_v9, %v1310_v13 }
 0x1c9   : > { %1396 = vst [vmem:[#allocation2 + $0x348] sm:$0xf] %v1341_v49  ;;  %1397 = vst [vmem:[#allocation2 + $0x350] sm:$0xf] %v1342_v23  ;;  %1677 = vrot.lane.b32.xlu1 %v10560_v27, %s9723_s6  ;;  %1675 = vrot.lane.b32.xlu0 %v10550_v17, %s9723_s6 }
 0x1cb   : > { %v1314_v7 = vpop.permute.xlu1 %1313  ;;  %v1312_v11 = vpop.permute.xlu0 %1311 }
 0x1cc   : > { %v1343_v56 = vsel %vm1319_vm7, %v1310_v13, %v1312_v11  ;;  %v1344_v28 = vsel %vm1319_vm7, %v1312_v11, %v1314_v7 }
 0x1cd   : > { %1398 = vst [vmem:[#allocation2 + $0x358] sm:$0xf] %v1343_v56  ;;  %1399 = vst [vmem:[#allocation2 + $0x360] sm:$0xf] %v1344_v28  ;;  %1681 = vrot.lane.b32.xlu1 %v10573_v34, %s9723_s6  ;;  %1679 = vrot.lane.b32.xlu0 %v10563_v60, %s9723_s6 }
 0x1cf   : > { %v1318_v29 = vpop.permute.xlu1 %1317  ;;  %v1316_v53 = vpop.permute.xlu0 %1315 }
 0x1d0   : > { %1402 = vst.msk [vmem:[#allocation2 + $0x378] sm:$0xf] %vm308_vm0, %v1318_v29  ;;  %v1345_v32 = vsel %vm1319_vm7, %v1314_v7, %v1316_v53  ;;  %v1346_v20 = vsel %vm1319_vm7, %v1316_v53, %v1318_v29 }
 0x1d1   : > { %1400 = vst [vmem:[#allocation2 + $0x368] sm:$0xf] %v1345_v32  ;;  %1401 = vst [vmem:[#allocation2 + $0x370] sm:$0xf] %v1346_v20  ;;  %1895 = vrot.lane.b32.xlu1 %v10418_v50, %s9716_s24  ;;  %1893 = vrot.lane.b32.xlu0 %v10407_v48, %s9716_s24  ;;  %v10910_v32 = vld [vmem:[%s9782_s23 + $0x18] sm:$0xff] }
 0x1d3   : > { %v1448_v37 = vpop.permute.xlu1 %1447  ;;  %v1446_v6 = vpop.permute.xlu0 %1445 }
 0x1d4   : > { %v1502_v14 = vsel %vm1501_vm8, %v1446_v6, %v1448_v37 }
 0x1d5   : > { %1557 = vst [vmem:[#allocation2 + $0x2a0] sm:$0xf0] %v1502_v14  ;;  %1899 = vrot.lane.b32.xlu1 %v10430_v4, %s9716_s24  ;;  %1897 = vrot.lane.b32.xlu0 %v10421_v52, %s9716_s24  ;;  %v10919_v14 = vcombine.low %v10910_v32, %v10910_v32 }
 0x1d7   : > { %v1452_v33 = vpop.permute.xlu1 %1451  ;;  %v1450_v10 = vpop.permute.xlu0 %1449 }
 0x1d8   : > { %v1503_v38 = vsel %vm1501_vm8, %v1448_v37, %v1450_v10  ;;  %v1504_v50 = vsel %vm1501_vm8, %v1450_v10, %v1452_v33 }
 0x1d9   : > { %1558 = vst [vmem:[#allocation2 + $0x2a8] sm:$0xf0] %v1503_v38  ;;  %1559 = vst [vmem:[#allocation2 + $0x2b0] sm:$0xf0] %v1504_v50  ;;  %1903 = vrot.lane.b32.xlu1 %v10443_v25, %s9716_s24  ;;  %1901 = vrot.lane.b32.xlu0 %v10433_v63, %s9716_s24 }
 0x1db   : > { %v1456_v48 = vpop.permute.xlu1 %1455  ;;  %v1454_v41 = vpop.permute.xlu0 %1453 }
 0x1dc   : > { %v1505_v4 = vsel %vm1501_vm8, %v1452_v33, %v1454_v41  ;;  %v1506_v52 = vsel %vm1501_vm8, %v1454_v41, %v1456_v48  ;;  %v10922_v33 = vld [vmem:[%s9782_s23 + $0x20] sm:$0xff] }
 0x1dd   : > { %1560 = vst [vmem:[#allocation2 + $0x2b8] sm:$0xf0] %v1505_v4  ;;  %1561 = vst [vmem:[#allocation2 + $0x2c0] sm:$0xf0] %v1506_v52  ;;  %1907 = vrot.lane.b32.xlu1 %v10456_v18, %s9716_s24  ;;  %1905 = vrot.lane.b32.xlu0 %v10446_v8, %s9716_s24  ;;  %v10932_v41 = vcombine.low %v10922_v33, %v10922_v33  ;;  %v10935_v4 = vld [vmem:[%s9782_s23 + $0x28] sm:$0xff] }
 0x1df   : > { %v1460_v57 = vpop.permute.xlu1 %1459  ;;  %v1458_v39 = vpop.permute.xlu0 %1457 }
 0x1e0   : > { %v1507_v25 = vsel %vm1501_vm8, %v1456_v48, %v1458_v39  ;;  %v1508_v63 = vsel %vm1501_vm8, %v1458_v39, %v1460_v57 }
 0x1e1   : > { %1562 = vst [vmem:[#allocation2 + $0x2c8] sm:$0xf0] %v1507_v25  ;;  %1563 = vst [vmem:[#allocation2 + $0x2d0] sm:$0xf0] %v1508_v63  ;;  %1911 = vrot.lane.b32.xlu1 %v10469_v51, %s9716_s24  ;;  %1909 = vrot.lane.b32.xlu0 %v10459_v55, %s9716_s24  ;;  %v10945_v63 = vcombine.low %v10935_v4, %v10935_v4 }
 0x1e3   : > { %v1464_v46 = vpop.permute.xlu1 %1463  ;;  %v1462_v44 = vpop.permute.xlu0 %1461 }
 0x1e4   : > { %v1509_v18 = vsel %vm1501_vm8, %v1460_v57, %v1462_v44  ;;  %v1510_v8 = vsel %vm1501_vm8, %v1462_v44, %v1464_v46 }
 0x1e5   : > { %1564 = vst [vmem:[#allocation2 + $0x2d8] sm:$0xf0] %v1509_v18  ;;  %1565 = vst [vmem:[#allocation2 + $0x2e0] sm:$0xf0] %v1510_v8  ;;  %1915 = vrot.lane.b32.xlu1 %v10482_v30, %s9716_s24  ;;  %1913 = vrot.lane.b32.xlu0 %v10472_v24, %s9716_s24 }
 0x1e7   : > { %v1468_v15 = vpop.permute.xlu1 %1467  ;;  %v1466_v31 = vpop.permute.xlu0 %1465 }
 0x1e8   : > { %v1511_v51 = vsel %vm1501_vm8, %v1464_v46, %v1466_v31  ;;  %v1512_v55 = vsel %vm1501_vm8, %v1466_v31, %v1468_v15  ;;  %v10948_v46 = vld [vmem:[%s9782_s23 + $0x30] sm:$0xff] }
 0x1e9   : > { %1566 = vst [vmem:[#allocation2 + $0x2e8] sm:$0xf0] %v1511_v51  ;;  %1567 = vst [vmem:[#allocation2 + $0x2f0] sm:$0xf0] %v1512_v55  ;;  %1919 = vrot.lane.b32.xlu1 %v10495_v36, %s9716_s24  ;;  %1917 = vrot.lane.b32.xlu0 %v10485_v12, %s9716_s24  ;;  %v10958_v31 = vcombine.low %v10948_v46, %v10948_v46  ;;  %v10961_v51 = vld [vmem:[%s9782_s23 + $0x38] sm:$0xff] }
 0x1eb   : > { %v1472_v43 = vpop.permute.xlu1 %1471  ;;  %v1470_v62 = vpop.permute.xlu0 %1469 }
 0x1ec   : > { %v1513_v30 = vsel %vm1501_vm8, %v1468_v15, %v1470_v62  ;;  %v1514_v24 = vsel %vm1501_vm8, %v1470_v62, %v1472_v43 }
 0x1ed   : > { %1568 = vst [vmem:[#allocation2 + $0x2f8] sm:$0xf0] %v1513_v30  ;;  %1569 = vst [vmem:[#allocation2 + $0x300] sm:$0xf0] %v1514_v24  ;;  %1923 = vrot.lane.b32.xlu1 %v10508_v40, %s9716_s24  ;;  %1921 = vrot.lane.b32.xlu0 %v10498_v61, %s9716_s24  ;;  %v10971_v24 = vcombine.low %v10961_v51, %v10961_v51 }
 0x1ef   : > { %v1476_v16 = vpop.permute.xlu1 %1475  ;;  %v1474_v1 = vpop.permute.xlu0 %1473 }
 0x1f0   : > { %v1515_v36 = vsel %vm1501_vm8, %v1472_v43, %v1474_v1  ;;  %v1516_v12 = vsel %vm1501_vm8, %v1474_v1, %v1476_v16 }
 0x1f1   : > { %1570 = vst [vmem:[#allocation2 + $0x308] sm:$0xf0] %v1515_v36  ;;  %1571 = vst [vmem:[#allocation2 + $0x310] sm:$0xf0] %v1516_v12  ;;  %1927 = vrot.lane.b32.xlu1 %v10521_v26, %s9716_s24  ;;  %1925 = vrot.lane.b32.xlu0 %v10511_v42, %s9716_s24 }
 0x1f3   : > { %v1480_v2 = vpop.permute.xlu1 %1479  ;;  %v1478_v47 = vpop.permute.xlu0 %1477 }
 0x1f4   : > { %v1517_v40 = vsel %vm1501_vm8, %v1476_v16, %v1478_v47  ;;  %v1518_v61 = vsel %vm1501_vm8, %v1478_v47, %v1480_v2  ;;  %v10974_v16 = vld [vmem:[%s9782_s23 + $0x40] sm:$0xff] }
 0x1f5   : > { %1572 = vst [vmem:[#allocation2 + $0x318] sm:$0xf0] %v1517_v40  ;;  %1573 = vst [vmem:[#allocation2 + $0x320] sm:$0xf0] %v1518_v61  ;;  %1931 = vrot.lane.b32.xlu1 %v10534_v35, %s9716_s24  ;;  %1929 = vrot.lane.b32.xlu0 %v10524_v45, %s9716_s24  ;;  %v10984_v47 = vcombine.low %v10974_v16, %v10974_v16  ;;  %v10987_v40 = vld [vmem:[%s9782_s23 + $0x48] sm:$0xff] }
 0x1f7   : > { %v1484_v58 = vpop.permute.xlu1 %1483  ;;  %v1482_v26 = vpop.permute.xlu0 %1481 }
 0x1f8   : > { %v1519_v19 = vsel %vm1501_vm8, %v1480_v2, %v1482_v26  ;;  %v1520_v42 = vsel %vm1501_vm8, %v1482_v26, %v1484_v58 }
 0x1f9   : > { %1574 = vst [vmem:[#allocation2 + $0x328] sm:$0xf0] %v1519_v19  ;;  %1575 = vst [vmem:[#allocation2 + $0x330] sm:$0xf0] %v1520_v42  ;;  %1935 = vrot.lane.b32.xlu1 %v10547_v59, %s9716_s24  ;;  %1933 = vrot.lane.b32.xlu0 %v10537_v3, %s9716_s24  ;;  %v10997_v42 = vcombine.low %v10987_v40, %v10987_v40 }
 0x1fb   : > { %v1488_v0 = vpop.permute.xlu1 %1487  ;;  %v1486_v35 = vpop.permute.xlu0 %1485 }
 0x1fc   : > { %v1521_v5 = vsel %vm1501_vm8, %v1484_v58, %v1486_v35  ;;  %v1522_v45 = vsel %vm1501_vm8, %v1486_v35, %v1488_v0 }
 0x1fd   : > { %1576 = vst [vmem:[#allocation2 + $0x338] sm:$0xf0] %v1521_v5  ;;  %1577 = vst [vmem:[#allocation2 + $0x340] sm:$0xf0] %v1522_v45  ;;  %1939 = vrot.lane.b32.xlu1 %v10560_v27, %s9716_s24  ;;  %1937 = vrot.lane.b32.xlu0 %v10550_v17, %s9716_s24  ;;  %v10880_v17 = vcombine.high %v10870_v54, %v10870_v54  ;;  %v10883_v27 = vld [vmem:[%s9782_s23 + $0x8] sm:$0xff] }
 0x1ff   : > { %v1492_v59 = vpop.permute.xlu1 %1491  ;;  %v1490_v13 = vpop.permute.xlu0 %1489 }
 0x200   : > { %v1523_v3 = vsel %vm1501_vm8, %v1488_v0, %v1490_v13  ;;  %v1524_v9 = vsel %vm1501_vm8, %v1490_v13, %v1492_v59  ;;  %v11000_v0 = vld [vmem:[%s9782_s23 + $0x50] sm:$0xff] }
 0x201   : > { %1578 = vst [vmem:[#allocation2 + $0x348] sm:$0xf0] %v1523_v3  ;;  %1579 = vst [vmem:[#allocation2 + $0x350] sm:$0xf0] %v1524_v9  ;;  %1943 = vrot.lane.b32.xlu1 %v10573_v34, %s9716_s24  ;;  %1941 = vrot.lane.b32.xlu0 %v10563_v60, %s9716_s24  ;;  %v10893_v60 = vcombine.low %v10883_v27, %v10883_v27  ;;  %v10896_v34 = vld [vmem:[%s9782_s23 + $0x10] sm:$0xff]  ;;  %v11010_v13 = vcombine.low %v11000_v0, %v11000_v0  ;;  %v11013_v3 = vld [vmem:[%s9782_s23 + $0x58] sm:$0xff] }
 0x202   : > { %v10907_v53 = vcombine.low %v10896_v34, %v10896_v34 }
 0x203   : > { %v1496_v49 = vpop.permute.xlu1 %1495  ;;  %v1494_v23 = vpop.permute.xlu0 %1493 }
 0x204   : > { %v1525_v22 = vsel %vm1501_vm8, %v1492_v59, %v1494_v23  ;;  %v1526_v7 = vsel %vm1501_vm8, %v1494_v23, %v1496_v49 }
 0x205   : > { %1580 = vst [vmem:[#allocation2 + $0x358] sm:$0xf0] %v1525_v22  ;;  %1581 = vst [vmem:[#allocation2 + $0x360] sm:$0xf0] %v1526_v7  ;;  %1947 = vrot.lane.b32.xlu1 %v10880_v17, %s9716_s24  ;;  %1945 = vrot.lane.b32.xlu0 %v10870_v54, %s9716_s24  ;;  %v11023_v7 = vcombine.low %v11013_v3, %v11013_v3 }
 0x207   : > { %v1500_v11 = vpop.permute.xlu1 %1499  ;;  %v1498_v56 = vpop.permute.xlu0 %1497 }
 0x208   : > { %1584 = vst.msk [vmem:[#allocation2 + $0x378] sm:$0xf0] %vm491_vm2, %v1500_v11  ;;  %v1527_v28 = vsel %vm1501_vm8, %v1496_v49, %v1498_v56  ;;  %v1528_v29 = vsel %vm1501_vm8, %v1498_v56, %v1500_v11  ;;  %v11026_v11 = vld [vmem:[%s9782_s23 + $0x60] sm:$0xff] }
 0x209   : > { %1582 = vst [vmem:[#allocation2 + $0x368] sm:$0xf0] %v1527_v28  ;;  %1583 = vst [vmem:[#allocation2 + $0x370] sm:$0xf0] %v1528_v29  ;;  %2076 = vrot.lane.b32.xlu1 %v10883_v27, %s9717_s25  ;;  %2074 = vrot.lane.b32.xlu0 %v10893_v60, %s9717_s25 }
 0x20b   : > { %v1630_v20 = vpop.permute.xlu1 %1629  ;;  %v1628_v37 = vpop.permute.xlu0 %1627 }
 0x20c   : > { %v1684_v6 = vsel %vm1683_vm9, %v1628_v37, %v1630_v20  ;;  %v11036_v37 = vcombine.low %v11026_v11, %v11026_v11 }
 0x20d   : > { %1739 = vst [vmem:[#allocation2 + $0x380] sm:$0xf] %v1684_v6  ;;  %2080 = vrot.lane.b32.xlu1 %v10896_v34, %s9717_s25  ;;  %2078 = vrot.lane.b32.xlu0 %v10907_v53, %s9717_s25  ;;  %v11039_v6 = vld [vmem:[%s9782_s23 + $0x68] sm:$0xff] }
 0x20f   : > { %v1634_v10 = vpop.permute.xlu1 %1633  ;;  %v1632_v38 = vpop.permute.xlu0 %1631 }
 0x210   : > { %v1685_v50 = vsel %vm1683_vm9, %v1630_v20, %v1632_v38  ;;  %v1686_v48 = vsel %vm1683_vm9, %v1632_v38, %v1634_v10 }
 0x211   : > { %1740 = vst [vmem:[#allocation2 + $0x388] sm:$0xf] %v1685_v50  ;;  %1741 = vst [vmem:[#allocation2 + $0x390] sm:$0xf] %v1686_v48  ;;  %2084 = vrot.lane.b32.xlu1 %v10910_v32, %s9717_s25  ;;  %2082 = vrot.lane.b32.xlu0 %v10919_v14, %s9717_s25 }
 0x213   : > { %v1638_v52 = vpop.permute.xlu1 %1637  ;;  %v1636_v57 = vpop.permute.xlu0 %1635 }
 0x214   : > { %v1687_v39 = vsel %vm1683_vm9, %v1634_v10, %v1636_v57  ;;  %v1688_v25 = vsel %vm1683_vm9, %v1636_v57, %v1638_v52 }
 0x215   : > { %1742 = vst [vmem:[#allocation2 + $0x398] sm:$0xf] %v1687_v39  ;;  %1743 = vst [vmem:[#allocation2 + $0x3a0] sm:$0xf] %v1688_v25  ;;  %2088 = vrot.lane.b32.xlu1 %v10922_v33, %s9717_s25  ;;  %2086 = vrot.lane.b32.xlu0 %v10932_v41, %s9717_s25 }
 0x217   : > { %v1642_v44 = vpop.permute.xlu1 %1641  ;;  %v1640_v18 = vpop.permute.xlu0 %1639 }
 0x218   : > { %v1689_v8 = vsel %vm1683_vm9, %v1638_v52, %v1640_v18  ;;  %v1690_v15 = vsel %vm1683_vm9, %v1640_v18, %v1642_v44  ;;  %v11049_v52 = vcombine.low %v11039_v6, %v11039_v6  ;;  %v11059_v18 = vcombine.low %v10870_v54, %v10870_v54 }
 0x219   : > { %1744 = vst [vmem:[#allocation2 + $0x3a8] sm:$0xf] %v1689_v8  ;;  %1745 = vst [vmem:[#allocation2 + $0x3b0] sm:$0xf] %v1690_v15  ;;  %2092 = vrot.lane.b32.xlu1 %v10935_v4, %s9717_s25  ;;  %2090 = vrot.lane.b32.xlu0 %v10945_v63, %s9717_s25 }
 0x21b   : > { %v1646_v55 = vpop.permute.xlu1 %1645  ;;  %v1644_v43 = vpop.permute.xlu0 %1643 }
 0x21c   : > { %v1691_v62 = vsel %vm1683_vm9, %v1642_v44, %v1644_v43  ;;  %v1692_v30 = vsel %vm1683_vm9, %v1644_v43, %v1646_v55 }
 0x21d   : > { %1746 = vst [vmem:[#allocation2 + $0x3b8] sm:$0xf] %v1691_v62  ;;  %1747 = vst [vmem:[#allocation2 + $0x3c0] sm:$0xf] %v1692_v30  ;;  %2096 = vrot.lane.b32.xlu1 %v10948_v46, %s9717_s25  ;;  %2094 = vrot.lane.b32.xlu0 %v10958_v31, %s9717_s25  ;;  %v11069_v62 = vcombine.high %v10883_v27, %v10883_v27 }
 0x21f   : > { %v1650_v1 = vpop.permute.xlu1 %1649  ;;  %v1648_v36 = vpop.permute.xlu0 %1647 }
 0x220   : > { %v1693_v12 = vsel %vm1683_vm9, %v1646_v55, %v1648_v36  ;;  %v1694_v2 = vsel %vm1683_vm9, %v1648_v36, %v1650_v1 }
 0x221   : > { %1748 = vst [vmem:[#allocation2 + $0x3c8] sm:$0xf] %v1693_v12  ;;  %1749 = vst [vmem:[#allocation2 + $0x3d0] sm:$0xf] %v1694_v2  ;;  %2100 = vrot.lane.b32.xlu1 %v10961_v51, %s9717_s25  ;;  %2098 = vrot.lane.b32.xlu0 %v10971_v24, %s9717_s25  ;;  %v11080_v2 = vcombine.high %v10896_v34, %v10896_v34 }
 0x223   : > { %v1654_v61 = vpop.permute.xlu1 %1653  ;;  %v1652_v58 = vpop.permute.xlu0 %1651 }
 0x224   : > { %v1695_v26 = vsel %vm1683_vm9, %v1650_v1, %v1652_v58  ;;  %v1696_v19 = vsel %vm1683_vm9, %v1652_v58, %v1654_v61 }
 0x225   : > { %1750 = vst [vmem:[#allocation2 + $0x3d8] sm:$0xf] %v1695_v26  ;;  %1751 = vst [vmem:[#allocation2 + $0x3e0] sm:$0xf] %v1696_v19  ;;  %2104 = vrot.lane.b32.xlu1 %v10974_v16, %s9717_s25  ;;  %2102 = vrot.lane.b32.xlu0 %v10984_v47, %s9717_s25  ;;  %v11089_v19 = vcombine.high %v10910_v32, %v10910_v32 }
 0x227   : > { %v1658_v35 = vpop.permute.xlu1 %1657  ;;  %v1656_v5 = vpop.permute.xlu0 %1655 }
 0x228   : > { %v1697_v45 = vsel %vm1683_vm9, %v1654_v61, %v1656_v5  ;;  %v1698_v59 = vsel %vm1683_vm9, %v1656_v5, %v1658_v35 }
 0x229   : > { %1752 = vst [vmem:[#allocation2 + $0x3e8] sm:$0xf] %v1697_v45  ;;  %1753 = vst [vmem:[#allocation2 + $0x3f0] sm:$0xf] %v1698_v59  ;;  %2108 = vrot.lane.b32.xlu1 %v10987_v40, %s9717_s25  ;;  %2106 = vrot.lane.b32.xlu0 %v10997_v42, %s9717_s25 }
 0x22b   : > { %v1662_v9 = vpop.permute.xlu1 %1661  ;;  %v1660_v49 = vpop.permute.xlu0 %1659 }
 0x22c   : > { %v1699_v23 = vsel %vm1683_vm9, %v1658_v35, %v1660_v49  ;;  %v1700_v22 = vsel %vm1683_vm9, %v1660_v49, %v1662_v9 }
 0x22d   : > { %1754 = vst [vmem:[#allocation2 + $0x3f8] sm:$0xf] %v1699_v23  ;;  %1755 = vst [vmem:[#allocation2 + $0x400] sm:$0xf] %v1700_v22  ;;  %2112 = vrot.lane.b32.xlu1 %v11000_v0, %s9717_s25  ;;  %2110 = vrot.lane.b32.xlu0 %v11010_v13, %s9717_s25 }
 0x22f   : > { %v1666_v56 = vpop.permute.xlu1 %1665  ;;  %v1664_v28 = vpop.permute.xlu0 %1663 }
 0x230   : > { %v1701_v29 = vsel %vm1683_vm9, %v1662_v9, %v1664_v28  ;;  %v1702_v20 = vsel %vm1683_vm9, %v1664_v28, %v1666_v56  ;;  %v11099_v9 = vcombine.high %v10922_v33, %v10922_v33  ;;  %v11109_v28 = vcombine.high %v10935_v4, %v10935_v4 }
 0x231   : > { %1756 = vst [vmem:[#allocation2 + $0x408] sm:$0xf] %v1701_v29  ;;  %1757 = vst [vmem:[#allocation2 + $0x410] sm:$0xf] %v1702_v20  ;;  %2116 = vrot.lane.b32.xlu1 %v11013_v3, %s9717_s25  ;;  %2114 = vrot.lane.b32.xlu0 %v11023_v7, %s9717_s25 }
 0x233   : > { %v1670_v10 = vpop.permute.xlu1 %1669  ;;  %v1668_v38 = vpop.permute.xlu0 %1667 }
 0x234   : > { %v1703_v50 = vsel %vm1683_vm9, %v1666_v56, %v1668_v38  ;;  %v1704_v48 = vsel %vm1683_vm9, %v1668_v38, %v1670_v10 }
 0x235   : > { %1758 = vst [vmem:[#allocation2 + $0x418] sm:$0xf] %v1703_v50  ;;  %1759 = vst [vmem:[#allocation2 + $0x420] sm:$0xf] %v1704_v48  ;;  %2120 = vrot.lane.b32.xlu1 %v11026_v11, %s9717_s25  ;;  %2118 = vrot.lane.b32.xlu0 %v11036_v37, %s9717_s25  ;;  %v11119_v50 = vcombine.high %v10948_v46, %v10948_v46 }
 0x237   : > { %v1674_v57 = vpop.permute.xlu1 %1673  ;;  %v1672_v39 = vpop.permute.xlu0 %1671 }
 0x238   : > { %v1705_v25 = vsel %vm1683_vm9, %v1670_v10, %v1672_v39  ;;  %v1706_v44 = vsel %vm1683_vm9, %v1672_v39, %v1674_v57 }
 0x239   : > { %1760 = vst [vmem:[#allocation2 + $0x428] sm:$0xf] %v1705_v25  ;;  %1761 = vst [vmem:[#allocation2 + $0x430] sm:$0xf] %v1706_v44  ;;  %2124 = vrot.lane.b32.xlu1 %v11039_v6, %s9717_s25  ;;  %2122 = vrot.lane.b32.xlu0 %v11049_v52, %s9717_s25  ;;  %v11129_v44 = vcombine.high %v10961_v51, %v10961_v51 }
 0x23b   : > { %v1678_v8 = vpop.permute.xlu1 %1677  ;;  %v1676_v15 = vpop.permute.xlu0 %1675 }
 0x23c   : > { %v1707_v55 = vsel %vm1683_vm9, %v1674_v57, %v1676_v15  ;;  %v1708_v43 = vsel %vm1683_vm9, %v1676_v15, %v1678_v8 }
 0x23d   : > { %1762 = vst [vmem:[#allocation2 + $0x438] sm:$0xf] %v1707_v55  ;;  %1763 = vst [vmem:[#allocation2 + $0x440] sm:$0xf] %v1708_v43  ;;  %2128 = vrot.lane.b32.xlu1 %v10870_v54, %s9717_s25  ;;  %2126 = vrot.lane.b32.xlu0 %v11059_v18, %s9717_s25 }
 0x23f   : > { %v1682_v30 = vpop.permute.xlu1 %1681  ;;  %v1680_v1 = vpop.permute.xlu0 %1679 }
 0x240   : > { %1766 = vst.msk [vmem:[#allocation2 + $0x458] sm:$0xf] %vm308_vm0, %v1682_v30  ;;  %v1709_v36 = vsel %vm1683_vm9, %v1678_v8, %v1680_v1  ;;  %v1710_v12 = vsel %vm1683_vm9, %v1680_v1, %v1682_v30  ;;  %v11139_v30 = vcombine.high %v10974_v16, %v10974_v16 }
 0x241   : > { %1764 = vst [vmem:[#allocation2 + $0x448] sm:$0xf] %v1709_v36  ;;  %1765 = vst [vmem:[#allocation2 + $0x450] sm:$0xf] %v1710_v12  ;;  %2257 = vrot.lane.b32.xlu1 %v11069_v62, %s9718_s26  ;;  %2255 = vrot.lane.b32.xlu0 %v10883_v27, %s9718_s26 }
 0x243   : > { %v1896_v61 = vpop.permute.xlu1 %1895  ;;  %v1894_v58 = vpop.permute.xlu0 %1893 }
 0x244   : > { %v1949_v26 = vsel %vm408_vm1, %v1894_v58, %v1896_v61  ;;  %v11149_v58 = vcombine.high %v10987_v40, %v10987_v40 }
 0x245   : > { %2004 = vst [vmem:[#allocation2 + $0x460] sm:$0xf] %v1949_v26  ;;  %2261 = vrot.lane.b32.xlu1 %v11080_v2, %s9718_s26  ;;  %2259 = vrot.lane.b32.xlu0 %v10896_v34, %s9718_s26 }
 0x247   : > { %v1900_v35 = vpop.permute.xlu1 %1899  ;;  %v1898_v5 = vpop.permute.xlu0 %1897 }
 0x248   : > { %v1950_v45 = vsel %vm408_vm1, %v1896_v61, %v1898_v5  ;;  %v1951_v59 = vsel %vm408_vm1, %v1898_v5, %v1900_v35 }
 0x249   : > { %2005 = vst [vmem:[#allocation2 + $0x468] sm:$0xf] %v1950_v45  ;;  %2006 = vst [vmem:[#allocation2 + $0x470] sm:$0xf] %v1951_v59  ;;  %2265 = vrot.lane.b32.xlu1 %v11089_v19, %s9718_s26  ;;  %2263 = vrot.lane.b32.xlu0 %v10910_v32, %s9718_s26  ;;  %v11159_v59 = vcombine.high %v11000_v0, %v11000_v0 }
 0x24b   : > { %v1904_v49 = vpop.permute.xlu1 %1903  ;;  %v1902_v23 = vpop.permute.xlu0 %1901 }
 0x24c   : > { %v1952_v22 = vsel %vm408_vm1, %v1900_v35, %v1902_v23  ;;  %v1953_v56 = vsel %vm408_vm1, %v1902_v23, %v1904_v49 }
 0x24d   : > { %2007 = vst [vmem:[#allocation2 + $0x478] sm:$0xf] %v1952_v22  ;;  %2008 = vst [vmem:[#allocation2 + $0x480] sm:$0xf] %v1953_v56  ;;  %2269 = vrot.lane.b32.xlu1 %v11099_v9, %s9718_s26  ;;  %2267 = vrot.lane.b32.xlu0 %v10922_v33, %s9718_s26 }
 0x24f   : > { %v1908_v29 = vpop.permute.xlu1 %1907  ;;  %v1906_v20 = vpop.permute.xlu0 %1905 }
 0x250   : > { %v1954_v10 = vsel %vm408_vm1, %v1904_v49, %v1906_v20  ;;  %v1955_v38 = vsel %vm408_vm1, %v1906_v20, %v1908_v29 }
 0x251   : > { %2009 = vst [vmem:[#allocation2 + $0x488] sm:$0xf] %v1954_v10  ;;  %2010 = vst [vmem:[#allocation2 + $0x490] sm:$0xf] %v1955_v38  ;;  %2273 = vrot.lane.b32.xlu1 %v11109_v28, %s9718_s26  ;;  %2271 = vrot.lane.b32.xlu0 %v10935_v4, %s9718_s26 }
 0x253   : > { %v1912_v48 = vpop.permute.xlu1 %1911  ;;  %v1910_v57 = vpop.permute.xlu0 %1909 }
 0x254   : > { %v1956_v39 = vsel %vm408_vm1, %v1908_v29, %v1910_v57  ;;  %v1957_v25 = vsel %vm408_vm1, %v1910_v57, %v1912_v48  ;;  %v11169_v29 = vcombine.high %v11013_v3, %v11013_v3  ;;  %v11179_v57 = vcombine.high %v11026_v11, %v11026_v11 }
 0x255   : > { %2011 = vst [vmem:[#allocation2 + $0x498] sm:$0xf] %v1956_v39  ;;  %2012 = vst [vmem:[#allocation2 + $0x4a0] sm:$0xf] %v1957_v25  ;;  %2277 = vrot.lane.b32.xlu1 %v11119_v50, %s9718_s26  ;;  %2275 = vrot.lane.b32.xlu0 %v10948_v46, %s9718_s26 }
 0x257   : > { %v1916_v8 = vpop.permute.xlu1 %1915  ;;  %v1914_v15 = vpop.permute.xlu0 %1913 }
 0x258   : > { %v1958_v55 = vsel %vm408_vm1, %v1912_v48, %v1914_v15  ;;  %v1959_v43 = vsel %vm408_vm1, %v1914_v15, %v1916_v8 }
 0x259   : > { %2013 = vst [vmem:[#allocation2 + $0x4a8] sm:$0xf] %v1958_v55  ;;  %2014 = vst [vmem:[#allocation2 + $0x4b0] sm:$0xf] %v1959_v43  ;;  %2281 = vrot.lane.b32.xlu1 %v11129_v44, %s9718_s26  ;;  %2279 = vrot.lane.b32.xlu0 %v10961_v51, %s9718_s26  ;;  %v11189_v55 = vcombine.high %v11039_v6, %v11039_v6 }
 0x25b   : > { %v1920_v1 = vpop.permute.xlu1 %1919  ;;  %v1918_v36 = vpop.permute.xlu0 %1917 }
 0x25c   : > { %v1960_v12 = vsel %vm408_vm1, %v1916_v8, %v1918_v36  ;;  %v1961_v61 = vsel %vm408_vm1, %v1918_v36, %v1920_v1 }
 0x25d   : > { %2015 = vst [vmem:[#allocation2 + $0x4b8] sm:$0xf] %v1960_v12  ;;  %2016 = vst [vmem:[#allocation2 + $0x4c0] sm:$0xf] %v1961_v61  ;;  %2285 = vrot.lane.b32.xlu1 %v11139_v30, %s9718_s26  ;;  %2283 = vrot.lane.b32.xlu0 %v10974_v16, %s9718_s26 }
 0x25f   : > { %v1924_v26 = vpop.permute.xlu1 %1923  ;;  %v1922_v35 = vpop.permute.xlu0 %1921 }
 0x260   : > { %v1962_v5 = vsel %vm408_vm1, %v1920_v1, %v1922_v35  ;;  %v1963_v45 = vsel %vm408_vm1, %v1922_v35, %v1924_v26 }
 0x261   : > { %2017 = vst [vmem:[#allocation2 + $0x4c8] sm:$0xf] %v1962_v5  ;;  %2018 = vst [vmem:[#allocation2 + $0x4d0] sm:$0xf] %v1963_v45  ;;  %2289 = vrot.lane.b32.xlu1 %v11149_v58, %s9718_s26  ;;  %2287 = vrot.lane.b32.xlu0 %v10987_v40, %s9718_s26 }
 0x263   : > { %v1928_v49 = vpop.permute.xlu1 %1927  ;;  %v1926_v23 = vpop.permute.xlu0 %1925 }
 0x264   : > { %v1964_v22 = vsel %vm408_vm1, %v1924_v26, %v1926_v23  ;;  %v1965_v56 = vsel %vm408_vm1, %v1926_v23, %v1928_v49 }
 0x265   : > { %2019 = vst [vmem:[#allocation2 + $0x4d8] sm:$0xf] %v1964_v22  ;;  %2020 = vst [vmem:[#allocation2 + $0x4e0] sm:$0xf] %v1965_v56  ;;  %2293 = vrot.lane.b32.xlu1 %v11159_v59, %s9718_s26  ;;  %2291 = vrot.lane.b32.xlu0 %v11000_v0, %s9718_s26 }
 0x267   : > { %v1932_v20 = vpop.permute.xlu1 %1931  ;;  %v1930_v10 = vpop.permute.xlu0 %1929 }
 0x268   : > { %v1966_v38 = vsel %vm408_vm1, %v1928_v49, %v1930_v10  ;;  %v1967_v48 = vsel %vm408_vm1, %v1930_v10, %v1932_v20 }
 0x269   : > { %2021 = vst [vmem:[#allocation2 + $0x4e8] sm:$0xf] %v1966_v38  ;;  %2022 = vst [vmem:[#allocation2 + $0x4f0] sm:$0xf] %v1967_v48  ;;  %2297 = vrot.lane.b32.xlu1 %v11169_v29, %s9718_s26  ;;  %2295 = vrot.lane.b32.xlu0 %v11013_v3, %s9718_s26 }
 0x26b   : > { %v1936_v39 = vpop.permute.xlu1 %1935  ;;  %v1934_v25 = vpop.permute.xlu0 %1933 }
 0x26c   : > { %v1968_v8 = vsel %vm408_vm1, %v1932_v20, %v1934_v25  ;;  %v1969_v15 = vsel %vm408_vm1, %v1934_v25, %v1936_v39 }
 0x26d   : > { %2023 = vst [vmem:[#allocation2 + $0x4f8] sm:$0xf] %v1968_v8  ;;  %2024 = vst [vmem:[#allocation2 + $0x500] sm:$0xf] %v1969_v15  ;;  %2301 = vrot.lane.b32.xlu1 %v11179_v57, %s9718_s26  ;;  %2299 = vrot.lane.b32.xlu0 %v11026_v11, %s9718_s26 }
 0x26f   : > { %v1940_v43 = vpop.permute.xlu1 %1939  ;;  %v1938_v1 = vpop.permute.xlu0 %1937 }
 0x270   : > { %v1970_v36 = vsel %vm408_vm1, %v1936_v39, %v1938_v1  ;;  %v1971_v12 = vsel %vm408_vm1, %v1938_v1, %v1940_v43 }
 0x271   : > { %2025 = vst [vmem:[#allocation2 + $0x508] sm:$0xf] %v1970_v36  ;;  %2026 = vst [vmem:[#allocation2 + $0x510] sm:$0xf] %v1971_v12  ;;  %2305 = vrot.lane.b32.xlu1 %v11189_v55, %s9718_s26  ;;  %2303 = vrot.lane.b32.xlu0 %v11039_v6, %s9718_s26 }
 0x273   : > { %v1944_v61 = vpop.permute.xlu1 %1943  ;;  %v1942_v26 = vpop.permute.xlu0 %1941 }
 0x274   : > { %v1972_v35 = vsel %vm408_vm1, %v1940_v43, %v1942_v26  ;;  %v1973_v5 = vsel %vm408_vm1, %v1942_v26, %v1944_v61 }
 0x275   : > { %2027 = vst [vmem:[#allocation2 + $0x518] sm:$0xf] %v1972_v35  ;;  %2028 = vst [vmem:[#allocation2 + $0x520] sm:$0xf] %v1973_v5  ;;  %2309 = vrot.lane.b32.xlu1 %v10880_v17, %s9718_s26  ;;  %2307 = vrot.lane.b32.xlu0 %v10870_v54, %s9718_s26 }
 0x277   : > { %v1948_v45 = vpop.permute.xlu1 %1947  ;;  %v1946_v49 = vpop.permute.xlu0 %1945 }
 0x278   : > { %2031 = vst.msk [vmem:[#allocation2 + $0x538] sm:$0xf] %vm308_vm0, %v1948_v45  ;;  %v1974_v23 = vsel %vm408_vm1, %v1944_v61, %v1946_v49  ;;  %v1975_v22 = vsel %vm408_vm1, %v1946_v49, %v1948_v45 }
 0x279   : > { %2029 = vst [vmem:[#allocation2 + $0x528] sm:$0xf] %v1974_v23  ;;  %2030 = vst [vmem:[#allocation2 + $0x530] sm:$0xf] %v1975_v22  ;;  %2438 = vrot.lane.b32.xlu1 %v10883_v27, %s9719_s27  ;;  %2436 = vrot.lane.b32.xlu0 %v10893_v60, %s9719_s27 }
 0x27b   : > { %v2077_v17 = vpop.permute.xlu1 %2076  ;;  %v2075_v56 = vpop.permute.xlu0 %2074 }
 0x27c   : > { %v2130_v20 = vsel %vm591_vm3, %v2075_v56, %v2077_v17 }
 0x27d   : > { %2185 = vst [vmem:[#allocation2 + $0x460] sm:$0xf0] %v2130_v20  ;;  %2442 = vrot.lane.b32.xlu1 %v10896_v34, %s9719_s27  ;;  %2440 = vrot.lane.b32.xlu0 %v10907_v53, %s9719_s27 }
 0x27f   : > { %v2081_v10 = vpop.permute.xlu1 %2080  ;;  %v2079_v38 = vpop.permute.xlu0 %2078 }
 0x280   : > { %v2131_v48 = vsel %vm591_vm3, %v2077_v17, %v2079_v38  ;;  %v2132_v39 = vsel %vm591_vm3, %v2079_v38, %v2081_v10 }
 0x281   : > { %2186 = vst [vmem:[#allocation2 + $0x468] sm:$0xf0] %v2131_v48  ;;  %2187 = vst [vmem:[#allocation2 + $0x470] sm:$0xf0] %v2132_v39  ;;  %2446 = vrot.lane.b32.xlu1 %v10910_v32, %s9719_s27  ;;  %2444 = vrot.lane.b32.xlu0 %v10919_v14, %s9719_s27 }
 0x283   : > { %v2085_v60 = vpop.permute.xlu1 %2084  ;;  %v2083_v25 = vpop.permute.xlu0 %2082 }
 0x284   : > { %v2133_v8 = vsel %vm591_vm3, %v2081_v10, %v2083_v25  ;;  %v2134_v53 = vsel %vm591_vm3, %v2083_v25, %v2085_v60 }
 0x285   : > { %2188 = vst [vmem:[#allocation2 + $0x478] sm:$0xf0] %v2133_v8  ;;  %2189 = vst [vmem:[#allocation2 + $0x480] sm:$0xf0] %v2134_v53  ;;  %2450 = vrot.lane.b32.xlu1 %v10922_v33, %s9719_s27  ;;  %2448 = vrot.lane.b32.xlu0 %v10932_v41, %s9719_s27 }
 0x287   : > { %v2089_v15 = vpop.permute.xlu1 %2088  ;;  %v2087_v43 = vpop.permute.xlu0 %2086 }
 0x288   : > { %v2135_v1 = vsel %vm591_vm3, %v2085_v60, %v2087_v43  ;;  %v2136_v14 = vsel %vm591_vm3, %v2087_v43, %v2089_v15 }
 0x289   : > { %2190 = vst [vmem:[#allocation2 + $0x488] sm:$0xf0] %v2135_v1  ;;  %2191 = vst [vmem:[#allocation2 + $0x490] sm:$0xf0] %v2136_v14  ;;  %2454 = vrot.lane.b32.xlu1 %v10935_v4, %s9719_s27  ;;  %2452 = vrot.lane.b32.xlu0 %v10945_v63, %s9719_s27 }
 0x28b   : > { %v2093_v36 = vpop.permute.xlu1 %2092  ;;  %v2091_v12 = vpop.permute.xlu0 %2090 }
 0x28c   : > { %v2137_v61 = vsel %vm591_vm3, %v2089_v15, %v2091_v12  ;;  %v2138_v41 = vsel %vm591_vm3, %v2091_v12, %v2093_v36 }
 0x28d   : > { %2192 = vst [vmem:[#allocation2 + $0x498] sm:$0xf0] %v2137_v61  ;;  %2193 = vst [vmem:[#allocation2 + $0x4a0] sm:$0xf0] %v2138_v41  ;;  %2458 = vrot.lane.b32.xlu1 %v10948_v46, %s9719_s27  ;;  %2456 = vrot.lane.b32.xlu0 %v10958_v31, %s9719_s27 }
 0x28f   : > { %v2097_v26 = vpop.permute.xlu1 %2096  ;;  %v2095_v35 = vpop.permute.xlu0 %2094 }
 0x290   : > { %v2139_v5 = vsel %vm591_vm3, %v2093_v36, %v2095_v35  ;;  %v2140_v63 = vsel %vm591_vm3, %v2095_v35, %v2097_v26 }
 0x291   : > { %2194 = vst [vmem:[#allocation2 + $0x4a8] sm:$0xf0] %v2139_v5  ;;  %2195 = vst [vmem:[#allocation2 + $0x4b0] sm:$0xf0] %v2140_v63  ;;  %2462 = vrot.lane.b32.xlu1 %v10961_v51, %s9719_s27  ;;  %2460 = vrot.lane.b32.xlu0 %v10971_v24, %s9719_s27 }
 0x293   : > { %v2101_v45 = vpop.permute.xlu1 %2100  ;;  %v2099_v49 = vpop.permute.xlu0 %2098 }
 0x294   : > { %v2141_v23 = vsel %vm591_vm3, %v2097_v26, %v2099_v49  ;;  %v2142_v31 = vsel %vm591_vm3, %v2099_v49, %v2101_v45 }
 0x295   : > { %2196 = vst [vmem:[#allocation2 + $0x4b8] sm:$0xf0] %v2141_v23  ;;  %2197 = vst [vmem:[#allocation2 + $0x4c0] sm:$0xf0] %v2142_v31  ;;  %2466 = vrot.lane.b32.xlu1 %v10974_v16, %s9719_s27  ;;  %2464 = vrot.lane.b32.xlu0 %v10984_v47, %s9719_s27 }
 0x297   : > { %v2105_v22 = vpop.permute.xlu1 %2104  ;;  %v2103_v17 = vpop.permute.xlu0 %2102 }
 0x298   : > { %v2143_v56 = vsel %vm591_vm3, %v2101_v45, %v2103_v17  ;;  %v2144_v24 = vsel %vm591_vm3, %v2103_v17, %v2105_v22 }
 0x299   : > { %2198 = vst [vmem:[#allocation2 + $0x4c8] sm:$0xf0] %v2143_v56  ;;  %2199 = vst [vmem:[#allocation2 + $0x4d0] sm:$0xf0] %v2144_v24  ;;  %2470 = vrot.lane.b32.xlu1 %v10987_v40, %s9719_s27  ;;  %2468 = vrot.lane.b32.xlu0 %v10997_v42, %s9719_s27 }
 0x29b   : > { %v2109_v20 = vpop.permute.xlu1 %2108  ;;  %v2107_v10 = vpop.permute.xlu0 %2106 }
 0x29c   : > { %v2145_v38 = vsel %vm591_vm3, %v2105_v22, %v2107_v10  ;;  %v2146_v47 = vsel %vm591_vm3, %v2107_v10, %v2109_v20 }
 0x29d   : > { %2200 = vst [vmem:[#allocation2 + $0x4d8] sm:$0xf0] %v2145_v38  ;;  %2201 = vst [vmem:[#allocation2 + $0x4e0] sm:$0xf0] %v2146_v47  ;;  %2474 = vrot.lane.b32.xlu1 %v11000_v0, %s9719_s27  ;;  %2472 = vrot.lane.b32.xlu0 %v11010_v13, %s9719_s27 }
 0x29f   : > { %v2113_v48 = vpop.permute.xlu1 %2112  ;;  %v2111_v39 = vpop.permute.xlu0 %2110 }
 0x2a0   : > { %v2147_v60 = vsel %vm591_vm3, %v2109_v20, %v2111_v39  ;;  %v2148_v42 = vsel %vm591_vm3, %v2111_v39, %v2113_v48 }
 0x2a1   : > { %2202 = vst [vmem:[#allocation2 + $0x4e8] sm:$0xf0] %v2147_v60  ;;  %2203 = vst [vmem:[#allocation2 + $0x4f0] sm:$0xf0] %v2148_v42  ;;  %2478 = vrot.lane.b32.xlu1 %v11013_v3, %s9719_s27  ;;  %2476 = vrot.lane.b32.xlu0 %v11023_v7, %s9719_s27 }
 0x2a3   : > { %v2117_v25 = vpop.permute.xlu1 %2116  ;;  %v2115_v8 = vpop.permute.xlu0 %2114 }
 0x2a4   : > { %v2149_v53 = vsel %vm591_vm3, %v2113_v48, %v2115_v8  ;;  %v2150_v13 = vsel %vm591_vm3, %v2115_v8, %v2117_v25 }
 0x2a5   : > { %2204 = vst [vmem:[#allocation2 + $0x4f8] sm:$0xf0] %v2149_v53  ;;  %2205 = vst [vmem:[#allocation2 + $0x500] sm:$0xf0] %v2150_v13  ;;  %2482 = vrot.lane.b32.xlu1 %v11026_v11, %s9719_s27  ;;  %2480 = vrot.lane.b32.xlu0 %v11036_v37, %s9719_s27  ;;  %v11360_v53 = vld [vmem:[%s9782_s23 + $0x70] sm:$0xff] }
 0x2a7   : > { %v2121_v15 = vpop.permute.xlu1 %2120  ;;  %v2119_v43 = vpop.permute.xlu0 %2118 }
 0x2a8   : > { %v2151_v1 = vsel %vm591_vm3, %v2117_v25, %v2119_v43  ;;  %v2152_v7 = vsel %vm591_vm3, %v2119_v43, %v2121_v15 }
 0x2a9   : > { %2206 = vst [vmem:[#allocation2 + $0x508] sm:$0xf0] %v2151_v1  ;;  %2207 = vst [vmem:[#allocation2 + $0x510] sm:$0xf0] %v2152_v7  ;;  %2486 = vrot.lane.b32.xlu1 %v11039_v6, %s9719_s27  ;;  %2484 = vrot.lane.b32.xlu0 %v11049_v52, %s9719_s27 }
 0x2ab   : > { %v2125_v14 = vpop.permute.xlu1 %2124  ;;  %v2123_v36 = vpop.permute.xlu0 %2122 }
 0x2ac   : > { %v2153_v12 = vsel %vm591_vm3, %v2121_v15, %v2123_v36  ;;  %v2154_v37 = vsel %vm591_vm3, %v2123_v36, %v2125_v14 }
 0x2ad   : > { %2208 = vst [vmem:[#allocation2 + $0x518] sm:$0xf0] %v2153_v12  ;;  %2209 = vst [vmem:[#allocation2 + $0x520] sm:$0xf0] %v2154_v37  ;;  %2490 = vrot.lane.b32.xlu1 %v10870_v54, %s9719_s27  ;;  %2488 = vrot.lane.b32.xlu0 %v11059_v18, %s9719_s27 }
 0x2af   : > { %v2129_v61 = vpop.permute.xlu1 %2128  ;;  %v2127_v41 = vpop.permute.xlu0 %2126 }
 0x2b0   : > { %2212 = vst.msk [vmem:[#allocation2 + $0x538] sm:$0xf0] %vm491_vm2, %v2129_v61  ;;  %v2155_v52 = vsel %vm591_vm3, %v2125_v14, %v2127_v41  ;;  %v2156_v26 = vsel %vm591_vm3, %v2127_v41, %v2129_v61 }
 0x2b1   : > { %2210 = vst [vmem:[#allocation2 + $0x528] sm:$0xf0] %v2155_v52  ;;  %2211 = vst [vmem:[#allocation2 + $0x530] sm:$0xf0] %v2156_v26  ;;  %2619 = vrot.lane.b32.xlu1 %v11069_v62, %s9720_s28  ;;  %2617 = vrot.lane.b32.xlu0 %v10883_v27, %s9720_s28  ;;  %v11397_v52 = vld [vmem:[%s9782_s23 + $0x18] sm:$0xff] }
 0x2b3   : > { %v2258_v54 = vpop.permute.xlu1 %2257  ;;  %v2256_v35 = vpop.permute.xlu0 %2255 }
 0x2b4   : > { %v2311_v18 = vsel %vm773_vm4, %v2256_v35, %v2258_v54 }
 0x2b5   : > { %2366 = vst [vmem:[#allocation2 + $0x540] sm:$0xf] %v2311_v18  ;;  %2623 = vrot.lane.b32.xlu1 %v11080_v2, %s9720_s28  ;;  %2621 = vrot.lane.b32.xlu0 %v10896_v34, %s9720_s28  ;;  %v11406_v18 = vcombine.low %v11397_v52, %v11397_v52 }
 0x2b7   : > { %v2262_v5 = vpop.permute.xlu1 %2261  ;;  %v2260_v63 = vpop.permute.xlu0 %2259 }
 0x2b8   : > { %v2312_v45 = vsel %vm773_vm4, %v2258_v54, %v2260_v63  ;;  %v2313_v62 = vsel %vm773_vm4, %v2260_v63, %v2262_v5 }
 0x2b9   : > { %2367 = vst [vmem:[#allocation2 + $0x548] sm:$0xf] %v2312_v45  ;;  %2368 = vst [vmem:[#allocation2 + $0x550] sm:$0xf] %v2313_v62  ;;  %2627 = vrot.lane.b32.xlu1 %v11089_v19, %s9720_s28  ;;  %2625 = vrot.lane.b32.xlu0 %v10910_v32, %s9720_s28 }
 0x2bb   : > { %v2266_v27 = vpop.permute.xlu1 %2265  ;;  %v2264_v49 = vpop.permute.xlu0 %2263 }
 0x2bc   : > { %v2314_v2 = vsel %vm773_vm4, %v2262_v5, %v2264_v49  ;;  %v2315_v34 = vsel %vm773_vm4, %v2264_v49, %v2266_v27  ;;  %v11409_v5 = vld [vmem:[%s9782_s23 + $0x20] sm:$0xff] }
 0x2bd   : > { %2369 = vst [vmem:[#allocation2 + $0x558] sm:$0xf] %v2314_v2  ;;  %2370 = vst [vmem:[#allocation2 + $0x560] sm:$0xf] %v2315_v34  ;;  %2631 = vrot.lane.b32.xlu1 %v11099_v9, %s9720_s28  ;;  %2629 = vrot.lane.b32.xlu0 %v10922_v33, %s9720_s28  ;;  %v11419_v49 = vcombine.low %v11409_v5, %v11409_v5  ;;  %v11422_v2 = vld [vmem:[%s9782_s23 + $0x28] sm:$0xff] }
 0x2bf   : > { %v2270_v23 = vpop.permute.xlu1 %2269  ;;  %v2268_v31 = vpop.permute.xlu0 %2267 }
 0x2c0   : > { %v2316_v19 = vsel %vm773_vm4, %v2266_v27, %v2268_v31  ;;  %v2317_v32 = vsel %vm773_vm4, %v2268_v31, %v2270_v23 }
 0x2c1   : > { %2371 = vst [vmem:[#allocation2 + $0x568] sm:$0xf] %v2316_v19  ;;  %2372 = vst [vmem:[#allocation2 + $0x570] sm:$0xf] %v2317_v32  ;;  %2635 = vrot.lane.b32.xlu1 %v11109_v28, %s9720_s28  ;;  %2633 = vrot.lane.b32.xlu0 %v10935_v4, %s9720_s28  ;;  %v11432_v32 = vcombine.low %v11422_v2, %v11422_v2 }
 0x2c3   : > { %v2274_v22 = vpop.permute.xlu1 %2273  ;;  %v2272_v17 = vpop.permute.xlu0 %2271 }
 0x2c4   : > { %v2318_v9 = vsel %vm773_vm4, %v2270_v23, %v2272_v17  ;;  %v2319_v33 = vsel %vm773_vm4, %v2272_v17, %v2274_v22 }
 0x2c5   : > { %2373 = vst [vmem:[#allocation2 + $0x578] sm:$0xf] %v2318_v9  ;;  %2374 = vst [vmem:[#allocation2 + $0x580] sm:$0xf] %v2319_v33  ;;  %2639 = vrot.lane.b32.xlu1 %v11119_v50, %s9720_s28  ;;  %2637 = vrot.lane.b32.xlu0 %v10948_v46, %s9720_s28 }
 0x2c7   : > { %v2278_v56 = vpop.permute.xlu1 %2277  ;;  %v2276_v24 = vpop.permute.xlu0 %2275 }
 0x2c8   : > { %v2320_v28 = vsel %vm773_vm4, %v2274_v22, %v2276_v24  ;;  %v2321_v4 = vsel %vm773_vm4, %v2276_v24, %v2278_v56  ;;  %v11435_v22 = vld [vmem:[%s9782_s23 + $0x30] sm:$0xff] }
 0x2c9   : > { %2375 = vst [vmem:[#allocation2 + $0x588] sm:$0xf] %v2320_v28  ;;  %2376 = vst [vmem:[#allocation2 + $0x590] sm:$0xf] %v2321_v4  ;;  %2643 = vrot.lane.b32.xlu1 %v11129_v44, %s9720_s28  ;;  %2641 = vrot.lane.b32.xlu0 %v10961_v51, %s9720_s28  ;;  %v2789_v24 = vcombine.low %v11435_v22, %v11435_v22  ;;  %v11446_v28 = vld [vmem:[%s9782_s23 + $0x38] sm:$0xff] }
 0x2cb   : > { %v2282_v20 = vpop.permute.xlu1 %2281  ;;  %v2280_v10 = vpop.permute.xlu0 %2279 }
 0x2cc   : > { %v2322_v50 = vsel %vm773_vm4, %v2278_v56, %v2280_v10  ;;  %v2323_v46 = vsel %vm773_vm4, %v2280_v10, %v2282_v20 }
 0x2cd   : > { %2377 = vst [vmem:[#allocation2 + $0x598] sm:$0xf] %v2322_v50  ;;  %2378 = vst [vmem:[#allocation2 + $0x5a0] sm:$0xf] %v2323_v46  ;;  %2647 = vrot.lane.b32.xlu1 %v11139_v30, %s9720_s28  ;;  %2645 = vrot.lane.b32.xlu0 %v10974_v16, %s9720_s28  ;;  %v2790_v46 = vcombine.low %v11446_v28, %v11446_v28 }
 0x2cf   : > { %v2286_v38 = vpop.permute.xlu1 %2285  ;;  %v2284_v47 = vpop.permute.xlu0 %2283 }
 0x2d0   : > { %v2324_v44 = vsel %vm773_vm4, %v2282_v20, %v2284_v47  ;;  %v2325_v51 = vsel %vm773_vm4, %v2284_v47, %v2286_v38 }
 0x2d1   : > { %2379 = vst [vmem:[#allocation2 + $0x5a8] sm:$0xf] %v2324_v44  ;;  %2380 = vst [vmem:[#allocation2 + $0x5b0] sm:$0xf] %v2325_v51  ;;  %2651 = vrot.lane.b32.xlu1 %v11149_v58, %s9720_s28  ;;  %2649 = vrot.lane.b32.xlu0 %v10987_v40, %s9720_s28 }
 0x2d3   : > { %v2290_v48 = vpop.permute.xlu1 %2289  ;;  %v2288_v39 = vpop.permute.xlu0 %2287 }
 0x2d4   : > { %v2326_v30 = vsel %vm773_vm4, %v2286_v38, %v2288_v39  ;;  %v2327_v16 = vsel %vm773_vm4, %v2288_v39, %v2290_v48  ;;  %v11456_v38 = vld [vmem:[%s9782_s23 + $0x40] sm:$0xff] }
 0x2d5   : > { %2381 = vst [vmem:[#allocation2 + $0x5b8] sm:$0xf] %v2326_v30  ;;  %2382 = vst [vmem:[#allocation2 + $0x5c0] sm:$0xf] %v2327_v16  ;;  %2655 = vrot.lane.b32.xlu1 %v11159_v59, %s9720_s28  ;;  %2653 = vrot.lane.b32.xlu0 %v11000_v0, %s9720_s28  ;;  %v2791_v39 = vcombine.low %v11456_v38, %v11456_v38  ;;  %v11466_v30 = vld [vmem:[%s9782_s23 + $0x48] sm:$0xff] }
 0x2d7   : > { %v2294_v60 = vpop.permute.xlu1 %2293  ;;  %v2292_v58 = vpop.permute.xlu0 %2291 }
 0x2d8   : > { %v2328_v42 = vsel %vm773_vm4, %v2290_v48, %v2292_v58  ;;  %v2329_v40 = vsel %vm773_vm4, %v2292_v58, %v2294_v60 }
 0x2d9   : > { %2383 = vst [vmem:[#allocation2 + $0x5c8] sm:$0xf] %v2328_v42  ;;  %2384 = vst [vmem:[#allocation2 + $0x5d0] sm:$0xf] %v2329_v40  ;;  %2659 = vrot.lane.b32.xlu1 %v11169_v29, %s9720_s28  ;;  %2657 = vrot.lane.b32.xlu0 %v11013_v3, %s9720_s28  ;;  %v2792_v40 = vcombine.low %v11466_v30, %v11466_v30 }
 0x2db   : > { %v2298_v25 = vpop.permute.xlu1 %2297  ;;  %v2296_v59 = vpop.permute.xlu0 %2295 }
 0x2dc   : > { %v2330_v8 = vsel %vm773_vm4, %v2294_v60, %v2296_v59  ;;  %v2331_v0 = vsel %vm773_vm4, %v2296_v59, %v2298_v25 }
 0x2dd   : > { %2385 = vst [vmem:[#allocation2 + $0x5d8] sm:$0xf] %v2330_v8  ;;  %2386 = vst [vmem:[#allocation2 + $0x5e0] sm:$0xf] %v2331_v0  ;;  %2663 = vrot.lane.b32.xlu1 %v11179_v57, %s9720_s28  ;;  %2661 = vrot.lane.b32.xlu0 %v11026_v11, %s9720_s28  ;;  %v2616_v11 = vcombine.high %v11360_v53, %v11360_v53  ;;  %v11371_v57 = vld [vmem:[%s9782_s23 + $0x8] sm:$0xff] }
 0x2df   : > { %v2302_v29 = vpop.permute.xlu1 %2301  ;;  %v2300_v13 = vpop.permute.xlu0 %2299 }
 0x2e0   : > { %v2332_v3 = vsel %vm773_vm4, %v2298_v25, %v2300_v13  ;;  %v2333_v15 = vsel %vm773_vm4, %v2300_v13, %v2302_v29  ;;  %v11476_v25 = vld [vmem:[%s9782_s23 + $0x50] sm:$0xff] }
 0x2e1   : > { %2387 = vst [vmem:[#allocation2 + $0x5e8] sm:$0xf] %v2332_v3  ;;  %2388 = vst [vmem:[#allocation2 + $0x5f0] sm:$0xf] %v2333_v15  ;;  %2667 = vrot.lane.b32.xlu1 %v11189_v55, %s9720_s28  ;;  %2665 = vrot.lane.b32.xlu0 %v11039_v6, %s9720_s28  ;;  %v11380_v6 = vcombine.low %v11371_v57, %v11371_v57  ;;  %v11383_v55 = vld [vmem:[%s9782_s23 + $0x10] sm:$0xff]  ;;  %v2793_v13 = vcombine.low %v11476_v25, %v11476_v25  ;;  %v2766_v3 = vld [vmem:[%s9782_s23 + $0x58] sm:$0xff] }
 0x2e2   : > { %v11394_v41 = vcombine.low %v11383_v55, %v11383_v55 }
 0x2e3   : > { %v2306_v43 = vpop.permute.xlu1 %2305  ;;  %v2304_v1 = vpop.permute.xlu0 %2303 }
 0x2e4   : > { %v2334_v7 = vsel %vm773_vm4, %v2302_v29, %v2304_v1  ;;  %v2335_v14 = vsel %vm773_vm4, %v2304_v1, %v2306_v43 }
 0x2e5   : > { %2389 = vst [vmem:[#allocation2 + $0x5f8] sm:$0xf] %v2334_v7  ;;  %2390 = vst [vmem:[#allocation2 + $0x600] sm:$0xf] %v2335_v14  ;;  %2671 = vrot.lane.b32.xlu1 %v2616_v11, %s9720_s28  ;;  %2669 = vrot.lane.b32.xlu0 %v11360_v53, %s9720_s28  ;;  %v2794_v7 = vcombine.low %v2766_v3, %v2766_v3  ;;  %v2767_v14 = vld [vmem:[%s9782_s23 + $0x60] sm:$0xff] }
 0x2e7   : > { %v2310_v36 = vpop.permute.xlu1 %2309  ;;  %v2308_v12 = vpop.permute.xlu0 %2307 }
 0x2e8   : > { %2393 = vst.msk [vmem:[#allocation2 + $0x618] sm:$0xf] %vm308_vm0, %v2310_v36  ;;  %v2336_v37 = vsel %vm773_vm4, %v2306_v43, %v2308_v12  ;;  %v2337_v61 = vsel %vm773_vm4, %v2308_v12, %v2310_v36 }
 0x2e9   : > { %2391 = vst [vmem:[#allocation2 + $0x608] sm:$0xf] %v2336_v37  ;;  %2392 = vst [vmem:[#allocation2 + $0x610] sm:$0xf] %v2337_v61  ;;  %2800 = vrot.lane.b32.xlu1 %v11371_v57, %s9721_s29  ;;  %2798 = vrot.lane.b32.xlu0 %v11380_v6, %s9721_s29 }
 0x2eb   : > { %v2439_v26 = vpop.permute.xlu1 %2438  ;;  %v2437_v54 = vpop.permute.xlu0 %2436 }
 0x2ec   : > { %v2492_v35 = vsel %vm955_vm5, %v2437_v54, %v2439_v26  ;;  %v2768_v54 = vld [vmem:[%s9782_s23 + $0x68] sm:$0xff] }
 0x2ed   : > { %2547 = vst [vmem:[#allocation2 + $0x540] sm:$0xf0] %v2492_v35  ;;  %2804 = vrot.lane.b32.xlu1 %v11383_v55, %s9721_s29  ;;  %2802 = vrot.lane.b32.xlu0 %v11394_v41, %s9721_s29 }
 0x2ef   : > { %v2443_v63 = vpop.permute.xlu1 %2442  ;;  %v2441_v45 = vpop.permute.xlu0 %2440 }
 0x2f0   : > { %v2493_v62 = vsel %vm955_vm5, %v2439_v26, %v2441_v45  ;;  %v2494_v27 = vsel %vm955_vm5, %v2441_v45, %v2443_v63  ;;  %v2795_v26 = vcombine.low %v2767_v14, %v2767_v14 }
 0x2f1   : > { %2548 = vst [vmem:[#allocation2 + $0x548] sm:$0xf0] %v2493_v62  ;;  %2549 = vst [vmem:[#allocation2 + $0x550] sm:$0xf0] %v2494_v27  ;;  %2808 = vrot.lane.b32.xlu1 %v11397_v52, %s9721_s29  ;;  %2806 = vrot.lane.b32.xlu0 %v11406_v18, %s9721_s29  ;;  %v2796_v27 = vcombine.low %v2768_v54, %v2768_v54 }
 0x2f3   : > { %v2447_v34 = vpop.permute.xlu1 %2446  ;;  %v2445_v23 = vpop.permute.xlu0 %2444 }
 0x2f4   : > { %v2495_v31 = vsel %vm955_vm5, %v2443_v63, %v2445_v23  ;;  %v2496_v19 = vsel %vm955_vm5, %v2445_v23, %v2447_v34 }
 0x2f5   : > { %2550 = vst [vmem:[#allocation2 + $0x558] sm:$0xf0] %v2495_v31  ;;  %2551 = vst [vmem:[#allocation2 + $0x560] sm:$0xf0] %v2496_v19  ;;  %2812 = vrot.lane.b32.xlu1 %v11409_v5, %s9721_s29  ;;  %2810 = vrot.lane.b32.xlu0 %v11419_v49, %s9721_s29 }
 0x2f7   : > { %v2451_v17 = vpop.permute.xlu1 %2450  ;;  %v2449_v9 = vpop.permute.xlu0 %2448 }
 0x2f8   : > { %v2497_v33 = vsel %vm955_vm5, %v2447_v34, %v2449_v9  ;;  %v2498_v56 = vsel %vm955_vm5, %v2449_v9, %v2451_v17 }
 0x2f9   : > { %2552 = vst [vmem:[#allocation2 + $0x568] sm:$0xf0] %v2497_v33  ;;  %2553 = vst [vmem:[#allocation2 + $0x570] sm:$0xf0] %v2498_v56  ;;  %2816 = vrot.lane.b32.xlu1 %v11422_v2, %s9721_s29  ;;  %2814 = vrot.lane.b32.xlu0 %v11432_v32, %s9721_s29 }
 0x2fb   : > { %v2455_v4 = vpop.permute.xlu1 %2454  ;;  %v2453_v20 = vpop.permute.xlu0 %2452 }
 0x2fc   : > { %v2499_v10 = vsel %vm955_vm5, %v2451_v17, %v2453_v20  ;;  %v2500_v50 = vsel %vm955_vm5, %v2453_v20, %v2455_v4  ;;  %v2797_v17 = vcombine.low %v11360_v53, %v11360_v53 }
 0x2fd   : > { %2554 = vst [vmem:[#allocation2 + $0x578] sm:$0xf0] %v2499_v10  ;;  %2555 = vst [vmem:[#allocation2 + $0x580] sm:$0xf0] %v2500_v50  ;;  %2820 = vrot.lane.b32.xlu1 %v11435_v22, %s9721_s29  ;;  %2818 = vrot.lane.b32.xlu0 %v2789_v24, %s9721_s29 }
 0x2ff   : > { %v2459_v47 = vpop.permute.xlu1 %2458  ;;  %v2457_v44 = vpop.permute.xlu0 %2456 }
 0x300   : > { %v2501_v51 = vsel %vm955_vm5, %v2455_v4, %v2457_v44  ;;  %v2502_v48 = vsel %vm955_vm5, %v2457_v44, %v2459_v47  ;;  %v2965_v4 = vcombine.high %v11371_v57, %v11371_v57 }
 0x301   : > { %2556 = vst [vmem:[#allocation2 + $0x588] sm:$0xf0] %v2501_v51  ;;  %2557 = vst [vmem:[#allocation2 + $0x590] sm:$0xf0] %v2502_v48  ;;  %2824 = vrot.lane.b32.xlu1 %v11446_v28, %s9721_s29  ;;  %2822 = vrot.lane.b32.xlu0 %v2790_v46, %s9721_s29  ;;  %v11531_v48 = vcombine.high %v11397_v52, %v11397_v52 }
 0x303   : > { %v2463_v16 = vpop.permute.xlu1 %2462  ;;  %v2461_v60 = vpop.permute.xlu0 %2460 }
 0x304   : > { %v2503_v58 = vsel %vm955_vm5, %v2459_v47, %v2461_v60  ;;  %v2504_v42 = vsel %vm955_vm5, %v2461_v60, %v2463_v16 }
 0x305   : > { %2558 = vst [vmem:[#allocation2 + $0x598] sm:$0xf0] %v2503_v58  ;;  %2559 = vst [vmem:[#allocation2 + $0x5a0] sm:$0xf0] %v2504_v42  ;;  %2828 = vrot.lane.b32.xlu1 %v11456_v38, %s9721_s29  ;;  %2826 = vrot.lane.b32.xlu0 %v2791_v39, %s9721_s29  ;;  %v11541_v42 = vcombine.high %v11409_v5, %v11409_v5 }
 0x307   : > { %v2467_v59 = vpop.permute.xlu1 %2466  ;;  %v2465_v8 = vpop.permute.xlu0 %2464 }
 0x308   : > { %v2505_v0 = vsel %vm955_vm5, %v2463_v16, %v2465_v8  ;;  %v2506_v29 = vsel %vm955_vm5, %v2465_v8, %v2467_v59 }
 0x309   : > { %2560 = vst [vmem:[#allocation2 + $0x5a8] sm:$0xf0] %v2505_v0  ;;  %2561 = vst [vmem:[#allocation2 + $0x5b0] sm:$0xf0] %v2506_v29  ;;  %2832 = vrot.lane.b32.xlu1 %v11466_v30, %s9721_s29  ;;  %2830 = vrot.lane.b32.xlu0 %v2792_v40, %s9721_s29  ;;  %v11551_v29 = vcombine.high %v11422_v2, %v11422_v2 }
 0x30b   : > { %v2471_v15 = vpop.permute.xlu1 %2470  ;;  %v2469_v11 = vpop.permute.xlu0 %2468 }
 0x30c   : > { %v2507_v43 = vsel %vm955_vm5, %v2467_v59, %v2469_v11  ;;  %v2508_v1 = vsel %vm955_vm5, %v2469_v11, %v2471_v15 }
 0x30d   : > { %2562 = vst [vmem:[#allocation2 + $0x5b8] sm:$0xf0] %v2507_v43  ;;  %2563 = vst [vmem:[#allocation2 + $0x5c0] sm:$0xf0] %v2508_v1  ;;  %2836 = vrot.lane.b32.xlu1 %v11476_v25, %s9721_s29  ;;  %2834 = vrot.lane.b32.xlu0 %v2793_v13, %s9721_s29  ;;  %v11561_v43 = vcombine.high %v11435_v22, %v11435_v22 }
 0x30f   : > { %v2475_v36 = vpop.permute.xlu1 %2474  ;;  %v2473_v12 = vpop.permute.xlu0 %2472 }
 0x310   : > { %v2509_v37 = vsel %vm955_vm5, %v2471_v15, %v2473_v12  ;;  %v2510_v61 = vsel %vm955_vm5, %v2473_v12, %v2475_v36  ;;  %v2971_v12 = vcombine.high %v11446_v28, %v11446_v28 }
 0x311   : > { %2564 = vst [vmem:[#allocation2 + $0x5c8] sm:$0xf0] %v2509_v37  ;;  %2565 = vst [vmem:[#allocation2 + $0x5d0] sm:$0xf0] %v2510_v61  ;;  %2840 = vrot.lane.b32.xlu1 %v2766_v3, %s9721_s29  ;;  %2838 = vrot.lane.b32.xlu0 %v2794_v7, %s9721_s29 }
 0x313   : > { %v2479_v35 = vpop.permute.xlu1 %2478  ;;  %v2477_v63 = vpop.permute.xlu0 %2476 }
 0x314   : > { %v2511_v45 = vsel %vm955_vm5, %v2475_v36, %v2477_v63  ;;  %v2512_v62 = vsel %vm955_vm5, %v2477_v63, %v2479_v35 }
 0x315   : > { %2566 = vst [vmem:[#allocation2 + $0x5d8] sm:$0xf0] %v2511_v45  ;;  %2567 = vst [vmem:[#allocation2 + $0x5e0] sm:$0xf0] %v2512_v62  ;;  %2844 = vrot.lane.b32.xlu1 %v2767_v14, %s9721_s29  ;;  %2842 = vrot.lane.b32.xlu0 %v2795_v26, %s9721_s29 }
 0x317   : > { %v2483_v34 = vpop.permute.xlu1 %2482  ;;  %v2481_v23 = vpop.permute.xlu0 %2480 }
 0x318   : > { %v2513_v31 = vsel %vm955_vm5, %v2479_v35, %v2481_v23  ;;  %v2514_v19 = vsel %vm955_vm5, %v2481_v23, %v2483_v34  ;;  %v2972_v35 = vcombine.high %v11456_v38, %v11456_v38 }
 0x319   : > { %2568 = vst [vmem:[#allocation2 + $0x5e8] sm:$0xf0] %v2513_v31  ;;  %2569 = vst [vmem:[#allocation2 + $0x5f0] sm:$0xf0] %v2514_v19  ;;  %2848 = vrot.lane.b32.xlu1 %v2768_v54, %s9721_s29  ;;  %2846 = vrot.lane.b32.xlu0 %v2796_v27, %s9721_s29 }
 0x31b   : > { %v2487_v9 = vpop.permute.xlu1 %2486  ;;  %v2485_v33 = vpop.permute.xlu0 %2484 }
 0x31c   : > { %v2515_v56 = vsel %vm955_vm5, %v2483_v34, %v2485_v33  ;;  %v2516_v24 = vsel %vm955_vm5, %v2485_v33, %v2487_v9  ;;  %v2973_v34 = vcombine.high %v11466_v30, %v11466_v30 }
 0x31d   : > { %2570 = vst [vmem:[#allocation2 + $0x5f8] sm:$0xf0] %v2515_v56  ;;  %2571 = vst [vmem:[#allocation2 + $0x600] sm:$0xf0] %v2516_v24  ;;  %2852 = vrot.lane.b32.xlu1 %v11360_v53, %s9721_s29  ;;  %2850 = vrot.lane.b32.xlu0 %v2797_v17, %s9721_s29  ;;  %v11522_v53 = vcombine.high %v11383_v55, %v11383_v55 }
 0x31f   : > { %v2491_v20 = vpop.permute.xlu1 %2490  ;;  %v2489_v10 = vpop.permute.xlu0 %2488 }
 0x320   : > { %2574 = vst.msk [vmem:[#allocation2 + $0x618] sm:$0xf0] %vm491_vm2, %v2491_v20  ;;  %v2517_v50 = vsel %vm955_vm5, %v2487_v9, %v2489_v10  ;;  %v2518_v46 = vsel %vm955_vm5, %v2489_v10, %v2491_v20 }
 0x321   : > { %2572 = vst [vmem:[#allocation2 + $0x608] sm:$0xf0] %v2517_v50  ;;  %2573 = vst [vmem:[#allocation2 + $0x610] sm:$0xf0] %v2518_v46  ;;  %2981 = vrot.lane.b32.xlu1 %v2965_v4, %s9722_s30  ;;  %2979 = vrot.lane.b32.xlu0 %v11371_v57, %s9722_s30 }
 0x323   : > { %v2620_v47 = vpop.permute.xlu1 %2619  ;;  %v2618_v44 = vpop.permute.xlu0 %2617 }
 0x324   : > { %v2673_v51 = vsel %vm1137_vm6, %v2618_v44, %v2620_v47 }
 0x325   : > { %2728 = vst [vmem:[#allocation2 + $0x620] sm:$0xf] %v2673_v51  ;;  %2985 = vrot.lane.b32.xlu1 %v11522_v53, %s9722_s30  ;;  %2983 = vrot.lane.b32.xlu0 %v11383_v55, %s9722_s30 }
 0x327   : > { %v2624_v39 = vpop.permute.xlu1 %2623  ;;  %v2622_v16 = vpop.permute.xlu0 %2621 }
 0x328   : > { %v2674_v60 = vsel %vm1137_vm6, %v2620_v47, %v2622_v16  ;;  %v2675_v58 = vsel %vm1137_vm6, %v2622_v16, %v2624_v39 }
 0x329   : > { %2729 = vst [vmem:[#allocation2 + $0x628] sm:$0xf] %v2674_v60  ;;  %2730 = vst [vmem:[#allocation2 + $0x630] sm:$0xf] %v2675_v58  ;;  %2989 = vrot.lane.b32.xlu1 %v11531_v48, %s9722_s30  ;;  %2987 = vrot.lane.b32.xlu0 %v11397_v52, %s9722_s30 }
 0x32b   : > { %v2628_v40 = vpop.permute.xlu1 %2627  ;;  %v2626_v59 = vpop.permute.xlu0 %2625 }
 0x32c   : > { %v2676_v8 = vsel %vm1137_vm6, %v2624_v39, %v2626_v59  ;;  %v2677_v0 = vsel %vm1137_vm6, %v2626_v59, %v2628_v40 }
 0x32d   : > { %2731 = vst [vmem:[#allocation2 + $0x638] sm:$0xf] %v2676_v8  ;;  %2732 = vst [vmem:[#allocation2 + $0x640] sm:$0xf] %v2677_v0  ;;  %2993 = vrot.lane.b32.xlu1 %v11541_v42, %s9722_s30  ;;  %2991 = vrot.lane.b32.xlu0 %v11409_v5, %s9722_s30 }
 0x32f   : > { %v2632_v13 = vpop.permute.xlu1 %2631  ;;  %v2630_v3 = vpop.permute.xlu0 %2629 }
 0x330   : > { %v2678_v15 = vsel %vm1137_vm6, %v2628_v40, %v2630_v3  ;;  %v2679_v11 = vsel %vm1137_vm6, %v2630_v3, %v2632_v13 }
 0x331   : > { %2733 = vst [vmem:[#allocation2 + $0x648] sm:$0xf] %v2678_v15  ;;  %2734 = vst [vmem:[#allocation2 + $0x650] sm:$0xf] %v2679_v11  ;;  %2997 = vrot.lane.b32.xlu1 %v11551_v29, %s9722_s30  ;;  %2995 = vrot.lane.b32.xlu0 %v11422_v2, %s9722_s30 }
 0x333   : > { %v2636_v1 = vpop.permute.xlu1 %2635  ;;  %v2634_v7 = vpop.permute.xlu0 %2633 }
 0x334   : > { %v2680_v14 = vsel %vm1137_vm6, %v2632_v13, %v2634_v7  ;;  %v2681_v36 = vsel %vm1137_vm6, %v2634_v7, %v2636_v1 }
 0x335   : > { %2735 = vst [vmem:[#allocation2 + $0x658] sm:$0xf] %v2680_v14  ;;  %2736 = vst [vmem:[#allocation2 + $0x660] sm:$0xf] %v2681_v36  ;;  %3001 = vrot.lane.b32.xlu1 %v11561_v43, %s9722_s30  ;;  %2999 = vrot.lane.b32.xlu0 %v11435_v22, %s9722_s30 }
 0x337   : > { %v2640_v37 = vpop.permute.xlu1 %2639  ;;  %v2638_v61 = vpop.permute.xlu0 %2637 }
 0x338   : > { %v2682_v26 = vsel %vm1137_vm6, %v2636_v1, %v2638_v61  ;;  %v2683_v54 = vsel %vm1137_vm6, %v2638_v61, %v2640_v37 }
 0x339   : > { %2737 = vst [vmem:[#allocation2 + $0x668] sm:$0xf] %v2682_v26  ;;  %2738 = vst [vmem:[#allocation2 + $0x670] sm:$0xf] %v2683_v54  ;;  %3005 = vrot.lane.b32.xlu1 %v2971_v12, %s9722_s30  ;;  %3003 = vrot.lane.b32.xlu0 %v11446_v28, %s9722_s30  ;;  %v11586_v28 = vld [vmem:[%s9782_s23 + $0x20] sm:$0xff] }
 0x33a   : > { %3359 = vst [vmem:[#allocation2 + $0x800] sm:$0xf] %v11586_v28 }
 0x33b   : > { %v2644_v63 = vpop.permute.xlu1 %2643  ;;  %v2642_v45 = vpop.permute.xlu0 %2641 }
 0x33c   : > { %v2684_v62 = vsel %vm1137_vm6, %v2640_v37, %v2642_v45  ;;  %v2685_v27 = vsel %vm1137_vm6, %v2642_v45, %v2644_v63 }
 0x33d   : > { %2739 = vst [vmem:[#allocation2 + $0x678] sm:$0xf] %v2684_v62  ;;  %2740 = vst [vmem:[#allocation2 + $0x680] sm:$0xf] %v2685_v27  ;;  %3009 = vrot.lane.b32.xlu1 %v2972_v35, %s9722_s30  ;;  %3007 = vrot.lane.b32.xlu0 %v11456_v38, %s9722_s30 }
 0x33f   : > { %v2648_v23 = vpop.permute.xlu1 %2647  ;;  %v2646_v31 = vpop.permute.xlu0 %2645 }
 0x340   : > { %v2686_v19 = vsel %vm1137_vm6, %v2644_v63, %v2646_v31  ;;  %v2687_v17 = vsel %vm1137_vm6, %v2646_v31, %v2648_v23 }
 0x341   : > { %2741 = vst [vmem:[#allocation2 + $0x688] sm:$0xf] %v2686_v19  ;;  %2742 = vst [vmem:[#allocation2 + $0x690] sm:$0xf] %v2687_v17  ;;  %3013 = vrot.lane.b32.xlu1 %v2973_v34, %s9722_s30  ;;  %3011 = vrot.lane.b32.xlu0 %v11466_v30, %s9722_s30 }
 0x343   : > { %v2652_v38 = vpop.permute.xlu1 %2651  ;;  %v2650_v9 = vpop.permute.xlu0 %2649 }
 0x344   : > { %v2688_v33 = vsel %vm1137_vm6, %v2648_v23, %v2650_v9  ;;  %v2689_v56 = vsel %vm1137_vm6, %v2650_v9, %v2652_v38 }
 0x345   : > { %2743 = vst [vmem:[#allocation2 + $0x698] sm:$0xf] %v2688_v33  ;;  %2744 = vst [vmem:[#allocation2 + $0x6a0] sm:$0xf] %v2689_v56  ;;  %4694 = vrot.lane.b32.xlu1 %v11522_v53, %s9723_s6  ;;  %3015 = vrot.lane.b32.xlu0 %v11476_v25, %s9722_s30 }
 0x347   : > { %v2656_v24 = vpop.permute.xlu1 %2655  ;;  %v2654_v4 = vpop.permute.xlu0 %2653 }
 0x348   : > { %v2690_v20 = vsel %vm1137_vm6, %v2652_v38, %v2654_v4  ;;  %v2691_v30 = vsel %vm1137_vm6, %v2654_v4, %v2656_v24 }
 0x349   : > { %2745 = vst [vmem:[#allocation2 + $0x6a8] sm:$0xf] %v2690_v20  ;;  %2746 = vst [vmem:[#allocation2 + $0x6b0] sm:$0xf] %v2691_v30  ;;  %4692 = vrot.lane.b32.xlu1 %v11383_v55, %s9723_s6  ;;  %4696 = vrot.lane.b32.xlu0 %v11397_v52, %s9723_s6 }
 0x34b   : > { %v2660_v10 = vpop.permute.xlu1 %2659  ;;  %v2658_v50 = vpop.permute.xlu0 %2657 }
 0x34c   : > { %v2692_v46 = vsel %vm1137_vm6, %v2656_v24, %v2658_v50  ;;  %v2693_v25 = vsel %vm1137_vm6, %v2658_v50, %v2660_v10 }
 0x34d   : > { %2747 = vst [vmem:[#allocation2 + $0x6b8] sm:$0xf] %v2692_v46  ;;  %2748 = vst [vmem:[#allocation2 + $0x6c0] sm:$0xf] %v2693_v25  ;;  %4334 = vrot.lane.b32.xlu1 %v11397_v52, %s9721_s29  ;;  %4332 = vrot.lane.b32.xlu0 %v11522_v53, %s9721_s29 }
 0x34f   : > { %v2664_v47 = vpop.permute.xlu1 %2663  ;;  %v2662_v44 = vpop.permute.xlu0 %2661 }
 0x350   : > { %v2694_v51 = vsel %vm1137_vm6, %v2660_v10, %v2662_v44  ;;  %v2695_v39 = vsel %vm1137_vm6, %v2662_v44, %v2664_v47  ;;  %v11687_v44 = vld [vmem:[%s9782_s23 + $0x28] sm:$0xff] }
 0x351   : > { %2749 = vst [vmem:[#allocation2 + $0x6c8] sm:$0xf] %v2694_v51  ;;  %2750 = vst [vmem:[#allocation2 + $0x6d0] sm:$0xf] %v2695_v39  ;;  %4515 = vrot.lane.b32.xlu1 %v11406_v18, %s9722_s30  ;;  %4513 = vrot.lane.b32.xlu0 %v11383_v55, %s9722_s30 }
 0x352   : > { %3361 = vst [vmem:[#allocation2 + $0x810] sm:$0xf] %v11687_v44 }
 0x353   : > { %v2668_v16 = vpop.permute.xlu1 %2667  ;;  %v2666_v60 = vpop.permute.xlu0 %2665 }
 0x354   : > { %v2696_v58 = vsel %vm1137_vm6, %v2664_v47, %v2666_v60  ;;  %v2697_v40 = vsel %vm1137_vm6, %v2666_v60, %v2668_v16 }
 0x355   : > { %2751 = vst [vmem:[#allocation2 + $0x6d8] sm:$0xf] %v2696_v58  ;;  %2752 = vst [vmem:[#allocation2 + $0x6e0] sm:$0xf] %v2697_v40  ;;  %4511 = vrot.lane.b32.xlu1 %v11394_v41, %s9722_s30  ;;  %4330 = vrot.lane.b32.xlu0 %v11383_v55, %s9721_s29 }
 0x357   : > { %v2672_v59 = vpop.permute.xlu1 %2671  ;;  %v2670_v8 = vpop.permute.xlu0 %2669 }
 0x358   : > { %2755 = vst.msk [vmem:[#allocation2 + $0x6f8] sm:$0xf] %vm308_vm0, %v2672_v59  ;;  %v2698_v0 = vsel %vm1137_vm6, %v2668_v16, %v2670_v8  ;;  %v2699_v13 = vsel %vm1137_vm6, %v2670_v8, %v2672_v59 }
 0x359   : > { %2753 = vst [vmem:[#allocation2 + $0x6e8] sm:$0xf] %v2698_v0  ;;  %2754 = vst [vmem:[#allocation2 + $0x6f0] sm:$0xf] %v2699_v13  ;;  %3972 = vrot.lane.b32.xlu1 %v11397_v52, %s9719_s27  ;;  %3970 = vrot.lane.b32.xlu0 %v11522_v53, %s9719_s27  ;;  %v9724_v0 = vmov 0.0  }
 0x35a   : > { %5383 = vmatprep.mubr.f32.mxu0 %v9724_v0  ;;  %5454 = vmatprep.mubr.f32.mxu1 %v9724_v0 }
 0x35b   : > { %v2801_v3 = vpop.permute.xlu1 %2800  ;;  %v2799_v15 = vpop.permute.xlu0 %2798 }
 0x35c   : > { %v2854_v11 = vsel %vm1319_vm7, %v2799_v15, %v2801_v3 }
 0x35d   : > { %2909 = vst [vmem:[#allocation2 + $0x620] sm:$0xf0] %v2854_v11  ;;  %4153 = vrot.lane.b32.xlu1 %v11406_v18, %s9720_s28  ;;  %4151 = vrot.lane.b32.xlu0 %v11383_v55, %s9720_s28 }
 0x35f   : > { %v2805_v1 = vpop.permute.xlu1 %2804  ;;  %v2803_v7 = vpop.permute.xlu0 %2802 }
 0x360   : > { %v2855_v14 = vsel %vm1319_vm7, %v2801_v3, %v2803_v7  ;;  %v2856_v36 = vsel %vm1319_vm7, %v2803_v7, %v2805_v1 }
 0x361   : > { %2910 = vst [vmem:[#allocation2 + $0x628] sm:$0xf0] %v2855_v14  ;;  %2911 = vst [vmem:[#allocation2 + $0x630] sm:$0xf0] %v2856_v36  ;;  %4149 = vrot.lane.b32.xlu1 %v11394_v41, %s9720_s28  ;;  %3968 = vrot.lane.b32.xlu0 %v11383_v55, %s9719_s27 }
 0x363   : > { %v2809_v12 = vpop.permute.xlu1 %2808  ;;  %v2807_v37 = vpop.permute.xlu0 %2806 }
 0x364   : > { %v2857_v61 = vsel %vm1319_vm7, %v2805_v1, %v2807_v37  ;;  %v2858_v26 = vsel %vm1319_vm7, %v2807_v37, %v2809_v12 }
 0x365   : > { %2912 = vst [vmem:[#allocation2 + $0x638] sm:$0xf0] %v2857_v61  ;;  %2913 = vst [vmem:[#allocation2 + $0x640] sm:$0xf0] %v2858_v26  ;;  %3610 = vrot.lane.b32.xlu1 %v11397_v52, %s9717_s25  ;;  %3608 = vrot.lane.b32.xlu0 %v11522_v53, %s9717_s25 }
 0x367   : > { %v2813_v54 = vpop.permute.xlu1 %2812  ;;  %v2811_v35 = vpop.permute.xlu0 %2810 }
 0x368   : > { %v2859_v63 = vsel %vm1319_vm7, %v2809_v12, %v2811_v35  ;;  %v2860_v45 = vsel %vm1319_vm7, %v2811_v35, %v2813_v54 }
 0x369   : > { %2914 = vst [vmem:[#allocation2 + $0x648] sm:$0xf0] %v2859_v63  ;;  %2915 = vst [vmem:[#allocation2 + $0x650] sm:$0xf0] %v2860_v45  ;;  %3791 = vrot.lane.b32.xlu1 %v11406_v18, %s9718_s26  ;;  %3789 = vrot.lane.b32.xlu0 %v11383_v55, %s9718_s26 }
 0x36b   : > { %v2817_v62 = vpop.permute.xlu1 %2816  ;;  %v2815_v27 = vpop.permute.xlu0 %2814 }
 0x36c   : > { %v2861_v34 = vsel %vm1319_vm7, %v2813_v54, %v2815_v27  ;;  %v2862_v53 = vsel %vm1319_vm7, %v2815_v27, %v2817_v62 }
 0x36d   : > { %2916 = vst [vmem:[#allocation2 + $0x658] sm:$0xf0] %v2861_v34  ;;  %2917 = vst [vmem:[#allocation2 + $0x660] sm:$0xf0] %v2862_v53  ;;  %3787 = vrot.lane.b32.xlu1 %v11394_v41, %s9718_s26  ;;  %3606 = vrot.lane.b32.xlu0 %v11383_v55, %s9717_s25 }
 0x36f   : > { %v2821_v23 = vpop.permute.xlu1 %2820  ;;  %v2819_v31 = vpop.permute.xlu0 %2818 }
 0x370   : > { %v2863_v19 = vsel %vm1319_vm7, %v2817_v62, %v2819_v31  ;;  %v2864_v17 = vsel %vm1319_vm7, %v2819_v31, %v2821_v23 }
 0x371   : > { %2918 = vst [vmem:[#allocation2 + $0x668] sm:$0xf0] %v2863_v19  ;;  %2919 = vst [vmem:[#allocation2 + $0x670] sm:$0xf0] %v2864_v17  ;;  %3429 = vrot.lane.b32.xlu1 %v11406_v18, %s9716_s24  ;;  %3427 = vrot.lane.b32.xlu0 %v11383_v55, %s9716_s24 }
 0x373   : > { %v2825_v38 = vpop.permute.xlu1 %2824  ;;  %v2823_v9 = vpop.permute.xlu0 %2822 }
 0x374   : > { %v2865_v33 = vsel %vm1319_vm7, %v2821_v23, %v2823_v9  ;;  %v2866_v56 = vsel %vm1319_vm7, %v2823_v9, %v2825_v38 }
 0x375   : > { %2920 = vst [vmem:[#allocation2 + $0x678] sm:$0xf0] %v2865_v33  ;;  %2921 = vst [vmem:[#allocation2 + $0x680] sm:$0xf0] %v2866_v56  ;;  %3162 = vrot.lane.b32.xlu1 %v11371_v57, %s9723_s6  ;;  %3425 = vrot.lane.b32.xlu0 %v11394_v41, %s9716_s24 }
 0x377   : > { %v2829_v24 = vpop.permute.xlu1 %2828  ;;  %v2827_v4 = vpop.permute.xlu0 %2826 }
 0x378   : > { %v2867_v20 = vsel %vm1319_vm7, %v2825_v38, %v2827_v4  ;;  %v2868_v30 = vsel %vm1319_vm7, %v2827_v4, %v2829_v24 }
 0x379   : > { %2922 = vst [vmem:[#allocation2 + $0x688] sm:$0xf0] %v2867_v20  ;;  %2923 = vst [vmem:[#allocation2 + $0x690] sm:$0xf0] %v2868_v30  ;;  %3160 = vrot.lane.b32.xlu1 %v11380_v6, %s9723_s6  ;;  %3164 = vrot.lane.b32.xlu0 %v11394_v41, %s9723_s6 }
 0x37b   : > { %v2833_v10 = vpop.permute.xlu1 %2832  ;;  %v2831_v57 = vpop.permute.xlu0 %2830 }
 0x37c   : > { %v2869_v50 = vsel %vm1319_vm7, %v2829_v24, %v2831_v57  ;;  %v2870_v46 = vsel %vm1319_vm7, %v2831_v57, %v2833_v10 }
 0x37d   : > { %2924 = vst [vmem:[#allocation2 + $0x698] sm:$0xf0] %v2869_v50  ;;  %2925 = vst [vmem:[#allocation2 + $0x6a0] sm:$0xf0] %v2870_v46  ;;  %4700 = vrot.lane.b32.xlu1 %v11409_v5, %s9723_s6  ;;  %4698 = vrot.lane.b32.xlu0 %v11531_v48, %s9723_s6 }
 0x37f   : > { %v2837_v25 = vpop.permute.xlu1 %2836  ;;  %v2835_v47 = vpop.permute.xlu0 %2834 }
 0x380   : > { %v2871_v6 = vsel %vm1319_vm7, %v2833_v10, %v2835_v47  ;;  %v2872_v41 = vsel %vm1319_vm7, %v2835_v47, %v2837_v25 }
 0x381   : > { %2926 = vst [vmem:[#allocation2 + $0x6a8] sm:$0xf0] %v2871_v6  ;;  %2927 = vst [vmem:[#allocation2 + $0x6b0] sm:$0xf0] %v2872_v41  ;;  %4338 = vrot.lane.b32.xlu1 %v11409_v5, %s9721_s29  ;;  %4336 = vrot.lane.b32.xlu0 %v11531_v48, %s9721_s29 }
 0x383   : > { %v2841_v51 = vpop.permute.xlu1 %2840  ;;  %v2839_v39 = vpop.permute.xlu0 %2838 }
 0x384   : > { %v2873_v16 = vsel %vm1319_vm7, %v2837_v25, %v2839_v39  ;;  %v2874_v60 = vsel %vm1319_vm7, %v2839_v39, %v2841_v51 }
 0x385   : > { %2928 = vst [vmem:[#allocation2 + $0x6b8] sm:$0xf0] %v2873_v16  ;;  %2929 = vst [vmem:[#allocation2 + $0x6c0] sm:$0xf0] %v2874_v60  ;;  %4519 = vrot.lane.b32.xlu1 %v11419_v49, %s9722_s30  ;;  %4517 = vrot.lane.b32.xlu0 %v11397_v52, %s9722_s30 }
 0x387   : > { %v2845_v58 = vpop.permute.xlu1 %2844  ;;  %v2843_v40 = vpop.permute.xlu0 %2842 }
 0x388   : > { %v2875_v59 = vsel %vm1319_vm7, %v2841_v51, %v2843_v40  ;;  %v2876_v8 = vsel %vm1319_vm7, %v2843_v40, %v2845_v58 }
 0x389   : > { %2930 = vst [vmem:[#allocation2 + $0x6c8] sm:$0xf0] %v2875_v59  ;;  %2931 = vst [vmem:[#allocation2 + $0x6d0] sm:$0xf0] %v2876_v8  ;;  %4704 = vrot.lane.b32.xlu1 %v11422_v2, %s9723_s6  ;;  %4702 = vrot.lane.b32.xlu0 %v11541_v42, %s9723_s6 }
 0x38b   : > { %v2849_v13 = vpop.permute.xlu1 %2848  ;;  %v2847_v3 = vpop.permute.xlu0 %2846 }
 0x38c   : > { %v2877_v15 = vsel %vm1319_vm7, %v2845_v58, %v2847_v3  ;;  %v2878_v11 = vsel %vm1319_vm7, %v2847_v3, %v2849_v13 }
 0x38d   : > { %2932 = vst [vmem:[#allocation2 + $0x6d8] sm:$0xf0] %v2877_v15  ;;  %2933 = vst [vmem:[#allocation2 + $0x6e0] sm:$0xf0] %v2878_v11  ;;  %3976 = vrot.lane.b32.xlu1 %v11409_v5, %s9719_s27  ;;  %3974 = vrot.lane.b32.xlu0 %v11531_v48, %s9719_s27 }
 0x38f   : > { %v2853_v1 = vpop.permute.xlu1 %2852  ;;  %v2851_v7 = vpop.permute.xlu0 %2850 }
 0x390   : > { %2936 = vst.msk [vmem:[#allocation2 + $0x6f8] sm:$0xf0] %vm491_vm2, %v2853_v1  ;;  %v2879_v14 = vsel %vm1319_vm7, %v2849_v13, %v2851_v7  ;;  %v2880_v36 = vsel %vm1319_vm7, %v2851_v7, %v2853_v1  ;;  %v11812_v7 = vld [vmem:[%s9782_s23 + $0x30] sm:$0xff] }
 0x391   : > { %2934 = vst [vmem:[#allocation2 + $0x6e8] sm:$0xf0] %v2879_v14  ;;  %2935 = vst [vmem:[#allocation2 + $0x6f0] sm:$0xf0] %v2880_v36  ;;  %4157 = vrot.lane.b32.xlu1 %v11419_v49, %s9720_s28  ;;  %4155 = vrot.lane.b32.xlu0 %v11397_v52, %s9720_s28 }
 0x393   : > { %v2982_v12 = vpop.permute.xlu1 %2981  ;;  %v2980_v37 = vpop.permute.xlu0 %2979 }
 0x394   : > { %v3035_v61 = vsel %vm1501_vm8, %v2980_v37, %v2982_v12 }
 0x395   : > { %3090 = vst [vmem:[#allocation2 + $0x700] sm:$0xf] %v3035_v61  ;;  %4342 = vrot.lane.b32.xlu1 %v11422_v2, %s9721_s29  ;;  %4340 = vrot.lane.b32.xlu0 %v11541_v42, %s9721_s29 }
 0x397   : > { %v2986_v26 = vpop.permute.xlu1 %2985  ;;  %v2984_v54 = vpop.permute.xlu0 %2983 }
 0x398   : > { %v3036_v35 = vsel %vm1501_vm8, %v2982_v12, %v2984_v54  ;;  %v3037_v63 = vsel %vm1501_vm8, %v2984_v54, %v2986_v26 }
 0x399   : > { %3091 = vst [vmem:[#allocation2 + $0x708] sm:$0xf] %v3036_v35  ;;  %3092 = vst [vmem:[#allocation2 + $0x710] sm:$0xf] %v3037_v63  ;;  %4523 = vrot.lane.b32.xlu1 %v11432_v32, %s9722_s30  ;;  %4521 = vrot.lane.b32.xlu0 %v11409_v5, %s9722_s30  ;;  %v11834_v35 = vld [vmem:[%s9782_s23 + $0x38] sm:$0xff] }
 0x39b   : > { %v2990_v45 = vpop.permute.xlu1 %2989  ;;  %v2988_v62 = vpop.permute.xlu0 %2987 }
 0x39c   : > { %v3038_v27 = vsel %vm1501_vm8, %v2986_v26, %v2988_v62  ;;  %v3039_v34 = vsel %vm1501_vm8, %v2988_v62, %v2990_v45 }
 0x39d   : > { %3093 = vst [vmem:[#allocation2 + $0x718] sm:$0xf] %v3038_v27  ;;  %3094 = vst [vmem:[#allocation2 + $0x720] sm:$0xf] %v3039_v34  ;;  %3614 = vrot.lane.b32.xlu1 %v11409_v5, %s9717_s25  ;;  %3612 = vrot.lane.b32.xlu0 %v11531_v48, %s9717_s25 }
 0x39f   : > { %v2994_v53 = vpop.permute.xlu1 %2993  ;;  %v2992_v23 = vpop.permute.xlu0 %2991 }
 0x3a0   : > { %v3040_v31 = vsel %vm1501_vm8, %v2990_v45, %v2992_v23  ;;  %v3041_v19 = vsel %vm1501_vm8, %v2992_v23, %v2994_v53 }
 0x3a1   : > { %3095 = vst [vmem:[#allocation2 + $0x728] sm:$0xf] %v3040_v31  ;;  %3096 = vst [vmem:[#allocation2 + $0x730] sm:$0xf] %v3041_v19  ;;  %3795 = vrot.lane.b32.xlu1 %v11419_v49, %s9718_s26  ;;  %3793 = vrot.lane.b32.xlu0 %v11397_v52, %s9718_s26 }
 0x3a3   : > { %v2998_v17 = vpop.permute.xlu1 %2997  ;;  %v2996_v38 = vpop.permute.xlu0 %2995 }
 0x3a4   : > { %v3042_v9 = vsel %vm1501_vm8, %v2994_v53, %v2996_v38  ;;  %v3043_v48 = vsel %vm1501_vm8, %v2996_v38, %v2998_v17 }
 0x3a5   : > { %3097 = vst [vmem:[#allocation2 + $0x738] sm:$0xf] %v3042_v9  ;;  %3098 = vst [vmem:[#allocation2 + $0x740] sm:$0xf] %v3043_v48  ;;  %3980 = vrot.lane.b32.xlu1 %v11422_v2, %s9719_s27  ;;  %3978 = vrot.lane.b32.xlu0 %v11541_v42, %s9719_s27  ;;  %v11856_v9 = vcombine.high %v11812_v7, %v11812_v7 }
 0x3a7   : > { %v3002_v33 = vpop.permute.xlu1 %3001  ;;  %v3000_v56 = vpop.permute.xlu0 %2999 }
 0x3a8   : > { %v3044_v24 = vsel %vm1501_vm8, %v2998_v17, %v3000_v56  ;;  %v3045_v4 = vsel %vm1501_vm8, %v3000_v56, %v3002_v33 }
 0x3a9   : > { %3099 = vst [vmem:[#allocation2 + $0x748] sm:$0xf] %v3044_v24  ;;  %3100 = vst [vmem:[#allocation2 + $0x750] sm:$0xf] %v3045_v4  ;;  %4161 = vrot.lane.b32.xlu1 %v11432_v32, %s9720_s28  ;;  %4159 = vrot.lane.b32.xlu0 %v11409_v5, %s9720_s28  ;;  %v11872_v4 = vcombine.low %v11834_v35, %v11834_v35 }
 0x3ab   : > { %v3006_v20 = vpop.permute.xlu1 %3005  ;;  %v3004_v30 = vpop.permute.xlu0 %3003 }
 0x3ac   : > { %v3046_v10 = vsel %vm1501_vm8, %v3002_v33, %v3004_v30  ;;  %v3047_v57 = vsel %vm1501_vm8, %v3004_v30, %v3006_v20 }
 0x3ad   : > { %3101 = vst [vmem:[#allocation2 + $0x758] sm:$0xf] %v3046_v10  ;;  %3102 = vst [vmem:[#allocation2 + $0x760] sm:$0xf] %v3047_v57  ;;  %3433 = vrot.lane.b32.xlu1 %v11419_v49, %s9716_s24  ;;  %3431 = vrot.lane.b32.xlu0 %v11397_v52, %s9716_s24  ;;  %v3329_v49 = vcombine.high %v11586_v28, %v11586_v28 }
 0x3af   : > { %v3010_v50 = vpop.permute.xlu1 %3009  ;;  %v3008_v46 = vpop.permute.xlu0 %3007  ;;  %3360 = vst [vmem:[#allocation2 + $0x808] sm:$0xf] %v3329_v49 }
 0x3b0   : > { %v3048_v25 = vsel %vm1501_vm8, %v3006_v20, %v3008_v46  ;;  %v3049_v47 = vsel %vm1501_vm8, %v3008_v46, %v3010_v50 }
 0x3b1   : > { %3103 = vst [vmem:[#allocation2 + $0x768] sm:$0xf] %v3048_v25  ;;  %3104 = vst [vmem:[#allocation2 + $0x770] sm:$0xf] %v3049_v47  ;;  %3618 = vrot.lane.b32.xlu1 %v11422_v2, %s9717_s25  ;;  %3616 = vrot.lane.b32.xlu0 %v11541_v42, %s9717_s25 }
 0x3b3   : > { %v3014_v6 = vpop.permute.xlu1 %3013  ;;  %v3012_v41 = vpop.permute.xlu0 %3011 }
 0x3b4   : > { %v3050_v51 = vsel %vm1501_vm8, %v3010_v50, %v3012_v41  ;;  %v3051_v39 = vsel %vm1501_vm8, %v3012_v41, %v3014_v6 }
 0x3b5   : > { %3105 = vst [vmem:[#allocation2 + $0x778] sm:$0xf] %v3050_v51  ;;  %3106 = vst [vmem:[#allocation2 + $0x780] sm:$0xf] %v3051_v39  ;;  %3799 = vrot.lane.b32.xlu1 %v11432_v32, %s9718_s26  ;;  %3797 = vrot.lane.b32.xlu0 %v11409_v5, %s9718_s26  ;;  %v9696_v51 = vld [vmem:[%s9782_s23 + $0x28] sm:$0xff] }
 0x3b7   : > { %v4695_v16 = vpop.permute.xlu1 %4694  ;;  %v11776_v42 = vpop.permute.xlu0 %3015 }
 0x3b8   : > { %v3052_v60 = vsel %vm1501_vm8, %v3014_v6, %v11776_v42 }
 0x3b9   : > { %3107 = vst [vmem:[#allocation2 + $0x788] sm:$0xf] %v3052_v60  ;;  %3168 = vrot.lane.b32.xlu1 %v11406_v18, %s9723_s6  ;;  %3166 = vrot.lane.b32.xlu0 %v11383_v55, %s9723_s6  ;;  %v3149_v18 = vcombine.low %v11586_v28, %v11586_v28 }
 0x3bb   : > { %v4693_v58 = vpop.permute.xlu1 %4692  ;;  %v11784_v40 = vpop.permute.xlu0 %4696 }
 0x3bc   : > { %v4748_v59 = vsel %vm1683_vm9, %v4693_v58, %v4695_v16  ;;  %v4749_v8 = vsel %vm1683_vm9, %v4695_v16, %v11784_v40 }
 0x3bd   : > { %4803 = vst [vmem:[#allocation2 + $0xb60] sm:$0xf] %v4748_v59  ;;  %4804 = vst [vmem:[#allocation2 + $0xb68] sm:$0xf] %v4749_v8  ;;  %3437 = vrot.lane.b32.xlu1 %v11432_v32, %s9716_s24  ;;  %3435 = vrot.lane.b32.xlu0 %v11409_v5, %s9716_s24  ;;  %v3330_v59 = vcombine.high %v11687_v44, %v11687_v44 }
 0x3bf   : > { %v11795_v55 = vpop.permute.xlu1 %4334  ;;  %v4333_v13 = vpop.permute.xlu0 %4332  ;;  %3362 = vst [vmem:[#allocation2 + $0x818] sm:$0xf] %v3330_v59 }
 0x3c0   : > { %v4387_v3 = vsel %vm1319_vm7, %v4333_v13, %v11795_v55 }
 0x3c1   : > { %4442 = vst [vmem:[#allocation2 + $0xa88] sm:$0xf] %v4387_v3  ;;  %3172 = vrot.lane.b32.xlu1 %v3149_v18, %s9723_s6  ;;  %3170 = vrot.lane.b32.xlu0 %v11397_v52, %s9723_s6 }
 0x3c3   : > { %v11802_v32 = vpop.permute.xlu1 %4515  ;;  %v4514_v15 = vpop.permute.xlu0 %4513 }
 0x3c4   : > { %v4568_v5 = vsel %vm1501_vm8, %v4514_v15, %v11802_v32  ;;  %v5197_v11 = vld [vmem:[#allocation2 + $0xb68] sm:$0xf]  ;;  %v5196_v1 = vld [vmem:[#allocation2 + $0xb60] sm:$0xf] }
 0x3c5   : > { %4623 = vst [vmem:[#allocation2 + $0xa88] sm:$0xf0] %v4568_v5  ;;  %4708 = vrot.lane.b32.xlu1 %v11435_v22, %s9723_s6  ;;  %4706 = vrot.lane.b32.xlu0 %v11551_v29, %s9723_s6  ;;  %v11823_v22 = vcombine.low %v11812_v7, %v11812_v7 }
 0x3c6   : > { %9476 = vmatprep.subr.msk.mxu0 %vm5234_vm10, %v5197_v11 }
 0x3c7   : > { %v4512_v52 = vpop.permute.xlu1 %4511  ;;  %v4331_v14 = vpop.permute.xlu0 %4330  ;;  %9477 = vmatpush1.msk.msra.mxu0 %vm5234_vm10, %v5196_v1 }
 0x3c8   : > { %v4567_v36 = vsel %vm1501_vm8, %v4512_v52, %v4514_v15  ;;  %v4386_v12 = vsel %vm1319_vm7, %v4331_v14, %v4333_v13 }
 0x3c9   : > { %4622 = vst [vmem:[#allocation2 + $0xa80] sm:$0xf0] %v4567_v36  ;;  %4441 = vst [vmem:[#allocation2 + $0xa80] sm:$0xf] %v4386_v12  ;;  %4346 = vrot.lane.b32.xlu1 %v11812_v7, %s9721_s29  ;;  %4344 = vrot.lane.b32.xlu0 %v11551_v29, %s9721_s29  ;;  %v5029_v12 = vld [vmem:[#allocation2 + $0x628] sm:$0xff] }
 0x3cb   : > { %v11825_v37 = vpop.permute.xlu1 %3972  ;;  %v3971_v61 = vpop.permute.xlu0 %3970 }
 0x3cc   : > { %v4025_v26 = vsel %vm955_vm5, %v3971_v61, %v11825_v37  ;;  %v5169_v54 = vld [vmem:[#allocation2 + $0xa88] sm:$0xff] }
 0x3cd   : > { %4080 = vst [vmem:[#allocation2 + $0x9a8] sm:$0xf] %v4025_v26  ;;  %4527 = vrot.lane.b32.xlu1 %v11823_v22, %s9722_s30  ;;  %4525 = vrot.lane.b32.xlu0 %v11422_v2, %s9722_s30 }
 0x3ce   : > { %5325 = vmatprep.subr.mxu0 %v5169_v54  ;;  %v5028_v54 = vld [vmem:[#allocation2 + $0x620] sm:$0xff] }
 0x3cf   : > { %v11836_v63 = vpop.permute.xlu1 %4153  ;;  %v4152_v45 = vpop.permute.xlu0 %4151 }
 0x3d0   : > { %v4206_v62 = vsel %vm1137_vm6, %v4152_v45, %v11836_v63  ;;  %v5168_v27 = vld [vmem:[#allocation2 + $0xa80] sm:$0xff] }
 0x3d1   : > { %4261 = vst [vmem:[#allocation2 + $0x9a8] sm:$0xf0] %v4206_v62  ;;  %4712 = vrot.lane.b32.xlu1 %v11834_v35, %s9723_s6  ;;  %4710 = vrot.lane.b32.xlu0 %v11561_v43, %s9723_s6  ;;  %v5001_v62 = vld [vmem:[#allocation2 + $0x548] sm:$0xff] }
 0x3d2   : > { %5326 = vmatpush1.msra.mxu0 %v5168_v27 }
 0x3d3   : > { %v4150_v34 = vpop.permute.xlu1 %4149  ;;  %v3969_v53 = vpop.permute.xlu0 %3968 }
 0x3d4   : > { %v4205_v23 = vsel %vm1137_vm6, %v4150_v34, %v4152_v45  ;;  %v4024_v31 = vsel %vm955_vm5, %v3969_v53, %v3971_v61  ;;  %v5000_v34 = vld [vmem:[#allocation2 + $0x540] sm:$0xff]  ;;  %v4973_v53 = vld [vmem:[#allocation2 + $0x468] sm:$0xff] }
 0x3d5   : > { %4260 = vst [vmem:[#allocation2 + $0x9a0] sm:$0xf0] %v4205_v23  ;;  %4079 = vst [vmem:[#allocation2 + $0x9a0] sm:$0xf] %v4024_v31  ;;  %3984 = vrot.lane.b32.xlu1 %v11812_v7, %s9719_s27  ;;  %3982 = vrot.lane.b32.xlu0 %v11551_v29, %s9719_s27 }
 0x3d7   : > { %v11850_v19 = vpop.permute.xlu1 %3610  ;;  %v3609_v17 = vpop.permute.xlu0 %3608 }
 0x3d8   : > { %v3663_v43 = vsel %vm591_vm3, %v3609_v17, %v11850_v19  ;;  %v5141_v38 = vld [vmem:[#allocation2 + $0x9a8] sm:$0xff] }
 0x3d9   : > { %3718 = vst [vmem:[#allocation2 + $0x8c8] sm:$0xf] %v3663_v43  ;;  %4165 = vrot.lane.b32.xlu1 %v11823_v22, %s9720_s28  ;;  %4163 = vrot.lane.b32.xlu0 %v11422_v2, %s9720_s28  ;;  %v4972_v43 = vld [vmem:[#allocation2 + $0x460] sm:$0xff] }
 0x3da   : > { %5327 = vmatprep.subr.mxu0 %v5141_v38  ;;  %v4945_v38 = vld [vmem:[#allocation2 + $0x388] sm:$0xff] }
 0x3db   : > { %v11862_v48 = vpop.permute.xlu1 %3791  ;;  %v3790_v33 = vpop.permute.xlu0 %3789 }
 0x3dc   : > { %v3844_v56 = vsel %vm773_vm4, %v3790_v33, %v11862_v48  ;;  %v5140_v24 = vld [vmem:[#allocation2 + $0x9a0] sm:$0xff] }
 0x3dd   : > { %3899 = vst [vmem:[#allocation2 + $0x8c8] sm:$0xf0] %v3844_v56  ;;  %4350 = vrot.lane.b32.xlu1 %v11834_v35, %s9721_s29  ;;  %4348 = vrot.lane.b32.xlu0 %v11856_v9, %s9721_s29 }
 0x3de   : > { %5328 = vmatpush1.msra.mxu0 %v5140_v24  ;;  %v4917_v24 = vld [vmem:[#allocation2 + $0x2a8] sm:$0xff] }
 0x3df   : > { %v3788_v2 = vpop.permute.xlu1 %3787  ;;  %v3607_v20 = vpop.permute.xlu0 %3606 }
 0x3e0   : > { %v3843_v30 = vsel %vm773_vm4, %v3788_v2, %v3790_v33  ;;  %v3662_v10 = vsel %vm591_vm3, %v3607_v20, %v3609_v17  ;;  %v4944_v33 = vld [vmem:[#allocation2 + $0x380] sm:$0xff] }
 0x3e1   : > { %3898 = vst [vmem:[#allocation2 + $0x8c0] sm:$0xf0] %v3843_v30  ;;  %3717 = vst [vmem:[#allocation2 + $0x8c0] sm:$0xf] %v3662_v10  ;;  %4531 = vrot.lane.b32.xlu1 %v11872_v4, %s9722_s30  ;;  %4529 = vrot.lane.b32.xlu0 %v11812_v7, %s9722_s30  ;;  %v4916_v10 = vld [vmem:[#allocation2 + $0x2a0] sm:$0xff] }
 0x3e3   : > { %v11880_v57 = vpop.permute.xlu1 %3429  ;;  %v3428_v50 = vpop.permute.xlu0 %3427 }
 0x3e4   : > { %v3482_v46 = vsel %vm408_vm1, %v3428_v50, %v11880_v57  ;;  %v5113_v25 = vld [vmem:[#allocation2 + $0x8c8] sm:$0xff] }
 0x3e5   : > { %3537 = vst [vmem:[#allocation2 + $0x7e8] sm:$0xf0] %v3482_v46  ;;  %3622 = vrot.lane.b32.xlu1 %v11812_v7, %s9717_s25  ;;  %3620 = vrot.lane.b32.xlu0 %v11551_v29, %s9717_s25  ;;  %v4889_v46 = vld [vmem:[#allocation2 + $0x1c8] sm:$0xff] }
 0x3e6   : > { %5329 = vmatprep.subr.mxu0 %v5113_v25 }
 0x3e7   : > { %v3163_v47 = vpop.permute.xlu1 %3162  ;;  %v3426_v49 = vpop.permute.xlu0 %3425 }
 0x3e8   : > { %v3481_v6 = vsel %vm408_vm1, %v3426_v49, %v3428_v50  ;;  %v5112_v41 = vld [vmem:[#allocation2 + $0x8c0] sm:$0xff]  ;;  %v4861_v49 = vld [vmem:[#allocation2 + $0xe8] sm:$0xff] }
 0x3e9   : > { %3536 = vst [vmem:[#allocation2 + $0x7e0] sm:$0xf0] %v3481_v6  ;;  %3803 = vrot.lane.b32.xlu1 %v11823_v22, %s9718_s26  ;;  %3801 = vrot.lane.b32.xlu0 %v9696_v51, %s9718_s26 }
 0x3ea   : > { %5330 = vmatpush1.msra.mxu0 %v5112_v41 }
 0x3eb   : > { %v3161_v39 = vpop.permute.xlu1 %3160  ;;  %v11893_v16 = vpop.permute.xlu0 %3164 }
 0x3ec   : > { %v3216_v60 = vsel %vm1683_vm9, %v3161_v39, %v3163_v47  ;;  %v3217_v29 = vsel %vm1683_vm9, %v3163_v47, %v11893_v16  ;;  %v5085_v58 = vld [vmem:[#allocation2 + $0x7e8] sm:$0xff]  ;;  %v4888_v47 = vld [vmem:[#allocation2 + $0x1c0] sm:$0xff] }
 0x3ed   : > { %3271 = vst [vmem:[#allocation2 + $0x700] sm:$0xf0] %v3216_v60  ;;  %3272 = vst [vmem:[#allocation2 + $0x708] sm:$0xf0] %v3217_v29  ;;  %3988 = vrot.lane.b32.xlu1 %v11834_v35, %s9719_s27  ;;  %3986 = vrot.lane.b32.xlu0 %v11856_v9, %s9719_s27  ;;  %v4860_v39 = vld [vmem:[#allocation2 + $0xe0] sm:$0xff] }
 0x3ee   : > { %5331 = vmatprep.subr.mxu0 %v5085_v58  ;;  %v11963_v60 = vld [vmem:[%s15203_s1] sm:$0xff] }
 0x3ef   : > { %v4701_v8 = vpop.permute.xlu1 %4700  ;;  %v4699_v18 = vpop.permute.xlu0 %4698 }
 0x3f0   : > { %v4750_v13 = vsel %vm1683_vm9, %v11784_v40, %v4699_v18  ;;  %v4751_v3 = vsel %vm1683_vm9, %v4699_v18, %v4701_v8  ;;  %v5084_v15 = vld [vmem:[#allocation2 + $0x7e0] sm:$0xff] }
 0x3f1   : > { %4805 = vst [vmem:[#allocation2 + $0xb70] sm:$0xf] %v4750_v13  ;;  %4806 = vst [vmem:[#allocation2 + $0xb78] sm:$0xf] %v4751_v3  ;;  %4169 = vrot.lane.b32.xlu1 %v11872_v4, %s9720_s28  ;;  %4167 = vrot.lane.b32.xlu0 %v11812_v7, %s9720_s28  ;;  %v11981_v3 = vcombine.high %v11834_v35, %v11834_v35 }
 0x3f2   : > { %5332 = vmatpush1.msra.mxu0 %v5084_v15  ;;  %v11986_v15 = vld [vmem:[%s9782_s23 + $0x40] sm:$0xff] }
 0x3f3   : > { %v11911_v5 = vpop.permute.xlu1 %4338  ;;  %v4337_v11 = vpop.permute.xlu0 %4336 }
 0x3f4   : > { %v4388_v1 = vsel %vm1319_vm7, %v11795_v55, %v4337_v11  ;;  %v4389_v40 = vsel %vm1319_vm7, %v4337_v11, %v11911_v5  ;;  %v5057_v52 = vld [vmem:[#allocation2 + $0x708] sm:$0xff]  ;;  %v5056_v14 = vld [vmem:[#allocation2 + $0x700] sm:$0xff] }
 0x3f5   : > { %4443 = vst [vmem:[#allocation2 + $0xa90] sm:$0xf] %v4388_v1  ;;  %4444 = vst [vmem:[#allocation2 + $0xa98] sm:$0xf] %v4389_v40  ;;  %3441 = vrot.lane.b32.xlu1 %v11823_v22, %s9716_s24  ;;  %3439 = vrot.lane.b32.xlu0 %v9696_v51, %s9716_s24 }
 0x3f6   : > { %5333 = vmatprep.subr.mxu0 %v5057_v52 }
 0x3f7   : > { %5334 = vmatpush1.msra.mxu0 %v5056_v14  ;;  %v11920_v36 = vpop.permute.xlu1 %4519  ;;  %v4518_v61 = vpop.permute.xlu0 %4517 }
 0x3f8   : > { %5335 = vmatprep.subr.mxu0 %v5029_v12  ;;  %v4569_v55 = vsel %vm1501_vm8, %v11802_v32, %v4518_v61  ;;  %v4570_v26 = vsel %vm1501_vm8, %v4518_v61, %v11920_v36  ;;  %v5199_v45 = vld [vmem:[#allocation2 + $0xb78] sm:$0xf]  ;;  %v5198_v27 = vld [vmem:[#allocation2 + $0xb70] sm:$0xf]  ;;  %v12006_v61 = vcombine.low %v11986_v15, %v11986_v15 }
 0x3f9   : > { %4624 = vst [vmem:[#allocation2 + $0xa90] sm:$0xf0] %v4569_v55  ;;  %4625 = vst [vmem:[#allocation2 + $0xa98] sm:$0xf0] %v4570_v26  ;;  %5336 = vmatpush1.msra.mxu0 %v5028_v54  ;;  %3626 = vrot.lane.b32.xlu1 %v11834_v35, %s9717_s25  ;;  %v12011_v54 = vld [vmem:[%s9782_s23 + $0x48] sm:$0xff] }
 0x3fa   : > { %3624 = vrot.lane.b32.xlu0 %v11856_v9, %s9717_s25  ;;  %5337 = vmatprep.subr.mxu0 %v5001_v62  ;;  %v3150_v9 = vcombine.low %v11687_v44, %v11687_v44  ;;  %3369 = vst [vmem:[#allocation2 + $0x850] sm:$0xf] %v12011_v54 }
 0x3fb   : > { %9479 = vmatprep.subr.msk.mxu1 %vm5234_vm10, %v5199_v45  ;;  %5338 = vmatpush1.msra.mxu0 %v5000_v34  ;;  %v11931_v32 = vpop.permute.xlu1 %4704  ;;  %v4703_v23 = vpop.permute.xlu0 %4702  ;;  %v12021_v34 = vcombine.high %v11986_v15, %v11986_v15 }
 0x3fc   : > { %9480 = vmatpush1.msk.msra.mxu1 %vm5234_vm10, %v5198_v27  ;;  %5339 = vmatprep.subr.mxu0 %v4973_v53  ;;  %v4752_v31 = vsel %vm1683_vm9, %v4701_v8, %v4703_v23  ;;  %v4753_v17 = vsel %vm1683_vm9, %v4703_v23, %v11931_v32 }
 0x3fd   : > { %4807 = vst [vmem:[#allocation2 + $0xb80] sm:$0xf] %v4752_v31  ;;  %4808 = vst [vmem:[#allocation2 + $0xb88] sm:$0xf] %v4753_v17  ;;  %5340 = vmatpush1.msra.mxu0 %v4972_v43  ;;  %3807 = vrot.lane.b32.xlu1 %v11872_v4, %s9718_s26 }
 0x3fe   : > { %3805 = vrot.lane.b32.xlu0 %v11812_v7, %s9718_s26  ;;  %5341 = vmatprep.subr.mxu0 %v4945_v38 }
 0x3ff   : > { %5342 = vmatpush1.msra.mxu0 %v4944_v33  ;;  %v11943_v56 = vpop.permute.xlu1 %3976  ;;  %v3975_v2 = vpop.permute.xlu0 %3974 }
 0x400   : > { %5343 = vmatprep.subr.mxu0 %v4917_v24  ;;  %v4026_v20 = vsel %vm955_vm5, %v11825_v37, %v3975_v2  ;;  %v4027_v30 = vsel %vm955_vm5, %v3975_v2, %v11943_v56  ;;  %v5171_v50 = vld [vmem:[#allocation2 + $0xa98] sm:$0xff]  ;;  %v5170_v25 = vld [vmem:[#allocation2 + $0xa90] sm:$0xff] }
 0x401   : > { %4081 = vst [vmem:[#allocation2 + $0x9b0] sm:$0xf] %v4026_v20  ;;  %4082 = vst [vmem:[#allocation2 + $0x9b8] sm:$0xf] %v4027_v30  ;;  %5344 = vmatpush1.msra.mxu0 %v4916_v10  ;;  %3176 = vrot.lane.b32.xlu1 %v3150_v9, %s9723_s6 }
 0x402   : > { %3174 = vrot.lane.b32.xlu0 %v11586_v28, %s9723_s6  ;;  %5345 = vmatprep.subr.mxu0 %v4889_v46  ;;  %v4833_v28 = vld [vmem:[#allocation2 + $0x8] sm:$0xff] }
 0x403   : > { %5396 = vmatprep.subr.mxu1 %v5171_v50  ;;  %5346 = vmatpush1.msra.mxu0 %v4888_v47  ;;  %v11952_v37 = vpop.permute.xlu1 %4157  ;;  %v4156_v6 = vpop.permute.xlu0 %4155 }
 0x404   : > { %5397 = vmatpush1.msra.mxu1 %v5170_v25  ;;  %5347 = vmatprep.subr.mxu0 %v4861_v49  ;;  %v4207_v41 = vsel %vm1137_vm6, %v11836_v63, %v4156_v6  ;;  %v4208_v51 = vsel %vm1137_vm6, %v4156_v6, %v11952_v37  ;;  %v4832_v63 = vld [vmem:[#allocation2] sm:$0xff]  ;;  %v5201_v59 = vld [vmem:[#allocation2 + $0xb88] sm:$0xf] }
 0x405   : > { %4262 = vst [vmem:[#allocation2 + $0x9b0] sm:$0xf0] %v4207_v41  ;;  %4263 = vst [vmem:[#allocation2 + $0x9b8] sm:$0xf0] %v4208_v51  ;;  %5348 = vmatpush1.msra.mxu0 %v4860_v39  ;;  %3445 = vrot.lane.b32.xlu1 %v11872_v4, %s9716_s24  ;;  %v5200_v13 = vld [vmem:[#allocation2 + $0xb80] sm:$0xf] }
 0x406   : > { %3443 = vrot.lane.b32.xlu0 %v11812_v7, %s9716_s24  ;;  %5349 = vmatprep.subr.mxu0 %v4833_v28 }
 0x407   : > { %5350 = vmatpush1.msra.mxu0 %v4832_v63  ;;  %v11967_v29 = vpop.permute.xlu1 %4342  ;;  %v4341_v58 = vpop.permute.xlu0 %4340 }
 0x408   : > { %v4390_v8 = vsel %vm1319_vm7, %v11911_v5, %v4341_v58  ;;  %v4391_v18 = vsel %vm1319_vm7, %v4341_v58, %v11967_v29  ;;  %9482 = vmatprep.subr.msk.mxu0 %vm5234_vm10, %v5201_v59  ;;  %9478 = vmatmul.mubr.msk.f32.vlgmr.msra.gmra.mxu0 %vm5230_vm11, %v11963_v60 }
 0x409   : > { %4445 = vst [vmem:[#allocation2 + $0xaa0] sm:$0xf] %v4390_v8  ;;  %4446 = vst [vmem:[#allocation2 + $0xaa8] sm:$0xf] %v4391_v18  ;;  %9483 = vmatpush1.msk.msra.mxu0 %vm5234_vm10, %v5200_v13  ;;  %3180 = vrot.lane.b32.xlu1 %v11823_v22, %s9723_s6 }
 0x40a   : > { %3178 = vrot.lane.b32.xlu0 %v11687_v44, %s9723_s6  ;;  %5525 = vmatprep.mubr.f32.mxu0 %v9724_v0 }
 0x40b   : > { %v11989_v5 = vpop.permute.xlu1 %4523  ;;  %v4522_v11 = vpop.permute.xlu0 %4521 }
 0x40c   : > { %v4571_v1 = vsel %vm1501_vm8, %v11920_v36, %v4522_v11  ;;  %v4572_v22 = vsel %vm1501_vm8, %v4522_v11, %v11989_v5  ;;  %v5143_v40 = vld [vmem:[#allocation2 + $0x9b8] sm:$0xff]  ;;  %v5142_v52 = vld [vmem:[#allocation2 + $0x9b0] sm:$0xff] }
 0x40d   : > { %4626 = vst [vmem:[#allocation2 + $0xaa0] sm:$0xf0] %v4571_v1  ;;  %4627 = vst [vmem:[#allocation2 + $0xaa8] sm:$0xf0] %v4572_v22  ;;  %4716 = vrot.lane.b32.xlu1 %v11986_v15, %s9723_s6  ;;  %5398 = vmatprep.subr.mxu1 %v5143_v40 }
 0x40e   : > { %4714 = vrot.lane.b32.xlu0 %v11981_v3, %s9723_s6  ;;  %5399 = vmatpush1.msra.mxu1 %v5142_v52 }
 0x40f   : > { %v3615_v44 = vpop.permute.xlu1 %3614  ;;  %v3613_v14 = vpop.permute.xlu0 %3612 }
 0x410   : > { %v3664_v36 = vsel %vm591_vm3, %v11850_v19, %v3613_v14  ;;  %v3665_v12 = vsel %vm591_vm3, %v3613_v14, %v3615_v44 }
 0x411   : > { %3719 = vst [vmem:[#allocation2 + $0x8d0] sm:$0xf] %v3664_v36  ;;  %3720 = vst [vmem:[#allocation2 + $0x8d8] sm:$0xf] %v3665_v12  ;;  %4354 = vrot.lane.b32.xlu1 %v11986_v15, %s9721_s29 }
 0x412   : > { %4352 = vrot.lane.b32.xlu0 %v11981_v3, %s9721_s29 }
 0x413   : > { %v3796_v55 = vpop.permute.xlu1 %3795  ;;  %v3794_v26 = vpop.permute.xlu0 %3793 }
 0x414   : > { %v3845_v19 = vsel %vm773_vm4, %v11862_v48, %v3794_v26  ;;  %v3846_v45 = vsel %vm773_vm4, %v3794_v26, %v3796_v55  ;;  %v5173_v62 = vld [vmem:[#allocation2 + $0xaa8] sm:$0xff]  ;;  %v5172_v27 = vld [vmem:[#allocation2 + $0xaa0] sm:$0xff] }
 0x415   : > { %3900 = vst [vmem:[#allocation2 + $0x8d0] sm:$0xf0] %v3845_v19  ;;  %3901 = vst [vmem:[#allocation2 + $0x8d8] sm:$0xf0] %v3846_v45  ;;  %4535 = vrot.lane.b32.xlu1 %v12006_v61, %s9722_s30  ;;  %5467 = vmatprep.subr.mxu0 %v5173_v62  ;;  %v12026_v48 = vld [vmem:[%s9782_s23 + $0x48] sm:$0xff]  ;;  %v5030_v45 = vld [vmem:[#allocation2 + $0x630] sm:$0xff] }
 0x416   : > { %4533 = vrot.lane.b32.xlu0 %v11834_v35, %s9722_s30  ;;  %5468 = vmatpush1.msra.mxu0 %v5172_v27  ;;  %v12064_v49 = vcombine.low %v12026_v48, %v12026_v48 }
 0x417   : > { %v12028_v53 = vpop.permute.xlu1 %3980  ;;  %v3979_v23 = vpop.permute.xlu0 %3978 }
 0x418   : > { %v4028_v31 = vsel %vm955_vm5, %v11943_v56, %v3979_v23  ;;  %v4029_v17 = vsel %vm955_vm5, %v3979_v23, %v12028_v53  ;;  %v5003_v23 = vld [vmem:[#allocation2 + $0x558] sm:$0xff] }
 0x419   : > { %4083 = vst [vmem:[#allocation2 + $0x9c0] sm:$0xf] %v4028_v31  ;;  %4084 = vst [vmem:[#allocation2 + $0x9c8] sm:$0xf] %v4029_v17  ;;  %4720 = vrot.lane.b32.xlu1 %v12026_v48, %s9723_s6 }
 0x41a   : > { %4718 = vrot.lane.b32.xlu0 %v12021_v34, %s9723_s6 }
 0x41b   : > { %v12038_v43 = vpop.permute.xlu1 %4161  ;;  %v4160_v38 = vpop.permute.xlu0 %4159 }
 0x41c   : > { %v4209_v9 = vsel %vm1137_vm6, %v11952_v37, %v4160_v38  ;;  %v4210_v33 = vsel %vm1137_vm6, %v4160_v38, %v12038_v43  ;;  %v5115_v56 = vld [vmem:[#allocation2 + $0x8d8] sm:$0xff]  ;;  %v5114_v24 = vld [vmem:[#allocation2 + $0x8d0] sm:$0xff] }
 0x41d   : > { %4264 = vst [vmem:[#allocation2 + $0x9c0] sm:$0xf0] %v4209_v9  ;;  %4265 = vst [vmem:[#allocation2 + $0x9c8] sm:$0xf0] %v4210_v33  ;;  %3992 = vrot.lane.b32.xlu1 %v11986_v15, %s9719_s27  ;;  %5400 = vmatprep.subr.mxu1 %v5115_v56  ;;  %v5002_v38 = vld [vmem:[#allocation2 + $0x550] sm:$0xff]  ;;  %v4975_v9 = vld [vmem:[#allocation2 + $0x478] sm:$0xff] }
 0x41e   : > { %3990 = vrot.lane.b32.xlu0 %v11981_v3, %s9719_s27  ;;  %5401 = vmatpush1.msra.mxu1 %v5114_v24 }
 0x41f   : > { %v3434_v2 = vpop.permute.xlu1 %3433  ;;  %v3432_v20 = vpop.permute.xlu0 %3431 }
 0x420   : > { %v3483_v30 = vsel %vm408_vm1, %v11880_v57, %v3432_v20  ;;  %v3484_v10 = vsel %vm408_vm1, %v3432_v20, %v3434_v2 }
 0x421   : > { %3538 = vst [vmem:[#allocation2 + $0x7f0] sm:$0xf0] %v3483_v30  ;;  %3539 = vst [vmem:[#allocation2 + $0x7f8] sm:$0xf0] %v3484_v10  ;;  %4173 = vrot.lane.b32.xlu1 %v12006_v61, %s9720_s28  ;;  %v4947_v30 = vld [vmem:[#allocation2 + $0x398] sm:$0xff] }
 0x422   : > { %4171 = vrot.lane.b32.xlu0 %v11834_v35, %s9720_s28 }
 0x423   : > { %v12055_v50 = vpop.permute.xlu1 %3618  ;;  %v3617_v46 = vpop.permute.xlu0 %3616 }
 0x424   : > { %v3666_v25 = vsel %vm591_vm3, %v3615_v44, %v3617_v46  ;;  %v3667_v47 = vsel %vm591_vm3, %v3617_v46, %v12055_v50  ;;  %v5145_v37 = vld [vmem:[#allocation2 + $0x9c8] sm:$0xff]  ;;  %v5144_v57 = vld [vmem:[#allocation2 + $0x9c0] sm:$0xff]  ;;  %v4946_v46 = vld [vmem:[#allocation2 + $0x390] sm:$0xff] }
 0x425   : > { %3721 = vst [vmem:[#allocation2 + $0x8e0] sm:$0xf] %v3666_v25  ;;  %3722 = vst [vmem:[#allocation2 + $0x8e8] sm:$0xf] %v3667_v47  ;;  %4358 = vrot.lane.b32.xlu1 %v12026_v48, %s9721_s29  ;;  %5469 = vmatprep.subr.mxu0 %v5145_v37  ;;  %v4919_v25 = vld [vmem:[#allocation2 + $0x2b8] sm:$0xff] }
 0x426   : > { %4356 = vrot.lane.b32.xlu0 %v12021_v34, %s9721_s29  ;;  %5470 = vmatpush1.msra.mxu0 %v5144_v57 }
 0x427   : > { %v12068_v6 = vpop.permute.xlu1 %3799  ;;  %v3798_v41 = vpop.permute.xlu0 %3797 }
 0x428   : > { %v3847_v51 = vsel %vm773_vm4, %v3796_v55, %v3798_v41  ;;  %v3848_v39 = vsel %vm773_vm4, %v3798_v41, %v12068_v6  ;;  %v5087_v28 = vld [vmem:[#allocation2 + $0x7f8] sm:$0xff]  ;;  %v5086_v63 = vld [vmem:[#allocation2 + $0x7f0] sm:$0xff]  ;;  %v5033_v41 = vld [vmem:[#allocation2 + $0x648] sm:$0xff] }
 0x429   : > { %3902 = vst [vmem:[#allocation2 + $0x8e0] sm:$0xf0] %v3847_v51  ;;  %3903 = vst [vmem:[#allocation2 + $0x8e8] sm:$0xf0] %v3848_v39  ;;  %4539 = vrot.lane.b32.xlu1 %v12064_v49, %s9722_s30  ;;  %5402 = vmatprep.subr.mxu1 %v5087_v28  ;;  %v5031_v55 = vld [vmem:[#allocation2 + $0x638] sm:$0xff]  ;;  %v4918_v51 = vld [vmem:[#allocation2 + $0x2b0] sm:$0xff] }
 0x42a   : > { %4537 = vrot.lane.b32.xlu0 %v11986_v15, %s9722_s30  ;;  %5403 = vmatpush1.msra.mxu1 %v5086_v63  ;;  %v5032_v39 = vld [vmem:[#allocation2 + $0x640] sm:$0xff]  ;;  %v4891_v28 = vld [vmem:[#allocation2 + $0x1d8] sm:$0xff]  ;;  %v4890_v63 = vld [vmem:[#allocation2 + $0x1d0] sm:$0xff] }
 0x42b   : > { %v3169_v58 = vpop.permute.xlu1 %3168  ;;  %v3167_v59 = vpop.permute.xlu0 %3166 }
 0x42c   : > { %v3218_v8 = vsel %vm1683_vm9, %v11893_v16, %v3167_v59  ;;  %v3219_v18 = vsel %vm1683_vm9, %v3167_v59, %v3169_v58 }
 0x42d   : > { %3273 = vst [vmem:[#allocation2 + $0x710] sm:$0xf0] %v3218_v8  ;;  %3274 = vst [vmem:[#allocation2 + $0x718] sm:$0xf0] %v3219_v18  ;;  %3630 = vrot.lane.b32.xlu1 %v11986_v15, %s9717_s25  ;;  %v5004_v8 = vld [vmem:[#allocation2 + $0x560] sm:$0xff]  ;;  %v4863_v18 = vld [vmem:[#allocation2 + $0xf8] sm:$0xff] }
 0x42e   : > { %3628 = vrot.lane.b32.xlu0 %v11981_v3, %s9717_s25 }
 0x42f   : > { %v12084_v13 = vpop.permute.xlu1 %3437  ;;  %v3436_v11 = vpop.permute.xlu0 %3435 }
 0x430   : > { %v3485_v1 = vsel %vm408_vm1, %v3434_v2, %v3436_v11  ;;  %v3486_v22 = vsel %vm408_vm1, %v3436_v11, %v12084_v13  ;;  %v5117_v40 = vld [vmem:[#allocation2 + $0x8e8] sm:$0xff]  ;;  %v5116_v16 = vld [vmem:[#allocation2 + $0x8e0] sm:$0xff]  ;;  %v4974_v2 = vld [vmem:[#allocation2 + $0x470] sm:$0xff] }
 0x431   : > { %3540 = vst [vmem:[#allocation2 + $0x800] sm:$0xf0] %v3485_v1  ;;  %3541 = vst [vmem:[#allocation2 + $0x808] sm:$0xf0] %v3486_v22  ;;  %3811 = vrot.lane.b32.xlu1 %v12006_v61, %s9718_s26  ;;  %5471 = vmatprep.subr.mxu0 %v5117_v40  ;;  %v4862_v22 = vld [vmem:[#allocation2 + $0xf0] sm:$0xff]  ;;  %v4976_v40 = vld [vmem:[#allocation2 + $0x480] sm:$0xff] }
 0x432   : > { %3809 = vrot.lane.b32.xlu0 %v11834_v35, %s9718_s26  ;;  %5472 = vmatpush1.msra.mxu0 %v5116_v16  ;;  %v4835_v16 = vld [vmem:[#allocation2 + $0x18] sm:$0xff] }
 0x433   : > { %v12093_v3 = vpop.permute.xlu1 %3172  ;;  %v3171_v52 = vpop.permute.xlu0 %3170 }
 0x434   : > { %v3220_v44 = vsel %vm1683_vm9, %v3169_v58, %v3171_v52  ;;  %v3221_v14 = vsel %vm1683_vm9, %v3171_v52, %v12093_v3  ;;  %v5059_v36 = vld [vmem:[#allocation2 + $0x718] sm:$0xff]  ;;  %v5058_v12 = vld [vmem:[#allocation2 + $0x710] sm:$0xff] }
 0x435   : > { %3275 = vst [vmem:[#allocation2 + $0x720] sm:$0xf0] %v3220_v44  ;;  %3276 = vst [vmem:[#allocation2 + $0x728] sm:$0xf0] %v3221_v14  ;;  %3996 = vrot.lane.b32.xlu1 %v12026_v48, %s9719_s27  ;;  %5404 = vmatprep.subr.mxu1 %v5059_v36  ;;  %v4949_v14 = vld [vmem:[#allocation2 + $0x3a8] sm:$0xff]  ;;  %v4834_v36 = vld [vmem:[#allocation2 + $0x10] sm:$0xff] }
 0x436   : > { %3994 = vrot.lane.b32.xlu0 %v12021_v34, %s9719_s27  ;;  %5405 = vmatpush1.msra.mxu1 %v5058_v12 }
 0x437   : > { %v12102_v26 = vpop.permute.xlu1 %4708  ;;  %5406 = vmatprep.subr.mxu1 %v5031_v55  ;;  %v4707_v19 = vpop.permute.xlu0 %4706 }
 0x438   : > { %v4754_v62 = vsel %vm1683_vm9, %v11931_v32, %v4707_v19  ;;  %v4755_v27 = vsel %vm1683_vm9, %v4707_v19, %v12102_v26  ;;  %5407 = vmatpush1.msra.mxu1 %v5030_v45  ;;  %v5089_v31 = vld [vmem:[#allocation2 + $0x808] sm:$0xff]  ;;  %v5088_v17 = vld [vmem:[#allocation2 + $0x800] sm:$0xff] }
 0x439   : > { %4809 = vst [vmem:[#allocation2 + $0xb90] sm:$0xf] %v4754_v62  ;;  %4810 = vst [vmem:[#allocation2 + $0xb98] sm:$0xf] %v4755_v27  ;;  %4177 = vrot.lane.b32.xlu1 %v12064_v49, %s9720_s28  ;;  %5408 = vmatprep.subr.mxu1 %v5003_v23  ;;  %v4921_v45 = vld [vmem:[#allocation2 + $0x2c8] sm:$0xff]  ;;  %v4920_v62 = vld [vmem:[#allocation2 + $0x2c0] sm:$0xff] }
 0x43a   : > { %4175 = vrot.lane.b32.xlu0 %v11986_v15, %s9720_s28  ;;  %5473 = vmatprep.subr.mxu0 %v5089_v31 }
 0x43b   : > { %5409 = vmatpush1.msra.mxu1 %v5002_v38  ;;  %5474 = vmatpush1.msra.mxu0 %v5088_v17  ;;  %v12112_v32 = vpop.permute.xlu1 %4346  ;;  %v4345_v33 = vpop.permute.xlu0 %4344 }
 0x43c   : > { %5410 = vmatprep.subr.mxu1 %v4975_v9  ;;  %v4392_v56 = vsel %vm1319_vm7, %v11967_v29, %v4345_v33  ;;  %v4393_v24 = vsel %vm1319_vm7, %v4345_v33, %v12112_v32  ;;  %v5061_v20 = vld [vmem:[#allocation2 + $0x728] sm:$0xff]  ;;  %v5060_v10 = vld [vmem:[#allocation2 + $0x720] sm:$0xff] }
 0x43d   : > { %4447 = vst [vmem:[#allocation2 + $0xab0] sm:$0xf] %v4392_v56  ;;  %4448 = vst [vmem:[#allocation2 + $0xab8] sm:$0xf] %v4393_v24  ;;  %5411 = vmatpush1.msra.mxu1 %v4974_v2  ;;  %3449 = vrot.lane.b32.xlu1 %v12006_v61, %s9716_s24  ;;  %v4893_v33 = vld [vmem:[#allocation2 + $0x1e8] sm:$0xff]  ;;  %v4892_v56 = vld [vmem:[#allocation2 + $0x1e0] sm:$0xff] }
 0x43e   : > { %3447 = vrot.lane.b32.xlu0 %v11834_v35, %s9716_s24  ;;  %5412 = vmatprep.subr.mxu1 %v4947_v30  ;;  %v4865_v24 = vld [vmem:[#allocation2 + $0x108] sm:$0xff] }
 0x43f   : > { %5475 = vmatprep.subr.mxu0 %v5061_v20  ;;  %5413 = vmatpush1.msra.mxu1 %v4946_v46  ;;  %v12122_v29 = vpop.permute.xlu1 %4527  ;;  %v4526_v47 = vpop.permute.xlu0 %4525  ;;  %v4864_v20 = vld [vmem:[#allocation2 + $0x100] sm:$0xff]  ;;  %v4837_v30 = vld [vmem:[#allocation2 + $0x28] sm:$0xff] }
 0x440   : > { %5476 = vmatpush1.msra.mxu0 %v5060_v10  ;;  %5414 = vmatprep.subr.mxu1 %v4919_v25  ;;  %v4573_v37 = vsel %vm1501_vm8, %v11989_v5, %v4526_v47  ;;  %v4574_v57 = vsel %vm1501_vm8, %v4526_v47, %v12122_v29  ;;  %v5005_v5 = vld [vmem:[#allocation2 + $0x568] sm:$0xff]  ;;  %v5203_v19 = vld [vmem:[#allocation2 + $0xb98] sm:$0xf]  ;;  %v5202_v27 = vld [vmem:[#allocation2 + $0xb90] sm:$0xf] }
 0x441   : > { %4628 = vst [vmem:[#allocation2 + $0xab0] sm:$0xf0] %v4573_v37  ;;  %4629 = vst [vmem:[#allocation2 + $0xab8] sm:$0xf0] %v4574_v57  ;;  %5477 = vmatprep.subr.mxu0 %v5033_v41  ;;  %5415 = vmatpush1.msra.mxu1 %v4918_v51  ;;  %v4836_v10 = vld [vmem:[#allocation2 + $0x20] sm:$0xff]  ;;  %v12187_v51 = vcombine.high %v12026_v48, %v12026_v48 }
 0x442   : > { %5478 = vmatpush1.msra.mxu0 %v5032_v39  ;;  %3634 = vrot.lane.b32.xlu1 %v12026_v48, %s9717_s25 }
 0x443   : > { %3632 = vrot.lane.b32.xlu0 %v12021_v34, %s9717_s25  ;;  %5416 = vmatprep.subr.mxu1 %v4891_v28  ;;  %v12132_v58 = vpop.permute.xlu1 %4712  ;;  %v4711_v59 = vpop.permute.xlu0 %4710  ;;  %v4977_v34 = vld [vmem:[#allocation2 + $0x488] sm:$0xff] }
 0x444   : > { %5479 = vmatprep.subr.mxu0 %v5005_v5  ;;  %5417 = vmatpush1.msra.mxu1 %v4890_v63  ;;  %v4756_v11 = vsel %vm1683_vm9, %v12102_v26, %v4711_v59  ;;  %v4757_v1 = vsel %vm1683_vm9, %v4711_v59, %v12132_v58  ;;  %v4948_v26 = vld [vmem:[#allocation2 + $0x3a0] sm:$0xff] }
 0x445   : > { %5480 = vmatpush1.msra.mxu0 %v5004_v8  ;;  %5418 = vmatprep.subr.mxu1 %v4863_v18  ;;  %4811 = vst [vmem:[#allocation2 + $0xba0] sm:$0xf] %v4756_v11  ;;  %4812 = vst [vmem:[#allocation2 + $0xba8] sm:$0xf] %v4757_v1 }
 0x446   : > { %5481 = vmatprep.subr.mxu0 %v4977_v34  ;;  %5419 = vmatpush1.msra.mxu1 %v4862_v22  ;;  %v12225_v22 = vld [vmem:[%s9782_s23 + $0x58] sm:$0xff] }
 0x447   : > { %5482 = vmatpush1.msra.mxu0 %v4976_v40  ;;  %3815 = vrot.lane.b32.xlu1 %v12064_v49, %s9718_s26  ;;  %v12140_v52 = vpop.permute.xlu1 %3984  ;;  %v3983_v44 = vpop.permute.xlu0 %3982  ;;  %3373 = vst [vmem:[#allocation2 + $0x870] sm:$0xf] %v12225_v22 }
 0x448   : > { %3813 = vrot.lane.b32.xlu0 %v11986_v15, %s9718_s26  ;;  %5420 = vmatprep.subr.mxu1 %v4835_v16  ;;  %v4030_v12 = vsel %vm955_vm5, %v12028_v53, %v3983_v44  ;;  %v4031_v55 = vsel %vm955_vm5, %v3983_v44, %v12140_v52  ;;  %v5175_v53 = vld [vmem:[#allocation2 + $0xab8] sm:$0xff]  ;;  %v5174_v17 = vld [vmem:[#allocation2 + $0xab0] sm:$0xff] }
 0x449   : > { %5483 = vmatprep.subr.mxu0 %v4949_v14  ;;  %5421 = vmatpush1.msra.mxu1 %v4834_v36  ;;  %4085 = vst [vmem:[#allocation2 + $0x9d0] sm:$0xf] %v4030_v12  ;;  %4086 = vst [vmem:[#allocation2 + $0x9d8] sm:$0xf] %v4031_v55  ;;  %v12234_v16 = vld [vmem:[%s9782_s23 + $0x58] sm:$0xff] }
 0x44a   : > { %5484 = vmatpush1.msra.mxu0 %v4948_v26  ;;  %9485 = vmatprep.subr.msk.mxu1 %vm5234_vm10, %v5203_v19 }
 0x44b   : > { %5485 = vmatprep.subr.mxu0 %v4921_v45  ;;  %9481 = vmatmul.mubr.msk.f32.vlgmr.msra.gmra.mxu1 %vm5230_vm11, %v11963_v60  ;;  %v12151_v23 = vpop.permute.xlu1 %4165  ;;  %v4164_v31 = vpop.permute.xlu0 %4163 }
 0x44c   : > { %5486 = vmatpush1.msra.mxu0 %v4920_v62  ;;  %9486 = vmatpush1.msk.msra.mxu1 %vm5234_vm10, %v5202_v27  ;;  %v4211_v38 = vsel %vm1137_vm6, %v12038_v43, %v4164_v31  ;;  %v4212_v9 = vsel %vm1137_vm6, %v4164_v31, %v12151_v23  ;;  %v5205_v46 = vld [vmem:[#allocation2 + $0xba8] sm:$0xf] }
 0x44d   : > { %3184 = vrot.lane.b32.xlu1 %v11872_v4, %s9723_s6  ;;  %3182 = vrot.lane.b32.xlu0 %v11812_v7, %s9723_s6  ;;  %4266 = vst [vmem:[#allocation2 + $0x9d0] sm:$0xf0] %v4211_v38  ;;  %4267 = vst [vmem:[#allocation2 + $0x9d8] sm:$0xf0] %v4212_v9 }
 0x44e   : > { %5487 = vmatprep.subr.mxu0 %v4893_v33  ;;  %5538 = vmatprep.subr.mxu1 %v5175_v53 }
 0x44f   : > { %5488 = vmatpush1.msra.mxu0 %v4892_v56  ;;  %5539 = vmatpush1.msra.mxu1 %v5174_v17  ;;  %v12162_v2 = vpop.permute.xlu1 %4350  ;;  %v4349_v43 = vpop.permute.xlu0 %4348 }
 0x450   : > { %5489 = vmatprep.subr.mxu0 %v4865_v24  ;;  %v4394_v4 = vsel %vm1319_vm7, %v12112_v32, %v4349_v43  ;;  %v4395_v7 = vsel %vm1319_vm7, %v4349_v43, %v12162_v2  ;;  %5596 = vmatprep.mubr.f32.mxu1 %v9724_v0 }
 0x451   : > { %5490 = vmatpush1.msra.mxu0 %v4864_v20  ;;  %3453 = vrot.lane.b32.xlu1 %v12064_v49, %s9716_s24  ;;  %4449 = vst [vmem:[#allocation2 + $0xac0] sm:$0xf] %v4394_v4  ;;  %4450 = vst [vmem:[#allocation2 + $0xac8] sm:$0xf] %v4395_v7  ;;  %v5204_v49 = vld [vmem:[#allocation2 + $0xba0] sm:$0xf]  ;;  %v12278_v4 = vcombine.low %v12234_v16, %v12234_v16 }
 0x452   : > { %3451 = vrot.lane.b32.xlu0 %v11986_v15, %s9716_s24  ;;  %5491 = vmatprep.subr.mxu0 %v4837_v30 }
 0x453   : > { %5492 = vmatpush1.msra.mxu0 %v4836_v10  ;;  %v12173_v32 = vpop.permute.xlu1 %4531  ;;  %v4530_v25 = vpop.permute.xlu0 %4529 }
 0x454   : > { %9488 = vmatprep.subr.msk.mxu0 %vm5234_vm10, %v5205_v46  ;;  %9484 = vmatmul.mubr.msk.f32.vlgmr.msra.gmra.mxu0 %vm5230_vm11, %v11963_v60  ;;  %v4575_v47 = vsel %vm1501_vm8, %v12122_v29, %v4530_v25  ;;  %v4576_v37 = vsel %vm1501_vm8, %v4530_v25, %v12173_v32  ;;  %v5147_v57 = vld [vmem:[#allocation2 + $0x9d8] sm:$0xff]  ;;  %v5146_v41 = vld [vmem:[#allocation2 + $0x9d0] sm:$0xff] }
 0x455   : > { %9489 = vmatpush1.msk.msra.mxu0 %vm5234_vm10, %v5204_v49  ;;  %3188 = vrot.lane.b32.xlu1 %v12006_v61, %s9723_s6  ;;  %4630 = vst [vmem:[#allocation2 + $0xac0] sm:$0xf0] %v4575_v47  ;;  %4631 = vst [vmem:[#allocation2 + $0xac8] sm:$0xf0] %v4576_v37  ;;  %v12192_v60 = vld [vmem:[%s9782_s23 + $0x50] sm:$0xff] }
 0x456   : > { %3186 = vrot.lane.b32.xlu0 %v11834_v35, %s9723_s6  ;;  %5540 = vmatprep.subr.mxu1 %v5147_v57  ;;  %v12212_v18 = vcombine.low %v12192_v60, %v12192_v60  ;;  %v12229_v40 = vcombine.high %v12192_v60, %v12192_v60 }
 0x457   : > { %5541 = vmatpush1.msra.mxu1 %v5146_v41  ;;  %v3623_v29 = vpop.permute.xlu1 %3622  ;;  %v3621_v39 = vpop.permute.xlu0 %3620  ;;  %5667 = vmatprep.mubr.f32.mxu0 %v9724_v0 }
 0x458   : > { %v3668_v61 = vsel %vm591_vm3, %v12055_v50, %v3621_v39  ;;  %v3669_v28 = vsel %vm591_vm3, %v3621_v39, %v3623_v29 }
 0x459   : > { %4724 = vrot.lane.b32.xlu1 %v12192_v60, %s9723_s6  ;;  %3723 = vst [vmem:[#allocation2 + $0x8f0] sm:$0xf] %v3668_v61  ;;  %3724 = vst [vmem:[#allocation2 + $0x8f8] sm:$0xf] %v3669_v28 }
 0x45a   : > { %4722 = vrot.lane.b32.xlu0 %v12187_v51, %s9723_s6 }
 0x45b   : > { %v12202_v35 = vpop.permute.xlu1 %3803  ;;  %v3802_v5 = vpop.permute.xlu0 %3801 }
 0x45c   : > { %v3849_v63 = vsel %vm773_vm4, %v12068_v6, %v3802_v5  ;;  %v3850_v59 = vsel %vm773_vm4, %v3802_v5, %v12202_v35  ;;  %v5177_v50 = vld [vmem:[#allocation2 + $0xac8] sm:$0xff]  ;;  %v5176_v8 = vld [vmem:[#allocation2 + $0xac0] sm:$0xff]  ;;  %v5035_v5 = vld [vmem:[#allocation2 + $0x658] sm:$0xff] }
 0x45d   : > { %4362 = vrot.lane.b32.xlu1 %v12192_v60, %s9721_s29  ;;  %3904 = vst [vmem:[#allocation2 + $0x8f0] sm:$0xf0] %v3849_v63  ;;  %3905 = vst [vmem:[#allocation2 + $0x8f8] sm:$0xf0] %v3850_v59  ;;  %5609 = vmatprep.subr.mxu0 %v5177_v50  ;;  %v5034_v59 = vld [vmem:[#allocation2 + $0x650] sm:$0xff] }
 0x45e   : > { %4360 = vrot.lane.b32.xlu0 %v12187_v51, %s9721_s29  ;;  %5610 = vmatpush1.msra.mxu0 %v5176_v8 }
 0x45f   : > { %v12216_v6 = vpop.permute.xlu1 %3988  ;;  %v3987_v11 = vpop.permute.xlu0 %3986 }
 0x460   : > { %v4032_v1 = vsel %vm955_vm5, %v12140_v52, %v3987_v11  ;;  %v4033_v34 = vsel %vm955_vm5, %v3987_v11, %v12216_v6  ;;  %v12238_v52 = vcombine.high %v12225_v22, %v12225_v22  ;;  %v5007_v11 = vld [vmem:[#allocation2 + $0x578] sm:$0xff] }
 0x461   : > { %4543 = vrot.lane.b32.xlu1 %v12212_v18, %s9722_s30  ;;  %4087 = vst [vmem:[#allocation2 + $0x9e0] sm:$0xf] %v4032_v1  ;;  %4088 = vst [vmem:[#allocation2 + $0x9e8] sm:$0xf] %v4033_v34 }
 0x462   : > { %4541 = vrot.lane.b32.xlu0 %v12026_v48, %s9722_s30  ;;  %3374 = vst [vmem:[#allocation2 + $0x878] sm:$0xf] %v12238_v52 }
 0x463   : > { %v12241_v44 = vpop.permute.xlu1 %4169  ;;  %v4168_v14 = vpop.permute.xlu0 %4167 }
 0x464   : > { %v4213_v36 = vsel %vm1137_vm6, %v12151_v23, %v4168_v14  ;;  %v4214_v12 = vsel %vm1137_vm6, %v4168_v14, %v12241_v44  ;;  %v5119_v55 = vld [vmem:[#allocation2 + $0x8f8] sm:$0xff]  ;;  %v5118_v26 = vld [vmem:[#allocation2 + $0x8f0] sm:$0xff]  ;;  %v3334_v14 = vcombine.high %v12011_v54, %v12011_v54 }
 0x465   : > { %4728 = vrot.lane.b32.xlu1 %v12234_v16, %s9723_s6  ;;  %4268 = vst [vmem:[#allocation2 + $0x9e0] sm:$0xf0] %v4213_v36  ;;  %4269 = vst [vmem:[#allocation2 + $0x9e8] sm:$0xf0] %v4214_v12  ;;  %5542 = vmatprep.subr.mxu1 %v5119_v55  ;;  %v5006_v36 = vld [vmem:[#allocation2 + $0x570] sm:$0xff]  ;;  %v4979_v12 = vld [vmem:[#allocation2 + $0x498] sm:$0xff] }
 0x466   : > { %4726 = vrot.lane.b32.xlu0 %v12229_v40, %s9723_s6  ;;  %5543 = vmatpush1.msra.mxu1 %v5118_v26  ;;  %3370 = vst [vmem:[#allocation2 + $0x858] sm:$0xf] %v3334_v14  ;;  %v4978_v26 = vld [vmem:[#allocation2 + $0x490] sm:$0xff] }
 0x467   : > { %v3442_v19 = vpop.permute.xlu1 %3441  ;;  %v3440_v45 = vpop.permute.xlu0 %3439 }
 0x468   : > { %v3487_v62 = vsel %vm408_vm1, %v12084_v13, %v3440_v45  ;;  %v3488_v27 = vsel %vm408_vm1, %v3440_v45, %v3442_v19 }
 0x469   : > { %4000 = vrot.lane.b32.xlu1 %v12192_v60, %s9719_s27  ;;  %3542 = vst [vmem:[#allocation2 + $0x810] sm:$0xf0] %v3487_v62  ;;  %3543 = vst [vmem:[#allocation2 + $0x818] sm:$0xf0] %v3488_v27  ;;  %v4951_v62 = vld [vmem:[#allocation2 + $0x3b8] sm:$0xff] }
 0x46a   : > { %3998 = vrot.lane.b32.xlu0 %v12187_v51, %s9719_s27 }
 0x46b   : > { %v12259_v53 = vpop.permute.xlu1 %3626 }
 0x46c   : > { %v3625_v23 = vpop.permute.xlu0 %3624  ;;  %v5149_v31 = vld [vmem:[#allocation2 + $0x9e8] sm:$0xff]  ;;  %v5148_v17 = vld [vmem:[#allocation2 + $0x9e0] sm:$0xff] }
 0x46d   : > { %4181 = vrot.lane.b32.xlu1 %v12212_v18, %s9720_s28  ;;  %v3670_v13 = vsel %vm591_vm3, %v3623_v29, %v3625_v23  ;;  %v3671_v38 = vsel %vm591_vm3, %v3625_v23, %v12259_v53  ;;  %5611 = vmatprep.subr.mxu0 %v5149_v31  ;;  %v4950_v31 = vld [vmem:[#allocation2 + $0x3b0] sm:$0xff] }
 0x46e   : > { %4179 = vrot.lane.b32.xlu0 %v12026_v48, %s9720_s28  ;;  %3725 = vst [vmem:[#allocation2 + $0x900] sm:$0xf] %v3670_v13  ;;  %3726 = vst [vmem:[#allocation2 + $0x908] sm:$0xf] %v3671_v38  ;;  %5612 = vmatpush1.msra.mxu0 %v5148_v17  ;;  %v4923_v13 = vld [vmem:[#allocation2 + $0x2d8] sm:$0xff]  ;;  %v5037_v38 = vld [vmem:[#allocation2 + $0x668] sm:$0xff] }
 0x46f   : > { %v12268_v9 = vpop.permute.xlu1 %3807 }
 0x470   : > { %v3806_v33 = vpop.permute.xlu0 %3805  ;;  %v5091_v56 = vld [vmem:[#allocation2 + $0x818] sm:$0xff]  ;;  %v5090_v24 = vld [vmem:[#allocation2 + $0x810] sm:$0xff] }
 0x471   : > { %4366 = vrot.lane.b32.xlu1 %v12234_v16, %s9721_s29  ;;  %v3851_v43 = vsel %vm773_vm4, %v12202_v35, %v3806_v33  ;;  %v3852_v20 = vsel %vm773_vm4, %v3806_v33, %v12268_v9  ;;  %5544 = vmatprep.subr.mxu1 %v5091_v56 }
 0x472   : > { %4364 = vrot.lane.b32.xlu0 %v12229_v40, %s9721_s29  ;;  %3906 = vst [vmem:[#allocation2 + $0x900] sm:$0xf0] %v3851_v43  ;;  %3907 = vst [vmem:[#allocation2 + $0x908] sm:$0xf0] %v3852_v20  ;;  %5545 = vmatpush1.msra.mxu1 %v5090_v24  ;;  %v4922_v24 = vld [vmem:[#allocation2 + $0x2d0] sm:$0xff]  ;;  %v5036_v43 = vld [vmem:[#allocation2 + $0x660] sm:$0xff] }
 0x473   : > { %v3177_v7 = vpop.permute.xlu1 %3176  ;;  %v4895_v20 = vld [vmem:[#allocation2 + $0x1f8] sm:$0xff] }
 0x474   : > { %v3175_v30 = vpop.permute.xlu0 %3174 }
 0x475   : > { %4547 = vrot.lane.b32.xlu1 %v12278_v4, %s9722_s30  ;;  %v3222_v10 = vsel %vm1683_vm9, %v12093_v3, %v3175_v30  ;;  %v3223_v46 = vsel %vm1683_vm9, %v3175_v30, %v3177_v7  ;;  %v4894_v30 = vld [vmem:[#allocation2 + $0x1f0] sm:$0xff] }
 0x476   : > { %4545 = vrot.lane.b32.xlu0 %v12192_v60, %s9722_s30  ;;  %3277 = vst [vmem:[#allocation2 + $0x730] sm:$0xf0] %v3222_v10  ;;  %3278 = vst [vmem:[#allocation2 + $0x738] sm:$0xf0] %v3223_v46 }
 0x477   : > { %v12289_v25 = vpop.permute.xlu1 %3445 }
 0x478   : > { %v3444_v49 = vpop.permute.xlu0 %3443 }
 0x479   : > { %3638 = vrot.lane.b32.xlu1 %v12192_v60, %s9717_s25  ;;  %v3489_v47 = vsel %vm408_vm1, %v3442_v19, %v3444_v49  ;;  %v3490_v37 = vsel %vm408_vm1, %v3444_v49, %v12289_v25  ;;  %v5121_v57 = vld [vmem:[#allocation2 + $0x908] sm:$0xff]  ;;  %v5120_v3 = vld [vmem:[#allocation2 + $0x900] sm:$0xff] }
 0x47a   : > { %3636 = vrot.lane.b32.xlu0 %v12187_v51, %s9717_s25  ;;  %3544 = vst [vmem:[#allocation2 + $0x820] sm:$0xf0] %v3489_v47  ;;  %3545 = vst [vmem:[#allocation2 + $0x828] sm:$0xf0] %v3490_v37  ;;  %5613 = vmatprep.subr.mxu0 %v5121_v57  ;;  %v4867_v47 = vld [vmem:[#allocation2 + $0x118] sm:$0xff]  ;;  %v4981_v37 = vld [vmem:[#allocation2 + $0x4a8] sm:$0xff] }
 0x47b   : > { %5614 = vmatpush1.msra.mxu0 %v5120_v3  ;;  %v12298_v41 = vpop.permute.xlu1 %3180  ;;  %v4866_v57 = vld [vmem:[#allocation2 + $0x110] sm:$0xff]  ;;  %v4980_v3 = vld [vmem:[#allocation2 + $0x4a0] sm:$0xff] }
 0x47c   : > { %v3179_v29 = vpop.permute.xlu0 %3178 }
 0x47d   : > { %3819 = vrot.lane.b32.xlu1 %v12212_v18, %s9718_s26  ;;  %v3224_v39 = vsel %vm1683_vm9, %v3177_v7, %v3179_v29  ;;  %v3225_v61 = vsel %vm1683_vm9, %v3179_v29, %v12298_v41  ;;  %v5063_v28 = vld [vmem:[#allocation2 + $0x738] sm:$0xff]  ;;  %v5062_v35 = vld [vmem:[#allocation2 + $0x730] sm:$0xff]  ;;  %v5009_v7 = vld [vmem:[#allocation2 + $0x588] sm:$0xff] }
 0x47e   : > { %3817 = vrot.lane.b32.xlu0 %v12026_v48, %s9718_s26  ;;  %3279 = vst [vmem:[#allocation2 + $0x740] sm:$0xf0] %v3224_v39  ;;  %3280 = vst [vmem:[#allocation2 + $0x748] sm:$0xf0] %v3225_v61  ;;  %5546 = vmatprep.subr.mxu1 %v5063_v28  ;;  %v4839_v29 = vld [vmem:[#allocation2 + $0x38] sm:$0xff]  ;;  %v4953_v61 = vld [vmem:[#allocation2 + $0x3c8] sm:$0xff] }
 0x47f   : > { %5547 = vmatpush1.msra.mxu1 %v5062_v35  ;;  %v12307_v51 = vpop.permute.xlu1 %4716 }
 0x480   : > { %v4715_v63 = vpop.permute.xlu0 %4714  ;;  %5548 = vmatprep.subr.mxu1 %v5035_v5  ;;  %v4952_v5 = vld [vmem:[#allocation2 + $0x3c0] sm:$0xff] }
 0x481   : > { %4004 = vrot.lane.b32.xlu1 %v12234_v16, %s9719_s27  ;;  %v4758_v50 = vsel %vm1683_vm9, %v12132_v58, %v4715_v63  ;;  %v4759_v8 = vsel %vm1683_vm9, %v4715_v63, %v12307_v51  ;;  %5549 = vmatpush1.msra.mxu1 %v5034_v59  ;;  %v5093_v1 = vld [vmem:[#allocation2 + $0x828] sm:$0xff]  ;;  %v5092_v34 = vld [vmem:[#allocation2 + $0x820] sm:$0xff]  ;;  %v3154_v59 = vcombine.low %v12011_v54, %v12011_v54 }
 0x482   : > { %4002 = vrot.lane.b32.xlu0 %v12229_v40, %s9719_s27  ;;  %4813 = vst [vmem:[#allocation2 + $0xbb0] sm:$0xf] %v4758_v50  ;;  %4814 = vst [vmem:[#allocation2 + $0xbb8] sm:$0xf] %v4759_v8  ;;  %5550 = vmatprep.subr.mxu1 %v5007_v11  ;;  %v4925_v50 = vld [vmem:[#allocation2 + $0x2e8] sm:$0xff]  ;;  %v4924_v11 = vld [vmem:[#allocation2 + $0x2e0] sm:$0xff] }
 0x483   : > { %5615 = vmatprep.subr.mxu0 %v5093_v1  ;;  %5551 = vmatpush1.msra.mxu1 %v5006_v36  ;;  %v12319_v58 = vpop.permute.xlu1 %4354 }
 0x484   : > { %5616 = vmatpush1.msra.mxu0 %v5092_v34  ;;  %v4353_v55 = vpop.permute.xlu0 %4352  ;;  %5552 = vmatprep.subr.mxu1 %v4979_v12 }
 0x485   : > { %4185 = vrot.lane.b32.xlu1 %v12278_v4, %s9720_s28  ;;  %v4396_v19 = vsel %vm1319_vm7, %v12162_v2, %v4353_v55  ;;  %v4397_v45 = vsel %vm1319_vm7, %v4353_v55, %v12319_v58  ;;  %5553 = vmatpush1.msra.mxu1 %v4978_v26  ;;  %v5065_v27 = vld [vmem:[#allocation2 + $0x748] sm:$0xff]  ;;  %v5064_v23 = vld [vmem:[#allocation2 + $0x740] sm:$0xff] }
 0x486   : > { %4183 = vrot.lane.b32.xlu0 %v12192_v60, %s9720_s28  ;;  %4451 = vst [vmem:[#allocation2 + $0xad0] sm:$0xf] %v4396_v19  ;;  %4452 = vst [vmem:[#allocation2 + $0xad8] sm:$0xf] %v4397_v45  ;;  %5554 = vmatprep.subr.mxu1 %v4951_v62  ;;  %v4897_v26 = vld [vmem:[#allocation2 + $0x208] sm:$0xff]  ;;  %v4896_v19 = vld [vmem:[#allocation2 + $0x200] sm:$0xff] }
 0x487   : > { %5617 = vmatprep.subr.mxu0 %v5065_v27  ;;  %5555 = vmatpush1.msra.mxu1 %v4950_v31  ;;  %v12329_v17 = vpop.permute.xlu1 %4535  ;;  %v4869_v62 = vld [vmem:[#allocation2 + $0x128] sm:$0xff]  ;;  %v4868_v27 = vld [vmem:[#allocation2 + $0x120] sm:$0xff] }
 0x488   : > { %5618 = vmatpush1.msra.mxu0 %v5064_v23  ;;  %v4534_v2 = vpop.permute.xlu0 %4533  ;;  %5556 = vmatprep.subr.mxu1 %v4923_v13  ;;  %v4841_v31 = vld [vmem:[#allocation2 + $0x48] sm:$0xff]  ;;  %v4840_v13 = vld [vmem:[#allocation2 + $0x40] sm:$0xff] }
 0x489   : > { %3457 = vrot.lane.b32.xlu1 %v12212_v18, %s9716_s24  ;;  %v4577_v33 = vsel %vm1501_vm8, %v12173_v32, %v4534_v2  ;;  %v4578_v56 = vsel %vm1501_vm8, %v4534_v2, %v12329_v17  ;;  %5619 = vmatprep.subr.mxu0 %v5037_v38  ;;  %v5008_v32 = vld [vmem:[#allocation2 + $0x580] sm:$0xff]  ;;  %v5207_v63 = vld [vmem:[#allocation2 + $0xbb8] sm:$0xf]  ;;  %v5206_v1 = vld [vmem:[#allocation2 + $0xbb0] sm:$0xf] }
 0x48a   : > { %3455 = vrot.lane.b32.xlu0 %v12026_v48, %s9716_s24  ;;  %4632 = vst [vmem:[#allocation2 + $0xad0] sm:$0xf0] %v4577_v33  ;;  %4633 = vst [vmem:[#allocation2 + $0xad8] sm:$0xf0] %v4578_v56  ;;  %5557 = vmatpush1.msra.mxu1 %v4922_v24 }
 0x48b   : > { %5620 = vmatpush1.msra.mxu0 %v5036_v43  ;;  %5558 = vmatprep.subr.mxu1 %v4895_v20  ;;  %v12339_v10 = vpop.permute.xlu1 %4720  ;;  %v12404_v43 = vcombine.high %v12234_v16, %v12234_v16 }
 0x48c   : > { %5621 = vmatprep.subr.mxu0 %v5009_v7  ;;  %5559 = vmatpush1.msra.mxu1 %v4894_v30  ;;  %v4719_v46 = vpop.permute.xlu0 %4718 }
 0x48d   : > { %3642 = vrot.lane.b32.xlu1 %v12234_v16, %s9717_s25  ;;  %5622 = vmatpush1.msra.mxu0 %v5008_v32  ;;  %v4760_v48 = vsel %vm1683_vm9, %v12307_v51, %v4719_v46  ;;  %v4761_v49 = vsel %vm1683_vm9, %v4719_v46, %v12339_v10 }
 0x48e   : > { %3640 = vrot.lane.b32.xlu0 %v12229_v40, %s9717_s25  ;;  %4815 = vst [vmem:[#allocation2 + $0xbc0] sm:$0xf] %v4760_v48  ;;  %4816 = vst [vmem:[#allocation2 + $0xbc8] sm:$0xf] %v4761_v49  ;;  %5560 = vmatprep.subr.mxu1 %v4867_v47  ;;  %v4838_v40 = vld [vmem:[#allocation2 + $0x30] sm:$0xff] }
 0x48f   : > { %5623 = vmatprep.subr.mxu0 %v4981_v37  ;;  %5561 = vmatpush1.msra.mxu1 %v4866_v57  ;;  %v12349_v39 = vpop.permute.xlu1 %3992 }
 0x490   : > { %5624 = vmatpush1.msra.mxu0 %v4980_v3  ;;  %5562 = vmatprep.subr.mxu1 %v4839_v29  ;;  %v3991_v28 = vpop.permute.xlu0 %3990 }
 0x491   : > { %3823 = vrot.lane.b32.xlu1 %v12278_v4, %s9718_s26  ;;  %5625 = vmatprep.subr.mxu0 %v4953_v61  ;;  %v4034_v35 = vsel %vm955_vm5, %v12216_v6, %v3991_v28  ;;  %v4035_v51 = vsel %vm955_vm5, %v3991_v28, %v12349_v39  ;;  %v12367_v6 = vld [vmem:[%s15203_s1] sm:$0xff]  ;;  %v5179_v34 = vld [vmem:[#allocation2 + $0xad8] sm:$0xff]  ;;  %v5178_v36 = vld [vmem:[#allocation2 + $0xad0] sm:$0xff] }
 0x492   : > { %3821 = vrot.lane.b32.xlu0 %v12192_v60, %s9718_s26  ;;  %5563 = vmatpush1.msra.mxu1 %v4838_v40  ;;  %4089 = vst [vmem:[#allocation2 + $0x9f0] sm:$0xf] %v4034_v35  ;;  %4090 = vst [vmem:[#allocation2 + $0x9f8] sm:$0xf] %v4035_v51  ;;  %v12451_v61 = vld [vmem:[%s9782_s23 + $0x68] sm:$0xff] }
 0x493   : > { %5626 = vmatpush1.msra.mxu0 %v4952_v5  ;;  %9491 = vmatprep.subr.msk.mxu1 %vm5234_vm10, %v5207_v63  ;;  %v12362_v8 = vpop.permute.xlu1 %4173 }
 0x494   : > { %5627 = vmatprep.subr.mxu0 %v4925_v50  ;;  %9487 = vmatmul.mubr.msk.f32.vlgmr.msra.gmra.mxu1 %vm5230_vm11, %v12367_v6  ;;  %v4172_v14 = vpop.permute.xlu0 %4171 }
 0x495   : > { %5628 = vmatpush1.msra.mxu0 %v4924_v11  ;;  %9492 = vmatpush1.msk.msra.mxu1 %vm5234_vm10, %v5206_v1  ;;  %v4215_v12 = vsel %vm1137_vm6, %v12241_v44, %v4172_v14  ;;  %v4216_v55 = vsel %vm1137_vm6, %v4172_v14, %v12362_v8  ;;  %v12469_v11 = vld [vmem:[%s9782_s23 + $0x68] sm:$0xff] }
 0x496   : > { %3192 = vrot.lane.b32.xlu1 %v3154_v59, %s9723_s6  ;;  %3190 = vrot.lane.b32.xlu0 %v11986_v15, %s9723_s6  ;;  %4270 = vst [vmem:[#allocation2 + $0x9f0] sm:$0xf0] %v4215_v12  ;;  %4271 = vst [vmem:[#allocation2 + $0x9f8] sm:$0xf0] %v4216_v55  ;;  %v12475_v1 = vcombine.high %v12469_v11, %v12469_v11 }
 0x497   : > { %5629 = vmatprep.subr.mxu0 %v4897_v26  ;;  %5680 = vmatprep.subr.mxu1 %v5179_v34  ;;  %v12379_v45 = vpop.permute.xlu1 %4358  ;;  %3377 = vst [vmem:[#allocation2 + $0x890] sm:$0xf] %v12469_v11 }
 0x498   : > { %5630 = vmatpush1.msra.mxu0 %v4896_v19  ;;  %5681 = vmatpush1.msra.mxu1 %v5178_v36  ;;  %v4357_v44 = vpop.permute.xlu0 %4356  ;;  %3378 = vst [vmem:[#allocation2 + $0x898] sm:$0xf] %v12475_v1 }
 0x499   : > { %5631 = vmatprep.subr.mxu0 %v4869_v62  ;;  %v4398_v23 = vsel %vm1319_vm7, %v12319_v58, %v4357_v44  ;;  %v4399_v15 = vsel %vm1319_vm7, %v4357_v44, %v12379_v45  ;;  %5738 = vmatprep.mubr.f32.mxu1 %v9724_v0  ;;  %v5209_v58 = vld [vmem:[#allocation2 + $0xbc8] sm:$0xf] }
 0x49a   : > { %5632 = vmatpush1.msra.mxu0 %v4868_v27  ;;  %3461 = vrot.lane.b32.xlu1 %v12278_v4, %s9716_s24  ;;  %4453 = vst [vmem:[#allocation2 + $0xae0] sm:$0xf] %v4398_v23  ;;  %4454 = vst [vmem:[#allocation2 + $0xae8] sm:$0xf] %v4399_v15  ;;  %v5208_v4 = vld [vmem:[#allocation2 + $0xbc0] sm:$0xf]  ;;  %v12495_v27 = vcombine.low %v12451_v61, %v12451_v61 }
 0x49b   : > { %3459 = vrot.lane.b32.xlu0 %v12192_v60, %s9716_s24  ;;  %5633 = vmatprep.subr.mxu0 %v4841_v31  ;;  %v12390_v2 = vpop.permute.xlu1 %4539 }
 0x49c   : > { %5634 = vmatpush1.msra.mxu0 %v4840_v13  ;;  %v4538_v38 = vpop.permute.xlu0 %4537 }
 0x49d   : > { %9494 = vmatprep.subr.msk.mxu0 %vm5234_vm10, %v5209_v58  ;;  %9490 = vmatmul.mubr.msk.f32.vlgmr.msra.gmra.mxu0 %vm5230_vm11, %v12367_v6  ;;  %v4579_v33 = vsel %vm1501_vm8, %v12329_v17, %v4538_v38  ;;  %v4580_v60 = vsel %vm1501_vm8, %v4538_v38, %v12390_v2  ;;  %v5151_v56 = vld [vmem:[#allocation2 + $0x9f8] sm:$0xff]  ;;  %v5150_v24 = vld [vmem:[#allocation2 + $0x9f0] sm:$0xff]  ;;  %v12409_v17 = vld [vmem:[%s9782_s23 + $0x60] sm:$0xff] }
 0x49e   : > { %9495 = vmatpush1.msk.msra.mxu0 %vm5234_vm10, %v5208_v4  ;;  %3196 = vrot.lane.b32.xlu1 %v12212_v18, %s9723_s6  ;;  %4634 = vst [vmem:[#allocation2 + $0xae0] sm:$0xf0] %v4579_v33  ;;  %4635 = vst [vmem:[#allocation2 + $0xae8] sm:$0xf0] %v4580_v60  ;;  %v12432_v47 = vcombine.low %v12409_v17, %v12409_v17  ;;  %v12446_v29 = vcombine.high %v12409_v17, %v12409_v17 }
 0x49f   : > { %3194 = vrot.lane.b32.xlu0 %v12011_v54, %s9723_s6  ;;  %5682 = vmatprep.subr.mxu1 %v5151_v56  ;;  %v12411_v20 = vpop.permute.xlu1 %3630 }
 0x4a0   : > { %5683 = vmatpush1.msra.mxu1 %v5150_v24  ;;  %v3629_v7 = vpop.permute.xlu0 %3628  ;;  %5809 = vmatprep.mubr.f32.mxu0 %v9724_v0 }
 0x4a1   : > { %v3672_v18 = vsel %vm591_vm3, %v12259_v53, %v3629_v7  ;;  %v3673_v30 = vsel %vm591_vm3, %v3629_v7, %v12411_v20 }
 0x4a2   : > { %4732 = vrot.lane.b32.xlu1 %v12409_v17, %s9723_s6  ;;  %3727 = vst [vmem:[#allocation2 + $0x910] sm:$0xf] %v3672_v18  ;;  %3728 = vst [vmem:[#allocation2 + $0x918] sm:$0xf] %v3673_v30 }
 0x4a3   : > { %4730 = vrot.lane.b32.xlu0 %v12404_v43, %s9723_s6  ;;  %v12422_v54 = vpop.permute.xlu1 %3811 }
 0x4a4   : > { %v3810_v32 = vpop.permute.xlu0 %3809 }
 0x4a5   : > { %v3853_v46 = vsel %vm773_vm4, %v12268_v9, %v3810_v32  ;;  %v3854_v53 = vsel %vm773_vm4, %v3810_v32, %v12422_v54  ;;  %v5181_v48 = vld [vmem:[#allocation2 + $0xae8] sm:$0xff]  ;;  %v5180_v49 = vld [vmem:[#allocation2 + $0xae0] sm:$0xff]  ;;  %v5039_v32 = vld [vmem:[#allocation2 + $0x678] sm:$0xff] }
 0x4a6   : > { %4370 = vrot.lane.b32.xlu1 %v12409_v17, %s9721_s29  ;;  %3908 = vst [vmem:[#allocation2 + $0x910] sm:$0xf0] %v3853_v46  ;;  %3909 = vst [vmem:[#allocation2 + $0x918] sm:$0xf0] %v3854_v53  ;;  %5751 = vmatprep.subr.mxu0 %v5181_v48  ;;  %v5038_v53 = vld [vmem:[#allocation2 + $0x670] sm:$0xff] }
 0x4a7   : > { %4368 = vrot.lane.b32.xlu0 %v12404_v43, %s9721_s29  ;;  %5752 = vmatpush1.msra.mxu0 %v5180_v49  ;;  %v12436_v9 = vpop.permute.xlu1 %3996  ;;  %v5011_v49 = vld [vmem:[#allocation2 + $0x598] sm:$0xff] }
 0x4a8   : > { %v3995_v37 = vpop.permute.xlu0 %3994 }
 0x4a9   : > { %v4036_v57 = vsel %vm955_vm5, %v12349_v39, %v3995_v37  ;;  %v4037_v3 = vsel %vm955_vm5, %v3995_v37, %v12436_v9 }
 0x4aa   : > { %4551 = vrot.lane.b32.xlu1 %v12432_v47, %s9722_s30  ;;  %4091 = vst [vmem:[#allocation2 + $0xa00] sm:$0xf] %v4036_v57  ;;  %4092 = vst [vmem:[#allocation2 + $0xa08] sm:$0xf] %v4037_v3 }
 0x4ab   : > { %4549 = vrot.lane.b32.xlu0 %v12234_v16, %s9722_s30  ;;  %v12453_v28 = vpop.permute.xlu1 %4177 }
 0x4ac   : > { %v4176_v39 = vpop.permute.xlu0 %4175 }
 0x4ad   : > { %v4217_v40 = vsel %vm1137_vm6, %v12362_v8, %v4176_v39  ;;  %v4218_v35 = vsel %vm1137_vm6, %v4176_v39, %v12453_v28  ;;  %v5123_v51 = vld [vmem:[#allocation2 + $0x918] sm:$0xff]  ;;  %v5122_v5 = vld [vmem:[#allocation2 + $0x910] sm:$0xff] }
 0x4ae   : > { %4736 = vrot.lane.b32.xlu1 %v12451_v61, %s9723_s6  ;;  %4272 = vst [vmem:[#allocation2 + $0xa00] sm:$0xf0] %v4217_v40  ;;  %4273 = vst [vmem:[#allocation2 + $0xa08] sm:$0xf0] %v4218_v35  ;;  %5684 = vmatprep.subr.mxu1 %v5123_v51  ;;  %v5010_v40 = vld [vmem:[#allocation2 + $0x590] sm:$0xff] }
 0x4af   : > { %4734 = vrot.lane.b32.xlu0 %v12446_v29, %s9723_s6  ;;  %5685 = vmatpush1.msra.mxu1 %v5122_v5  ;;  %v3450_v63 = vpop.permute.xlu1 %3449  ;;  %v4982_v5 = vld [vmem:[#allocation2 + $0x4b0] sm:$0xff] }
 0x4b0   : > { %v3448_v59 = vpop.permute.xlu0 %3447 }
 0x4b1   : > { %v3491_v50 = vsel %vm408_vm1, %v12289_v25, %v3448_v59  ;;  %v3492_v8 = vsel %vm408_vm1, %v3448_v59, %v3450_v63 }
 0x4b2   : > { %4008 = vrot.lane.b32.xlu1 %v12409_v17, %s9719_s27  ;;  %3546 = vst [vmem:[#allocation2 + $0x830] sm:$0xf0] %v3491_v50  ;;  %3547 = vst [vmem:[#allocation2 + $0x838] sm:$0xf0] %v3492_v8  ;;  %v4955_v50 = vld [vmem:[#allocation2 + $0x3d8] sm:$0xff] }
 0x4b3   : > { %4006 = vrot.lane.b32.xlu0 %v12404_v43, %s9719_s27 }
 0x4b4   : > { %v12478_v34 = vpop.permute.xlu1 %3634 }
 0x4b5   : > { %v3633_v25 = vpop.permute.xlu0 %3632  ;;  %v5153_v14 = vld [vmem:[#allocation2 + $0xa08] sm:$0xff]  ;;  %v5152_v36 = vld [vmem:[#allocation2 + $0xa00] sm:$0xff] }
 0x4b6   : > { %4189 = vrot.lane.b32.xlu1 %v12432_v47, %s9720_s28  ;;  %v3674_v12 = vsel %vm591_vm3, %v12411_v20, %v3633_v25  ;;  %v3675_v55 = vsel %vm591_vm3, %v3633_v25, %v12478_v34  ;;  %5753 = vmatprep.subr.mxu0 %v5153_v14  ;;  %v4954_v14 = vld [vmem:[#allocation2 + $0x3d0] sm:$0xff] }
 0x4b7   : > { %4187 = vrot.lane.b32.xlu0 %v12234_v16, %s9720_s28  ;;  %3729 = vst [vmem:[#allocation2 + $0x920] sm:$0xf] %v3674_v12  ;;  %3730 = vst [vmem:[#allocation2 + $0x928] sm:$0xf] %v3675_v55  ;;  %5754 = vmatpush1.msra.mxu0 %v5152_v36  ;;  %v4927_v12 = vld [vmem:[#allocation2 + $0x2f8] sm:$0xff]  ;;  %v5041_v55 = vld [vmem:[#allocation2 + $0x688] sm:$0xff] }
 0x4b9   : > { %v12489_v26 = vpop.permute.xlu1 %3815  ;;  %v5095_v19 = vld [vmem:[#allocation2 + $0x838] sm:$0xff]  ;;  %v5094_v62 = vld [vmem:[#allocation2 + $0x830] sm:$0xff] }
 0x4ba   : > { %4374 = vrot.lane.b32.xlu1 %v12451_v61, %s9721_s29  ;;  %v3814_v44 = vpop.permute.xlu0 %3813  ;;  %5686 = vmatprep.subr.mxu1 %v5095_v19 }
 0x4bb   : > { %4372 = vrot.lane.b32.xlu0 %v12446_v29, %s9721_s29  ;;  %v3855_v23 = vsel %vm773_vm4, %v12422_v54, %v3814_v44  ;;  %v3856_v15 = vsel %vm773_vm4, %v3814_v44, %v12489_v26  ;;  %5687 = vmatpush1.msra.mxu1 %v5094_v62  ;;  %v4926_v44 = vld [vmem:[#allocation2 + $0x2f0] sm:$0xff] }
 0x4bc   : > { %3910 = vst [vmem:[#allocation2 + $0x920] sm:$0xf0] %v3855_v23  ;;  %3911 = vst [vmem:[#allocation2 + $0x928] sm:$0xf0] %v3856_v15  ;;  %v5040_v23 = vld [vmem:[#allocation2 + $0x680] sm:$0xff]  ;;  %v5013_v15 = vld [vmem:[#allocation2 + $0x5a8] sm:$0xff] }
 0x4be   : > { %4555 = vrot.lane.b32.xlu1 %v12495_v27, %s9722_s30 }
 0x4bf   : > { %4553 = vrot.lane.b32.xlu0 %v12409_v17, %s9722_s30  ;;  %v3185_v31 = vpop.permute.xlu1 %3184  ;;  %v3183_v13 = vpop.permute.xlu0 %3182 }
 0x4c0   : > { %v3226_v58 = vsel %vm1683_vm9, %v12298_v41, %v3183_v13  ;;  %v3227_v38 = vsel %vm1683_vm9, %v3183_v13, %v3185_v31  ;;  %v5012_v13 = vld [vmem:[#allocation2 + $0x5a0] sm:$0xff] }
 0x4c1   : > { %3281 = vst [vmem:[#allocation2 + $0x750] sm:$0xf0] %v3226_v58  ;;  %3282 = vst [vmem:[#allocation2 + $0x758] sm:$0xf0] %v3227_v38 }
 0x4c2   : > { %3646 = vrot.lane.b32.xlu1 %v12409_v17, %s9717_s25 }
 0x4c3   : > { %3644 = vrot.lane.b32.xlu0 %v12404_v43, %s9717_s25  ;;  %v12514_v4 = vpop.permute.xlu1 %3453  ;;  %v5125_v33 = vld [vmem:[#allocation2 + $0x928] sm:$0xff]  ;;  %v5124_v60 = vld [vmem:[#allocation2 + $0x920] sm:$0xff] }
 0x4c4   : > { %v3452_v56 = vpop.permute.xlu0 %3451  ;;  %5755 = vmatprep.subr.mxu0 %v5125_v33 }
 0x4c5   : > { %v3493_v24 = vsel %vm408_vm1, %v3450_v63, %v3452_v56  ;;  %v3494_v41 = vsel %vm408_vm1, %v3452_v56, %v12514_v4  ;;  %5756 = vmatpush1.msra.mxu0 %v5124_v60  ;;  %v4871_v60 = vld [vmem:[#allocation2 + $0x138] sm:$0xff]  ;;  %v4985_v56 = vld [vmem:[#allocation2 + $0x4c8] sm:$0xff] }
 0x4c6   : > { %3548 = vst [vmem:[#allocation2 + $0x840] sm:$0xf0] %v3493_v24  ;;  %3549 = vst [vmem:[#allocation2 + $0x848] sm:$0xf0] %v3494_v41  ;;  %3827 = vrot.lane.b32.xlu1 %v12432_v47, %s9718_s26  ;;  %v4870_v24 = vld [vmem:[#allocation2 + $0x130] sm:$0xff]  ;;  %v4984_v41 = vld [vmem:[#allocation2 + $0x4c0] sm:$0xff] }
 0x4c7   : > { %3825 = vrot.lane.b32.xlu0 %v12234_v16, %s9718_s26  ;;  %v12523_v43 = vpop.permute.xlu1 %3188 }
 0x4c8   : > { %v3187_v20 = vpop.permute.xlu0 %3186  ;;  %v5067_v7 = vld [vmem:[#allocation2 + $0x758] sm:$0xff]  ;;  %v5066_v18 = vld [vmem:[#allocation2 + $0x750] sm:$0xff] }
 0x4c9   : > { %v3228_v30 = vsel %vm1683_vm9, %v3185_v31, %v3187_v20  ;;  %v3229_v54 = vsel %vm1683_vm9, %v3187_v20, %v12523_v43  ;;  %5688 = vmatprep.subr.mxu1 %v5067_v7  ;;  %v4898_v31 = vld [vmem:[#allocation2 + $0x210] sm:$0xff]  ;;  %v4843_v7 = vld [vmem:[#allocation2 + $0x58] sm:$0xff] }
 0x4ca   : > { %3283 = vst [vmem:[#allocation2 + $0x760] sm:$0xf0] %v3228_v30  ;;  %3284 = vst [vmem:[#allocation2 + $0x768] sm:$0xf0] %v3229_v54  ;;  %4012 = vrot.lane.b32.xlu1 %v12451_v61, %s9719_s27  ;;  %5689 = vmatpush1.msra.mxu1 %v5066_v18  ;;  %v4957_v18 = vld [vmem:[#allocation2 + $0x3e8] sm:$0xff]  ;;  %v4842_v54 = vld [vmem:[#allocation2 + $0x50] sm:$0xff] }
 0x4cb   : > { %4010 = vrot.lane.b32.xlu0 %v12446_v29, %s9719_s27  ;;  %v12532_v46 = vpop.permute.xlu1 %4724  ;;  %5690 = vmatprep.subr.mxu1 %v5039_v32  ;;  %v4956_v32 = vld [vmem:[#allocation2 + $0x3e0] sm:$0xff] }
 0x4cc   : > { %v4723_v48 = vpop.permute.xlu0 %4722  ;;  %5691 = vmatpush1.msra.mxu1 %v5038_v53 }
 0x4cd   : > { %v4762_v37 = vsel %vm1683_vm9, %v12339_v10, %v4723_v48  ;;  %v4763_v57 = vsel %vm1683_vm9, %v4723_v48, %v12532_v46  ;;  %5692 = vmatprep.subr.mxu1 %v5011_v49  ;;  %v5097_v3 = vld [vmem:[#allocation2 + $0x848] sm:$0xff]  ;;  %v5096_v39 = vld [vmem:[#allocation2 + $0x840] sm:$0xff]  ;;  %v4983_v10 = vld [vmem:[#allocation2 + $0x4b8] sm:$0xff] }
 0x4ce   : > { %4817 = vst [vmem:[#allocation2 + $0xbd0] sm:$0xf] %v4762_v37  ;;  %4818 = vst [vmem:[#allocation2 + $0xbd8] sm:$0xf] %v4763_v57  ;;  %4193 = vrot.lane.b32.xlu1 %v12495_v27, %s9720_s28  ;;  %5757 = vmatprep.subr.mxu0 %v5097_v3  ;;  %v9698_v48 = vld [vmem:[%s9782_s23 + $0x50] sm:$0xff]  ;;  %v4929_v37 = vld [vmem:[#allocation2 + $0x308] sm:$0xff] }
 0x4cf   : > { %4191 = vrot.lane.b32.xlu0 %v12409_v17, %s9720_s28  ;;  %5693 = vmatpush1.msra.mxu1 %v5010_v40  ;;  %v12542_v35 = vpop.permute.xlu1 %4362  ;;  %v2974_v49 = vcombine.high %v9698_v48, %v9698_v48  ;;  %v4928_v3 = vld [vmem:[#allocation2 + $0x300] sm:$0xff] }
 0x4d0   : > { %5758 = vmatpush1.msra.mxu0 %v5096_v39  ;;  %v4361_v51 = vpop.permute.xlu0 %4360  ;;  %5694 = vmatprep.subr.mxu1 %v4983_v10 }
 0x4d1   : > { %v4400_v63 = vsel %vm1319_vm7, %v12379_v45, %v4361_v51  ;;  %v4401_v59 = vsel %vm1319_vm7, %v4361_v51, %v12542_v35  ;;  %5695 = vmatpush1.msra.mxu1 %v4982_v5  ;;  %v5069_v8 = vld [vmem:[#allocation2 + $0x768] sm:$0xff]  ;;  %v5068_v25 = vld [vmem:[#allocation2 + $0x760] sm:$0xff] }
 0x4d2   : > { %4455 = vst [vmem:[#allocation2 + $0xaf0] sm:$0xf] %v4400_v63  ;;  %4456 = vst [vmem:[#allocation2 + $0xaf8] sm:$0xf] %v4401_v59  ;;  %3465 = vrot.lane.b32.xlu1 %v12432_v47, %s9716_s24  ;;  %5696 = vmatprep.subr.mxu1 %v4955_v50  ;;  %v4901_v51 = vld [vmem:[#allocation2 + $0x228] sm:$0xff]  ;;  %v3156_v50 = vcombine.low %v12225_v22, %v12225_v22 }
 0x4d3   : > { %3463 = vrot.lane.b32.xlu0 %v12234_v16, %s9716_s24  ;;  %5759 = vmatprep.subr.mxu0 %v5069_v8  ;;  %v12552_v36 = vpop.permute.xlu1 %4543  ;;  %v4899_v16 = vld [vmem:[#allocation2 + $0x218] sm:$0xff]  ;;  %v4900_v8 = vld [vmem:[#allocation2 + $0x220] sm:$0xff] }
 0x4d4   : > { %5697 = vmatpush1.msra.mxu1 %v4954_v14  ;;  %5760 = vmatpush1.msra.mxu0 %v5068_v25  ;;  %v4542_v45 = vpop.permute.xlu0 %4541  ;;  %v4873_v25 = vld [vmem:[#allocation2 + $0x148] sm:$0xff] }
 0x4d5   : > { %v4581_v19 = vsel %vm1501_vm8, %v12390_v2, %v4542_v45  ;;  %v4582_v62 = vsel %vm1501_vm8, %v4542_v45, %v12552_v36  ;;  %5698 = vmatprep.subr.mxu1 %v4927_v12  ;;  %5761 = vmatprep.subr.mxu0 %v5041_v55  ;;  %v5211_v57 = vld [vmem:[#allocation2 + $0xbd8] sm:$0xf]  ;;  %v4845_v12 = vld [vmem:[#allocation2 + $0x68] sm:$0xff] }
 0x4d6   : > { %4636 = vst [vmem:[#allocation2 + $0xaf0] sm:$0xf0] %v4581_v19  ;;  %4637 = vst [vmem:[#allocation2 + $0xaf8] sm:$0xf0] %v4582_v62  ;;  %5699 = vmatpush1.msra.mxu1 %v4926_v44  ;;  %5762 = vmatpush1.msra.mxu0 %v5040_v23  ;;  %v9699_v62 = vld [vmem:[%s9782_s23 + $0x50] sm:$0xff]  ;;  %v4844_v44 = vld [vmem:[#allocation2 + $0x60] sm:$0xff] }
 0x4d7   : > { %3650 = vrot.lane.b32.xlu1 %v12451_v61, %s9717_s25  ;;  %3648 = vrot.lane.b32.xlu0 %v12446_v29, %s9717_s25  ;;  %v12562_v2 = vpop.permute.xlu1 %4728 }
 0x4d8   : > { %5700 = vmatprep.subr.mxu1 %v4899_v16  ;;  %5763 = vmatprep.subr.mxu0 %v5013_v15  ;;  %v4727_v58 = vpop.permute.xlu0 %4726 }
 0x4d9   : > { %5701 = vmatpush1.msra.mxu1 %v4898_v31  ;;  %5764 = vmatpush1.msra.mxu0 %v5012_v13  ;;  %v4764_v38 = vsel %vm1683_vm9, %v12532_v46, %v4727_v58  ;;  %v4765_v33 = vsel %vm1683_vm9, %v4727_v58, %v12562_v2 }
 0x4da   : > { %4819 = vst [vmem:[#allocation2 + $0xbe0] sm:$0xf] %v4764_v38  ;;  %4820 = vst [vmem:[#allocation2 + $0xbe8] sm:$0xf] %v4765_v33  ;;  %5702 = vmatprep.subr.mxu1 %v4871_v60  ;;  %5765 = vmatprep.subr.mxu0 %v4985_v56 }
 0x4db   : > { %5703 = vmatpush1.msra.mxu1 %v4870_v24  ;;  %5766 = vmatpush1.msra.mxu0 %v4984_v41  ;;  %v12568_v20 = vpop.permute.xlu1 %4000 }
 0x4dc   : > { %3831 = vrot.lane.b32.xlu1 %v12495_v27, %s9718_s26  ;;  %3829 = vrot.lane.b32.xlu0 %v12409_v17, %s9718_s26  ;;  %v3999_v30 = vpop.permute.xlu0 %3998 }
 0x4dd   : > { %5704 = vmatprep.subr.mxu1 %v4843_v7  ;;  %5767 = vmatprep.subr.mxu0 %v4957_v18  ;;  %v4038_v46 = vsel %vm955_vm5, %v12436_v9, %v3999_v30  ;;  %v4039_v53 = vsel %vm955_vm5, %v3999_v30, %v12568_v20  ;;  %v5210_v9 = vld [vmem:[#allocation2 + $0xbd0] sm:$0xf]  ;;  %v5183_v40 = vld [vmem:[#allocation2 + $0xaf8] sm:$0xff]  ;;  %v12633_v18 = vcombine.high %v12451_v61, %v12451_v61 }
 0x4de   : > { %5705 = vmatpush1.msra.mxu1 %v4842_v54  ;;  %5768 = vmatpush1.msra.mxu0 %v4956_v32  ;;  %4093 = vst [vmem:[#allocation2 + $0xa10] sm:$0xf] %v4038_v46  ;;  %4094 = vst [vmem:[#allocation2 + $0xa18] sm:$0xf] %v4039_v53  ;;  %v5182_v5 = vld [vmem:[#allocation2 + $0xaf0] sm:$0xff] }
 0x4df   : > { %5769 = vmatprep.subr.mxu0 %v4929_v37  ;;  %9497 = vmatprep.subr.msk.mxu1 %vm5234_vm10, %v5211_v57  ;;  %v12580_v39 = vpop.permute.xlu1 %4181 }
 0x4e0   : > { %9493 = vmatmul.mubr.msk.f32.vlgmr.msra.gmra.mxu1 %vm5230_vm11, %v12367_v6  ;;  %5770 = vmatpush1.msra.mxu0 %v4928_v3  ;;  %v4180_v10 = vpop.permute.xlu0 %4179 }
 0x4e1   : > { %9498 = vmatpush1.msk.msra.mxu1 %vm5234_vm10, %v5210_v9  ;;  %3019 = vrot.lane.b32.xlu1 %v12225_v22, %s9722_s30  ;;  %v4219_v63 = vsel %vm1137_vm6, %v12453_v28, %v4180_v10  ;;  %v4220_v59 = vsel %vm1137_vm6, %v4180_v10, %v12580_v39  ;;  %v4872_v28 = vld [vmem:[#allocation2 + $0x140] sm:$0xff]  ;;  %v5213_v23 = vld [vmem:[#allocation2 + $0xbe8] sm:$0xf] }
 0x4e2   : > { %3017 = vrot.lane.b32.xlu0 %v2974_v49, %s9722_s30  ;;  %5771 = vmatprep.subr.mxu0 %v4901_v51  ;;  %4274 = vst [vmem:[#allocation2 + $0xa10] sm:$0xf0] %v4219_v63  ;;  %4275 = vst [vmem:[#allocation2 + $0xa18] sm:$0xf0] %v4220_v59 }
 0x4e3   : > { %5822 = vmatprep.subr.mxu1 %v5183_v40  ;;  %5772 = vmatpush1.msra.mxu0 %v4900_v8  ;;  %v12594_v14 = vpop.permute.xlu1 %4366  ;;  %v12676_v40 = vld [vmem:[%s9782_s23 + $0x78] sm:$0xff] }
 0x4e4   : > { %5823 = vmatpush1.msra.mxu1 %v5182_v5  ;;  %5773 = vmatprep.subr.mxu0 %v4873_v25  ;;  %v4365_v45 = vpop.permute.xlu0 %4364 }
 0x4e5   : > { %5774 = vmatpush1.msra.mxu0 %v4872_v28  ;;  %3200 = vrot.lane.b32.xlu1 %v3156_v50, %s9723_s6  ;;  %v4402_v55 = vsel %vm1319_vm7, %v12542_v35, %v4365_v45  ;;  %v4403_v19 = vsel %vm1319_vm7, %v4365_v45, %v12594_v14  ;;  %v5212_v35 = vld [vmem:[#allocation2 + $0xbe0] sm:$0xf] }
 0x4e6   : > { %3198 = vrot.lane.b32.xlu0 %v9699_v62, %s9723_s6  ;;  %5775 = vmatprep.subr.mxu0 %v4845_v12  ;;  %4457 = vst [vmem:[#allocation2 + $0xb00] sm:$0xf] %v4402_v55  ;;  %4458 = vst [vmem:[#allocation2 + $0xb08] sm:$0xf] %v4403_v19 }
 0x4e7   : > { %5776 = vmatpush1.msra.mxu0 %v4844_v44  ;;  %v12603_v16 = vpop.permute.xlu1 %4547  ;;  %5880 = vmatprep.mubr.f32.mxu1 %v9724_v0 }
 0x4e8   : > { %9500 = vmatprep.subr.msk.mxu0 %vm5234_vm10, %v5213_v23  ;;  %9496 = vmatmul.mubr.msk.f32.vlgmr.msra.gmra.mxu0 %vm5230_vm11, %v12367_v6  ;;  %v4546_v15 = vpop.permute.xlu0 %4545 }
 0x4e9   : > { %9501 = vmatpush1.msk.msra.mxu0 %vm5234_vm10, %v5212_v35  ;;  %3469 = vrot.lane.b32.xlu1 %v12495_v27, %s9716_s24  ;;  %v4583_v31 = vsel %vm1501_vm8, %v12552_v36, %v4546_v15  ;;  %v4584_v13 = vsel %vm1501_vm8, %v4546_v15, %v12603_v16  ;;  %v5155_v58 = vld [vmem:[#allocation2 + $0xa18] sm:$0xff]  ;;  %v5154_v38 = vld [vmem:[#allocation2 + $0xa10] sm:$0xff]  ;;  %v9725_v27 = vmov 0   ;;  %v12709_v15 = vcombine.low %v12676_v40, %v12676_v40 }
 0x4ea   : > { %3467 = vrot.lane.b32.xlu0 %v12409_v17, %s9716_s24  ;;  %4638 = vst [vmem:[#allocation2 + $0xb00] sm:$0xf0] %v4583_v31  ;;  %4639 = vst [vmem:[#allocation2 + $0xb08] sm:$0xf0] %v4584_v13  ;;  %5824 = vmatprep.subr.mxu1 %v5155_v58 }
 0x4eb   : > { %5825 = vmatpush1.msra.mxu1 %v5154_v38  ;;  %v3639_v6 = vpop.permute.xlu1 %3638  ;;  %5951 = vmatprep.mubr.f32.mxu0 %v9724_v0 }
 0x4ec   : > { %v3637_v33 = vpop.permute.xlu0 %3636  ;;  %9568 = vset.pattern.permute.xlu0 %v9725_v27  ;;  %9569 = vset.pattern.permute.xlu1 %v9725_v27 }
 0x4ed   : > { %3023 = vrot.lane.b32.xlu1 %v12409_v17, %s9722_s30  ;;  %v3676_v36 = vsel %vm591_vm3, %v12478_v34, %v3637_v33  ;;  %v3677_v60 = vsel %vm591_vm3, %v3637_v33, %v3639_v6 }
 0x4ee   : > { %3021 = vrot.lane.b32.xlu0 %v12238_v52, %s9722_s30  ;;  %3731 = vst [vmem:[#allocation2 + $0x930] sm:$0xf] %v3676_v36  ;;  %3732 = vst [vmem:[#allocation2 + $0x938] sm:$0xf] %v3677_v60  ;;  %v12638_v52 = vld [vmem:[%s9782_s23 + $0x70] sm:$0xff] }
 0x4ef   : > { %v3820_v56 = vpop.permute.xlu1 %3819  ;;  %v12660_v53 = vcombine.low %v12638_v52, %v12638_v52  ;;  %v12671_v9 = vcombine.high %v12638_v52, %v12638_v52 }
 0x4f0   : > { %v3818_v24 = vpop.permute.xlu0 %3817 }
 0x4f1   : > { %3204 = vrot.lane.b32.xlu1 %v12432_v47, %s9723_s6  ;;  %v3857_v41 = vsel %vm773_vm4, %v12489_v26, %v3818_v24  ;;  %v3858_v17 = vsel %vm773_vm4, %v3818_v24, %v3820_v56  ;;  %v5185_v7 = vld [vmem:[#allocation2 + $0xb08] sm:$0xff]  ;;  %v5184_v34 = vld [vmem:[#allocation2 + $0xb00] sm:$0xff] }
 0x4f2   : > { %3202 = vrot.lane.b32.xlu0 %v12225_v22, %s9723_s6  ;;  %3912 = vst [vmem:[#allocation2 + $0x930] sm:$0xf0] %v3857_v41  ;;  %3913 = vst [vmem:[#allocation2 + $0x938] sm:$0xf0] %v3858_v17  ;;  %5893 = vmatprep.subr.mxu0 %v5185_v7  ;;  %v5042_v41 = vld [vmem:[#allocation2 + $0x690] sm:$0xff]  ;;  %v5015_v7 = vld [vmem:[#allocation2 + $0x5b8] sm:$0xff] }
 0x4f3   : > { %5894 = vmatpush1.msra.mxu0 %v5184_v34  ;;  %v12640_v47 = vpop.permute.xlu1 %4004 }
 0x4f4   : > { %v4003_v26 = vpop.permute.xlu0 %4002 }
 0x4f5   : > { %4740 = vrot.lane.b32.xlu1 %v12638_v52, %s9723_s6  ;;  %v4040_v30 = vsel %vm955_vm5, %v12568_v20, %v4003_v26  ;;  %v4041_v54 = vsel %vm955_vm5, %v4003_v26, %v12640_v47 }
 0x4f6   : > { %4738 = vrot.lane.b32.xlu0 %v12633_v18, %s9723_s6  ;;  %4095 = vst [vmem:[#allocation2 + $0xa20] sm:$0xf] %v4040_v30  ;;  %4096 = vst [vmem:[#allocation2 + $0xa28] sm:$0xf] %v4041_v54  ;;  %v5014_v54 = vld [vmem:[#allocation2 + $0x5b0] sm:$0xff] }
 0x4f7   : > { %v12650_v22 = vpop.permute.xlu1 %4185 }
 0x4f8   : > { %v4184_v32 = vpop.permute.xlu0 %4183 }
 0x4f9   : > { %4378 = vrot.lane.b32.xlu1 %v12638_v52, %s9721_s29  ;;  %v4221_v46 = vsel %vm1137_vm6, %v12580_v39, %v4184_v32  ;;  %v4222_v20 = vsel %vm1137_vm6, %v4184_v32, %v12650_v22  ;;  %v5127_v48 = vld [vmem:[#allocation2 + $0x938] sm:$0xff]  ;;  %v5126_v49 = vld [vmem:[#allocation2 + $0x930] sm:$0xff] }
 0x4fa   : > { %4376 = vrot.lane.b32.xlu0 %v12633_v18, %s9721_s29  ;;  %4276 = vst [vmem:[#allocation2 + $0xa20] sm:$0xf0] %v4221_v46  ;;  %4277 = vst [vmem:[#allocation2 + $0xa28] sm:$0xf0] %v4222_v20  ;;  %5826 = vmatprep.subr.mxu1 %v5127_v48  ;;  %v4987_v46 = vld [vmem:[#allocation2 + $0x4d8] sm:$0xff] }
 0x4fb   : > { %5827 = vmatpush1.msra.mxu1 %v5126_v49  ;;  %v3458_v37 = vpop.permute.xlu1 %3457  ;;  %v4959_v48 = vld [vmem:[#allocation2 + $0x3f8] sm:$0xff] }
 0x4fc   : > { %v3456_v57 = vpop.permute.xlu0 %3455 }
 0x4fd   : > { %4559 = vrot.lane.b32.xlu1 %v12660_v53, %s9722_s30  ;;  %v3495_v3 = vsel %vm408_vm1, %v12514_v4, %v3456_v57  ;;  %v3496_v39 = vsel %vm408_vm1, %v3456_v57, %v3458_v37 }
 0x4fe   : > { %4557 = vrot.lane.b32.xlu0 %v12451_v61, %s9722_s30  ;;  %3550 = vst [vmem:[#allocation2 + $0x850] sm:$0xf0] %v3495_v3  ;;  %3551 = vst [vmem:[#allocation2 + $0x858] sm:$0xf0] %v3496_v39  ;;  %v4958_v3 = vld [vmem:[#allocation2 + $0x3f0] sm:$0xff] }
 0x4ff   : > { %v12678_v10 = vpop.permute.xlu1 %3642 }
 0x500   : > { %v3641_v51 = vpop.permute.xlu0 %3640 }
 0x501   : > { %4744 = vrot.lane.b32.xlu1 %v12676_v40, %s9723_s6  ;;  %v3678_v4 = vsel %vm591_vm3, %v3639_v6, %v3641_v51  ;;  %v3679_v5 = vsel %vm591_vm3, %v3641_v51, %v12678_v10  ;;  %v5157_v63 = vld [vmem:[#allocation2 + $0xa28] sm:$0xff]  ;;  %v5156_v59 = vld [vmem:[#allocation2 + $0xa20] sm:$0xff]  ;;  %v4931_v51 = vld [vmem:[#allocation2 + $0x318] sm:$0xff] }
 0x502   : > { %4742 = vrot.lane.b32.xlu0 %v12671_v9, %s9723_s6  ;;  %3733 = vst [vmem:[#allocation2 + $0x940] sm:$0xf] %v3678_v4  ;;  %3734 = vst [vmem:[#allocation2 + $0x948] sm:$0xf] %v3679_v5  ;;  %5895 = vmatprep.subr.mxu0 %v5157_v63  ;;  %v5045_v5 = vld [vmem:[#allocation2 + $0x6a8] sm:$0xff]  ;;  %v4930_v63 = vld [vmem:[#allocation2 + $0x310] sm:$0xff] }
 0x503   : > { %5896 = vmatpush1.msra.mxu0 %v5156_v59  ;;  %v12687_v50 = vpop.permute.xlu1 %3823 }
 0x504   : > { %v3822_v8 = vpop.permute.xlu0 %3821 }
 0x505   : > { %4016 = vrot.lane.b32.xlu1 %v12638_v52, %s9719_s27  ;;  %v3859_v25 = vsel %vm773_vm4, %v3820_v56, %v3822_v8  ;;  %v3860_v28 = vsel %vm773_vm4, %v3822_v8, %v12687_v50  ;;  %v5099_v45 = vld [vmem:[#allocation2 + $0x858] sm:$0xff]  ;;  %v5098_v12 = vld [vmem:[#allocation2 + $0x850] sm:$0xff] }
 0x506   : > { %4014 = vrot.lane.b32.xlu0 %v12633_v18, %s9719_s27  ;;  %3914 = vst [vmem:[#allocation2 + $0x940] sm:$0xf0] %v3859_v25  ;;  %3915 = vst [vmem:[#allocation2 + $0x948] sm:$0xf0] %v3860_v28  ;;  %5828 = vmatprep.subr.mxu1 %v5099_v45  ;;  %v5043_v56 = vld [vmem:[#allocation2 + $0x698] sm:$0xff]  ;;  %v5044_v25 = vld [vmem:[#allocation2 + $0x6a0] sm:$0xff] }
 0x507   : > { %5829 = vmatpush1.msra.mxu1 %v5098_v12  ;;  %v4903_v28 = vld [vmem:[#allocation2 + $0x238] sm:$0xff]  ;;  %v5017_v45 = vld [vmem:[#allocation2 + $0x5c8] sm:$0xff]  ;;  %v4902_v12 = vld [vmem:[#allocation2 + $0x230] sm:$0xff] }
 0x508   : > { %v3193_v55 = vpop.permute.xlu1 %3192  ;;  %v3191_v19 = vpop.permute.xlu0 %3190 }
 0x509   : > { %4197 = vrot.lane.b32.xlu1 %v12660_v53, %s9720_s28  ;;  %v3230_v62 = vsel %vm1683_vm9, %v12523_v43, %v3191_v19  ;;  %v3231_v44 = vsel %vm1683_vm9, %v3191_v19, %v3193_v55 }
 0x50a   : > { %4195 = vrot.lane.b32.xlu0 %v12451_v61, %s9720_s28  ;;  %3285 = vst [vmem:[#allocation2 + $0x770] sm:$0xf0] %v3230_v62  ;;  %3286 = vst [vmem:[#allocation2 + $0x778] sm:$0xf0] %v3231_v44  ;;  %v4875_v62 = vld [vmem:[#allocation2 + $0x158] sm:$0xff] }
 0x50c   : > { %v12703_v23 = vpop.permute.xlu1 %3461 }
 0x50d   : > { %4382 = vrot.lane.b32.xlu1 %v12676_v40, %s9721_s29  ;;  %v3460_v35 = vpop.permute.xlu0 %3459  ;;  %v5129_v31 = vld [vmem:[#allocation2 + $0x948] sm:$0xff]  ;;  %v5128_v13 = vld [vmem:[#allocation2 + $0x940] sm:$0xff] }
 0x50e   : > { %4380 = vrot.lane.b32.xlu0 %v12671_v9, %s9721_s29  ;;  %v3497_v43 = vsel %vm408_vm1, %v3458_v37, %v3460_v35  ;;  %v3498_v58 = vsel %vm408_vm1, %v3460_v35, %v12703_v23  ;;  %5897 = vmatprep.subr.mxu0 %v5129_v31  ;;  %v4989_v31 = vld [vmem:[#allocation2 + $0x4e8] sm:$0xff] }
 0x50f   : > { %3552 = vst [vmem:[#allocation2 + $0x860] sm:$0xf0] %v3497_v43  ;;  %3553 = vst [vmem:[#allocation2 + $0x868] sm:$0xf0] %v3498_v58  ;;  %5898 = vmatpush1.msra.mxu0 %v5128_v13  ;;  %v4874_v13 = vld [vmem:[#allocation2 + $0x150] sm:$0xff]  ;;  %v4988_v43 = vld [vmem:[#allocation2 + $0x4e0] sm:$0xff] }
 0x510   : > { %v12716_v38 = vpop.permute.xlu1 %3196  ;;  %v4847_v58 = vld [vmem:[#allocation2 + $0x78] sm:$0xff] }
 0x511   : > { %4563 = vrot.lane.b32.xlu1 %v12709_v15, %s9722_s30  ;;  %v3195_v6 = vpop.permute.xlu0 %3194  ;;  %v5071_v33 = vld [vmem:[#allocation2 + $0x778] sm:$0xff]  ;;  %v5070_v27 = vld [vmem:[#allocation2 + $0x770] sm:$0xff] }
 0x512   : > { %4561 = vrot.lane.b32.xlu0 %v12638_v52, %s9722_s30  ;;  %v3232_v36 = vsel %vm1683_vm9, %v3193_v55, %v3195_v6  ;;  %v3233_v60 = vsel %vm1683_vm9, %v3195_v6, %v12716_v38  ;;  %5830 = vmatprep.subr.mxu1 %v5071_v33  ;;  %v5016_v55 = vld [vmem:[#allocation2 + $0x5c0] sm:$0xff]  ;;  %v4961_v6 = vld [vmem:[#allocation2 + $0x408] sm:$0xff] }
 0x513   : > { %3287 = vst [vmem:[#allocation2 + $0x780] sm:$0xf0] %v3232_v36  ;;  %3288 = vst [vmem:[#allocation2 + $0x788] sm:$0xf0] %v3233_v60  ;;  %5831 = vmatpush1.msra.mxu1 %v5070_v27  ;;  %v4846_v27 = vld [vmem:[#allocation2 + $0x70] sm:$0xff]  ;;  %v4960_v60 = vld [vmem:[#allocation2 + $0x400] sm:$0xff] }
 0x514   : > { %v12725_v24 = vpop.permute.xlu1 %4732  ;;  %5832 = vmatprep.subr.mxu1 %v5043_v56 }
 0x515   : > { %3654 = vrot.lane.b32.xlu1 %v12638_v52, %s9717_s25  ;;  %v4731_v17 = vpop.permute.xlu0 %4730  ;;  %5833 = vmatpush1.msra.mxu1 %v5042_v41  ;;  %v12778_v41 = vld [vmem:[%s15203_s1] sm:$0xff] }
 0x516   : > { %3652 = vrot.lane.b32.xlu0 %v12633_v18, %s9717_s25  ;;  %v4766_v34 = vsel %vm1683_vm9, %v12562_v2, %v4731_v17  ;;  %v4767_v26 = vsel %vm1683_vm9, %v4731_v17, %v12725_v24  ;;  %5834 = vmatprep.subr.mxu1 %v5015_v7  ;;  %v5101_v30 = vld [vmem:[#allocation2 + $0x868] sm:$0xff]  ;;  %v5100_v32 = vld [vmem:[#allocation2 + $0x860] sm:$0xff]  ;;  %v4986_v18 = vld [vmem:[#allocation2 + $0x4d0] sm:$0xff] }
 0x517   : > { %4821 = vst [vmem:[#allocation2 + $0xbf0] sm:$0xf] %v4766_v34  ;;  %4822 = vst [vmem:[#allocation2 + $0xbf8] sm:$0xf] %v4767_v26  ;;  %5899 = vmatprep.subr.mxu0 %v5101_v30  ;;  %5835 = vmatpush1.msra.mxu1 %v5014_v54 }
 0x518   : > { %5900 = vmatpush1.msra.mxu0 %v5100_v32  ;;  %v12735_v20 = vpop.permute.xlu1 %4370  ;;  %5836 = vmatprep.subr.mxu1 %v4987_v46  ;;  %v4905_v32 = vld [vmem:[#allocation2 + $0x248] sm:$0xff] }
 0x519   : > { %3835 = vrot.lane.b32.xlu1 %v12660_v53, %s9718_s26  ;;  %v4369_v2 = vpop.permute.xlu0 %4368  ;;  %5837 = vmatpush1.msra.mxu1 %v4986_v18 }
 0x51a   : > { %3833 = vrot.lane.b32.xlu0 %v12451_v61, %s9718_s26  ;;  %v4404_v49 = vsel %vm1319_vm7, %v12594_v14, %v4369_v2  ;;  %v4405_v37 = vsel %vm1319_vm7, %v4369_v2, %v12735_v20  ;;  %5838 = vmatprep.subr.mxu1 %v4959_v48  ;;  %v5073_v57 = vld [vmem:[#allocation2 + $0x788] sm:$0xff]  ;;  %v5072_v39 = vld [vmem:[#allocation2 + $0x780] sm:$0xff] }
 0x51b   : > { %4459 = vst [vmem:[#allocation2 + $0xb10] sm:$0xf] %v4404_v49  ;;  %4460 = vst [vmem:[#allocation2 + $0xb18] sm:$0xf] %v4405_v37  ;;  %5901 = vmatprep.subr.mxu0 %v5073_v57  ;;  %5839 = vmatpush1.msra.mxu1 %v4958_v3  ;;  %v4904_v2 = vld [vmem:[#allocation2 + $0x240] sm:$0xff]  ;;  %v4877_v48 = vld [vmem:[#allocation2 + $0x168] sm:$0xff] }
 0x51c   : > { %5902 = vmatpush1.msra.mxu0 %v5072_v39  ;;  %v12745_v4 = vpop.permute.xlu1 %4551  ;;  %5840 = vmatprep.subr.mxu1 %v4931_v51  ;;  %v4876_v37 = vld [vmem:[#allocation2 + $0x160] sm:$0xff]  ;;  %v4849_v3 = vld [vmem:[#allocation2 + $0x88] sm:$0xff] }
 0x51d   : > { %4020 = vrot.lane.b32.xlu1 %v12676_v40, %s9719_s27  ;;  %v4550_v14 = vpop.permute.xlu0 %4549  ;;  %5903 = vmatprep.subr.mxu0 %v5045_v5  ;;  %v4848_v5 = vld [vmem:[#allocation2 + $0x80] sm:$0xff] }
 0x51e   : > { %4018 = vrot.lane.b32.xlu0 %v12671_v9, %s9719_s27  ;;  %v4585_v59 = vsel %vm1501_vm8, %v12603_v16, %v4550_v14  ;;  %v4586_v8 = vsel %vm1501_vm8, %v4550_v14, %v12745_v4  ;;  %5841 = vmatpush1.msra.mxu1 %v4930_v63  ;;  %v5215_v17 = vld [vmem:[#allocation2 + $0xbf8] sm:$0xf]  ;;  %v5214_v7 = vld [vmem:[#allocation2 + $0xbf0] sm:$0xf] }
 0x51f   : > { %4640 = vst [vmem:[#allocation2 + $0xb10] sm:$0xf0] %v4585_v59  ;;  %4641 = vst [vmem:[#allocation2 + $0xb18] sm:$0xf0] %v4586_v8  ;;  %5904 = vmatpush1.msra.mxu0 %v5044_v25  ;;  %5842 = vmatprep.subr.mxu1 %v4903_v28  ;;  %v3158_v25 = vcombine.low %v12469_v11, %v12469_v11 }
 0x520   : > { %5905 = vmatprep.subr.mxu0 %v5017_v45  ;;  %5843 = vmatpush1.msra.mxu1 %v4902_v12  ;;  %v12755_v19 = vpop.permute.xlu1 %4736 }
 0x521   : > { %4201 = vrot.lane.b32.xlu1 %v12709_v15, %s9720_s28  ;;  %5906 = vmatpush1.msra.mxu0 %v5016_v55  ;;  %v4735_v16 = vpop.permute.xlu0 %4734 }
 0x522   : > { %4199 = vrot.lane.b32.xlu0 %v12638_v52, %s9720_s28  ;;  %v4768_v44 = vsel %vm1683_vm9, %v12725_v24, %v4735_v16  ;;  %v4769_v35 = vsel %vm1683_vm9, %v4735_v16, %v12755_v19  ;;  %5844 = vmatprep.subr.mxu1 %v4875_v62  ;;  %v9701_v62 = vld [vmem:[%s9782_s23 + $0x60] sm:$0xff] }
 0x523   : > { %4823 = vst [vmem:[#allocation2 + $0xc00] sm:$0xf] %v4768_v44  ;;  %4824 = vst [vmem:[#allocation2 + $0xc08] sm:$0xf] %v4769_v35  ;;  %5907 = vmatprep.subr.mxu0 %v4989_v31  ;;  %5845 = vmatpush1.msra.mxu1 %v4874_v13 }
 0x524   : > { %5908 = vmatpush1.msra.mxu0 %v4988_v43  ;;  %5846 = vmatprep.subr.mxu1 %v4847_v58  ;;  %v12765_v33 = vpop.permute.xlu1 %4008 }
 0x525   : > { %3473 = vrot.lane.b32.xlu1 %v12660_v53, %s9716_s24  ;;  %5909 = vmatprep.subr.mxu0 %v4961_v6  ;;  %v4007_v36 = vpop.permute.xlu0 %4006 }
 0x526   : > { %3471 = vrot.lane.b32.xlu0 %v12451_v61, %s9716_s24  ;;  %5847 = vmatpush1.msra.mxu1 %v4846_v27  ;;  %v4042_v56 = vsel %vm955_vm5, %v12640_v47, %v4007_v36  ;;  %v4043_v24 = vsel %vm955_vm5, %v4007_v36, %v12765_v33  ;;  %v4933_v61 = vld [vmem:[#allocation2 + $0x328] sm:$0xff]  ;;  %v4932_v47 = vld [vmem:[#allocation2 + $0x320] sm:$0xff]  ;;  %v5187_v34 = vld [vmem:[#allocation2 + $0xb18] sm:$0xff]  ;;  %v4691_v36 = vcombine.high %v12676_v40, %v12676_v40 }
 0x527   : > { %5910 = vmatpush1.msra.mxu0 %v4960_v60  ;;  %4097 = vst [vmem:[#allocation2 + $0xa30] sm:$0xf] %v4042_v56  ;;  %4098 = vst [vmem:[#allocation2 + $0xa38] sm:$0xf] %v4043_v24  ;;  %9499 = vmatmul.mubr.msk.f32.vlgmr.msra.gmra.mxu1 %vm5230_vm11, %v12778_v41  ;;  %v5186_v30 = vld [vmem:[#allocation2 + $0xb10] sm:$0xff] }
 0x528   : > { %5911 = vmatprep.subr.mxu0 %v4933_v61  ;;  %9503 = vmatprep.subr.msk.mxu1 %vm5234_vm10, %v5215_v17  ;;  %v12783_v26 = vpop.permute.xlu1 %4189 }
 0x529   : > { %5912 = vmatpush1.msra.mxu0 %v4932_v47  ;;  %9504 = vmatpush1.msk.msra.mxu1 %vm5234_vm10, %v5214_v7  ;;  %v4188_v54 = vpop.permute.xlu0 %4187  ;;  %v3312_v47 = vld [vmem:[%s9782_s23 + $0x78] sm:$0xff]  ;;  %s9730_s23 = smov 62  }
 0x52a   : > { %3658 = vrot.lane.b32.xlu1 %v12676_v40, %s9717_s25  ;;  %3656 = vrot.lane.b32.xlu0 %v12671_v9, %s9717_s25  ;;  %v4223_v46 = vsel %vm1137_vm6, %v12650_v22, %v4188_v54  ;;  %v4224_v18 = vsel %vm1137_vm6, %v4188_v54, %v12783_v26  ;;  %v3339_v22 = vcombine.high %v10780_v21, %v10780_v21  ;;  %v5217_v21 = vld [vmem:[#allocation2 + $0xc08] sm:$0xf] }
 0x52b   : > { %5913 = vmatprep.subr.mxu0 %v4905_v32  ;;  %5964 = vmatprep.subr.mxu1 %v5187_v34  ;;  %4278 = vst [vmem:[#allocation2 + $0xa30] sm:$0xf0] %v4223_v46  ;;  %4279 = vst [vmem:[#allocation2 + $0xa38] sm:$0xf0] %v4224_v18  ;;  %v3340_v7 = vcombine.high %v3312_v47, %v3312_v47 }
 0x52c   : > { %5914 = vmatpush1.msra.mxu0 %v4904_v2  ;;  %5965 = vmatpush1.msra.mxu1 %v5186_v30  ;;  %v12794_v49 = vpop.permute.xlu1 %4374  ;;  %3380 = vst [vmem:[#allocation2 + $0x8a8] sm:$0xf] %v3339_v22  ;;  %3381 = vst [vmem:[#allocation2 + $0x8b0] sm:$0xf] %v3312_v47 }
 0x52d   : > { %5915 = vmatprep.subr.mxu0 %v4877_v48  ;;  %v4373_v57 = vpop.permute.xlu0 %4372  ;;  %6022 = vmatprep.mubr.f32.mxu1 %v9724_v0  ;;  %3382 = vst.msk [vmem:[#allocation2 + $0x8b8] sm:$0xf] %vm308_vm0, %v3340_v7  ;;  %v4907_v7 = vld [vmem:[#allocation2 + $0x258] sm:$0xff] }
 0x52e   : > { %5916 = vmatpush1.msra.mxu0 %v4876_v37  ;;  %3839 = vrot.lane.b32.xlu1 %v12709_v15, %s9718_s26  ;;  %v4406_v39 = vsel %vm1319_vm7, %v12735_v20, %v4373_v57  ;;  %v4407_v51 = vsel %vm1319_vm7, %v4373_v57, %v12794_v49  ;;  %v5216_v20 = vld [vmem:[#allocation2 + $0xc00] sm:$0xf] }
 0x52f   : > { %3837 = vrot.lane.b32.xlu0 %v12638_v52, %s9718_s26  ;;  %5917 = vmatprep.subr.mxu0 %v4849_v3  ;;  %4461 = vst [vmem:[#allocation2 + $0xb20] sm:$0xf] %v4406_v39  ;;  %4462 = vst [vmem:[#allocation2 + $0xb28] sm:$0xf] %v4407_v51 }
 0x530   : > { %5918 = vmatpush1.msra.mxu0 %v4848_v5  ;;  %v12807_v14 = vpop.permute.xlu1 %4555 }
 0x531   : > { %9502 = vmatmul.mubr.msk.f32.vlgmr.msra.gmra.mxu0 %vm5230_vm11, %v12778_v41  ;;  %9506 = vmatprep.subr.msk.mxu0 %vm5234_vm10, %v5217_v21  ;;  %v4554_v63 = vpop.permute.xlu0 %4553 }
 0x532   : > { %9507 = vmatpush1.msk.msra.mxu0 %vm5234_vm10, %v5216_v20  ;;  %3027 = vrot.lane.b32.xlu1 %v12469_v11, %s9722_s30  ;;  %v4587_v59 = vsel %vm1501_vm8, %v12745_v4, %v4554_v63  ;;  %v4588_v8 = vsel %vm1501_vm8, %v4554_v63, %v12807_v14  ;;  %v5159_v28 = vld [vmem:[#allocation2 + $0xa38] sm:$0xff]  ;;  %v5158_v45 = vld [vmem:[#allocation2 + $0xa30] sm:$0xff] }
 0x533   : > { %3025 = vrot.lane.b32.xlu0 %v12446_v29, %s9722_s30  ;;  %4642 = vst [vmem:[#allocation2 + $0xb20] sm:$0xf0] %v4587_v59  ;;  %4643 = vst [vmem:[#allocation2 + $0xb28] sm:$0xf0] %v4588_v8  ;;  %5966 = vmatprep.subr.mxu1 %v5159_v28 }
 0x534   : > { %5967 = vmatpush1.msra.mxu1 %v5158_v45  ;;  %v3647_v12 = vpop.permute.xlu1 %3646  ;;  %6093 = vmatprep.mubr.f32.mxu0 %v9724_v0 }
 0x535   : > { %v3645_v4 = vpop.permute.xlu0 %3644 }
 0x536   : > { %3208 = vrot.lane.b32.xlu1 %v3158_v25, %s9723_s6  ;;  %v3680_v55 = vsel %vm591_vm3, %v12678_v10, %v3645_v4  ;;  %v3681_v16 = vsel %vm591_vm3, %v3645_v4, %v3647_v12 }
 0x537   : > { %3206 = vrot.lane.b32.xlu0 %v9701_v62, %s9723_s6  ;;  %3735 = vst [vmem:[#allocation2 + $0x950] sm:$0xf] %v3680_v55  ;;  %3736 = vst [vmem:[#allocation2 + $0x958] sm:$0xf] %v3681_v16  ;;  %v5047_v16 = vld [vmem:[#allocation2 + $0x6b8] sm:$0xff] }
 0x538   : > { %v12830_v29 = vpop.permute.xlu1 %3827 }
 0x539   : > { %v3826_v44 = vpop.permute.xlu0 %3825 }
 0x53a   : > { %3477 = vrot.lane.b32.xlu1 %v12709_v15, %s9716_s24  ;;  %v3861_v35 = vsel %vm773_vm4, %v12687_v50, %v3826_v44  ;;  %v3862_v31 = vsel %vm773_vm4, %v3826_v44, %v12830_v29  ;;  %v5189_v10 = vld [vmem:[#allocation2 + $0xb28] sm:$0xff]  ;;  %v5188_v13 = vld [vmem:[#allocation2 + $0xb20] sm:$0xff] }
 0x53b   : > { %3475 = vrot.lane.b32.xlu0 %v12638_v52, %s9716_s24  ;;  %3916 = vst [vmem:[#allocation2 + $0x950] sm:$0xf0] %v3861_v35  ;;  %3917 = vst [vmem:[#allocation2 + $0x958] sm:$0xf0] %v3862_v31  ;;  %6035 = vmatprep.subr.mxu0 %v5189_v10  ;;  %v5019_v31 = vld [vmem:[#allocation2 + $0x5d8] sm:$0xff] }
 0x53c   : > { %6036 = vmatpush1.msra.mxu0 %v5188_v13  ;;  %v12840_v43 = vpop.permute.xlu1 %4012 }
 0x53d   : > { %v4011_v58 = vpop.permute.xlu0 %4010 }
 0x53e   : > { %3031 = vrot.lane.b32.xlu1 %v12638_v52, %s9722_s30  ;;  %v4044_v50 = vsel %vm955_vm5, %v12765_v33, %v4011_v58  ;;  %v4045_v15 = vsel %vm955_vm5, %v4011_v58, %v12840_v43  ;;  %v5018_v58 = vld [vmem:[#allocation2 + $0x5d0] sm:$0xff] }
 0x53f   : > { %3029 = vrot.lane.b32.xlu0 %v12475_v1, %s9722_s30  ;;  %4099 = vst [vmem:[#allocation2 + $0xa40] sm:$0xf] %v4044_v50  ;;  %4100 = vst [vmem:[#allocation2 + $0xa48] sm:$0xf] %v4045_v15  ;;  %v4991_v15 = vld [vmem:[#allocation2 + $0x4f8] sm:$0xff] }
 0x540   : > { %v12850_v6 = vpop.permute.xlu1 %4193 }
 0x541   : > { %v4192_v27 = vpop.permute.xlu0 %4191 }
 0x542   : > { %3212 = vrot.lane.b32.xlu1 %v12660_v53, %s9723_s6  ;;  %v4225_v33 = vsel %vm1137_vm6, %v12783_v26, %v4192_v27  ;;  %v4226_v60 = vsel %vm1137_vm6, %v4192_v27, %v12850_v6  ;;  %v5131_v56 = vld [vmem:[#allocation2 + $0x958] sm:$0xff]  ;;  %v5130_v1 = vld [vmem:[#allocation2 + $0x950] sm:$0xff] }
 0x543   : > { %3210 = vrot.lane.b32.xlu0 %v12469_v11, %s9723_s6  ;;  %4280 = vst [vmem:[#allocation2 + $0xa40] sm:$0xf0] %v4225_v33  ;;  %4281 = vst [vmem:[#allocation2 + $0xa48] sm:$0xf0] %v4226_v60  ;;  %5968 = vmatprep.subr.mxu1 %v5131_v56  ;;  %v4963_v56 = vld [vmem:[#allocation2 + $0x418] sm:$0xff] }
 0x544   : > { %5969 = vmatpush1.msra.mxu1 %v5130_v1  ;;  %v3466_v24 = vpop.permute.xlu1 %3465  ;;  %v4962_v1 = vld [vmem:[#allocation2 + $0x410] sm:$0xff] }
 0x545   : > { %v3464_v61 = vpop.permute.xlu0 %3463 }
 0x546   : > { %4384 = vrot.lane.b32.xlu1 %v4691_v36, %s9721_s29  ;;  %v3499_v53 = vsel %vm408_vm1, %v12703_v23, %v3464_v61  ;;  %v3500_v17 = vsel %vm408_vm1, %v3464_v61, %v3466_v24  ;;  %v4935_v61 = vld [vmem:[#allocation2 + $0x338] sm:$0xff] }
 0x547   : > { %4746 = vrot.lane.b32.xlu0 %v4691_v36, %s9723_s6  ;;  %3554 = vst [vmem:[#allocation2 + $0x870] sm:$0xf0] %v3499_v53  ;;  %3555 = vst [vmem:[#allocation2 + $0x878] sm:$0xf0] %v3500_v17  ;;  %v4934_v17 = vld [vmem:[#allocation2 + $0x330] sm:$0xff] }
 0x549   : > { %v12868_v11 = vpop.permute.xlu1 %3650  ;;  %v3649_v34 = vpop.permute.xlu0 %3648 }
 0x54a   : > { %4022 = vrot.lane.b32.xlu1 %v4691_v36, %s9719_s27  ;;  %v3682_v26 = vsel %vm591_vm3, %v3647_v12, %v3649_v34  ;;  %v3683_v23 = vsel %vm591_vm3, %v3649_v34, %v12868_v11  ;;  %v5161_v30 = vld [vmem:[#allocation2 + $0xa48] sm:$0xff]  ;;  %v5160_v54 = vld [vmem:[#allocation2 + $0xa40] sm:$0xff] }
 0x54b   : > { %4565 = vrot.lane.b32.xlu0 %v12676_v40, %s9722_s30  ;;  %3737 = vst [vmem:[#allocation2 + $0x960] sm:$0xf] %v3682_v26  ;;  %3738 = vst [vmem:[#allocation2 + $0x968] sm:$0xf] %v3683_v23  ;;  %6037 = vmatprep.subr.mxu0 %v5161_v30  ;;  %v4906_v23 = vld [vmem:[#allocation2 + $0x250] sm:$0xff] }
 0x54c   : > { %6038 = vmatpush1.msra.mxu0 %v5160_v54  ;;  %v4879_v54 = vld [vmem:[#allocation2 + $0x178] sm:$0xff] }
 0x54e   : > { %3660 = vrot.lane.b32.xlu1 %v4691_v36, %s9717_s25  ;;  %v12878_v32 = vpop.permute.xlu1 %3831  ;;  %v3830_v46 = vpop.permute.xlu0 %3829  ;;  %v5103_v18 = vld [vmem:[#allocation2 + $0x878] sm:$0xff]  ;;  %v5102_v2 = vld [vmem:[#allocation2 + $0x870] sm:$0xff] }
 0x54f   : > { %4203 = vrot.lane.b32.xlu0 %v12676_v40, %s9720_s28  ;;  %v3863_v48 = vsel %vm773_vm4, %v12830_v29, %v3830_v46  ;;  %v3864_v37 = vsel %vm773_vm4, %v3830_v46, %v12878_v32  ;;  %5970 = vmatprep.subr.mxu1 %v5103_v18  ;;  %v5046_v29 = vld [vmem:[#allocation2 + $0x6b0] sm:$0xff]  ;;  %v5049_v46 = vld [vmem:[#allocation2 + $0x6c8] sm:$0xff] }
 0x550   : > { %3918 = vst [vmem:[#allocation2 + $0x960] sm:$0xf0] %v3863_v48  ;;  %3919 = vst [vmem:[#allocation2 + $0x968] sm:$0xf0] %v3864_v37  ;;  %5971 = vmatpush1.msra.mxu1 %v5102_v2  ;;  %v4990_v36 = vld [vmem:[#allocation2 + $0x4f0] sm:$0xff]  ;;  %v5048_v2 = vld [vmem:[#allocation2 + $0x6c0] sm:$0xff] }
 0x552   : > { %3479 = vrot.lane.b32.xlu1 %v12676_v40, %s9716_s24 }
 0x553   : > { %3841 = vrot.lane.b32.xlu0 %v12676_v40, %s9718_s26  ;;  %v3020_v57 = vpop.permute.xlu1 %3019  ;;  %v5224_v40 = vld [vmem:[%s15204_s2] sm:$0xff] }
 0x554   : > { %v3018_v22 = vpop.permute.xlu0 %3017 }
 0x555   : > { %v3053_v3 = vsel %vm1501_vm8, %v11776_v42, %v3018_v22  ;;  %v3054_v39 = vsel %vm1501_vm8, %v3018_v22, %v3020_v57  ;;  %v5021_v22 = vld [vmem:[#allocation2 + $0x5e8] sm:$0xff] }
 0x556   : > { %3108 = vst [vmem:[#allocation2 + $0x790] sm:$0xf] %v3053_v3  ;;  %3109 = vst [vmem:[#allocation2 + $0x798] sm:$0xf] %v3054_v39  ;;  %3214 = vrot.lane.b32.xlu1 %v12638_v52, %s9723_s6  ;;  %v4850_v3 = vld [vmem:[#allocation2 + $0x90] sm:$0xff]  ;;  %v5020_v39 = vld [vmem:[#allocation2 + $0x5e0] sm:$0xff] }
 0x557   : > { %3033 = vrot.lane.b32.xlu0 %v12671_v9, %s9722_s30  ;;  %v3201_v51 = vpop.permute.xlu1 %3200  ;;  %v5133_v5 = vld [vmem:[#allocation2 + $0x968] sm:$0xff]  ;;  %v5132_v21 = vld [vmem:[#allocation2 + $0x960] sm:$0xff] }
 0x558   : > { %v3199_v20 = vpop.permute.xlu0 %3198  ;;  %6039 = vmatprep.subr.mxu0 %v5133_v5  ;;  %v4993_v5 = vld [vmem:[#allocation2 + $0x508] sm:$0xff] }
 0x559   : > { %v3234_v42 = vsel %vm1683_vm9, %v12716_v38, %v3199_v20  ;;  %v3235_v63 = vsel %vm1683_vm9, %v3199_v20, %v3201_v51  ;;  %6040 = vmatpush1.msra.mxu0 %v5132_v21  ;;  %v4992_v20 = vld [vmem:[#allocation2 + $0x500] sm:$0xff] }
 0x55a   : > { %3289 = vst [vmem:[#allocation2 + $0x790] sm:$0xf0] %v3234_v42  ;;  %3290 = vst [vmem:[#allocation2 + $0x798] sm:$0xf0] %v3235_v63 }
 0x55b   : > { %5227 = vperm.xlu0 %9568, %v5224_v40   ;;  %v12903_v52 = vpop.permute.xlu1 %3469 }
 0x55c   : > { %v3468_v9 = vpop.permute.xlu0 %3467 }
 0x55d   : > { %v3501_v59 = vsel %vm408_vm1, %v3466_v24, %v3468_v9  ;;  %v3502_v8 = vsel %vm408_vm1, %v3468_v9, %v12903_v52  ;;  %v4965_v9 = vld [vmem:[#allocation2 + $0x428] sm:$0xff] }
 0x55e   : > { %3556 = vst [vmem:[#allocation2 + $0x880] sm:$0xf0] %v3501_v59  ;;  %3557 = vst [vmem:[#allocation2 + $0x888] sm:$0xf0] %v3502_v8  ;;  %v4964_v59 = vld [vmem:[#allocation2 + $0x420] sm:$0xff] }
 0x55f   : > { %v12908_v25 = vpop.permute.xlu1 %3023 }
 0x560   : > { %v3022_v28 = vpop.permute.xlu0 %3021 }
 0x561   : > { %v3055_v38 = vsel %vm1501_vm8, %v3020_v57, %v3022_v28  ;;  %v3056_v45 = vsel %vm1501_vm8, %v3022_v28, %v12908_v25  ;;  %v5075_v12 = vld [vmem:[#allocation2 + $0x798] sm:$0xff]  ;;  %v5074_v4 = vld [vmem:[#allocation2 + $0x790] sm:$0xff]  ;;  %v4937_v28 = vld [vmem:[#allocation2 + $0x348] sm:$0xff] }
 0x562   : > { %3110 = vst [vmem:[#allocation2 + $0x7a0] sm:$0xf] %v3055_v38  ;;  %3111 = vst [vmem:[#allocation2 + $0x7a8] sm:$0xf] %v3056_v45  ;;  %5972 = vmatprep.subr.mxu1 %v5075_v12  ;;  %v4851_v57 = vld [vmem:[#allocation2 + $0x98] sm:$0xff]  ;;  %v4936_v45 = vld [vmem:[#allocation2 + $0x340] sm:$0xff] }
 0x563   : > { %5973 = vmatpush1.msra.mxu1 %v5074_v4  ;;  %v12913_v55 = vpop.permute.xlu1 %3204 }
 0x564   : > { %v3203_v62 = vpop.permute.xlu0 %3202  ;;  %5974 = vmatprep.subr.mxu1 %v5047_v16  ;;  %v4909_v16 = vld [vmem:[#allocation2 + $0x268] sm:$0xff] }
 0x565   : > { %v3236_v44 = vsel %vm1683_vm9, %v3201_v51, %v3203_v62  ;;  %v3237_v35 = vsel %vm1683_vm9, %v3203_v62, %v12913_v55  ;;  %5975 = vmatpush1.msra.mxu1 %v5046_v29  ;;  %v5105_v10 = vld [vmem:[#allocation2 + $0x888] sm:$0xff]  ;;  %v5104_v13 = vld [vmem:[#allocation2 + $0x880] sm:$0xff] }
 0x566   : > { %3291 = vst [vmem:[#allocation2 + $0x7a0] sm:$0xf0] %v3236_v44  ;;  %3292 = vst [vmem:[#allocation2 + $0x7a8] sm:$0xf0] %v3237_v35  ;;  %5976 = vmatprep.subr.mxu1 %v5019_v31  ;;  %6041 = vmatprep.subr.mxu0 %v5105_v10  ;;  %v4908_v44 = vld [vmem:[#allocation2 + $0x260] sm:$0xff]  ;;  %v4881_v31 = vld [vmem:[#allocation2 + $0x188] sm:$0xff] }
 0x567   : > { %5977 = vmatpush1.msra.mxu1 %v5018_v58  ;;  %6042 = vmatpush1.msra.mxu0 %v5104_v13  ;;  %v4741_v50 = vpop.permute.xlu1 %4740  ;;  %v4880_v13 = vld [vmem:[#allocation2 + $0x180] sm:$0xff] }
 0x568   : > { %v4739_v27 = vpop.permute.xlu0 %4738  ;;  %5978 = vmatprep.subr.mxu1 %v4991_v15  ;;  %v4852_v15 = vld [vmem:[#allocation2 + $0xa0] sm:$0xff] }
 0x569   : > { %v4770_v33 = vsel %vm1683_vm9, %v12755_v19, %v4739_v27  ;;  %v4771_v60 = vsel %vm1683_vm9, %v4739_v27, %v4741_v50  ;;  %5979 = vmatpush1.msra.mxu1 %v4990_v36 }
 0x56a   : > { %4825 = vst [vmem:[#allocation2 + $0xc10] sm:$0xf] %v4770_v33  ;;  %4826 = vst [vmem:[#allocation2 + $0xc18] sm:$0xf] %v4771_v60  ;;  %5980 = vmatprep.subr.mxu1 %v4963_v56 }
 0x56b   : > { %5981 = vmatpush1.msra.mxu1 %v4962_v1  ;;  %v12921_v24 = vpop.permute.xlu1 %4378 }
 0x56c   : > { %v4377_v53 = vpop.permute.xlu0 %4376  ;;  %5982 = vmatprep.subr.mxu1 %v4935_v61 }
 0x56d   : > { %v4408_v47 = vsel %vm1319_vm7, %v12794_v49, %v4377_v53  ;;  %v4409_v19 = vsel %vm1319_vm7, %v4377_v53, %v12921_v24  ;;  %5983 = vmatpush1.msra.mxu1 %v4934_v17  ;;  %v5077_v34 = vld [vmem:[#allocation2 + $0x7a8] sm:$0xff]  ;;  %v5076_v26 = vld [vmem:[#allocation2 + $0x7a0] sm:$0xff]  ;;  %v4878_v49 = vld [vmem:[#allocation2 + $0x170] sm:$0xff] }
 0x56e   : > { %4463 = vst [vmem:[#allocation2 + $0xb30] sm:$0xf] %v4408_v47  ;;  %4464 = vst [vmem:[#allocation2 + $0xb38] sm:$0xf] %v4409_v19  ;;  %5984 = vmatprep.subr.mxu1 %v4907_v7  ;;  %6043 = vmatprep.subr.mxu0 %v5077_v34 }
 0x56f   : > { %5985 = vmatpush1.msra.mxu1 %v4906_v23  ;;  %6044 = vmatpush1.msra.mxu0 %v5076_v26  ;;  %v12927_v30 = vpop.permute.xlu1 %4559 }
 0x570   : > { %v4558_v18 = vpop.permute.xlu0 %4557  ;;  %5986 = vmatprep.subr.mxu1 %v4879_v54  ;;  %6045 = vmatprep.subr.mxu0 %v5049_v46 }
 0x571   : > { %v4589_v48 = vsel %vm1501_vm8, %v12807_v14, %v4558_v18  ;;  %v4590_v37 = vsel %vm1501_vm8, %v4558_v18, %v12927_v30  ;;  %5987 = vmatpush1.msra.mxu1 %v4878_v49  ;;  %6046 = vmatpush1.msra.mxu0 %v5048_v2  ;;  %v5219_v14 = vld [vmem:[#allocation2 + $0xc18] sm:$0xf]  ;;  %v5218_v63 = vld [vmem:[#allocation2 + $0xc10] sm:$0xf] }
 0x572   : > { %4644 = vst [vmem:[#allocation2 + $0xb30] sm:$0xf0] %v4589_v48  ;;  %4645 = vst [vmem:[#allocation2 + $0xb38] sm:$0xf0] %v4590_v37  ;;  %5988 = vmatprep.subr.mxu1 %v4851_v57  ;;  %6047 = vmatprep.subr.mxu0 %v5021_v22 }
 0x573   : > { %5989 = vmatpush1.msra.mxu1 %v4850_v3  ;;  %6048 = vmatpush1.msra.mxu0 %v5020_v39  ;;  %v12933_v51 = vpop.permute.xlu1 %4744 }
 0x574   : > { %v4743_v21 = vpop.permute.xlu0 %4742  ;;  %9505 = vmatmul.mubr.msk.f32.vlgmr.msra.gmra.mxu1 %vm5230_vm11, %v12778_v41  ;;  %6049 = vmatprep.subr.mxu0 %v4993_v5 }
 0x575   : > { %v4772_v40 = vsel %vm1683_vm9, %v4741_v50, %v4743_v21  ;;  %v4773_v42 = vsel %vm1683_vm9, %v4743_v21, %v12933_v51  ;;  %9509 = vmatprep.subr.msk.mxu1 %vm5234_vm10, %v5219_v14  ;;  %6050 = vmatpush1.msra.mxu0 %v4992_v20  ;;  %v4853_v50 = vld [vmem:[#allocation2 + $0xa8] sm:$0xff] }
 0x576   : > { %4827 = vst [vmem:[#allocation2 + $0xc20] sm:$0xf] %v4772_v40  ;;  %4828 = vst [vmem:[#allocation2 + $0xc28] sm:$0xf] %v4773_v42  ;;  %9510 = vmatpush1.msk.msra.mxu1 %vm5234_vm10, %v5218_v63  ;;  %6051 = vmatprep.subr.mxu0 %v4965_v9 }
 0x577   : > { %6052 = vmatpush1.msra.mxu0 %v4964_v59  ;;  %v12942_v8 = vpop.permute.xlu1 %4016  ;;  %6164 = vmatprep.mubr.f32.mxu1 %v9724_v0 }
 0x578   : > { %v4015_v38 = vpop.permute.xlu0 %4014  ;;  %6053 = vmatprep.subr.mxu0 %v4937_v28 }
 0x579   : > { %v4046_v12 = vsel %vm955_vm5, %v12840_v43, %v4015_v38  ;;  %v4047_v4 = vsel %vm955_vm5, %v4015_v38, %v12942_v8  ;;  %6054 = vmatpush1.msra.mxu0 %v4936_v45  ;;  %v5191_v62 = vld [vmem:[#allocation2 + $0xb38] sm:$0xff]  ;;  %v5190_v29 = vld [vmem:[#allocation2 + $0xb30] sm:$0xff] }
 0x57a   : > { %4101 = vst [vmem:[#allocation2 + $0xa50] sm:$0xf] %v4046_v12  ;;  %4102 = vst [vmem:[#allocation2 + $0xa58] sm:$0xf] %v4047_v4  ;;  %6055 = vmatprep.subr.mxu0 %v4909_v16  ;;  %6106 = vmatprep.subr.mxu1 %v5191_v62 }
 0x57b   : > { %6056 = vmatpush1.msra.mxu0 %v4908_v44  ;;  %6107 = vmatpush1.msra.mxu1 %v5190_v29  ;;  %v4198_v35 = vpop.permute.xlu1 %4197 }
 0x57c   : > { %v4196_v10 = vpop.permute.xlu0 %4195  ;;  %6057 = vmatprep.subr.mxu0 %v4881_v31 }
 0x57d   : > { %v4227_v43 = vsel %vm1137_vm6, %v12850_v6, %v4196_v10  ;;  %v4228_v58 = vsel %vm1137_vm6, %v4196_v10, %v4198_v35  ;;  %6058 = vmatpush1.msra.mxu0 %v4880_v13  ;;  %v5221_v36 = vld [vmem:[#allocation2 + $0xc28] sm:$0xf]  ;;  %v5220_v60 = vld [vmem:[#allocation2 + $0xc20] sm:$0xf] }
 0x57e   : > { %4282 = vst [vmem:[#allocation2 + $0xa50] sm:$0xf0] %v4227_v43  ;;  %4283 = vst [vmem:[#allocation2 + $0xa58] sm:$0xf0] %v4228_v58  ;;  %6059 = vmatprep.subr.mxu0 %v4853_v50 }
 0x57f   : > { %6060 = vmatpush1.msra.mxu0 %v4852_v15  ;;  %v12952_v27 = vpop.permute.xlu1 %4382 }
 0x580   : > { %v4381_v33 = vpop.permute.xlu0 %4380  ;;  %9508 = vmatmul.mubr.msk.f32.vlgmr.msra.gmra.mxu0 %vm5230_vm11, %v12778_v41  ;;  %9512 = vmatprep.subr.msk.mxu0 %vm5234_vm10, %v5221_v36 }
 0x581   : > { %v4410_v6 = vsel %vm1319_vm7, %v12921_v24, %v4381_v33  ;;  %v4411_v56 = vsel %vm1319_vm7, %v4381_v33, %v12952_v27  ;;  %9513 = vmatpush1.msk.msra.mxu0 %vm5234_vm10, %v5220_v60  ;;  %6235 = vmatprep.mubr.f32.mxu0 %v9724_v0 }
 0x582   : > { %4465 = vst [vmem:[#allocation2 + $0xb40] sm:$0xf] %v4410_v6  ;;  %4466 = vst [vmem:[#allocation2 + $0xb48] sm:$0xf] %v4411_v56 }
 0x583   : > { %v12963_v1 = vpop.permute.xlu1 %4563 }
 0x584   : > { %v4562_v61 = vpop.permute.xlu0 %4561 }
 0x585   : > { %v4591_v53 = vsel %vm1501_vm8, %v12927_v30, %v4562_v61  ;;  %v4592_v17 = vsel %vm1501_vm8, %v4562_v61, %v12963_v1  ;;  %v5163_v47 = vld [vmem:[#allocation2 + $0xa58] sm:$0xff]  ;;  %v5162_v24 = vld [vmem:[#allocation2 + $0xa50] sm:$0xff] }
 0x586   : > { %4646 = vst [vmem:[#allocation2 + $0xb40] sm:$0xf0] %v4591_v53  ;;  %4647 = vst [vmem:[#allocation2 + $0xb48] sm:$0xf0] %v4592_v17  ;;  %6108 = vmatprep.subr.mxu1 %v5163_v47  ;;  %v5051_v47 = vld [vmem:[#allocation2 + $0x6d8] sm:$0xff] }
 0x587   : > { %6109 = vmatpush1.msra.mxu1 %v5162_v24  ;;  %v3655_v19 = vpop.permute.xlu1 %3654 }
 0x588   : > { %v3653_v7 = vpop.permute.xlu0 %3652 }
 0x589   : > { %v3684_v34 = vsel %vm591_vm3, %v12868_v11, %v3653_v7  ;;  %v3685_v26 = vsel %vm591_vm3, %v3653_v7, %v3655_v19 }
 0x58a   : > { %3739 = vst [vmem:[#allocation2 + $0x970] sm:$0xf] %v3684_v34  ;;  %3740 = vst [vmem:[#allocation2 + $0x978] sm:$0xf] %v3685_v26  ;;  %v5023_v26 = vld [vmem:[#allocation2 + $0x5f8] sm:$0xff] }
 0x58b   : > { %v3836_v23 = vpop.permute.xlu1 %3835 }
 0x58c   : > { %v3834_v30 = vpop.permute.xlu0 %3833 }
 0x58d   : > { %v3865_v54 = vsel %vm773_vm4, %v12878_v32, %v3834_v30  ;;  %v3866_v46 = vsel %vm773_vm4, %v3834_v30, %v3836_v23  ;;  %v5193_v18 = vld [vmem:[#allocation2 + $0xb48] sm:$0xff]  ;;  %v5192_v49 = vld [vmem:[#allocation2 + $0xb40] sm:$0xff] }
 0x58e   : > { %3920 = vst [vmem:[#allocation2 + $0x970] sm:$0xf0] %v3865_v54  ;;  %3921 = vst [vmem:[#allocation2 + $0x978] sm:$0xf0] %v3866_v46  ;;  %6177 = vmatprep.subr.mxu0 %v5193_v18  ;;  %v5022_v54 = vld [vmem:[#allocation2 + $0x5f0] sm:$0xff]  ;;  %v4995_v18 = vld [vmem:[#allocation2 + $0x518] sm:$0xff] }
 0x58f   : > { %6178 = vmatpush1.msra.mxu0 %v5192_v49  ;;  %v12975_v2 = vpop.permute.xlu1 %4020 }
 0x590   : > { %v4019_v11 = vpop.permute.xlu0 %4018 }
 0x591   : > { %v4048_v48 = vsel %vm955_vm5, %v12942_v8, %v4019_v11  ;;  %v4049_v37 = vsel %vm955_vm5, %v4019_v11, %v12975_v2 }
 0x592   : > { %4103 = vst [vmem:[#allocation2 + $0xa60] sm:$0xf] %v4048_v48  ;;  %4104 = vst [vmem:[#allocation2 + $0xa68] sm:$0xf] %v4049_v37  ;;  %v4994_v48 = vld [vmem:[#allocation2 + $0x510] sm:$0xff] }
 0x593   : > { %v12981_v32 = vpop.permute.xlu1 %4201 }
 0x594   : > { %v4200_v57 = vpop.permute.xlu0 %4199 }
 0x595   : > { %v4229_v22 = vsel %vm1137_vm6, %v4198_v35, %v4200_v57  ;;  %v4230_v3 = vsel %vm1137_vm6, %v4200_v57, %v12981_v32  ;;  %v5135_v39 = vld [vmem:[#allocation2 + $0x978] sm:$0xff]  ;;  %v5134_v5 = vld [vmem:[#allocation2 + $0x970] sm:$0xff] }
 0x596   : > { %4284 = vst [vmem:[#allocation2 + $0xa60] sm:$0xf0] %v4229_v22  ;;  %4285 = vst [vmem:[#allocation2 + $0xa68] sm:$0xf0] %v4230_v3  ;;  %6110 = vmatprep.subr.mxu1 %v5135_v39  ;;  %v4967_v57 = vld [vmem:[#allocation2 + $0x438] sm:$0xff]  ;;  %v4966_v22 = vld [vmem:[#allocation2 + $0x430] sm:$0xff] }
 0x597   : > { %6111 = vmatpush1.msra.mxu1 %v5134_v5  ;;  %v3474_v21 = vpop.permute.xlu1 %3473  ;;  %v4939_v39 = vld [vmem:[#allocation2 + $0x358] sm:$0xff] }
 0x598   : > { %v3472_v14 = vpop.permute.xlu0 %3471 }
 0x599   : > { %v3503_v20 = vsel %vm408_vm1, %v12903_v52, %v3472_v14  ;;  %v3504_v40 = vsel %vm408_vm1, %v3472_v14, %v3474_v21  ;;  %v4911_v14 = vld [vmem:[#allocation2 + $0x278] sm:$0xff] }
 0x59a   : > { %3558 = vst [vmem:[#allocation2 + $0x890] sm:$0xf0] %v3503_v20  ;;  %3559 = vst [vmem:[#allocation2 + $0x898] sm:$0xf0] %v3504_v40 }
 0x59c   : > { %v12989_v42 = vpop.permute.xlu1 %3658  ;;  %v3657_v63 = vpop.permute.xlu0 %3656 }
 0x59d   : > { %v3686_v9 = vsel %vm591_vm3, %v3655_v19, %v3657_v63  ;;  %v3687_v59 = vsel %vm591_vm3, %v3657_v63, %v12989_v42  ;;  %v5165_v8 = vld [vmem:[#allocation2 + $0xa68] sm:$0xff]  ;;  %v5164_v28 = vld [vmem:[#allocation2 + $0xa60] sm:$0xff]  ;;  %v5050_v19 = vld [vmem:[#allocation2 + $0x6d0] sm:$0xff] }
 0x59e   : > { %3741 = vst [vmem:[#allocation2 + $0x980] sm:$0xf] %v3686_v9  ;;  %3742 = vst [vmem:[#allocation2 + $0x988] sm:$0xf] %v3687_v59  ;;  %6179 = vmatprep.subr.mxu0 %v5165_v8  ;;  %v4910_v63 = vld [vmem:[#allocation2 + $0x270] sm:$0xff]  ;;  %v4883_v9 = vld [vmem:[#allocation2 + $0x198] sm:$0xff] }
 0x59f   : > { %6180 = vmatpush1.msra.mxu0 %v5164_v28  ;;  %v5053_v59 = vld [vmem:[#allocation2 + $0x6e8] sm:$0xff]  ;;  %v4882_v28 = vld [vmem:[#allocation2 + $0x190] sm:$0xff] }
 0x5a0   : > { %v12994_v38 = vpop.permute.xlu1 %3839 }
 0x5a1   : > { %v3838_v52 = vpop.permute.xlu0 %3837  ;;  %v5107_v45 = vld [vmem:[#allocation2 + $0x898] sm:$0xff]  ;;  %v5106_v12 = vld [vmem:[#allocation2 + $0x890] sm:$0xff] }
 0x5a2   : > { %v3867_v4 = vsel %vm773_vm4, %v3836_v23, %v3838_v52  ;;  %v3868_v16 = vsel %vm773_vm4, %v3838_v52, %v12994_v38  ;;  %6112 = vmatprep.subr.mxu1 %v5107_v45  ;;  %v5052_v52 = vld [vmem:[#allocation2 + $0x6e0] sm:$0xff] }
 0x5a3   : > { %3922 = vst [vmem:[#allocation2 + $0x980] sm:$0xf0] %v3867_v4  ;;  %3923 = vst [vmem:[#allocation2 + $0x988] sm:$0xf0] %v3868_v16  ;;  %6113 = vmatpush1.msra.mxu1 %v5106_v12  ;;  %v4855_v12 = vld [vmem:[#allocation2 + $0xb8] sm:$0xff]  ;;  %v5025_v4 = vld [vmem:[#allocation2 + $0x608] sm:$0xff] }
 0x5a4   : > { %v3028_v62 = vpop.permute.xlu1 %3027  ;;  %v5024_v16 = vld [vmem:[#allocation2 + $0x600] sm:$0xff] }
 0x5a5   : > { %v3026_v29 = vpop.permute.xlu0 %3025 }
 0x5a6   : > { %v3057_v44 = vsel %vm1501_vm8, %v12908_v25, %v3026_v29  ;;  %v3058_v35 = vsel %vm1501_vm8, %v3026_v29, %v3028_v62  ;;  %v4997_v29 = vld [vmem:[#allocation2 + $0x528] sm:$0xff] }
 0x5a7   : > { %3112 = vst [vmem:[#allocation2 + $0x7b0] sm:$0xf] %v3057_v44  ;;  %3113 = vst [vmem:[#allocation2 + $0x7b8] sm:$0xf] %v3058_v35 }
 0x5a8   : > { %v3209_v31 = vpop.permute.xlu1 %3208 }
 0x5a9   : > { %v3207_v10 = vpop.permute.xlu0 %3206 }
 0x5aa   : > { %v3238_v13 = vsel %vm1683_vm9, %v12913_v55, %v3207_v10  ;;  %v3239_v43 = vsel %vm1683_vm9, %v3207_v10, %v3209_v31  ;;  %v5137_v58 = vld [vmem:[#allocation2 + $0x988] sm:$0xff]  ;;  %v5136_v50 = vld [vmem:[#allocation2 + $0x980] sm:$0xff] }
 0x5ab   : > { %3293 = vst [vmem:[#allocation2 + $0x7b0] sm:$0xf0] %v3238_v13  ;;  %3294 = vst [vmem:[#allocation2 + $0x7b8] sm:$0xf0] %v3239_v43  ;;  %6181 = vmatprep.subr.mxu0 %v5137_v58  ;;  %v4969_v58 = vld [vmem:[#allocation2 + $0x448] sm:$0xff] }
 0x5ac   : > { %6182 = vmatpush1.msra.mxu0 %v5136_v50  ;;  %v13005_v15 = vpop.permute.xlu1 %3477 }
 0x5ad   : > { %v3476_v25 = vpop.permute.xlu0 %3475 }
 0x5ae   : > { %v3505_v36 = vsel %vm408_vm1, %v3474_v21, %v3476_v25  ;;  %v3506_v33 = vsel %vm408_vm1, %v3476_v25, %v13005_v15  ;;  %v4938_v21 = vld [vmem:[#allocation2 + $0x350] sm:$0xff] }
 0x5af   : > { %3560 = vst [vmem:[#allocation2 + $0x8a0] sm:$0xf0] %v3505_v36  ;;  %3561 = vst [vmem:[#allocation2 + $0x8a8] sm:$0xf0] %v3506_v33  ;;  %v4941_v36 = vld [vmem:[#allocation2 + $0x368] sm:$0xff] }
 0x5b0   : > { %v13010_v60 = vpop.permute.xlu1 %3031 }
 0x5b1   : > { %v3030_v55 = vpop.permute.xlu0 %3029 }
 0x5b2   : > { %v3059_v6 = vsel %vm1501_vm8, %v3028_v62, %v3030_v55  ;;  %v3060_v56 = vsel %vm1501_vm8, %v3030_v55, %v13010_v60  ;;  %v5079_v61 = vld [vmem:[#allocation2 + $0x7b8] sm:$0xff]  ;;  %v5078_v53 = vld [vmem:[#allocation2 + $0x7b0] sm:$0xff]  ;;  %v4940_v55 = vld [vmem:[#allocation2 + $0x360] sm:$0xff] }
 0x5b3   : > { %3114 = vst [vmem:[#allocation2 + $0x7c0] sm:$0xf] %v3059_v6  ;;  %3115 = vst [vmem:[#allocation2 + $0x7c8] sm:$0xf] %v3060_v56  ;;  %6114 = vmatprep.subr.mxu1 %v5079_v61  ;;  %v4913_v61 = vld [vmem:[#allocation2 + $0x288] sm:$0xff] }
 0x5b4   : > { %6115 = vmatpush1.msra.mxu1 %v5078_v53  ;;  %v13015_v17 = vpop.permute.xlu1 %3212 }
 0x5b5   : > { %v3211_v24 = vpop.permute.xlu0 %3210  ;;  %6116 = vmatprep.subr.mxu1 %v5051_v47 }
 0x5b6   : > { %v3240_v7 = vsel %vm1683_vm9, %v3209_v31, %v3211_v24  ;;  %v3241_v34 = vsel %vm1683_vm9, %v3211_v24, %v13015_v17  ;;  %6117 = vmatpush1.msra.mxu1 %v5050_v19  ;;  %v5109_v23 = vld [vmem:[#allocation2 + $0x8a8] sm:$0xff]  ;;  %v5108_v30 = vld [vmem:[#allocation2 + $0x8a0] sm:$0xff]  ;;  %v13058_v24 = vpop.f32.mrf.mxu1 }
 0x5b7   : > { %3295 = vst [vmem:[#allocation2 + $0x7c0] sm:$0xf0] %v3240_v7  ;;  %3296 = vst [vmem:[#allocation2 + $0x7c8] sm:$0xf0] %v3241_v34  ;;  %6118 = vmatprep.subr.mxu1 %v5023_v26  ;;  %6183 = vmatprep.subr.mxu0 %v5109_v23  ;;  %v4996_v31 = vld [vmem:[#allocation2 + $0x520] sm:$0xff]  ;;  %v4885_v19 = vld [vmem:[#allocation2 + $0x1a8] sm:$0xff] }
 0x5b8   : > { %6119 = vmatpush1.msra.mxu1 %v5022_v54  ;;  %6184 = vmatpush1.msra.mxu0 %v5108_v30  ;;  %v4385_v46 = vpop.permute.xlu1 %4384  ;;  %v4857_v23 = vld [vmem:[#allocation2 + $0xc8] sm:$0xff] }
 0x5b9   : > { %v4412_v49 = vsel %vm1319_vm7, %v12952_v27, %v4385_v46  ;;  %4468 = vst.msk [vmem:[#allocation2 + $0xb58] sm:$0xf] %vm308_vm0, %v4385_v46  ;;  %v4747_v11 = vpop.permute.xlu0 %4746  ;;  %6120 = vmatprep.subr.mxu1 %v4995_v18  ;;  %v4856_v46 = vld [vmem:[#allocation2 + $0xc0] sm:$0xff]  ;;  %v13061_v18 = vpop.f32.mrf.mxu1 }
 0x5ba   : > { %4467 = vst [vmem:[#allocation2 + $0xb50] sm:$0xf] %v4412_v49  ;;  %v4774_v37 = vsel %vm1683_vm9, %v12933_v51, %v4747_v11  ;;  %4830 = vst.msk [vmem:[#allocation2 + $0xc38] sm:$0xf] %vm308_vm0, %v4747_v11  ;;  %6121 = vmatpush1.msra.mxu1 %v4994_v48 }
 0x5bb   : > { %4829 = vst [vmem:[#allocation2 + $0xc30] sm:$0xf] %v4774_v37  ;;  %6122 = vmatprep.subr.mxu1 %v4967_v57  ;;  %v5598_v48 = vpop.f32.mrf.mxu1  ;;  %v5055_v57 = vld [vmem:[#allocation2 + $0x6f8] sm:$0xff] }
 0x5bc   : > { %6123 = vmatpush1.msra.mxu1 %v4966_v22  ;;  %v4023_v3 = vpop.permute.xlu1 %4022 }
 0x5bd   : > { %v4050_v27 = vsel %vm955_vm5, %v12975_v2, %v4023_v3  ;;  %4106 = vst.msk [vmem:[#allocation2 + $0xa78] sm:$0xf] %vm308_vm0, %v4023_v3  ;;  %v4566_v5 = vpop.permute.xlu0 %4565  ;;  %6124 = vmatprep.subr.mxu1 %v4939_v39  ;;  %v5054_v3 = vld [vmem:[#allocation2 + $0x6f0] sm:$0xff]  ;;  %v5027_v39 = vld [vmem:[#allocation2 + $0x618] sm:$0xff]  ;;  %vm9397_vm5 = vcmask 31744  }
 0x5be   : > { %4105 = vst [vmem:[#allocation2 + $0xa70] sm:$0xf] %v4050_v27  ;;  %v4593_v51 = vsel %vm1501_vm8, %v12963_v1, %v4566_v5  ;;  %4649 = vst.msk [vmem:[#allocation2 + $0xb58] sm:$0xf0] %vm491_vm2, %v4566_v5  ;;  %6125 = vmatpush1.msra.mxu1 %v4938_v21  ;;  %v5081_v20 = vld [vmem:[#allocation2 + $0x7c8] sm:$0xff]  ;;  %v5080_v40 = vld [vmem:[#allocation2 + $0x7c0] sm:$0xff]  ;;  %v5600_v27 = vpop.f32.mrf.mxu1 }
 0x5bf   : > { %4648 = vst [vmem:[#allocation2 + $0xb50] sm:$0xf0] %v4593_v51  ;;  %6126 = vmatprep.subr.mxu1 %v4911_v14  ;;  %6185 = vmatprep.subr.mxu0 %v5081_v20  ;;  %v5026_v21 = vld [vmem:[#allocation2 + $0x610] sm:$0xff]  ;;  %v4999_v51 = vld [vmem:[#allocation2 + $0x538] sm:$0xff] }
 0x5c0   : > { %6127 = vmatpush1.msra.mxu1 %v4910_v63  ;;  %6186 = vmatpush1.msra.mxu0 %v5080_v40  ;;  %v3661_v2 = vpop.permute.xlu1 %3660  ;;  %v4998_v63 = vld [vmem:[#allocation2 + $0x530] sm:$0xff] }
 0x5c1   : > { %v3688_v8 = vsel %vm591_vm3, %v12989_v42, %v3661_v2  ;;  %3744 = vst.msk [vmem:[#allocation2 + $0x998] sm:$0xf] %vm308_vm0, %v3661_v2  ;;  %v4204_v1 = vpop.permute.xlu0 %4203  ;;  %6128 = vmatprep.subr.mxu1 %v4883_v9  ;;  %6187 = vmatprep.subr.mxu0 %v5053_v59  ;;  %v4854_v42 = vld [vmem:[#allocation2 + $0xb0] sm:$0xff]  ;;  %v5223_v35 = vld [vmem:[#allocation2 + $0xc38] sm:$0xf] }
 0x5c2   : > { %3743 = vst [vmem:[#allocation2 + $0x990] sm:$0xf] %v3688_v8  ;;  %v4231_v45 = vsel %vm1137_vm6, %v12981_v32, %v4204_v1  ;;  %4287 = vst.msk [vmem:[#allocation2 + $0xa78] sm:$0xf0] %vm491_vm2, %v4204_v1  ;;  %6129 = vmatpush1.msra.mxu1 %v4882_v28  ;;  %6188 = vmatpush1.msra.mxu0 %v5052_v52  ;;  %v5222_v43 = vld [vmem:[#allocation2 + $0xc30] sm:$0xf] }
 0x5c3   : > { %4286 = vst [vmem:[#allocation2 + $0xa70] sm:$0xf0] %v4231_v45  ;;  %6130 = vmatprep.subr.mxu1 %v4855_v12  ;;  %6189 = vmatprep.subr.mxu0 %v5025_v4  ;;  %v4971_v2 = vld [vmem:[#allocation2 + $0x458] sm:$0xff]  ;;  %v4970_v1 = vld [vmem:[#allocation2 + $0x450] sm:$0xff]  ;;  %vm9400_vm6 = vcmask 39936  }
 0x5c4   : > { %6131 = vmatpush1.msra.mxu1 %v4854_v42  ;;  %6190 = vmatpush1.msra.mxu0 %v5024_v16  ;;  %v3480_v62 = vpop.permute.xlu1 %3479  ;;  %v4943_v52 = vld [vmem:[#allocation2 + $0x378] sm:$0xff]  ;;  %v4942_v45 = vld [vmem:[#allocation2 + $0x370] sm:$0xff] }
 0x5c5   : > { %v3507_v44 = vsel %vm408_vm1, %v13005_v15, %v3480_v62  ;;  %3563 = vst.msk [vmem:[#allocation2 + $0x8b8] sm:$0xf0] %vm491_vm2, %v3480_v62  ;;  %v3842_v32 = vpop.permute.xlu0 %3841  ;;  %9511 = vmatmul.mubr.msk.f32.vlgmr.msra.gmra.mxu1 %vm5230_vm11, %v12778_v41  ;;  %6191 = vmatprep.subr.mxu0 %v4997_v29  ;;  %v5195_v10 = vld [vmem:[#allocation2 + $0xb58] sm:$0xff]  ;;  %v4968_v41 = vld [vmem:[#allocation2 + $0x440] sm:$0xff]  ;;  %v13048_v15 = vpop.f32.mrf.mxu0  ;;  %v4914_v16 = vld [vmem:[#allocation2 + $0x290] sm:$0xff] }
 0x5c6   : > { %3562 = vst [vmem:[#allocation2 + $0x8b0] sm:$0xf0] %v3507_v44  ;;  %v3869_v13 = vsel %vm773_vm4, %v12994_v38, %v3842_v32  ;;  %3925 = vst.msk [vmem:[#allocation2 + $0x998] sm:$0xf0] %vm491_vm2, %v3842_v32  ;;  %9515 = vmatprep.subr.msk.mxu1 %vm5234_vm10, %v5223_v35  ;;  %6192 = vmatpush1.msra.mxu0 %v4996_v31  ;;  %v5194_v50 = vld [vmem:[#allocation2 + $0xb50] sm:$0xff]  ;;  %v4915_v12 = vld [vmem:[#allocation2 + $0x298] sm:$0xff]  ;;  %v5740_v44 = vpop.f32.mrf.mxu1 }
 0x5c7   : > { %3924 = vst [vmem:[#allocation2 + $0x990] sm:$0xf0] %v3869_v13  ;;  %9516 = vmatpush1.msk.msra.mxu1 %vm5234_vm10, %v5222_v43  ;;  %6193 = vmatprep.subr.mxu0 %v4969_v58  ;;  %v13056_v47 = vpop.f32.mrf.mxu0  ;;  %v4887_v32 = vld [vmem:[#allocation2 + $0x1b8] sm:$0xff]  ;;  %v4886_v31 = vld [vmem:[#allocation2 + $0x1b0] sm:$0xff] }
 0x5c8   : > { %6248 = vmatprep.subr.mxu1 %v5195_v10  ;;  %6194 = vmatpush1.msra.mxu0 %v4968_v41  ;;  %v3215_v25 = vpop.permute.xlu1 %3214  ;;  %v4859_v10 = vld [vmem:[#allocation2 + $0xd8] sm:$0xff]  ;;  %v4858_v58 = vld [vmem:[#allocation2 + $0xd0] sm:$0xff] }
 0x5c9   : > { %6249 = vmatpush1.msra.mxu1 %v5194_v50  ;;  %v3242_v38 = vsel %vm1683_vm9, %v13015_v17, %v3215_v25  ;;  %3298 = vst.msk [vmem:[#allocation2 + $0x7d8] sm:$0xf0] %vm491_vm2, %v3215_v25  ;;  %v3034_v33 = vpop.permute.xlu0 %3033  ;;  %6195 = vmatprep.subr.mxu0 %v4941_v36  ;;  %v5167_v6 = vld [vmem:[#allocation2 + $0xa78] sm:$0xff]  ;;  %v4912_v17 = vld [vmem:[#allocation2 + $0x280] sm:$0xff]  ;;  %v5527_v26 = vpop.f32.mrf.mxu0  ;;  %vm8507_vm2 = vcmask 719872  }
 0x5ca   : > { %3297 = vst [vmem:[#allocation2 + $0x7d0] sm:$0xf0] %v3242_v38  ;;  %v3061_v56 = vsel %vm1501_vm8, %v13010_v60, %v3034_v33  ;;  %3117 = vst.msk [vmem:[#allocation2 + $0x7d8] sm:$0xf] %vm308_vm0, %v3034_v33  ;;  %6196 = vmatpush1.msra.mxu0 %v4940_v55  ;;  %6250 = vmatprep.subr.mxu1 %v5167_v6  ;;  %v5166_v53 = vld [vmem:[#allocation2 + $0xa70] sm:$0xff]  ;;  %v4884_v60 = vld [vmem:[#allocation2 + $0x1a0] sm:$0xff]  ;;  %v5742_v25 = vpop.f32.mrf.mxu1 }
 0x5cb   : > { %3116 = vst [vmem:[#allocation2 + $0x7d0] sm:$0xf] %v3061_v56  ;;  %6197 = vmatprep.subr.mxu0 %v4913_v61  ;;  %6251 = vmatpush1.msra.mxu1 %v5166_v53  ;;  %v5529_v11 = vpop.f32.mrf.mxu0  ;;  %vm7311_vm0 = vcmask 506880   ;;  %vm9406_vm8 = vcmask 56320  }
 0x5cc   : > { %6198 = vmatpush1.msra.mxu0 %v4912_v17  ;;  %6306 = vmatprep.mubr.f32.mxu1 %v9724_v0  ;;  %v5111_v34 = vld [vmem:[#allocation2 + $0x8b8] sm:$0xff]  ;;  %v13066_v0 = vld [vmem:[%s15203_s1] sm:$0xff] }
 0x5cd   : > { %6199 = vmatprep.subr.mxu0 %v4885_v19  ;;  %v5139_v7 = vld [vmem:[#allocation2 + $0x998] sm:$0xff]  ;;  %v5110_v54 = vld [vmem:[#allocation2 + $0x8b0] sm:$0xff]  ;;  %v5669_v22 = vpop.f32.mrf.mxu0 }
 0x5ce   : > { %6200 = vmatpush1.msra.mxu0 %v4884_v60  ;;  %6252 = vmatprep.subr.mxu1 %v5139_v7  ;;  %v5138_v30 = vld [vmem:[#allocation2 + $0x990] sm:$0xff] }
 0x5cf   : > { %6201 = vmatprep.subr.mxu0 %v4857_v23  ;;  %6253 = vmatpush1.msra.mxu1 %v5138_v30  ;;  %v5671_v40 = vpop.f32.mrf.mxu0 }
 0x5d0   : > { %6202 = vmatpush1.msra.mxu0 %v4856_v46  ;;  %6254 = vmatprep.subr.mxu1 %v5111_v34 }
 0x5d1   : > { %9514 = vmatmul.mubr.msk.f32.vlgmr.msra.gmra.mxu0 %vm5230_vm11, %v13066_v0  ;;  %6255 = vmatpush1.msra.mxu1 %v5110_v54  ;;  %v5083_v49 = vld [vmem:[#allocation2 + $0x7d8] sm:$0xff]  ;;  %v5811_v35 = vpop.f32.mrf.mxu0 }
 0x5d2   : > { %6256 = vmatprep.subr.mxu1 %v5083_v49  ;;  %v5082_v37 = vld [vmem:[#allocation2 + $0x7d0] sm:$0xff] }
 0x5d3   : > { %6257 = vmatpush1.msra.mxu1 %v5082_v37  ;;  %v5813_v7 = vpop.f32.mrf.mxu0 }
 0x5d4   : > { %6258 = vmatprep.subr.mxu1 %v5055_v57 }
 0x5d5   : > { %6259 = vmatpush1.msra.mxu1 %v5054_v3 }
 0x5d6   : > { %v13070_v5 = vpop.permute.xlu0 %5227  ;;  %6260 = vmatprep.subr.mxu1 %v5027_v39 }
 0x5d7   : > { %6261 = vmatpush1.msra.mxu1 %v5026_v21  ;;  %v13073_v14 = vadd.f32 %v5600_v27, %v13070_v5  ;;  %v13076_v20 = vadd.f32 %v5529_v11, %v13070_v5  ;;  %v13081_v8 = vadd.f32 %v5671_v40, %v13070_v5  ;;  %v13084_v28 = vadd.f32 %v5598_v48, %v13070_v5 }
 0x5d8   : > { %6262 = vmatprep.subr.mxu1 %v4999_v51  ;;  %v13094_v42 = vadd.f32 %v5527_v26, %v13070_v5  ;;  %v13098_v29 = vadd.f32 %v5669_v22, %v13070_v5  ;;  %v13108_v43 = vadd.f32 %v5811_v35, %v13070_v5  ;;  %v13112_v41 = vadd.f32 %v5740_v44, %v13070_v5 }
 0x5d9   : > { %6263 = vmatpush1.msra.mxu1 %v4998_v63  ;;  %v6320_v9 = vmax.f32 %v13073_v14, 0.0  ;;  %v6318_v59 = vmax.f32 %v13076_v20, 0.0  ;;  %v6322_v4 = vmax.f32 %v13081_v8, 0.0  ;;  %v6319_v62 = vmax.f32 %v13084_v28, 0.0 }
 0x5da   : > { %6264 = vmatprep.subr.mxu1 %v4971_v2  ;;  %v6317_v13 = vmax.f32 %v13094_v42, 0.0  ;;  %v6321_v50 = vmax.f32 %v13098_v29, 0.0  ;;  %v6325_v36 = vmax.f32 %v13108_v43, 0.0  ;;  %v13123_v38 = vadd.f32 %v13058_v24, %v13070_v5 }
 0x5db   : > { %6265 = vmatpush1.msra.mxu1 %v4970_v1  ;;  %6383 = vrot.lane.b32.xlu0 %v6320_v9, %s9716_s24  ;;  %v13126_v33 = vadd.f32 %v5742_v25, %v13070_v5  ;;  %v6323_v55 = vmax.f32 %v13112_v41, 0.0  ;;  %v13136_v56 = vadd.f32 %v13048_v15, %v13070_v5  ;;  %v5388_v17 = vadd.f32 %v13056_v47, %v13070_v5 }
 0x5dc   : > { %6379 = vrot.lane.b32.xlu1 %v6318_v59, %s9716_s24  ;;  %6266 = vmatprep.subr.mxu1 %v4943_v52  ;;  %v6315_v6 = vmax.f32 %v13123_v38, 0.0  ;;  %v13151_v15 = vadd.f32 %v13061_v18, %v13070_v5  ;;  %v13159_v26 = vadd.f32 %v5813_v7, %v13070_v5 }
 0x5dd   : > { %6267 = vmatpush1.msra.mxu1 %v4942_v45  ;;  %v6324_v61 = vmax.f32 %v13126_v33, 0.0  ;;  %v6313_v19 = vmax.f32 %v13136_v56, 0.0  ;;  %v6314_v60 = vmax.f32 %v5388_v17, 0.0 }
 0x5de   : > { %6268 = vmatprep.subr.mxu1 %v4915_v12  ;;  %v6316_v30 = vmax.f32 %v13151_v15, 0.0  ;;  %v6326_v18 = vmax.f32 %v13159_v26, 0.0 }
 0x5df   : > { %6269 = vmatpush1.msra.mxu1 %v4914_v16  ;;  %6387 = vrot.lane.b32.xlu0 %v6322_v4, %s9716_s24 }
 0x5e0   : > { %6381 = vrot.lane.b32.xlu1 %v6319_v62, %s9716_s24  ;;  %6270 = vmatprep.subr.mxu1 %v4887_v32 }
 0x5e1   : > { %6271 = vmatpush1.msra.mxu1 %v4886_v31 }
 0x5e2   : > { %6272 = vmatprep.subr.mxu1 %v4859_v10 }
 0x5e3   : > { %6273 = vmatpush1.msra.mxu1 %v4858_v58  ;;  %6377 = vrot.lane.b32.xlu0 %v6317_v13, %s9716_s24 }
 0x5e4   : > { %6385 = vrot.lane.b32.xlu1 %v6321_v50, %s9716_s24  ;;  %9517 = vmatmul.mubr.msk.f32.vlgmr.msra.gmra.mxu1 %vm5230_vm11, %v13066_v0 }
 0x5e7   : > { %6393 = vrot.lane.b32.xlu0 %v6325_v36, %s9716_s24  ;;  %v5882_v53 = vpop.f32.mrf.mxu1 }
 0x5e8   : > { %6389 = vrot.lane.b32.xlu1 %v6323_v55, %s9716_s24  ;;  %v13146_v24 = vadd.f32 %v5882_v53, %v13070_v5 }
 0x5e9   : > { %v5884_v54 = vpop.f32.mrf.mxu1 }
 0x5ea   : > { %v6327_v47 = vmax.f32 %v13146_v24, 0.0  ;;  %v13172_v0 = vadd.f32 %v5884_v54, %v13070_v5 }
 0x5eb   : > { %6373 = vrot.lane.b32.xlu0 %v6315_v6, %s9716_s24 }
 0x5ec   : > { %6391 = vrot.lane.b32.xlu1 %v6324_v61, %s9716_s24  ;;  %v6328_v49 = vmax.f32 %v13172_v0, 0.0 }
 0x5ef   : > { %6369 = vrot.lane.b32.xlu0 %v6313_v19, %s9716_s24 }
 0x5f0   : > { %6371 = vrot.lane.b32.xlu1 %v6314_v60, %s9716_s24 }
 0x5f1   : > { %v5953_v34 = vpop.f32.mrf.mxu0 }
 0x5f2   : > { %v13162_v23 = vadd.f32 %v5953_v34, %v13070_v5 }
 0x5f3   : > { %6397 = vrot.lane.b32.xlu0 %v6327_v47, %s9716_s24  ;;  %v5955_v32 = vpop.f32.mrf.mxu0 }
 0x5f4   : > { %v6329_v46 = vmax.f32 %v13162_v23, 0.0  ;;  %6375 = vrot.lane.b32.xlu1 %v6316_v30, %s9716_s24 }
 0x5f7   : > { %6401 = vrot.lane.b32.xlu0 %v6329_v46, %s9716_s24 }
 0x5f8   : > { %6395 = vrot.lane.b32.xlu1 %v6326_v18, %s9716_s24 }
 0x5fc   : > { %6399 = vrot.lane.b32.xlu1 %v6328_v49, %s9716_s24 }
 0x634   : > { %v6024_v35 = vpop.f32.mrf.mxu1 }
 0x635   : > { %v13257_v53 = vadd.f32 %v6024_v35, %v13070_v5 }
 0x636   : > { %v6026_v33 = vpop.f32.mrf.mxu1 }
 0x637   : > { %v13260_v38 = vadd.f32 %v6026_v33, %v13070_v5  ;;  %v6331_v15 = vmax.f32 %v13257_v53, 0.0 }
 0x639   : > { %v6332_v7 = vmax.f32 %v13260_v38, 0.0 }
 0x64d   : > { %v6384_v11 = vpop.permute.xlu0 %6383 }
 0x64e   : > { %v6380_v48 = vpop.permute.xlu1 %6379 }
 0x651   : > { %v6388_v37 = vpop.permute.xlu0 %6387 }
 0x652   : > { %v6382_v57 = vpop.permute.xlu1 %6381 }
 0x653   : > { %v6430_v22 = vsel %vm408_vm1, %v6380_v48, %v6382_v57  ;;  %v6431_v3 = vsel %vm408_vm1, %v6382_v57, %v6384_v11 }
 0x654   : > { %v13188_v39 = vmax.f32 %v6318_v59, %v6430_v22  ;;  %v13192_v27 = vmax.f32 %v6319_v62, %v6431_v3 }
 0x655   : > { %v6378_v21 = vpop.permute.xlu0 %6377 }
 0x656   : > { %v6386_v51 = vpop.permute.xlu1 %6385  ;;  %6546 = vrot.lane.b32.xlu1 %v13188_v39, %s9718_s26  ;;  %6548 = vrot.lane.b32.xlu0 %v13192_v27, %s9718_s26  ;;  %v6429_v59 = vsel %vm408_vm1, %v6378_v21, %v6380_v48 }
 0x657   : > { %v6432_v40 = vsel %vm408_vm1, %v6384_v11, %v6386_v51  ;;  %v6433_v63 = vsel %vm408_vm1, %v6386_v51, %v6388_v37  ;;  %v13214_v45 = vmax.f32 %v6317_v13, %v6429_v59 }
 0x658   : > { %v13202_v20 = vmax.f32 %v6320_v9, %v6432_v40  ;;  %v13204_v2 = vmax.f32 %v6321_v50, %v6433_v63  ;;  %v13242_v50 = vadd.f32 %v5955_v32, %v13070_v5 }
 0x659   : > { %v6394_v28 = vpop.permute.xlu0 %6393 }
 0x65a   : > { %v6390_v1 = vpop.permute.xlu1 %6389  ;;  %6550 = vrot.lane.b32.xlu1 %v13202_v20, %s9718_s26  ;;  %6552 = vrot.lane.b32.xlu0 %v13204_v2, %s9718_s26 }
 0x65b   : > { %v6434_v52 = vsel %vm408_vm1, %v6388_v37, %v6390_v1 }
 0x65c   : > { %v13218_v14 = vmax.f32 %v6322_v4, %v6434_v52 }
 0x65d   : > { %v6374_v29 = vpop.permute.xlu0 %6373 }
 0x65e   : > { %v6392_v9 = vpop.permute.xlu1 %6391  ;;  %6554 = vrot.lane.b32.xlu1 %v13218_v14, %s9718_s26  ;;  %6544 = vrot.lane.b32.xlu0 %v13214_v45, %s9718_s26 }
 0x65f   : > { %v6435_v12 = vsel %vm408_vm1, %v6390_v1, %v6392_v9  ;;  %v6436_v16 = vsel %vm408_vm1, %v6392_v9, %v6394_v28 }
 0x660   : > { %v13226_v62 = vmax.f32 %v6323_v55, %v6435_v12  ;;  %v13228_v42 = vmax.f32 %v6324_v61, %v6436_v16  ;;  %v6330_v61 = vmax.f32 %v13242_v50, 0.0 }
 0x661   : > { %v6370_v31 = vpop.permute.xlu0 %6369 }
 0x662   : > { %6556 = vrot.lane.b32.xlu1 %v13226_v62, %s9718_s26  ;;  %v6372_v8 = vpop.permute.xlu1 %6371  ;;  %6558 = vrot.lane.b32.xlu0 %v13228_v42, %s9718_s26 }
 0x663   : > { %v6426_v4 = vsel %vm408_vm1, %v6372_v8, %v6374_v29  ;;  %v6425_v55 = vsel %vm408_vm1, %v6370_v31, %v6372_v8 }
 0x664   : > { %v13235_v44 = vmax.f32 %v6314_v60, %v6426_v4  ;;  %v6095_v60 = vpop.f32.mrf.mxu0 }
 0x665   : > { %v13274_v34 = vadd.f32 %v6095_v60, %v13070_v5 }
 0x666   : > { %6538 = vrot.lane.b32.xlu1 %v13235_v44, %s9718_s26  ;;  %v6376_v10 = vpop.permute.xlu1 %6375 }
 0x667   : > { %v6427_v13 = vsel %vm408_vm1, %v6374_v29, %v6376_v10  ;;  %v6428_v58 = vsel %vm408_vm1, %v6376_v10, %v6378_v21  ;;  %v6333_v54 = vmax.f32 %v13274_v34, 0.0 }
 0x668   : > { %v13246_v41 = vmax.f32 %v6315_v6, %v6427_v13  ;;  %v13248_v25 = vmax.f32 %v6316_v30, %v6428_v58  ;;  %v13264_v6 = vmax.f32 %v6313_v19, %v6425_v55  ;;  %v6398_v19 = vpop.permute.xlu0 %6397 }
 0x66a   : > { %6542 = vrot.lane.b32.xlu1 %v13248_v25, %s9718_s26  ;;  %6540 = vrot.lane.b32.xlu0 %v13246_v41, %s9718_s26  ;;  %v6396_v17 = vpop.permute.xlu1 %6395 }
 0x66b   : > { %v6437_v56 = vsel %vm408_vm1, %v6394_v28, %v6396_v17  ;;  %v6438_v48 = vsel %vm408_vm1, %v6396_v17, %v6398_v19 }
 0x66c   : > { %v13286_v11 = vmax.f32 %v6325_v36, %v6437_v56  ;;  %v13297_v57 = vmax.f32 %v6326_v18, %v6438_v48  ;;  %v13299_v22 = vpop.permute.xlu0 %6401 }
 0x66e   : > { %6403 = vrot.lane.b32.xlu1 %v6330_v61, %s9716_s24  ;;  %6536 = vrot.lane.b32.xlu0 %v13264_v6, %s9718_s26  ;;  %v6400_v30 = vpop.permute.xlu1 %6399 }
 0x66f   : > { %v6439_v37 = vsel %vm408_vm1, %v6398_v19, %v6400_v30  ;;  %v6440_v36 = vsel %vm408_vm1, %v6400_v30, %v13299_v22 }
 0x670   : > { %v13303_v43 = vmax.f32 %v6327_v47, %v6439_v37  ;;  %v13313_v26 = vmax.f32 %v6328_v49, %v6440_v36 }
 0x672   : > { %6407 = vrot.lane.b32.xlu1 %v6332_v7, %s9716_s24  ;;  %6405 = vrot.lane.b32.xlu0 %v6331_v15, %s9716_s24 }
 0x676   : > { %6560 = vrot.lane.b32.xlu1 %v13286_v11, %s9718_s26  ;;  %6409 = vrot.lane.b32.xlu0 %v6333_v54, %s9716_s24 }
 0x67a   : > { %6564 = vrot.lane.b32.xlu1 %v13303_v43, %s9718_s26  ;;  %6562 = vrot.lane.b32.xlu0 %v13297_v57, %s9718_s26 }
 0x67e   : > { %6566 = vrot.lane.b32.xlu0 %v13313_v26, %s9718_s26 }
 0x6c8   : > { %v6547_v18 = vpop.permute.xlu1 %6546  ;;  %v6549_v24 = vpop.permute.xlu0 %6548 }
 0x6c9   : > { %v6597_v47 = vsel %vm773_vm4, %v6547_v18, %v6549_v24 }
 0x6ca   : > { %v6652_v40 = vmax.f32 %v13188_v39, %v6597_v47 }
 0x6cc   : > { %v6551_v3 = vpop.permute.xlu1 %6550  ;;  %v6553_v21 = vpop.permute.xlu0 %6552 }
 0x6cd   : > { %v6599_v51 = vsel %vm773_vm4, %v6551_v3, %v6553_v21  ;;  %v6598_v59 = vsel %vm773_vm4, %v6549_v24, %v6551_v3 }
 0x6ce   : > { %v6654_v63 = vmax.f32 %v13202_v20, %v6599_v51  ;;  %v6653_v9 = vmax.f32 %v13192_v27, %v6598_v59 }
 0x6d0   : > { %v13322_v0 = vmax.f32 %v6652_v40, %v6654_v63  ;;  %v6555_v49 = vpop.permute.xlu1 %6554  ;;  %v6545_v1 = vpop.permute.xlu0 %6544 }
 0x6d1   : > { %v6600_v28 = vsel %vm773_vm4, %v6553_v21, %v6555_v49  ;;  %v6596_v52 = vsel %vm773_vm4, %v6545_v1, %v6547_v18 }
 0x6d2   : > { %6706 = vst [vmem:[#allocation3 + $0x28] sm:$0xff] %v13322_v0  ;;  %v6655_v12 = vmax.f32 %v13204_v2, %v6600_v28  ;;  %v6651_v39 = vmax.f32 %v13214_v45, %v6596_v52  ;;  %7195 = vrot.lane.b32.xlu1 %v13322_v0, %s9726_s17 }
 0x6d4   : > { %v13332_v20 = vmax.f32 %v6653_v9, %v6655_v12  ;;  %v13334_v16 = vmax.f32 %v6651_v39, %v6653_v9  ;;  %v6557_v29 = vpop.permute.xlu1 %6556  ;;  %v6559_v8 = vpop.permute.xlu0 %6558 }
 0x6d5   : > { %v6601_v4 = vsel %vm773_vm4, %v6555_v49, %v6557_v29  ;;  %v6602_v27 = vsel %vm773_vm4, %v6557_v29, %v6559_v8  ;;  %v6166_v9 = vpop.f32.mrf.mxu1 }
 0x6d6   : > { %6707 = vst [vmem:[#allocation3 + $0x30] sm:$0xff] %v13332_v20  ;;  %6705 = vst [vmem:[#allocation3 + $0x20] sm:$0xff] %v13334_v16  ;;  %v6656_v2 = vmax.f32 %v13218_v14, %v6601_v4  ;;  %v6657_v45 = vmax.f32 %v13226_v62, %v6602_v27  ;;  %7197 = vrot.lane.b32.xlu0 %v13332_v20, %s9726_s17  ;;  %7193 = vrot.lane.b32.xlu1 %v13334_v16, %s9726_s17 }
 0x6d7   : > { %v6168_v4 = vpop.f32.mrf.mxu1 }
 0x6d8   : > { %v13346_v32 = vmax.f32 %v6654_v63, %v6656_v2  ;;  %v13348_v35 = vmax.f32 %v6655_v12, %v6657_v45  ;;  %v6539_v31 = vpop.permute.xlu1 %6538  ;;  %v13498_v27 = vadd.f32 %v6168_v4, %v13070_v5 }
 0x6da   : > { %6708 = vst [vmem:[#allocation3 + $0x38] sm:$0xff] %v13346_v32  ;;  %6709 = vst [vmem:[#allocation3 + $0x40] sm:$0xff] %v13348_v35  ;;  %7105 = vrot.lane.b32.xlu0 %v13322_v0, %s9727_s20  ;;  %7107 = vrot.lane.b32.xlu1 %v13332_v20, %s9727_s20 }
 0x6db   : > { %7459 = vst [vmem:[#allocation3 + $0x530] sm:$0xff] %v13348_v35  ;;  %7757 = vst [vmem:[#allocation3 + $0xa20] sm:$0xff] %v13348_v35 }
 0x6dc   : > { %v6543_v14 = vpop.permute.xlu1 %6542  ;;  %v6541_v62 = vpop.permute.xlu0 %6540 }
 0x6dd   : > { %v6595_v10 = vsel %vm773_vm4, %v6543_v14, %v6545_v1  ;;  %v6593_v13 = vsel %vm773_vm4, %v6539_v31, %v6541_v62  ;;  %v6594_v58 = vsel %vm773_vm4, %v6541_v62, %v6543_v14 }
 0x6de   : > { %v6650_v33 = vmax.f32 %v13248_v25, %v6595_v10  ;;  %v6648_v55 = vmax.f32 %v13235_v44, %v6593_v13  ;;  %v6649_v17 = vmax.f32 %v13246_v41, %v6594_v58  ;;  %7199 = vrot.lane.b32.xlu0 %v13346_v32, %s9726_s17  ;;  %7201 = vrot.lane.b32.xlu1 %v13348_v35, %s9726_s17 }
 0x6e0   : > { %v13368_v60 = vmax.f32 %v6650_v33, %v6652_v40  ;;  %v13370_v56 = vmax.f32 %v6648_v55, %v6650_v33  ;;  %v13372_v19 = vmax.f32 %v6649_v17, %v6651_v39  ;;  %v13374_v30 = vpop.permute.xlu1 %6403  ;;  %v6537_v48 = vpop.permute.xlu0 %6536  ;;  %v13479_v39 = vadd.f32 %v6166_v9, %v13070_v5 }
 0x6e1   : > { %v6592_v25 = vsel %vm773_vm4, %v6537_v48, %v6539_v31  ;;  %v6441_v62 = vsel %vm408_vm1, %v13299_v22, %v13374_v30 }
 0x6e2   : > { %6704 = vst [vmem:[#allocation3 + $0x18] sm:$0xff] %v13368_v60  ;;  %6702 = vst [vmem:[#allocation3 + $0x8] sm:$0xff] %v13370_v56  ;;  %v6647_v44 = vmax.f32 %v13264_v6, %v6592_v25  ;;  %7103 = vrot.lane.b32.xlu0 %v13334_v16, %s9727_s20  ;;  %7016 = vrot.lane.b32.xlu1 %v13322_v0, %s9723_s6  ;;  %v13544_v10 = vmax.f32 %v6329_v46, %v6441_v62 }
 0x6e3   : > { %6703 = vst [vmem:[#allocation3 + $0x10] sm:$0xff] %v13372_v19 }
 0x6e4   : > { %v13385_v41 = vmax.f32 %v6647_v44, %v6649_v17  ;;  %v13387_v37 = vpop.permute.xlu1 %6407  ;;  %v13389_v36 = vpop.permute.xlu0 %6405 }
 0x6e5   : > { %v6442_v13 = vsel %vm408_vm1, %v13374_v30, %v13389_v36  ;;  %v6443_v46 = vsel %vm408_vm1, %v13389_v36, %v13387_v37 }
 0x6e6   : > { %6701 = vst [vmem:[#allocation3] sm:$0xff] %v13385_v41  ;;  %7018 = vrot.lane.b32.xlu0 %v13332_v20, %s9723_s6  ;;  %7109 = vrot.lane.b32.xlu1 %v13346_v32, %s9727_s20  ;;  %v13555_v22 = vmax.f32 %v6330_v61, %v6442_v13  ;;  %v13570_v50 = vmax.f32 %v6331_v15, %v6443_v46 }
 0x6e8   : > { %v6561_v6 = vpop.permute.xlu1 %6560  ;;  %v13396_v18 = vpop.permute.xlu0 %6409 }
 0x6e9   : > { %v6603_v24 = vsel %vm773_vm4, %v6559_v8, %v6561_v6  ;;  %v6335_v8 = vmax.f32 %v13479_v39, 0.0  ;;  %v6444_v33 = vsel %vm408_vm1, %v13387_v37, %v13396_v18 }
 0x6ea   : > { %v6658_v47 = vmax.f32 %v13228_v42, %v6603_v24  ;;  %7111 = vrot.lane.b32.xlu0 %v13348_v35, %s9727_s20  ;;  %7014 = vrot.lane.b32.xlu1 %v13334_v16, %s9723_s6  ;;  %v13586_v53 = vmax.f32 %v6332_v7, %v6444_v33 }
 0x6ec   : > { %v13404_v3 = vmax.f32 %v6656_v2, %v6658_v47  ;;  %v6565_v21 = vpop.permute.xlu1 %6564  ;;  %v6563_v51 = vpop.permute.xlu0 %6562 }
 0x6ed   : > { %v6604_v40 = vsel %vm773_vm4, %v6561_v6, %v6563_v51  ;;  %v6605_v63 = vsel %vm773_vm4, %v6563_v51, %v6565_v21 }
 0x6ee   : > { %6710 = vst [vmem:[#allocation3 + $0x48] sm:$0xff] %v13404_v3  ;;  %7460 = vst [vmem:[#allocation3 + $0x538] sm:$0xff] %v13404_v3  ;;  %v6659_v42 = vmax.f32 %v13286_v11, %v6604_v40  ;;  %v13413_v59 = vmax.f32 %v13297_v57, %v6605_v63  ;;  %6927 = vrot.lane.b32.xlu0 %v13322_v0, %s9721_s29  ;;  %6929 = vrot.lane.b32.xlu1 %v13332_v20, %s9721_s29 }
 0x6ef   : > { %7758 = vst [vmem:[#allocation3 + $0xa28] sm:$0xff] %v13404_v3 }
 0x6f0   : > { %v13419_v49 = vmax.f32 %v6657_v45, %v6659_v42  ;;  %v13422_v1 = vmax.f32 %v6658_v47, %v13413_v59  ;;  %v13424_v28 = vpop.permute.xlu0 %6566  ;;  %v6336_v45 = vmax.f32 %v13498_v27, 0.0 }
 0x6f1   : > { %v6606_v52 = vsel %vm773_vm4, %v6565_v21, %v13424_v28 }
 0x6f2   : > { %6711 = vst [vmem:[#allocation3 + $0x50] sm:$0xff] %v13419_v49  ;;  %6712 = vst [vmem:[#allocation3 + $0x58] sm:$0xff] %v13422_v1  ;;  %v13435_v11 = vmax.f32 %v13303_v43, %v6606_v52  ;;  %7020 = vrot.lane.b32.xlu0 %v13346_v32, %s9723_s6  ;;  %7022 = vrot.lane.b32.xlu1 %v13348_v35, %s9723_s6  ;;  %v6097_v43 = vpop.f32.mrf.mxu0 }
 0x6f3   : > { %7461 = vst [vmem:[#allocation3 + $0x540] sm:$0xff] %v13419_v49  ;;  %7462 = vst [vmem:[#allocation3 + $0x548] sm:$0xff] %v13422_v1  ;;  %v13476_v12 = vadd.f32 %v6097_v43, %v13070_v5 }
 0x6f4   : > { %7759 = vst [vmem:[#allocation3 + $0xa30] sm:$0xff] %v13419_v49  ;;  %7760 = vst [vmem:[#allocation3 + $0xa38] sm:$0xff] %v13422_v1  ;;  %v13442_v57 = vmax.f32 %v6659_v42, %v13435_v11  ;;  %v6237_v2 = vpop.f32.mrf.mxu0 }
 0x6f5   : > { %v6334_v29 = vmax.f32 %v13476_v12, 0.0  ;;  %v13506_v31 = vadd.f32 %v6237_v2, %v13070_v5 }
 0x6f6   : > { %6713 = vst [vmem:[#allocation3 + $0x60] sm:$0xff] %v13442_v57  ;;  %7463 = vst [vmem:[#allocation3 + $0x550] sm:$0xff] %v13442_v57  ;;  %6925 = vrot.lane.b32.xlu0 %v13334_v16, %s9721_s29  ;;  %6837 = vrot.lane.b32.xlu1 %v13322_v0, %s9728_s21 }
 0x6f7   : > { %7761 = vst [vmem:[#allocation3 + $0xa40] sm:$0xff] %v13442_v57  ;;  %v6337_v14 = vmax.f32 %v13506_v31, 0.0 }
 0x6fa   : > { %6839 = vrot.lane.b32.xlu0 %v13332_v20, %s9728_s21  ;;  %6931 = vrot.lane.b32.xlu1 %v13346_v32, %s9721_s29 }
 0x6fe   : > { %6933 = vrot.lane.b32.xlu0 %v13348_v35, %s9721_s29  ;;  %6835 = vrot.lane.b32.xlu1 %v13334_v16, %s9728_s21 }
 0x702   : > { %6748 = vrot.lane.b32.xlu0 %v13322_v0, %s9717_s25  ;;  %6750 = vrot.lane.b32.xlu1 %v13332_v20, %s9717_s25 }
 0x706   : > { %6841 = vrot.lane.b32.xlu0 %v13346_v32, %s9728_s21  ;;  %6843 = vrot.lane.b32.xlu1 %v13348_v35, %s9728_s21 }
 0x70a   : > { %6746 = vrot.lane.b32.xlu0 %v13334_v16, %s9717_s25  ;;  %6752 = vrot.lane.b32.xlu1 %v13346_v32, %s9717_s25 }
 0x70e   : > { %6754 = vrot.lane.b32.xlu0 %v13348_v35, %s9717_s25  ;;  %7367 = vrot.lane.b32.xlu1 %v13370_v56, %s9729_s22 }
 0x712   : > { %7369 = vrot.lane.b32.xlu0 %v13372_v19, %s9729_s22  ;;  %7365 = vrot.lane.b32.xlu1 %v13385_v41, %s9729_s22 }
 0x716   : > { %6411 = vrot.lane.b32.xlu0 %v6334_v29, %s9716_s24  ;;  %6413 = vrot.lane.b32.xlu1 %v6335_v8, %s9716_s24 }
 0x71a   : > { %7277 = vrot.lane.b32.xlu0 %v13370_v56, %s9730_s23  ;;  %7279 = vrot.lane.b32.xlu1 %v13372_v19, %s9730_s23 }
 0x71e   : > { %7371 = vrot.lane.b32.xlu0 %v13368_v60, %s9729_s22  ;;  %7373 = vrot.lane.b32.xlu1 %v13334_v16, %s9729_s22 }
 0x722   : > { %7275 = vrot.lane.b32.xlu0 %v13385_v41, %s9730_s23  ;;  %6415 = vrot.lane.b32.xlu1 %v6336_v45, %s9716_s24 }
 0x726   : > { %6417 = vrot.lane.b32.xlu0 %v6337_v14, %s9716_s24  ;;  %7187 = vrot.lane.b32.xlu1 %v13370_v56, %s9726_s17 }
 0x72a   : > { %7189 = vrot.lane.b32.xlu0 %v13372_v19, %s9726_s17  ;;  %7281 = vrot.lane.b32.xlu1 %v13368_v60, %s9730_s23 }
 0x72e   : > { %7283 = vrot.lane.b32.xlu0 %v13334_v16, %s9730_s23  ;;  %7185 = vrot.lane.b32.xlu1 %v13385_v41, %s9726_s17 }
 0x732   : > { %7097 = vrot.lane.b32.xlu0 %v13370_v56, %s9727_s20  ;;  %7099 = vrot.lane.b32.xlu1 %v13372_v19, %s9727_s20 }
 0x736   : > { %7191 = vrot.lane.b32.xlu0 %v13368_v60, %s9726_s17  ;;  %7095 = vrot.lane.b32.xlu1 %v13385_v41, %s9727_s20 }
 0x73a   : > { %7008 = vrot.lane.b32.xlu0 %v13370_v56, %s9723_s6  ;;  %7010 = vrot.lane.b32.xlu1 %v13372_v19, %s9723_s6 }
 0x73e   : > { %7101 = vrot.lane.b32.xlu0 %v13368_v60, %s9727_s20  ;;  %6568 = vrot.lane.b32.xlu1 %v13544_v10, %s9718_s26 }
 0x742   : > { %7006 = vrot.lane.b32.xlu1 %v13385_v41, %s9723_s6  ;;  %6570 = vrot.lane.b32.xlu0 %v13555_v22, %s9718_s26 }
 0x744   : > { %v7196_v23 = vpop.permute.xlu1 %7195 }
 0x746   : > { %6921 = vrot.lane.b32.xlu1 %v13372_v19, %s9721_s29  ;;  %6919 = vrot.lane.b32.xlu0 %v13370_v56, %s9721_s29 }
 0x748   : > { %v13572_v61 = vpop.permute.xlu1 %7193  ;;  %v7198_v58 = vpop.permute.xlu0 %7197 }
 0x749   : > { %v7226_v55 = vsel %vm7221_vm12, %v13572_v61, %v7196_v23  ;;  %v7227_v17 = vsel %vm7221_vm12, %v7196_v23, %v7198_v58 }
 0x74a   : > { %7261 = vst [vmem:[#allocation3 + $0x380] sm:$0xff] %v7226_v55  ;;  %7262 = vst [vmem:[#allocation3 + $0x388] sm:$0xff] %v7227_v17  ;;  %6572 = vrot.lane.b32.xlu1 %v13570_v50, %s9718_s26  ;;  %7012 = vrot.lane.b32.xlu0 %v13368_v60, %s9723_s6 }
 0x74b   : > { %8514 = vmatprep.subr.mxu0 %v7227_v17 }
 0x74c   : > { %v7108_v15 = vpop.permute.xlu1 %7107  ;;  %v7106_v30 = vpop.permute.xlu0 %7105  ;;  %8515 = vmatpush1.msra.mxu0 %v7226_v55 }
 0x74d   : > { %v7137_v48 = vsel %vm7131_vm13, %v7106_v30, %v7108_v15 }
 0x74e   : > { %7172 = vst [vmem:[#allocation3 + $0x2f8] sm:$0xff] %v7137_v48  ;;  %6917 = vrot.lane.b32.xlu1 %v13385_v41, %s9721_s29  ;;  %6574 = vrot.lane.b32.xlu0 %v13586_v53, %s9718_s26 }
 0x74f   : > { %8516 = vmatprep.subr.mxu0 %v7137_v48 }
 0x750   : > { %v13593_v25 = vpop.permute.xlu1 %7201  ;;  %v7200_v44 = vpop.permute.xlu0 %7199 }
 0x751   : > { %v7228_v38 = vsel %vm7221_vm12, %v7198_v58, %v7200_v44  ;;  %v7229_v7 = vsel %vm7221_vm12, %v7200_v44, %v13593_v25 }
 0x752   : > { %7263 = vst [vmem:[#allocation3 + $0x390] sm:$0xff] %v7228_v38  ;;  %7264 = vst [vmem:[#allocation3 + $0x398] sm:$0xff] %v7229_v7  ;;  %6831 = vrot.lane.b32.xlu1 %v13372_v19, %s9728_s21  ;;  %6829 = vrot.lane.b32.xlu0 %v13370_v56, %s9728_s21 }
 0x753   : > { %8591 = vmatprep.subr.mxu1 %v7229_v7 }
 0x754   : > { %v7017_v37 = vpop.permute.xlu1 %7016  ;;  %v13602_v36 = vpop.permute.xlu0 %7103  ;;  %8592 = vmatpush1.msra.mxu1 %v7228_v38 }
 0x755   : > { %v7136_v6 = vsel %vm7131_vm13, %v13602_v36, %v7106_v30 }
 0x756   : > { %7171 = vst [vmem:[#allocation3 + $0x2f0] sm:$0xff] %v7136_v6  ;;  %6827 = vrot.lane.b32.xlu1 %v13385_v41, %s9728_s21  ;;  %6923 = vrot.lane.b32.xlu0 %v13368_v60, %s9721_s29 }
 0x757   : > { %8517 = vmatpush1.msra.mxu0 %v7136_v6 }
 0x758   : > { %v7110_v24 = vpop.permute.xlu1 %7109  ;;  %v7019_v47 = vpop.permute.xlu0 %7018 }
 0x759   : > { %v7138_v21 = vsel %vm7131_vm13, %v7108_v15, %v7110_v24  ;;  %v7047_v51 = vsel %vm1683_vm9, %v7017_v37, %v7019_v47 }
 0x75a   : > { %7173 = vst [vmem:[#allocation3 + $0x300] sm:$0xff] %v7138_v21  ;;  %7082 = vst [vmem:[#allocation3 + $0x268] sm:$0xff] %v7047_v51  ;;  %6742 = vrot.lane.b32.xlu1 %v13372_v19, %s9717_s25  ;;  %6740 = vrot.lane.b32.xlu0 %v13370_v56, %s9717_s25 }
 0x75b   : > { %8518 = vmatprep.subr.mxu0 %v7047_v51 }
 0x75c   : > { %v13616_v40 = vpop.permute.xlu1 %7014  ;;  %v13618_v63 = vpop.permute.xlu0 %7111 }
 0x75d   : > { %v7046_v42 = vsel %vm1683_vm9, %v13616_v40, %v7017_v37  ;;  %v7139_v52 = vsel %vm7131_vm13, %v7110_v24, %v13618_v63 }
 0x75e   : > { %7081 = vst [vmem:[#allocation3 + $0x260] sm:$0xff] %v7046_v42  ;;  %7174 = vst [vmem:[#allocation3 + $0x308] sm:$0xff] %v7139_v52  ;;  %6738 = vrot.lane.b32.xlu1 %v13385_v41, %s9717_s25  ;;  %6833 = vrot.lane.b32.xlu0 %v13368_v60, %s9728_s21 }
 0x75f   : > { %8519 = vmatpush1.msra.mxu0 %v7046_v42  ;;  %8593 = vmatprep.subr.mxu1 %v7139_v52 }
 0x760   : > { %v6930_v56 = vpop.permute.xlu1 %6929  ;;  %v6928_v19 = vpop.permute.xlu0 %6927  ;;  %8594 = vmatpush1.msra.mxu1 %v7138_v21 }
 0x761   : > { %v6958_v43 = vsel %vm1319_vm7, %v6928_v19, %v6930_v56 }
 0x762   : > { %6993 = vst [vmem:[#allocation3 + $0x1d8] sm:$0xff] %v6958_v43  ;;  %7383 = vrot.lane.b32.xlu1 %v13404_v3, %s9729_s22  ;;  %6744 = vrot.lane.b32.xlu0 %v13368_v60, %s9717_s25 }
 0x763   : > { %8520 = vmatprep.subr.mxu0 %v6958_v43 }
 0x764   : > { %v13633_v9 = vpop.permute.xlu1 %7022  ;;  %v7021_v41 = vpop.permute.xlu0 %7020 }
 0x765   : > { %v7048_v4 = vsel %vm1683_vm9, %v7019_v47, %v7021_v41  ;;  %v7049_v2 = vsel %vm1683_vm9, %v7021_v41, %v13633_v9 }
 0x766   : > { %7083 = vst [vmem:[#allocation3 + $0x270] sm:$0xff] %v7048_v4  ;;  %7084 = vst [vmem:[#allocation3 + $0x278] sm:$0xff] %v7049_v2  ;;  %7381 = vrot.lane.b32.xlu1 %v13348_v35, %s9729_s22  ;;  %7385 = vrot.lane.b32.xlu0 %v13419_v49, %s9729_s22 }
 0x767   : > { %8595 = vmatprep.subr.mxu1 %v7049_v2 }
 0x768   : > { %v6838_v62 = vpop.permute.xlu1 %6837  ;;  %v13642_v60 = vpop.permute.xlu0 %6925  ;;  %8596 = vmatpush1.msra.mxu1 %v7048_v4 }
 0x769   : > { %v6957_v13 = vsel %vm1319_vm7, %v13642_v60, %v6928_v19 }
 0x76a   : > { %6992 = vst [vmem:[#allocation3 + $0x1d0] sm:$0xff] %v6957_v13  ;;  %7295 = vrot.lane.b32.xlu1 %v13419_v49, %s9730_s23  ;;  %7293 = vrot.lane.b32.xlu0 %v13404_v3, %s9730_s23 }
 0x76b   : > { %8521 = vmatpush1.msra.mxu0 %v6957_v13 }
 0x76c   : > { %v6932_v23 = vpop.permute.xlu1 %6931  ;;  %v6840_v46 = vpop.permute.xlu0 %6839 }
 0x76d   : > { %v6959_v58 = vsel %vm1319_vm7, %v6930_v56, %v6932_v23  ;;  %v6869_v33 = vsel %vm6863_vm14, %v6838_v62, %v6840_v46 }
 0x76e   : > { %6994 = vst [vmem:[#allocation3 + $0x1e0] sm:$0xff] %v6959_v58  ;;  %6904 = vst [vmem:[#allocation3 + $0x148] sm:$0xff] %v6869_v33  ;;  %7387 = vrot.lane.b32.xlu0 %v13422_v1, %s9729_s22  ;;  %7389 = vrot.lane.b32.xlu1 %v13442_v57, %s9729_s22 }
 0x76f   : > { %8522 = vmatprep.subr.mxu0 %v6869_v33 }
 0x770   : > { %v13656_v55 = vpop.permute.xlu1 %6835  ;;  %v13658_v17 = vpop.permute.xlu0 %6933 }
 0x771   : > { %v6868_v15 = vsel %vm6863_vm14, %v13656_v55, %v6838_v62  ;;  %v6960_v30 = vsel %vm1319_vm7, %v6932_v23, %v13658_v17 }
 0x772   : > { %6903 = vst [vmem:[#allocation3 + $0x140] sm:$0xff] %v6868_v15  ;;  %6995 = vst [vmem:[#allocation3 + $0x1e8] sm:$0xff] %v6960_v30  ;;  %7291 = vrot.lane.b32.xlu0 %v13348_v35, %s9730_s23  ;;  %7203 = vrot.lane.b32.xlu1 %v13404_v3, %s9726_s17 }
 0x773   : > { %8523 = vmatpush1.msra.mxu0 %v6868_v15  ;;  %8597 = vmatprep.subr.mxu1 %v6960_v30 }
 0x774   : > { %v6751_v48 = vpop.permute.xlu1 %6750  ;;  %v6749_v44 = vpop.permute.xlu0 %6748  ;;  %8598 = vmatpush1.msra.mxu1 %v6959_v58 }
 0x775   : > { %v6779_v38 = vsel %vm591_vm3, %v6749_v44, %v6751_v48 }
 0x776   : > { %6814 = vst [vmem:[#allocation3 + $0xb8] sm:$0xff] %v6779_v38  ;;  %7205 = vrot.lane.b32.xlu0 %v13419_v49, %s9726_s17  ;;  %7297 = vrot.lane.b32.xlu1 %v13422_v1, %s9730_s23 }
 0x777   : > { %8524 = vmatprep.subr.mxu0 %v6779_v38 }
 0x778   : > { %v13673_v7 = vpop.permute.xlu1 %6843  ;;  %v6842_v35 = vpop.permute.xlu0 %6841 }
 0x779   : > { %v6870_v37 = vsel %vm6863_vm14, %v6840_v46, %v6842_v35  ;;  %v6871_v6 = vsel %vm6863_vm14, %v6842_v35, %v13673_v7 }
 0x77a   : > { %6905 = vst [vmem:[#allocation3 + $0x150] sm:$0xff] %v6870_v37  ;;  %6906 = vst [vmem:[#allocation3 + $0x158] sm:$0xff] %v6871_v6  ;;  %7299 = vrot.lane.b32.xlu0 %v13442_v57, %s9730_s23  ;;  %7113 = vrot.lane.b32.xlu1 %v13404_v3, %s9727_s20 }
 0x77b   : > { %8599 = vmatprep.subr.mxu1 %v6871_v6 }
 0x77c   : > { %v6753_v24 = vpop.permute.xlu1 %6752  ;;  %v13682_v47 = vpop.permute.xlu0 %6746  ;;  %8600 = vmatpush1.msra.mxu1 %v6870_v37 }
 0x77d   : > { %v6780_v21 = vsel %vm591_vm3, %v6751_v48, %v6753_v24  ;;  %v6778_v51 = vsel %vm591_vm3, %v13682_v47, %v6749_v44 }
 0x77e   : > { %6815 = vst [vmem:[#allocation3 + $0xc0] sm:$0xff] %v6780_v21  ;;  %6813 = vst [vmem:[#allocation3 + $0xb0] sm:$0xff] %v6778_v51  ;;  %7115 = vrot.lane.b32.xlu0 %v13419_v49, %s9727_s20  ;;  %7207 = vrot.lane.b32.xlu1 %v13422_v1, %s9726_s17 }
 0x77f   : > { %8525 = vmatpush1.msra.mxu0 %v6778_v51 }
 0x780   : > { %v7368_v42 = vpop.permute.xlu1 %7367  ;;  %v13691_v52 = vpop.permute.xlu0 %6754  ;;  %8526 = vmatprep.subr.mxu0 %v13322_v0 }
 0x781   : > { %v6781_v56 = vsel %vm591_vm3, %v6753_v24, %v13691_v52  ;;  %8527 = vmatpush1.msra.mxu0 %v13334_v16 }
 0x782   : > { %6816 = vst [vmem:[#allocation3 + $0xc8] sm:$0xff] %v6781_v56  ;;  %7209 = vrot.lane.b32.xlu0 %v13442_v57, %s9726_s17  ;;  %7024 = vrot.lane.b32.xlu1 %v13404_v3, %s9723_s6 }
 0x783   : > { %8601 = vmatprep.subr.mxu1 %v6781_v56 }
 0x784   : > { %v7366_v19 = vpop.permute.xlu1 %7365  ;;  %v7370_v43 = vpop.permute.xlu0 %7369  ;;  %8602 = vmatpush1.msra.mxu1 %v6780_v21 }
 0x785   : > { %v7402_v41 = vsel %vm7401_vm15, %v7366_v19, %v7368_v42  ;;  %v7403_v4 = vsel %vm7401_vm15, %v7368_v42, %v7370_v43  ;;  %8603 = vmatprep.subr.mxu1 %v13346_v32 }
 0x786   : > { %7026 = vrot.lane.b32.xlu0 %v13419_v49, %s9723_s6  ;;  %7117 = vrot.lane.b32.xlu1 %v13422_v1, %s9727_s20 }
 0x787   : > { %8604 = vmatpush1.msra.mxu1 %v13332_v20  ;;  %8528 = vmatprep.subr.mxu0 %v7403_v4 }
 0x788   : > { %v13709_v16 = vpop.permute.xlu1 %6413  ;;  %v13711_v2 = vpop.permute.xlu0 %6411  ;;  %8529 = vmatpush1.msra.mxu0 %v7402_v41 }
 0x78a   : > { %7119 = vrot.lane.b32.xlu0 %v13442_v57, %s9727_s20  ;;  %6935 = vrot.lane.b32.xlu1 %v13404_v3, %s9721_s29 }
 0x78c   : > { %v7280_v62 = vpop.permute.xlu1 %7279  ;;  %v7278_v13 = vpop.permute.xlu0 %7277 }
 0x78d   : > { %v7313_v23 = vsel %vm7311_vm0, %v7278_v13, %v7280_v62 }
 0x78e   : > { %6937 = vrot.lane.b32.xlu0 %v13419_v49, %s9721_s29  ;;  %7028 = vrot.lane.b32.xlu1 %v13422_v1, %s9723_s6 }
 0x78f   : > { %8530 = vmatprep.subr.mxu0 %v7313_v23 }
 0x790   : > { %v13722_v46 = vpop.permute.xlu1 %7373  ;;  %v7372_v58 = vpop.permute.xlu0 %7371 }
 0x791   : > { %v7404_v33 = vsel %vm7401_vm15, %v7370_v43, %v7372_v58  ;;  %v7405_v15 = vsel %vm7401_vm15, %v7372_v58, %v13722_v46 }
 0x792   : > { %7030 = vrot.lane.b32.xlu0 %v13442_v57, %s9723_s6  ;;  %6845 = vrot.lane.b32.xlu1 %v13404_v3, %s9728_s21 }
 0x793   : > { %8605 = vmatprep.subr.mxu1 %v7405_v15 }
 0x794   : > { %v13731_v30 = vpop.permute.xlu1 %6415  ;;  %v7276_v48 = vpop.permute.xlu0 %7275  ;;  %8606 = vmatpush1.msra.mxu1 %v7404_v33 }
 0x795   : > { %v7312_v44 = vsel %vm7311_vm0, %v7276_v48, %v7278_v13  ;;  %v6308_v13 = vpop.f32.mrf.mxu1 }
 0x796   : > { %6847 = vrot.lane.b32.xlu0 %v13419_v49, %s9728_s21  ;;  %6939 = vrot.lane.b32.xlu1 %v13422_v1, %s9721_s29 }
 0x797   : > { %8531 = vmatpush1.msra.mxu0 %v7312_v44  ;;  %v6310_v44 = vpop.f32.mrf.mxu1 }
 0x798   : > { %v7188_v38 = vpop.permute.xlu1 %7187  ;;  %v13738_v35 = vpop.permute.xlu0 %6417 }
 0x79a   : > { %6756 = vrot.lane.b32.xlu1 %v13404_v3, %s9717_s25  ;;  %6941 = vrot.lane.b32.xlu0 %v13442_v57, %s9721_s29 }
 0x79c   : > { %v7282_v37 = vpop.permute.xlu1 %7281  ;;  %v7190_v6 = vpop.permute.xlu0 %7189 }
 0x79d   : > { %v7314_v24 = vsel %vm7311_vm0, %v7280_v62, %v7282_v37  ;;  %v7223_v21 = vsel %vm7221_vm12, %v7188_v38, %v7190_v6  ;;  %v6239_v62 = vpop.f32.mrf.mxu0 }
 0x79e   : > { %6849 = vrot.lane.b32.xlu1 %v13422_v1, %s9728_s21  ;;  %6758 = vrot.lane.b32.xlu0 %v13419_v49, %s9717_s25  ;;  %v13778_v33 = vadd.f32 %v6239_v62, %v13070_v5  ;;  %v6448_v62 = vsel %vm408_vm1, %v13731_v30, %v13738_v35 }
 0x79f   : > { %8532 = vmatprep.subr.mxu0 %v7223_v21 }
 0x7a0   : > { %v7186_v51 = vpop.permute.xlu1 %7185  ;;  %v13750_v42 = vpop.permute.xlu0 %7283 }
 0x7a1   : > { %v7222_v3 = vsel %vm7221_vm12, %v7186_v51, %v7188_v38  ;;  %v7315_v56 = vsel %vm7311_vm0, %v7282_v37, %v13750_v42  ;;  %v13790_v37 = vadd.f32 %v6310_v44, %v13070_v5 }
 0x7a2   : > { %6760 = vrot.lane.b32.xlu1 %v13422_v1, %s9717_s25  ;;  %6851 = vrot.lane.b32.xlu0 %v13442_v57, %s9728_s21  ;;  %v8060_v1 = vld [vmem:[%s15205_s3 + $0x8] sm:$0xff] }
 0x7a3   : > { %8533 = vmatpush1.msra.mxu0 %v7222_v3  ;;  %8607 = vmatprep.subr.mxu1 %v7315_v56  ;;  %v6340_v56 = vmax.f32 %v13790_v37, 0.0 }
 0x7a4   : > { %v7100_v19 = vpop.permute.xlu1 %7099  ;;  %v7098_v43 = vpop.permute.xlu0 %7097  ;;  %8608 = vmatpush1.msra.mxu1 %v7314_v24  ;;  %9518 = vmatprep.mubr.msk.f32.mxu0 %vm8507_vm2, %v8060_v1 }
 0x7a5   : > { %v7133_v49 = vsel %vm7131_vm13, %v7098_v43, %v7100_v19  ;;  %9520 = vmatprep.mubr.msk.f32.mxu1 %vm8507_vm2, %v8060_v1 }
 0x7a6   : > { %7375 = vrot.lane.b32.xlu1 %v13322_v0, %s9729_s22  ;;  %6762 = vrot.lane.b32.xlu0 %v13442_v57, %s9717_s25 }
 0x7a7   : > { %8534 = vmatprep.subr.mxu0 %v7133_v49 }
 0x7a8   : > { %v7096_v41 = vpop.permute.xlu1 %7095  ;;  %v7192_v4 = vpop.permute.xlu0 %7191 }
 0x7a9   : > { %v7132_v23 = vsel %vm7131_vm13, %v7096_v41, %v7098_v43  ;;  %v7224_v58 = vsel %vm7221_vm12, %v7190_v6, %v7192_v4  ;;  %v7225_v57 = vsel %vm7221_vm12, %v7192_v4, %v13572_v61  ;;  %v13787_v61 = vadd.f32 %v6308_v13, %v13070_v5 }
 0x7aa   : > { %7285 = vrot.lane.b32.xlu1 %v13322_v0, %s9730_s23  ;;  %7377 = vrot.lane.b32.xlu0 %v13332_v20, %s9729_s22  ;;  %v6338_v0 = vmax.f32 %v13778_v33, 0.0  ;;  %v6447_v4 = vsel %vm408_vm1, %v13709_v16, %v13731_v30 }
 0x7ab   : > { %8535 = vmatpush1.msra.mxu0 %v7132_v23  ;;  %8609 = vmatprep.subr.mxu1 %v7225_v57  ;;  %v6339_v5 = vmax.f32 %v13787_v61, 0.0 }
 0x7ac   : > { %v7011_v15 = vpop.permute.xlu1 %7010  ;;  %v7009_v48 = vpop.permute.xlu0 %7008  ;;  %8610 = vmatpush1.msra.mxu1 %v7224_v58 }
 0x7ad   : > { %v7043_v38 = vsel %vm1683_vm9, %v7009_v48, %v7011_v15 }
 0x7ae   : > { %7379 = vrot.lane.b32.xlu1 %v13346_v32, %s9729_s22  ;;  %7287 = vrot.lane.b32.xlu0 %v13332_v20, %s9730_s23 }
 0x7af   : > { %8536 = vmatprep.subr.mxu0 %v7043_v38 }
 0x7b0   : > { %v6569_v6 = vpop.permute.xlu1 %6568  ;;  %v7102_v24 = vpop.permute.xlu0 %7101 }
 0x7b1   : > { %v6607_v21 = vsel %vm773_vm4, %v13424_v28, %v6569_v6  ;;  %v7134_v51 = vsel %vm7131_vm13, %v7100_v19, %v7102_v24  ;;  %v7135_v3 = vsel %vm7131_vm13, %v7102_v24, %v13602_v36  ;;  %v6446_v36 = vsel %vm408_vm1, %v13711_v2, %v13709_v16 }
 0x7b2   : > { %v6662_v20 = vmax.f32 %v13313_v26, %v6607_v21  ;;  %6419 = vrot.lane.b32.xlu1 %v6338_v0, %s9716_s24  ;;  %7289 = vrot.lane.b32.xlu0 %v13346_v32, %s9730_s23  ;;  %v6445_v26 = vsel %vm408_vm1, %v13396_v18, %v13711_v2  ;;  %v13832_v2 = vmax.f32 %v6334_v29, %v6446_v36  ;;  %v8064_v36 = vld [vmem:[#allocation3 + $0x8] sm:$0xff] }
 0x7b3   : > { %8611 = vmatprep.subr.mxu1 %v7135_v3  ;;  %v13828_v18 = vmax.f32 %v6333_v54, %v6445_v26  ;;  %v13853_v54 = vmax.f32 %v6335_v8, %v6447_v4 }
 0x7b4   : > { %v13806_v28 = vmax.f32 %v13413_v59, %v6662_v20  ;;  %v7007_v19 = vpop.permute.xlu1 %7006  ;;  %v6571_v43 = vpop.permute.xlu0 %6570  ;;  %8612 = vmatpush1.msra.mxu1 %v7134_v51 }
 0x7b5   : > { %v7042_v32 = vsel %vm1683_vm9, %v7007_v19, %v7009_v48  ;;  %v6608_v49 = vsel %vm773_vm4, %v6569_v6, %v6571_v43 }
 0x7b6   : > { %6714 = vst [vmem:[#allocation3 + $0x68] sm:$0xff] %v13806_v28  ;;  %7464 = vst [vmem:[#allocation3 + $0x558] sm:$0xff] %v13806_v28  ;;  %v6663_v59 = vmax.f32 %v13544_v10, %v6608_v49  ;;  %6423 = vrot.lane.b32.xlu1 %v6340_v56, %s9716_s24  ;;  %6421 = vrot.lane.b32.xlu0 %v6339_v5, %s9716_s24 }
 0x7b7   : > { %7762 = vst [vmem:[#allocation3 + $0xa48] sm:$0xff] %v13806_v28  ;;  %8537 = vmatpush1.msra.mxu0 %v7042_v32 }
 0x7b8   : > { %v13835_v1 = vmax.f32 %v13435_v11, %v6663_v59  ;;  %v6922_v10 = vpop.permute.xlu1 %6921  ;;  %v6920_v41 = vpop.permute.xlu0 %6919  ;;  %v13857_v11 = vmax.f32 %v6336_v45, %v6448_v62  ;;  %v8066_v62 = vld [vmem:[#allocation3 + $0x18] sm:$0xff] }
 0x7b9   : > { %v6954_v34 = vsel %vm1319_vm7, %v6920_v41, %v6922_v10 }
 0x7ba   : > { %6715 = vst [vmem:[#allocation3 + $0x70] sm:$0xff] %v13835_v1  ;;  %7465 = vst [vmem:[#allocation3 + $0x560] sm:$0xff] %v13835_v1  ;;  %6578 = vrot.lane.b32.xlu1 %v13832_v2, %s9718_s26  ;;  %6576 = vrot.lane.b32.xlu0 %v13828_v18, %s9718_s26 }
 0x7bb   : > { %7763 = vst [vmem:[#allocation3 + $0xa50] sm:$0xff] %v13835_v1  ;;  %8538 = vmatprep.subr.mxu0 %v6954_v34 }
 0x7bc   : > { %v6573_v12 = vpop.permute.xlu1 %6572  ;;  %v7013_v29 = vpop.permute.xlu0 %7012 }
 0x7bd   : > { %v6609_v16 = vsel %vm773_vm4, %v6571_v43, %v6573_v12  ;;  %v7044_v30 = vsel %vm1683_vm9, %v7011_v15, %v7013_v29  ;;  %v7045_v13 = vsel %vm1683_vm9, %v7013_v29, %v13616_v40 }
 0x7be   : > { %v13864_v23 = vmax.f32 %v13555_v22, %v6609_v16  ;;  %6580 = vrot.lane.b32.xlu0 %v13853_v54, %s9718_s26  ;;  %6582 = vrot.lane.b32.xlu1 %v13857_v11, %s9718_s26 }
 0x7bf   : > { %8613 = vmatprep.subr.mxu1 %v7045_v13 }
 0x7c0   : > { %v13871_v39 = vmax.f32 %v6662_v20, %v13864_v23  ;;  %v6918_v8 = vpop.permute.xlu1 %6917  ;;  %v13873_v27 = vpop.permute.xlu0 %6574  ;;  %8614 = vmatpush1.msra.mxu1 %v7044_v30 }
 0x7c1   : > { %v6953_v45 = vsel %vm1319_vm7, %v6918_v8, %v6920_v41  ;;  %v6610_v22 = vsel %vm773_vm4, %v6573_v12, %v13873_v27 }
 0x7c2   : > { %6716 = vst [vmem:[#allocation3 + $0x78] sm:$0xff] %v13871_v39  ;;  %7466 = vst [vmem:[#allocation3 + $0x568] sm:$0xff] %v13871_v39  ;;  %v13882_v40 = vmax.f32 %v13570_v50, %v6610_v22  ;;  %7391 = vrot.lane.b32.xlu0 %v13806_v28, %s9729_s22  ;;  %7393 = vrot.lane.b32.xlu1 %v13835_v1, %s9729_s22 }
 0x7c3   : > { %7764 = vst [vmem:[#allocation3 + $0xa58] sm:$0xff] %v13871_v39  ;;  %8539 = vmatpush1.msra.mxu0 %v6953_v45 }
 0x7c4   : > { %v13889_v58 = vmax.f32 %v6663_v59, %v13882_v40  ;;  %v6832_v57 = vpop.permute.xlu1 %6831  ;;  %v6830_v15 = vpop.permute.xlu0 %6829  ;;  %v8063_v59 = vld [vmem:[#allocation3] sm:$0xff] }
 0x7c5   : > { %v6865_v48 = vsel %vm6863_vm14, %v6830_v15, %v6832_v57 }
 0x7c6   : > { %7467 = vst [vmem:[#allocation3 + $0x570] sm:$0xff] %v13889_v58  ;;  %7765 = vst [vmem:[#allocation3 + $0xa60] sm:$0xff] %v13889_v58  ;;  %7301 = vrot.lane.b32.xlu0 %v13806_v28, %s9730_s23  ;;  %7303 = vrot.lane.b32.xlu1 %v13835_v1, %s9730_s23 }
 0x7c7   : > { %8540 = vmatprep.subr.mxu0 %v6865_v48 }
 0x7c8   : > { %v6828_v50 = vpop.permute.xlu1 %6827  ;;  %v6924_v44 = vpop.permute.xlu0 %6923 }
 0x7c9   : > { %v6864_v38 = vsel %vm6863_vm14, %v6828_v50, %v6830_v15  ;;  %v6955_v6 = vsel %vm1319_vm7, %v6922_v10, %v6924_v44  ;;  %v6956_v24 = vsel %vm1319_vm7, %v6924_v44, %v13642_v60 }
 0x7ca   : > { %7395 = vrot.lane.b32.xlu0 %v13871_v39, %s9729_s22  ;;  %7397 = vrot.lane.b32.xlu1 %v13889_v58, %s9729_s22 }
 0x7cb   : > { %8541 = vmatpush1.msra.mxu0 %v6864_v38  ;;  %8615 = vmatprep.subr.mxu1 %v6956_v24 }
 0x7cc   : > { %v6743_v21 = vpop.permute.xlu1 %6742  ;;  %v6741_v51 = vpop.permute.xlu0 %6740  ;;  %8616 = vmatpush1.msra.mxu1 %v6955_v6 }
 0x7cd   : > { %v6775_v3 = vsel %vm591_vm3, %v6741_v51, %v6743_v21 }
 0x7ce   : > { %7211 = vrot.lane.b32.xlu0 %v13806_v28, %s9726_s17  ;;  %7213 = vrot.lane.b32.xlu1 %v13835_v1, %s9726_s17 }
 0x7cf   : > { %8542 = vmatprep.subr.mxu0 %v6775_v3 }
 0x7d0   : > { %v6739_v60 = vpop.permute.xlu1 %6738  ;;  %v6834_v20 = vpop.permute.xlu0 %6833 }
 0x7d1   : > { %v6774_v19 = vsel %vm591_vm3, %v6739_v60, %v6741_v51  ;;  %v6866_v43 = vsel %vm6863_vm14, %v6832_v57, %v6834_v20  ;;  %v6867_v26 = vsel %vm6863_vm14, %v6834_v20, %v13656_v55 }
 0x7d2   : > { %7305 = vrot.lane.b32.xlu0 %v13871_v39, %s9730_s23  ;;  %7307 = vrot.lane.b32.xlu1 %v13889_v58, %s9730_s23 }
 0x7d3   : > { %8543 = vmatpush1.msra.mxu0 %v6774_v19  ;;  %8617 = vmatprep.subr.mxu1 %v6867_v26 }
 0x7d4   : > { %v7384_v32 = vpop.permute.xlu1 %7383  ;;  %v6745_v49 = vpop.permute.xlu0 %6744  ;;  %8544 = vmatprep.subr.mxu0 %v8064_v36  ;;  %8618 = vmatpush1.msra.mxu1 %v6866_v43 }
 0x7d5   : > { %v6776_v10 = vsel %vm591_vm3, %v6743_v21, %v6745_v49  ;;  %v6777_v41 = vsel %vm591_vm3, %v6745_v49, %v13682_v47  ;;  %8545 = vmatpush1.msra.mxu0 %v8063_v59  ;;  %v8065_v47 = vld [vmem:[#allocation3 + $0x10] sm:$0xff] }
 0x7d6   : > { %7121 = vrot.lane.b32.xlu0 %v13806_v28, %s9727_s20  ;;  %7123 = vrot.lane.b32.xlu1 %v13835_v1, %s9727_s20 }
 0x7d7   : > { %8619 = vmatprep.subr.mxu1 %v6777_v41 }
 0x7d8   : > { %v13926_v55 = vpop.permute.xlu1 %7381  ;;  %v7386_v4 = vpop.permute.xlu0 %7385  ;;  %8620 = vmatpush1.msra.mxu1 %v6776_v10 }
 0x7d9   : > { %v7410_v34 = vsel %vm7401_vm15, %v13926_v55, %v7384_v32  ;;  %v7411_v12 = vsel %vm7401_vm15, %v7384_v32, %v7386_v4  ;;  %8621 = vmatprep.subr.mxu1 %v8066_v62 }
 0x7da   : > { %7445 = vst [vmem:[#allocation3 + $0x4c0] sm:$0xff] %v7410_v34  ;;  %7743 = vst [vmem:[#allocation3 + $0x9b0] sm:$0xff] %v7410_v34  ;;  %7215 = vrot.lane.b32.xlu0 %v13871_v39, %s9726_s17  ;;  %7217 = vrot.lane.b32.xlu1 %v13889_v58, %s9726_s17 }
 0x7db   : > { %7446 = vst [vmem:[#allocation3 + $0x4c8] sm:$0xff] %v7411_v12  ;;  %7744 = vst [vmem:[#allocation3 + $0x9b8] sm:$0xff] %v7411_v12  ;;  %8622 = vmatpush1.msra.mxu1 %v8065_v47  ;;  %8556 = vmatprep.subr.mxu0 %v7411_v12 }
 0x7dc   : > { %v7296_v29 = vpop.permute.xlu1 %7295  ;;  %v7294_v16 = vpop.permute.xlu0 %7293  ;;  %8557 = vmatpush2.msra.mxu0 %v7410_v34 }
 0x7dd   : > { %v7321_v30 = vsel %vm7311_vm0, %v7294_v16, %v7296_v29 }
 0x7de   : > { %7356 = vst [vmem:[#allocation3 + $0x438] sm:$0xff] %v7321_v30  ;;  %7709 = vst [vmem:[#allocation3 + $0x928] sm:$0xff] %v7321_v30  ;;  %7032 = vrot.lane.b32.xlu0 %v13806_v28, %s9723_s6  ;;  %7034 = vrot.lane.b32.xlu1 %v13835_v1, %s9723_s6 }
 0x7df   : > { %8558 = vmatprep.subr.mxu0 %v7321_v30 }
 0x7e0   : > { %v13940_v13 = vpop.permute.xlu1 %7389  ;;  %v7388_v8 = vpop.permute.xlu0 %7387 }
 0x7e1   : > { %v7412_v45 = vsel %vm7401_vm15, %v7386_v4, %v7388_v8  ;;  %v7413_v22 = vsel %vm7401_vm15, %v7388_v8, %v13940_v13 }
 0x7e2   : > { %7447 = vst [vmem:[#allocation3 + $0x4d0] sm:$0xff] %v7412_v45  ;;  %7448 = vst [vmem:[#allocation3 + $0x4d8] sm:$0xff] %v7413_v22  ;;  %7125 = vrot.lane.b32.xlu0 %v13871_v39, %s9727_s20  ;;  %7127 = vrot.lane.b32.xlu1 %v13889_v58, %s9727_s20 }
 0x7e3   : > { %7745 = vst [vmem:[#allocation3 + $0x9c0] sm:$0xff] %v7412_v45  ;;  %7746 = vst [vmem:[#allocation3 + $0x9c8] sm:$0xff] %v7413_v22  ;;  %8633 = vmatprep.subr.mxu1 %v7413_v22 }
 0x7e4   : > { %v7204_v57 = vpop.permute.xlu1 %7203  ;;  %v13949_v15 = vpop.permute.xlu0 %7291  ;;  %8634 = vmatpush2.msra.mxu1 %v7412_v45 }
 0x7e5   : > { %v13953_v48 = vsel %vm7221_vm12, %v13593_v25, %v7204_v57  ;;  %v7320_v50 = vsel %vm7311_vm0, %v13949_v15, %v7294_v16 }
 0x7e6   : > { %7265 = vst [vmem:[#allocation3 + $0x3a0] sm:$0xff] %v13953_v48  ;;  %7355 = vst [vmem:[#allocation3 + $0x430] sm:$0xff] %v7320_v50  ;;  %6943 = vrot.lane.b32.xlu0 %v13806_v28, %s9721_s29  ;;  %6945 = vrot.lane.b32.xlu1 %v13835_v1, %s9721_s29 }
 0x7e7   : > { %7708 = vst [vmem:[#allocation3 + $0x920] sm:$0xff] %v7320_v50  ;;  %8559 = vmatpush2.msra.mxu0 %v7320_v50 }
 0x7e8   : > { %v7298_v44 = vpop.permute.xlu1 %7297  ;;  %v7206_v38 = vpop.permute.xlu0 %7205 }
 0x7e9   : > { %v7322_v6 = vsel %vm7311_vm0, %v7296_v29, %v7298_v44  ;;  %v13964_v25 = vsel %vm7221_vm12, %v7204_v57, %v7206_v38 }
 0x7ea   : > { %7357 = vst [vmem:[#allocation3 + $0x440] sm:$0xff] %v7322_v6  ;;  %7710 = vst [vmem:[#allocation3 + $0x930] sm:$0xff] %v7322_v6  ;;  %7036 = vrot.lane.b32.xlu0 %v13871_v39, %s9723_s6  ;;  %7038 = vrot.lane.b32.xlu1 %v13889_v58, %s9723_s6 }
 0x7eb   : > { %7266 = vst [vmem:[#allocation3 + $0x3a8] sm:$0xff] %v13964_v25  ;;  %8560 = vmatprep.subr.mxu0 %v13964_v25 }
 0x7ec   : > { %v7114_v24 = vpop.permute.xlu1 %7113  ;;  %v13972_v21 = vpop.permute.xlu0 %7299  ;;  %8561 = vmatpush2.msra.mxu0 %v13953_v48 }
 0x7ed   : > { %v13977_v51 = vsel %vm7131_vm13, %v13618_v63, %v7114_v24  ;;  %v7323_v3 = vsel %vm7311_vm0, %v7298_v44, %v13972_v21 }
 0x7ee   : > { %7175 = vst [vmem:[#allocation3 + $0x310] sm:$0xff] %v13977_v51  ;;  %7358 = vst [vmem:[#allocation3 + $0x448] sm:$0xff] %v7323_v3  ;;  %6853 = vrot.lane.b32.xlu0 %v13806_v28, %s9728_s21  ;;  %6855 = vrot.lane.b32.xlu1 %v13835_v1, %s9728_s21 }
 0x7ef   : > { %7711 = vst [vmem:[#allocation3 + $0x938] sm:$0xff] %v7323_v3  ;;  %8635 = vmatprep.subr.mxu1 %v7323_v3 }
 0x7f0   : > { %v7208_v60 = vpop.permute.xlu1 %7207  ;;  %v7116_v20 = vpop.permute.xlu0 %7115  ;;  %8636 = vmatpush2.msra.mxu1 %v7322_v6 }
 0x7f1   : > { %v13987_v63 = vsel %vm7221_vm12, %v7206_v38, %v7208_v60  ;;  %v13990_v19 = vsel %vm7131_vm13, %v7114_v24, %v7116_v20  ;;  %v8352_v24 = vld [vmem:[#allocation3 + $0xa28] sm:$0xff] }
 0x7f2   : > { %7267 = vst [vmem:[#allocation3 + $0x3b0] sm:$0xff] %v13987_v63  ;;  %7176 = vst [vmem:[#allocation3 + $0x318] sm:$0xff] %v13990_v19  ;;  %6947 = vrot.lane.b32.xlu0 %v13871_v39, %s9721_s29  ;;  %6949 = vrot.lane.b32.xlu1 %v13889_v58, %s9721_s29 }
 0x7f3   : > { %8562 = vmatprep.subr.mxu0 %v13990_v19 }
 0x7f4   : > { %v7025_v43 = vpop.permute.xlu1 %7024  ;;  %v13999_v26 = vpop.permute.xlu0 %7209  ;;  %8563 = vmatpush2.msra.mxu0 %v13977_v51 }
 0x7f5   : > { %v14004_v36 = vsel %vm1683_vm9, %v13633_v9, %v7025_v43  ;;  %v14008_v32 = vsel %vm7221_vm12, %v7208_v60, %v13999_v26 }
 0x7f6   : > { %7085 = vst [vmem:[#allocation3 + $0x280] sm:$0xff] %v14004_v36  ;;  %7268 = vst [vmem:[#allocation3 + $0x3b8] sm:$0xff] %v14008_v32  ;;  %6764 = vrot.lane.b32.xlu0 %v13806_v28, %s9717_s25  ;;  %6766 = vrot.lane.b32.xlu1 %v13835_v1, %s9717_s25 }
 0x7f7   : > { %8637 = vmatprep.subr.mxu1 %v14008_v32 }
 0x7f8   : > { %v7118_v49 = vpop.permute.xlu1 %7117  ;;  %v7027_v59 = vpop.permute.xlu0 %7026  ;;  %8638 = vmatpush2.msra.mxu1 %v13987_v63 }
 0x7f9   : > { %v14019_v9 = vsel %vm7131_vm13, %v7116_v20, %v7118_v49  ;;  %v14022_v10 = vsel %vm1683_vm9, %v7025_v43, %v7027_v59  ;;  %v8351_v20 = vld [vmem:[#allocation3 + $0xa20] sm:$0xff] }
 0x7fa   : > { %7177 = vst [vmem:[#allocation3 + $0x320] sm:$0xff] %v14019_v9  ;;  %7086 = vst [vmem:[#allocation3 + $0x288] sm:$0xff] %v14022_v10  ;;  %6857 = vrot.lane.b32.xlu0 %v13871_v39, %s9728_s21  ;;  %6859 = vrot.lane.b32.xlu1 %v13889_v58, %s9728_s21 }
 0x7fb   : > { %8564 = vmatprep.subr.mxu0 %v14022_v10 }
 0x7fc   : > { %v6936_v28 = vpop.permute.xlu1 %6935  ;;  %v14031_v1 = vpop.permute.xlu0 %7119  ;;  %8565 = vmatpush2.msra.mxu0 %v14004_v36 }
 0x7fd   : > { %v14036_v41 = vsel %vm1319_vm7, %v13658_v17, %v6936_v28  ;;  %v14040_v4 = vsel %vm7131_vm13, %v7118_v49, %v14031_v1 }
 0x7fe   : > { %6996 = vst [vmem:[#allocation3 + $0x1f0] sm:$0xff] %v14036_v41  ;;  %7178 = vst [vmem:[#allocation3 + $0x328] sm:$0xff] %v14040_v4  ;;  %6768 = vrot.lane.b32.xlu0 %v13871_v39, %s9717_s25  ;;  %6770 = vrot.lane.b32.xlu1 %v13889_v58, %s9717_s25 }
 0x7ff   : > { %8639 = vmatprep.subr.mxu1 %v14040_v4 }
 0x800   : > { %v7029_v62 = vpop.permute.xlu1 %7028  ;;  %v6938_v34 = vpop.permute.xlu0 %6937  ;;  %8640 = vmatpush2.msra.mxu1 %v14019_v9 }
 0x801   : > { %v14051_v17 = vsel %vm1683_vm9, %v7027_v59, %v7029_v62  ;;  %v14054_v12 = vsel %vm1319_vm7, %v6936_v28, %v6938_v34 }
 0x802   : > { %7087 = vst [vmem:[#allocation3 + $0x290] sm:$0xff] %v14051_v17  ;;  %6997 = vst [vmem:[#allocation3 + $0x1f8] sm:$0xff] %v14054_v12  ;;  %8566 = vmatprep.subr.mxu0 %v14054_v12 }
 0x803   : > { %8567 = vmatpush2.msra.mxu0 %v14036_v41 }
 0x804   : > { %v6846_v39 = vpop.permute.xlu1 %6845  ;;  %v14060_v58 = vpop.permute.xlu0 %7030 }
 0x805   : > { %v14064_v47 = vsel %vm6863_vm14, %v13673_v7, %v6846_v39  ;;  %v14068_v29 = vsel %vm1683_vm9, %v7029_v62, %v14060_v58 }
 0x806   : > { %6907 = vst [vmem:[#allocation3 + $0x160] sm:$0xff] %v14064_v47  ;;  %7088 = vst [vmem:[#allocation3 + $0x298] sm:$0xff] %v14068_v29  ;;  %8641 = vmatprep.subr.mxu1 %v14068_v29 }
 0x807   : > { %8642 = vmatpush2.msra.mxu1 %v14051_v17 }
 0x808   : > { %v6940_v16 = vpop.permute.xlu1 %6939  ;;  %v6848_v30 = vpop.permute.xlu0 %6847 }
 0x809   : > { %v14075_v8 = vsel %vm1319_vm7, %v6938_v34, %v6940_v16  ;;  %v14078_v7 = vsel %vm6863_vm14, %v6846_v39, %v6848_v30  ;;  %v8354_v39 = vld [vmem:[#allocation3 + $0xa38] sm:$0xff] }
 0x80a   : > { %6998 = vst [vmem:[#allocation3 + $0x200] sm:$0xff] %v14075_v8  ;;  %6908 = vst [vmem:[#allocation3 + $0x168] sm:$0xff] %v14078_v7  ;;  %8568 = vmatprep.subr.mxu0 %v14078_v7 }
 0x80b   : > { %8569 = vmatpush2.msra.mxu0 %v14064_v47 }
 0x80c   : > { %v6757_v45 = vpop.permute.xlu1 %6756  ;;  %v14084_v22 = vpop.permute.xlu0 %6941 }
 0x80d   : > { %v14088_v57 = vsel %vm591_vm3, %v13691_v52, %v6757_v45  ;;  %v14092_v50 = vsel %vm1319_vm7, %v6940_v16, %v14084_v22 }
 0x80e   : > { %6817 = vst [vmem:[#allocation3 + $0xd0] sm:$0xff] %v14088_v57  ;;  %6999 = vst [vmem:[#allocation3 + $0x208] sm:$0xff] %v14092_v50  ;;  %8643 = vmatprep.subr.mxu1 %v14092_v50 }
 0x80f   : > { %8644 = vmatpush2.msra.mxu1 %v14075_v8 }
 0x810   : > { %v6850_v44 = vpop.permute.xlu1 %6849  ;;  %v6759_v38 = vpop.permute.xlu0 %6758 }
 0x811   : > { %v14099_v6 = vsel %vm6863_vm14, %v6848_v30, %v6850_v44  ;;  %v14102_v52 = vsel %vm591_vm3, %v6757_v45, %v6759_v38  ;;  %v8353_v45 = vld [vmem:[#allocation3 + $0xa30] sm:$0xff] }
 0x812   : > { %6909 = vst [vmem:[#allocation3 + $0x170] sm:$0xff] %v14099_v6  ;;  %6818 = vst [vmem:[#allocation3 + $0xd8] sm:$0xff] %v14102_v52  ;;  %8570 = vmatprep.subr.mxu0 %v14102_v52 }
 0x813   : > { %8571 = vmatpush2.msra.mxu0 %v14088_v57 }
 0x814   : > { %v6761_v3 = vpop.permute.xlu1 %6760  ;;  %v14108_v60 = vpop.permute.xlu0 %6851  ;;  %8572 = vmatprep.subr.mxu0 %v8352_v24 }
 0x815   : > { %v14111_v43 = vsel %vm591_vm3, %v6759_v38, %v6761_v3  ;;  %v14115_v49 = vsel %vm6863_vm14, %v6850_v44, %v14108_v60  ;;  %8573 = vmatpush2.msra.mxu0 %v8351_v20 }
 0x816   : > { %6819 = vst [vmem:[#allocation3 + $0xe0] sm:$0xff] %v14111_v43  ;;  %6910 = vst [vmem:[#allocation3 + $0x178] sm:$0xff] %v14115_v49  ;;  %8645 = vmatprep.subr.mxu1 %v14115_v49 }
 0x817   : > { %8646 = vmatpush2.msra.mxu1 %v14099_v6 }
 0x818   : > { %v7376_v59 = vpop.permute.xlu1 %7375  ;;  %v14121_v28 = vpop.permute.xlu0 %6762 }
 0x819   : > { %v14125_v62 = vsel %vm7401_vm15, %v13722_v46, %v7376_v59  ;;  %v14129_v34 = vsel %vm591_vm3, %v6761_v3, %v14121_v28 }
 0x81a   : > { %6820 = vst [vmem:[#allocation3 + $0xe8] sm:$0xff] %v14129_v34  ;;  %8647 = vmatprep.subr.mxu1 %v14129_v34 }
 0x81b   : > { %8648 = vmatpush2.msra.mxu1 %v14111_v43 }
 0x81c   : > { %v7286_v16 = vpop.permute.xlu1 %7285  ;;  %v7378_v30 = vpop.permute.xlu0 %7377  ;;  %8649 = vmatprep.subr.mxu1 %v8354_v39  ;;  %v14163_v39 = vld [vmem:[%s15205_s3 + $0x18] sm:$0xff] }
 0x81d   : > { %v14136_v44 = vsel %vm7311_vm0, %v13750_v42, %v7286_v16  ;;  %v14139_v46 = vsel %vm7401_vm15, %v7376_v59, %v7378_v30  ;;  %8650 = vmatpush2.msra.mxu1 %v8353_v45  ;;  %v14156_v59 = vld [vmem:[%s15205_s3] sm:$0xff] }
 0x81e   : > { %8574 = vmatprep.subr.mxu0 %v14139_v46 }
 0x81f   : > { %8575 = vmatpush2.msra.mxu0 %v14125_v62 }
 0x820   : > { %v7380_v38 = vpop.permute.xlu1 %7379  ;;  %v7288_v24 = vpop.permute.xlu0 %7287 }
 0x821   : > { %v14144_v3 = vsel %vm7401_vm15, %v7378_v30, %v7380_v38  ;;  %v14148_v20 = vsel %vm7401_vm15, %v7380_v38, %v13926_v55  ;;  %v14151_v42 = vsel %vm7311_vm0, %v7286_v16, %v7288_v24 }
 0x822   : > { %8576 = vmatprep.subr.mxu0 %v14151_v42  ;;  %8651 = vmatprep.subr.mxu1 %v14148_v20 }
 0x823   : > { %8577 = vmatpush2.msra.mxu0 %v14136_v44  ;;  %8652 = vmatpush2.msra.mxu1 %v14144_v3 }
 0x824   : > { %v6420_v55 = vpop.permute.xlu1 %6419  ;;  %v7290_v16 = vpop.permute.xlu0 %7289  ;;  %8666 = vmatprep.subr.mxu0 %v13964_v25  ;;  %8579 = vmatmul.mubr.f32.vlgmr.msra.gmra.mxu0 %v14156_v59 }
 0x825   : > { %v6449_v30 = vsel %vm408_vm1, %v13738_v35, %v6420_v55  ;;  %v14172_v45 = vsel %vm7311_vm0, %v7288_v24, %v7290_v16  ;;  %v14176_v38 = vsel %vm7311_vm0, %v7290_v16, %v13949_v15  ;;  %8667 = vmatpush1.msra.mxu0 %v13953_v48  ;;  %9519 = vmatprep.mubr.msk.f32.mxu0 %vm8507_vm2, %v14163_v39  ;;  %v8165_v16 = vld [vmem:[#allocation3 + $0x390] sm:$0xff] }
 0x826   : > { %v14183_v25 = vmax.f32 %v6337_v14, %v6449_v30  ;;  %8653 = vmatprep.subr.mxu1 %v14176_v38  ;;  %8668 = vmatprep.subr.mxu0 %v13990_v19  ;;  %v8116_v30 = vld [vmem:[#allocation3 + $0x1d8] sm:$0xff] }
 0x827   : > { %8654 = vmatpush2.msra.mxu1 %v14172_v45  ;;  %8669 = vmatpush1.msra.mxu0 %v13977_v51 }
 0x828   : > { %v6424_v35 = vpop.permute.xlu1 %6423  ;;  %6584 = vrot.lane.b32.xlu0 %v14183_v25, %s9718_s26  ;;  %v6422_v15 = vpop.permute.xlu0 %6421  ;;  %8670 = vmatprep.subr.mxu0 %v14022_v10  ;;  %v8211_v10 = vld [vmem:[#allocation3 + $0x530] sm:$0xff] }
 0x829   : > { %v6450_v48 = vsel %vm408_vm1, %v6420_v55, %v6422_v15  ;;  %v6451_v31 = vsel %vm408_vm1, %v6422_v15, %v6424_v35  ;;  %8743 = vmatprep.subr.mxu1 %v14008_v32  ;;  %8656 = vmatmul.mubr.f32.vlgmr.msra.gmra.mxu1 %v14156_v59  ;;  %v8149_v15 = vld [vmem:[#allocation3 + $0x300] sm:$0xff]  ;;  %vm9388_vm1 = vcmask 7168  }
 0x82a   : > { %v14198_v14 = vmax.f32 %v6338_v0, %v6450_v48  ;;  %v14202_v51 = vmax.f32 %v6339_v5, %v6451_v31  ;;  %8671 = vmatpush1.msra.mxu0 %v14004_v36  ;;  %8744 = vmatpush1.msra.mxu1 %v13987_v63  ;;  %v14219_v5 = vmax.f32 %v6340_v56, %v6424_v35  ;;  %v8100_v48 = vld [vmem:[#allocation3 + $0x148] sm:$0xff] }
 0x82b   : > { %8672 = vmatprep.subr.mxu0 %v14054_v12  ;;  %8745 = vmatprep.subr.mxu1 %v14040_v4 }
 0x82c   : > { %v6579_v19 = vpop.permute.xlu1 %6578  ;;  %6588 = vrot.lane.b32.xlu0 %v14202_v51, %s9718_s26  ;;  %6586 = vrot.lane.b32.xlu1 %v14198_v14, %s9718_s26  ;;  %v6577_v33 = vpop.permute.xlu0 %6576 }
 0x82d   : > { %v6611_v0 = vsel %vm773_vm4, %v13873_v27, %v6577_v33  ;;  %v6612_v61 = vsel %vm773_vm4, %v6577_v33, %v6579_v19  ;;  %8673 = vmatpush1.msra.mxu0 %v14036_v41  ;;  %8746 = vmatpush1.msra.mxu1 %v14019_v9  ;;  %v8212_v9 = vld [vmem:[#allocation3 + $0x538] sm:$0xff] }
 0x82e   : > { %v6666_v63 = vmax.f32 %v13586_v53, %v6611_v0  ;;  %v6667_v36 = vmax.f32 %v13828_v18, %v6612_v61  ;;  %8674 = vmatprep.subr.mxu0 %v14078_v7  ;;  %8747 = vmatprep.subr.mxu1 %v14068_v29  ;;  %v8214_v29 = vld [vmem:[#allocation3 + $0x548] sm:$0xff]  ;;  %v8134_v33 = vld [vmem:[#allocation3 + $0x278] sm:$0xff]  ;;  %v8099_v0 = vld [vmem:[#allocation3 + $0x140] sm:$0xff] }
 0x82f   : > { %8675 = vmatpush1.msra.mxu0 %v14064_v47  ;;  %8748 = vmatpush1.msra.mxu1 %v14051_v17  ;;  %v8133_v61 = vld [vmem:[#allocation3 + $0x270] sm:$0xff] }
 0x830   : > { %v14228_v27 = vmax.f32 %v13864_v23, %v6666_v63  ;;  %v14231_v32 = vmax.f32 %v13882_v40, %v6667_v36  ;;  %v14233_v37 = vpop.permute.xlu1 %6582  ;;  %6590 = vrot.lane.b32.xlu1 %v14219_v5, %s9718_s26  ;;  %v6581_v53 = vpop.permute.xlu0 %6580  ;;  %8676 = vmatprep.subr.mxu0 %v14102_v52 }
 0x831   : > { %v6613_v56 = vsel %vm773_vm4, %v6579_v19, %v6581_v53  ;;  %v6614_v18 = vsel %vm773_vm4, %v6581_v53, %v14233_v37  ;;  %8749 = vmatprep.subr.mxu1 %v14092_v50  ;;  %8677 = vmatpush1.msra.mxu0 %v14088_v57  ;;  %v8213_v57 = vld [vmem:[#allocation3 + $0x540] sm:$0xff] }
 0x832   : > { %7468 = vst [vmem:[#allocation3 + $0x578] sm:$0xff] %v14228_v27  ;;  %7469 = vst [vmem:[#allocation3 + $0x580] sm:$0xff] %v14231_v32  ;;  %v14248_v23 = vmax.f32 %v13832_v2, %v6613_v56  ;;  %v14251_v40 = vmax.f32 %v13853_v54, %v6614_v18  ;;  %7399 = vrot.lane.b32.xlu0 %v14228_v27, %s9729_s22  ;;  %8750 = vmatpush1.msra.mxu1 %v14075_v8  ;;  %v8163_v50 = vld [vmem:[#allocation3 + $0x380] sm:$0xff]  ;;  %v8083_v18 = vld [vmem:[#allocation3 + $0xb0] sm:$0xff] }
 0x833   : > { %7766 = vst [vmem:[#allocation3 + $0xa68] sm:$0xff] %v14228_v27  ;;  %7767 = vst [vmem:[#allocation3 + $0xa70] sm:$0xff] %v14231_v32  ;;  %8678 = vmatprep.subr.mxu0 %v8212_v9  ;;  %8751 = vmatprep.subr.mxu1 %v14115_v49 }
 0x834   : > { %v14258_v41 = vmax.f32 %v6666_v63, %v14248_v23  ;;  %v14261_v4 = vmax.f32 %v6667_v36, %v14251_v40  ;;  %v7394_v2 = vpop.permute.xlu1 %7393  ;;  %7722 = vrot.lane.b32.xlu1 %v14231_v32, %s9729_s22  ;;  %v7392_v54 = vpop.permute.xlu0 %7391  ;;  %8679 = vmatpush1.msra.mxu0 %v8211_v10  ;;  %v8084_v63 = vld [vmem:[#allocation3 + $0xb8] sm:$0xff]  ;;  %v8118_v36 = vld [vmem:[#allocation3 + $0x1e8] sm:$0xff] }
 0x835   : > { %v14267_v17 = vsel %vm7401_vm15, %v13940_v13, %v7392_v54  ;;  %v14270_v12 = vsel %vm7401_vm15, %v7392_v54, %v7394_v2  ;;  %8752 = vmatpush1.msra.mxu1 %v14099_v6  ;;  %8680 = vmatprep.subr.mxu0 %v14139_v46  ;;  %v8068_v54 = vld [vmem:[#allocation3 + $0x28] sm:$0xff] }
 0x836   : > { %7470 = vst [vmem:[#allocation3 + $0x588] sm:$0xff] %v14258_v41  ;;  %7768 = vst [vmem:[#allocation3 + $0xa78] sm:$0xff] %v14258_v41  ;;  %7309 = vrot.lane.b32.xlu0 %v14228_v27, %s9730_s23  ;;  %8753 = vmatprep.subr.mxu1 %v14129_v34  ;;  %v8147_v34 = vld [vmem:[#allocation3 + $0x2f0] sm:$0xff] }
 0x837   : > { %7769 = vst [vmem:[#allocation3 + $0xa80] sm:$0xff] %v14261_v4  ;;  %7449 = vst [vmem:[#allocation3 + $0x4e0] sm:$0xff] %v14267_v17  ;;  %8681 = vmatpush1.msra.mxu0 %v14125_v62  ;;  %8754 = vmatpush1.msra.mxu1 %v14111_v43  ;;  %v8148_v43 = vld [vmem:[#allocation3 + $0x2f8] sm:$0xff] }
 0x838   : > { %7450 = vst [vmem:[#allocation3 + $0x4e8] sm:$0xff] %v14270_v12  ;;  %7747 = vst [vmem:[#allocation3 + $0x9d0] sm:$0xff] %v14267_v17  ;;  %v14286_v13 = vpop.permute.xlu1 %7303  ;;  %7687 = vrot.lane.b32.xlu1 %v14231_v32, %s9730_s23  ;;  %v7302_v47 = vpop.permute.xlu0 %7301  ;;  %8682 = vmatprep.subr.mxu0 %v14151_v42 }
 0x839   : > { %7748 = vst [vmem:[#allocation3 + $0x9d8] sm:$0xff] %v14270_v12  ;;  %v14293_v8 = vsel %vm7311_vm0, %v13972_v21, %v7302_v47  ;;  %v14297_v7 = vsel %vm7311_vm0, %v7302_v47, %v14286_v13  ;;  %8755 = vmatprep.subr.mxu1 %v8214_v29  ;;  %8683 = vmatpush1.msra.mxu0 %v14136_v44  ;;  %v8164_v21 = vld [vmem:[#allocation3 + $0x388] sm:$0xff]  ;;  %v8067_v47 = vld [vmem:[#allocation3 + $0x20] sm:$0xff] }
 0x83a   : > { %7359 = vst [vmem:[#allocation3 + $0x450] sm:$0xff] %v14293_v8  ;;  %7360 = vst [vmem:[#allocation3 + $0x458] sm:$0xff] %v14297_v7  ;;  %7724 = vrot.lane.b32.xlu0 %v14258_v41, %s9729_s22  ;;  %8756 = vmatpush1.msra.mxu1 %v8213_v57  ;;  %v8132_v44 = vld [vmem:[#allocation3 + $0x268] sm:$0xff] }
 0x83b   : > { %7712 = vst [vmem:[#allocation3 + $0x940] sm:$0xff] %v14293_v8  ;;  %7713 = vst [vmem:[#allocation3 + $0x948] sm:$0xff] %v14297_v7  ;;  %8684 = vmatprep.subr.mxu0 %v8164_v21  ;;  %8757 = vmatprep.subr.mxu1 %v14148_v20  ;;  %v8131_v20 = vld [vmem:[#allocation3 + $0x260] sm:$0xff]  ;;  %v8086_v57 = vld [vmem:[#allocation3 + $0xc8] sm:$0xff] }
 0x83c   : > { %v14307_v6 = vpop.permute.xlu1 %7397  ;;  %7726 = vrot.lane.b32.xlu1 %v14261_v4, %s9729_s22  ;;  %v7396_v52 = vpop.permute.xlu0 %7395  ;;  %8685 = vmatpush1.msra.mxu0 %v8163_v50 }
 0x83d   : > { %v14312_v49 = vsel %vm7401_vm15, %v7394_v2, %v7396_v52  ;;  %v14316_v62 = vsel %vm7401_vm15, %v7396_v52, %v14307_v6  ;;  %8758 = vmatpush1.msra.mxu1 %v14144_v3  ;;  %8686 = vmatprep.subr.mxu0 %v8148_v43  ;;  %v8166_v3 = vld [vmem:[#allocation3 + $0x398] sm:$0xff]  ;;  %v8117_v2 = vld [vmem:[#allocation3 + $0x1e0] sm:$0xff] }
 0x83e   : > { %7451 = vst [vmem:[#allocation3 + $0x4f0] sm:$0xff] %v14312_v49  ;;  %7452 = vst [vmem:[#allocation3 + $0x4f8] sm:$0xff] %v14316_v62  ;;  %7219 = vrot.lane.b32.xlu0 %v14228_v27, %s9726_s17  ;;  %8759 = vmatprep.subr.mxu1 %v14176_v38  ;;  %v8085_v43 = vld [vmem:[#allocation3 + $0xc0] sm:$0xff] }
 0x83f   : > { %7749 = vst [vmem:[#allocation3 + $0x9e0] sm:$0xff] %v14312_v49  ;;  %7750 = vst [vmem:[#allocation3 + $0x9e8] sm:$0xff] %v14316_v62  ;;  %8687 = vmatpush1.msra.mxu0 %v8147_v34  ;;  %8760 = vmatpush1.msra.mxu1 %v14172_v45  ;;  %v8150_v45 = vld [vmem:[#allocation3 + $0x308] sm:$0xff]  ;;  %v8070_v34 = vld [vmem:[#allocation3 + $0x38] sm:$0xff] }
 0x840   : > { %v14327_v46 = vpop.permute.xlu1 %7213  ;;  %7652 = vrot.lane.b32.xlu1 %v14231_v32, %s9726_s17  ;;  %v7212_v24 = vpop.permute.xlu0 %7211  ;;  %8688 = vmatprep.subr.mxu0 %v8132_v44  ;;  %v8069_v44 = vld [vmem:[#allocation3 + $0x30] sm:$0xff] }
 0x841   : > { %v14333_v42 = vsel %vm7221_vm12, %v13999_v26, %v7212_v24  ;;  %v14337_v55 = vsel %vm7221_vm12, %v7212_v24, %v14327_v46  ;;  %8761 = vmatprep.subr.mxu1 %v8166_v3  ;;  %8689 = vmatpush1.msra.mxu0 %v8131_v20  ;;  %v8115_v26 = vld [vmem:[#allocation3 + $0x1d0] sm:$0xff] }
 0x842   : > { %7269 = vst [vmem:[#allocation3 + $0x3c0] sm:$0xff] %v14333_v42  ;;  %7270 = vst [vmem:[#allocation3 + $0x3c8] sm:$0xff] %v14337_v55  ;;  %7689 = vrot.lane.b32.xlu0 %v14258_v41, %s9730_s23  ;;  %8762 = vmatpush1.msra.mxu1 %v8165_v16 }
 0x843   : > { %8690 = vmatprep.subr.mxu0 %v8116_v30  ;;  %8763 = vmatprep.subr.mxu1 %v8150_v45 }
 0x844   : > { %v14343_v38 = vpop.permute.xlu1 %7307  ;;  %7691 = vrot.lane.b32.xlu1 %v14261_v4, %s9730_s23  ;;  %v7306_v35 = vpop.permute.xlu0 %7305  ;;  %8691 = vmatpush1.msra.mxu0 %v8115_v26 }
 0x845   : > { %v14349_v31 = vsel %vm7311_vm0, %v14286_v13, %v7306_v35  ;;  %v14353_v19 = vsel %vm7311_vm0, %v7306_v35, %v14343_v38  ;;  %8764 = vmatpush1.msra.mxu1 %v8149_v15  ;;  %8692 = vmatprep.subr.mxu0 %v8100_v48  ;;  %v8102_v13 = vld [vmem:[#allocation3 + $0x158] sm:$0xff]  ;;  %v14474_v15 = vld [vmem:[%s15205_s3 + $0x8] sm:$0xff] }
 0x846   : > { %7361 = vst [vmem:[#allocation3 + $0x460] sm:$0xff] %v14349_v31  ;;  %7362 = vst [vmem:[#allocation3 + $0x468] sm:$0xff] %v14353_v19  ;;  %8765 = vmatprep.subr.mxu1 %v8134_v33  ;;  %7129 = vrot.lane.b32.xlu0 %v14228_v27, %s9727_s20 }
 0x847   : > { %7714 = vst [vmem:[#allocation3 + $0x950] sm:$0xff] %v14349_v31  ;;  %7715 = vst [vmem:[#allocation3 + $0x958] sm:$0xff] %v14353_v19  ;;  %8693 = vmatpush1.msra.mxu0 %v8099_v0  ;;  %8766 = vmatpush1.msra.mxu1 %v8133_v61 }
 0x848   : > { %v7124_v53 = vpop.permute.xlu1 %7123  ;;  %8694 = vmatprep.subr.mxu0 %v8084_v63  ;;  %8767 = vmatprep.subr.mxu1 %v8118_v36  ;;  %v7122_v56 = vpop.permute.xlu0 %7121 }
 0x849   : > { %7617 = vrot.lane.b32.xlu1 %v14231_v32, %s9727_s20  ;;  %v14365_v9 = vsel %vm7131_vm13, %v14031_v1, %v7122_v56  ;;  %v14368_v10 = vsel %vm7131_vm13, %v7122_v56, %v7124_v53  ;;  %8695 = vmatpush1.msra.mxu0 %v8083_v18  ;;  %v8101_v1 = vld [vmem:[#allocation3 + $0x150] sm:$0xff] }
 0x84a   : > { %7179 = vst [vmem:[#allocation3 + $0x330] sm:$0xff] %v14365_v9  ;;  %7180 = vst [vmem:[#allocation3 + $0x338] sm:$0xff] %v14368_v10  ;;  %8768 = vmatpush1.msra.mxu1 %v8117_v2  ;;  %8696 = vmatprep.subr.mxu0 %v8068_v54  ;;  %v8355_v54 = vld [vmem:[#allocation3 + $0xa40] sm:$0xff] }
 0x84b   : > { %8769 = vmatprep.subr.mxu1 %v8102_v13  ;;  %7654 = vrot.lane.b32.xlu0 %v14258_v41, %s9726_s17 }
 0x84c   : > { %8697 = vmatpush1.msra.mxu0 %v8067_v47  ;;  %8770 = vmatpush1.msra.mxu1 %v8101_v1  ;;  %v14374_v29 = vpop.permute.xlu1 %7217  ;;  %v7216_v21 = vpop.permute.xlu0 %7215  ;;  %v8339_v1 = vld [vmem:[#allocation3 + $0x9b0] sm:$0xff] }
 0x84d   : > { %8771 = vmatprep.subr.mxu1 %v8086_v57  ;;  %7656 = vrot.lane.b32.xlu1 %v14261_v4, %s9726_s17  ;;  %v14380_v50 = vsel %vm7221_vm12, %v14327_v46, %v7216_v21  ;;  %v14384_v52 = vsel %vm7221_vm12, %v7216_v21, %v14374_v29 }
 0x84e   : > { %8708 = vmatprep.subr.mxu0 %v14270_v12  ;;  %7271 = vst [vmem:[#allocation3 + $0x3d0] sm:$0xff] %v14380_v50  ;;  %7272 = vst [vmem:[#allocation3 + $0x3d8] sm:$0xff] %v14384_v52  ;;  %8772 = vmatpush1.msra.mxu1 %v8085_v43  ;;  %v8324_v43 = vld [vmem:[#allocation3 + $0x928] sm:$0xff] }
 0x84f   : > { %8709 = vmatpush2.msra.mxu0 %v14267_v17  ;;  %8773 = vmatprep.subr.mxu1 %v8070_v34 }
 0x850   : > { %7040 = vrot.lane.b32.xlu0 %v14228_v27, %s9723_s6  ;;  %8710 = vmatprep.subr.mxu0 %v14297_v7  ;;  %v7035_v46 = vpop.permute.xlu1 %7034  ;;  %v7033_v24 = vpop.permute.xlu0 %7032 }
 0x851   : > { %8711 = vmatpush2.msra.mxu0 %v14293_v8  ;;  %8774 = vmatpush1.msra.mxu1 %v8069_v44  ;;  %v14396_v12 = vsel %vm1683_vm9, %v14060_v58, %v7033_v24  ;;  %v14399_v3 = vsel %vm1683_vm9, %v7033_v24, %v7035_v46  ;;  %v8357_v24 = vld [vmem:[#allocation3 + $0xa50] sm:$0xff] }
 0x852   : > { %7582 = vrot.lane.b32.xlu1 %v14231_v32, %s9723_s6  ;;  %8712 = vmatprep.subr.mxu0 %v14337_v55  ;;  %7089 = vst [vmem:[#allocation3 + $0x2a0] sm:$0xff] %v14396_v12  ;;  %7090 = vst [vmem:[#allocation3 + $0x2a8] sm:$0xff] %v14399_v3 }
 0x853   : > { %8785 = vmatprep.subr.mxu1 %v14316_v62  ;;  %8713 = vmatpush2.msra.mxu0 %v14333_v42 }
 0x854   : > { %8786 = vmatpush2.msra.mxu1 %v14312_v49  ;;  %7619 = vrot.lane.b32.xlu0 %v14258_v41, %s9727_s20  ;;  %v14411_v58 = vpop.permute.xlu1 %7127  ;;  %v7126_v17 = vpop.permute.xlu0 %7125 }
 0x855   : > { %8714 = vmatprep.subr.mxu0 %v14368_v10  ;;  %8787 = vmatprep.subr.mxu1 %v14353_v19  ;;  %v14416_v8 = vsel %vm7131_vm13, %v7124_v53, %v7126_v17  ;;  %v14420_v7 = vsel %vm7131_vm13, %v7126_v17, %v14411_v58  ;;  %v8342_v17 = vld [vmem:[#allocation3 + $0x9c8] sm:$0xff] }
 0x856   : > { %8715 = vmatpush2.msra.mxu0 %v14365_v9  ;;  %8788 = vmatpush2.msra.mxu1 %v14349_v31  ;;  %7181 = vst [vmem:[#allocation3 + $0x340] sm:$0xff] %v14416_v8  ;;  %7182 = vst [vmem:[#allocation3 + $0x348] sm:$0xff] %v14420_v7 }
 0x857   : > { %7621 = vrot.lane.b32.xlu1 %v14261_v4, %s9727_s20  ;;  %8789 = vmatprep.subr.mxu1 %v14384_v52 }
 0x858   : > { %6951 = vrot.lane.b32.xlu0 %v14228_v27, %s9721_s29  ;;  %8790 = vmatpush2.msra.mxu1 %v14380_v50  ;;  %v6946_v49 = vpop.permute.xlu1 %6945  ;;  %v6944_v62 = vpop.permute.xlu0 %6943 }
 0x859   : > { %v14434_v20 = vsel %vm1319_vm7, %v14084_v22, %v6944_v62  ;;  %v14437_v16 = vsel %vm1319_vm7, %v6944_v62, %v6946_v49  ;;  %8716 = vmatprep.subr.mxu0 %v14399_v3  ;;  %8791 = vmatprep.subr.mxu1 %v14420_v7  ;;  %v14448_v22 = vld [vmem:[%s15205_s3 + $0x10] sm:$0xff] }
 0x85a   : > { %7000 = vst [vmem:[#allocation3 + $0x210] sm:$0xff] %v14434_v20  ;;  %7001 = vst [vmem:[#allocation3 + $0x218] sm:$0xff] %v14437_v16  ;;  %8717 = vmatpush2.msra.mxu0 %v14396_v12  ;;  %8792 = vmatpush2.msra.mxu1 %v14416_v8  ;;  %v8151_v62 = vld [vmem:[#allocation3 + $0x310] sm:$0xff] }
 0x85b   : > { %7547 = vrot.lane.b32.xlu1 %v14231_v32, %s9721_s29  ;;  %8718 = vmatprep.subr.mxu0 %v14437_v16 }
 0x85c   : > { %7584 = vrot.lane.b32.xlu0 %v14258_v41, %s9723_s6  ;;  %v14455_v30 = vpop.permute.xlu1 %7038  ;;  %v7037_v45 = vpop.permute.xlu0 %7036  ;;  %8719 = vmatpush2.msra.mxu0 %v14434_v20 }
 0x85d   : > { %v14459_v26 = vsel %vm1683_vm9, %v7035_v46, %v7037_v45  ;;  %v14463_v35 = vsel %vm1683_vm9, %v7037_v45, %v14455_v30  ;;  %8585 = vmatmul.mubr.f32.gmra.mxu0 %v14448_v22  ;;  %9521 = vmatprep.mubr.msk.f32.mxu1 %vm8507_vm2, %v14163_v39  ;;  %v8323_v46 = vld [vmem:[#allocation3 + $0x920] sm:$0xff]  ;;  %v8202_v45 = vld [vmem:[#allocation3 + $0x4d8] sm:$0xff] }
 0x85e   : > { %7091 = vst [vmem:[#allocation3 + $0x2b0] sm:$0xff] %v14459_v26  ;;  %7092 = vst [vmem:[#allocation3 + $0x2b8] sm:$0xff] %v14463_v35  ;;  %8793 = vmatprep.subr.mxu1 %v14463_v35  ;;  %9522 = vmatprep.mubr.msk.f32.mxu0 %vm8507_vm2, %v14474_v15 }
 0x85f   : > { %7586 = vrot.lane.b32.xlu1 %v14261_v4, %s9723_s6  ;;  %8794 = vmatpush2.msra.mxu1 %v14459_v26 }
 0x860   : > { %6861 = vrot.lane.b32.xlu0 %v14228_v27, %s9728_s21  ;;  %v6856_v48 = vpop.permute.xlu1 %6855  ;;  %v6854_v31 = vpop.permute.xlu0 %6853  ;;  %8661 = vmatmul.mubr.f32.gmra.mxu1 %v14448_v22 }
 0x861   : > { %v14486_v19 = vsel %vm6863_vm14, %v14108_v60, %v6854_v31  ;;  %v14489_v33 = vsel %vm6863_vm14, %v6854_v31, %v6856_v48  ;;  %9524 = vmatprep.mubr.msk.f32.mxu1 %vm8507_vm2, %v14474_v15  ;;  %v8186_v31 = vld [vmem:[#allocation3 + $0x448] sm:$0xff] }
 0x862   : > { %6911 = vst [vmem:[#allocation3 + $0x180] sm:$0xff] %v14486_v19  ;;  %6912 = vst [vmem:[#allocation3 + $0x188] sm:$0xff] %v14489_v33  ;;  %8720 = vmatprep.subr.mxu0 %v14489_v33 }
 0x863   : > { %7512 = vrot.lane.b32.xlu1 %v14231_v32, %s9728_s21  ;;  %8721 = vmatpush2.msra.mxu0 %v14486_v19 }
 0x864   : > { %7549 = vrot.lane.b32.xlu0 %v14258_v41, %s9721_s29  ;;  %v14501_v60 = vpop.permute.xlu1 %6949  ;;  %v6948_v0 = vpop.permute.xlu0 %6947 }
 0x865   : > { %v14504_v61 = vsel %vm1319_vm7, %v6946_v49, %v6948_v0  ;;  %v14508_v63 = vsel %vm1319_vm7, %v6948_v0, %v14501_v60  ;;  %v8341_v49 = vld [vmem:[#allocation3 + $0x9c0] sm:$0xff]  ;;  %v8104_v0 = vld [vmem:[#allocation3 + $0x168] sm:$0xff] }
 0x866   : > { %7002 = vst [vmem:[#allocation3 + $0x220] sm:$0xff] %v14504_v61  ;;  %7003 = vst [vmem:[#allocation3 + $0x228] sm:$0xff] %v14508_v63  ;;  %8795 = vmatprep.subr.mxu1 %v14508_v63 }
 0x867   : > { %7551 = vrot.lane.b32.xlu1 %v14261_v4, %s9721_s29  ;;  %8796 = vmatpush2.msra.mxu1 %v14504_v61 }
 0x868   : > { %6772 = vrot.lane.b32.xlu0 %v14228_v27, %s9717_s25  ;;  %v6767_v36 = vpop.permute.xlu1 %6766  ;;  %v6765_v53 = vpop.permute.xlu0 %6764  ;;  %v8356_v27 = vld [vmem:[#allocation3 + $0xa48] sm:$0xff] }
 0x869   : > { %v14520_v56 = vsel %vm591_vm3, %v14121_v28, %v6765_v53  ;;  %v14523_v18 = vsel %vm591_vm3, %v6765_v53, %v6767_v36  ;;  %v8088_v53 = vld [vmem:[#allocation3 + $0xd8] sm:$0xff] }
 0x86a   : > { %6821 = vst [vmem:[#allocation3 + $0xf0] sm:$0xff] %v14520_v56  ;;  %6822 = vst [vmem:[#allocation3 + $0xf8] sm:$0xff] %v14523_v18  ;;  %8722 = vmatprep.subr.mxu0 %v14523_v18 }
 0x86b   : > { %7477 = vrot.lane.b32.xlu1 %v14231_v32, %s9717_s25  ;;  %8723 = vmatpush2.msra.mxu0 %v14520_v56  ;;  %v8340_v32 = vld [vmem:[#allocation3 + $0x9b8] sm:$0xff] }
 0x86c   : > { %7514 = vrot.lane.b32.xlu0 %v14258_v41, %s9728_s21  ;;  %v14533_v28 = vpop.permute.xlu1 %6859  ;;  %v6858_v2 = vpop.permute.xlu0 %6857  ;;  %8724 = vmatprep.subr.mxu0 %v8356_v27  ;;  %v8153_v27 = vld [vmem:[#allocation3 + $0x320] sm:$0xff] }
 0x86d   : > { %v14536_v13 = vsel %vm6863_vm14, %v6856_v48, %v6858_v2  ;;  %v14540_v47 = vsel %vm6863_vm14, %v6858_v2, %v14533_v28  ;;  %8725 = vmatpush2.msra.mxu0 %v8355_v54  ;;  %v8120_v48 = vld [vmem:[#allocation3 + $0x1f8] sm:$0xff]  ;;  %v8072_v2 = vld [vmem:[#allocation3 + $0x48] sm:$0xff] }
 0x86e   : > { %6913 = vst [vmem:[#allocation3 + $0x190] sm:$0xff] %v14536_v13  ;;  %6914 = vst [vmem:[#allocation3 + $0x198] sm:$0xff] %v14540_v47  ;;  %8726 = vmatprep.subr.mxu0 %v8340_v32  ;;  %8797 = vmatprep.subr.mxu1 %v14540_v47  ;;  %v8138_v54 = vld [vmem:[#allocation3 + $0x298] sm:$0xff]  ;;  %v8122_v32 = vld [vmem:[#allocation3 + $0x208] sm:$0xff] }
 0x86f   : > { %7516 = vrot.lane.b32.xlu1 %v14261_v4, %s9728_s21  ;;  %8727 = vmatpush2.msra.mxu0 %v8339_v1  ;;  %v8121_v1 = vld [vmem:[#allocation3 + $0x200] sm:$0xff] }
 0x870   : > { %7479 = vrot.lane.b32.xlu0 %v14258_v41, %s9717_s25  ;;  %v14549_v57 = vpop.permute.xlu1 %6770  ;;  %v6769_v21 = vpop.permute.xlu0 %6768  ;;  %8798 = vmatpush2.msra.mxu1 %v14536_v13  ;;  %v8358_v41 = vld [vmem:[#allocation3 + $0xa58] sm:$0xff] }
 0x871   : > { %v6788_v34 = vsel %vm591_vm3, %v6767_v36, %v6769_v21  ;;  %v6789_v44 = vsel %vm591_vm3, %v6769_v21, %v14549_v57  ;;  %8728 = vmatprep.subr.mxu0 %v8324_v43  ;;  %v8169_v36 = vld [vmem:[#allocation3 + $0x3b0] sm:$0xff]  ;;  %v8106_v21 = vld [vmem:[#allocation3 + $0x178] sm:$0xff] }
 0x872   : > { %6823 = vst [vmem:[#allocation3 + $0x100] sm:$0xff] %v6788_v34  ;;  %6824 = vst [vmem:[#allocation3 + $0x108] sm:$0xff] %v6789_v44  ;;  %8729 = vmatpush2.msra.mxu0 %v8323_v46  ;;  %8799 = vmatprep.subr.mxu1 %v6789_v44  ;;  %v8105_v43 = vld [vmem:[#allocation3 + $0x170] sm:$0xff]  ;;  %v8074_v46 = vld [vmem:[#allocation3 + $0x58] sm:$0xff] }
 0x873   : > { %7481 = vrot.lane.b32.xlu1 %v14261_v4, %s9717_s25  ;;  %8818 = vmatprep.subr.mxu0 %v14337_v55  ;;  %v8326_v4 = vld [vmem:[#allocation3 + $0x938] sm:$0xff]  ;;  %v8325_v55 = vld [vmem:[#allocation3 + $0x930] sm:$0xff] }
 0x874   : > { %8731 = vmatmul.mubr.f32.vlgmr.msra.gmra.mxu0 %v14156_v59  ;;  %8800 = vmatpush2.msra.mxu1 %v6788_v34 }
 0x875   : > { %8819 = vmatpush1.msra.mxu0 %v14333_v42  ;;  %8801 = vmatprep.subr.mxu1 %v8358_v41  ;;  %v8216_v42 = vld [vmem:[#allocation3 + $0x558] sm:$0xff] }
 0x876   : > { %8820 = vmatprep.subr.mxu0 %v14368_v10  ;;  %8802 = vmatpush2.msra.mxu1 %v8357_v24  ;;  %v8199_v10 = vld [vmem:[#allocation3 + $0x4c0] sm:$0xff]  ;;  %v8073_v24 = vld [vmem:[#allocation3 + $0x50] sm:$0xff] }
 0x877   : > { %8821 = vmatpush1.msra.mxu0 %v14365_v9  ;;  %8803 = vmatprep.subr.mxu1 %v8342_v17  ;;  %v8215_v9 = vld [vmem:[#allocation3 + $0x550] sm:$0xff] }
 0x878   : > { %8822 = vmatprep.subr.mxu0 %v14399_v3  ;;  %8804 = vmatpush2.msra.mxu1 %v8341_v49  ;;  %v8167_v3 = vld [vmem:[#allocation3 + $0x3a0] sm:$0xff] }
 0x879   : > { %8823 = vmatpush1.msra.mxu0 %v14396_v12  ;;  %8805 = vmatprep.subr.mxu1 %v8326_v4  ;;  %v8168_v12 = vld [vmem:[#allocation3 + $0x3a8] sm:$0xff] }
 0x87a   : > { %8824 = vmatprep.subr.mxu0 %v14437_v16  ;;  %8806 = vmatpush2.msra.mxu1 %v8325_v55  ;;  %v8136_v16 = vld [vmem:[#allocation3 + $0x288] sm:$0xff] }
 0x87b   : > { %8825 = vmatpush1.msra.mxu0 %v14434_v20  ;;  %8895 = vmatprep.subr.mxu1 %v14384_v52  ;;  %v8183_v52 = vld [vmem:[#allocation3 + $0x430] sm:$0xff]  ;;  %v8217_v20 = vld [vmem:[#allocation3 + $0x560] sm:$0xff] }
 0x87c   : > { %8826 = vmatprep.subr.mxu0 %v14489_v33  ;;  %8808 = vmatmul.mubr.f32.vlgmr.msra.gmra.mxu1 %v14156_v59  ;;  %v8200_v59 = vld [vmem:[#allocation3 + $0x4c8] sm:$0xff]  ;;  %v8185_v33 = vld [vmem:[#allocation3 + $0x440] sm:$0xff] }
 0x87d   : > { %8827 = vmatpush1.msra.mxu0 %v14486_v19  ;;  %8896 = vmatpush1.msra.mxu1 %v14380_v50  ;;  %v8184_v50 = vld [vmem:[#allocation3 + $0x438] sm:$0xff]  ;;  %v8119_v19 = vld [vmem:[#allocation3 + $0x1f0] sm:$0xff] }
 0x87e   : > { %8828 = vmatprep.subr.mxu0 %v14523_v18  ;;  %8897 = vmatprep.subr.mxu1 %v14420_v7  ;;  %v8218_v7 = vld [vmem:[#allocation3 + $0x568] sm:$0xff]  ;;  %v8087_v18 = vld [vmem:[#allocation3 + $0xd0] sm:$0xff] }
 0x87f   : > { %8829 = vmatpush1.msra.mxu0 %v14520_v56  ;;  %8898 = vmatpush1.msra.mxu1 %v14416_v8  ;;  %v8152_v8 = vld [vmem:[#allocation3 + $0x318] sm:$0xff]  ;;  %v8154_v56 = vld [vmem:[#allocation3 + $0x328] sm:$0xff] }
 0x880   : > { %8830 = vmatprep.subr.mxu0 %v8216_v42  ;;  %8899 = vmatprep.subr.mxu1 %v14463_v35  ;;  %v8201_v35 = vld [vmem:[#allocation3 + $0x4d0] sm:$0xff] }
 0x881   : > { %8831 = vmatpush1.msra.mxu0 %v8215_v9  ;;  %8900 = vmatpush1.msra.mxu1 %v14459_v26  ;;  %v8135_v26 = vld [vmem:[#allocation3 + $0x280] sm:$0xff] }
 0x882   : > { %8832 = vmatprep.subr.mxu0 %v8200_v59  ;;  %8901 = vmatprep.subr.mxu1 %v14508_v63  ;;  %v8103_v63 = vld [vmem:[#allocation3 + $0x160] sm:$0xff] }
 0x883   : > { %8833 = vmatpush1.msra.mxu0 %v8199_v10  ;;  %8902 = vmatpush1.msra.mxu1 %v14504_v61  ;;  %v8170_v61 = vld [vmem:[#allocation3 + $0x3b8] sm:$0xff] }
 0x884   : > { %8834 = vmatprep.subr.mxu0 %v8184_v50  ;;  %8903 = vmatprep.subr.mxu1 %v14540_v47  ;;  %v8137_v47 = vld [vmem:[#allocation3 + $0x290] sm:$0xff] }
 0x885   : > { %8835 = vmatpush1.msra.mxu0 %v8183_v52  ;;  %8904 = vmatpush1.msra.mxu1 %v14536_v13  ;;  %v8071_v13 = vld [vmem:[#allocation3 + $0x40] sm:$0xff] }
 0x886   : > { %8836 = vmatprep.subr.mxu0 %v8168_v12  ;;  %8905 = vmatprep.subr.mxu1 %v6789_v44  ;;  %v8089_v44 = vld [vmem:[#allocation3 + $0xe0] sm:$0xff] }
 0x887   : > { %8837 = vmatpush1.msra.mxu0 %v8167_v3  ;;  %8906 = vmatpush1.msra.mxu1 %v6788_v34  ;;  %v8090_v34 = vld [vmem:[#allocation3 + $0xe8] sm:$0xff] }
 0x888   : > { %8838 = vmatprep.subr.mxu0 %v8152_v8  ;;  %8907 = vmatprep.subr.mxu1 %v8218_v7 }
 0x889   : > { %8839 = vmatpush1.msra.mxu0 %v8151_v62  ;;  %8908 = vmatpush1.msra.mxu1 %v8217_v20 }
 0x88a   : > { %8840 = vmatprep.subr.mxu0 %v8136_v16  ;;  %8909 = vmatprep.subr.mxu1 %v8202_v45 }
 0x88b   : > { %8841 = vmatpush1.msra.mxu0 %v8135_v26  ;;  %8910 = vmatpush1.msra.mxu1 %v8201_v35 }
 0x88c   : > { %8842 = vmatprep.subr.mxu0 %v8120_v48  ;;  %8911 = vmatprep.subr.mxu1 %v8186_v31 }
 0x88d   : > { %8843 = vmatpush1.msra.mxu0 %v8119_v19  ;;  %8912 = vmatpush1.msra.mxu1 %v8185_v33 }
 0x88e   : > { %8844 = vmatprep.subr.mxu0 %v8104_v0  ;;  %8913 = vmatprep.subr.mxu1 %v8170_v61 }
 0x88f   : > { %8845 = vmatpush1.msra.mxu0 %v8103_v63  ;;  %8914 = vmatpush1.msra.mxu1 %v8169_v36 }
 0x890   : > { %8846 = vmatprep.subr.mxu0 %v8088_v53  ;;  %8915 = vmatprep.subr.mxu1 %v8154_v56 }
 0x891   : > { %8847 = vmatpush1.msra.mxu0 %v8087_v18  ;;  %8916 = vmatpush1.msra.mxu1 %v8153_v27 }
 0x892   : > { %8848 = vmatprep.subr.mxu0 %v8072_v2  ;;  %8917 = vmatprep.subr.mxu1 %v8138_v54 }
 0x893   : > { %8849 = vmatpush1.msra.mxu0 %v8071_v13  ;;  %8918 = vmatpush1.msra.mxu1 %v8137_v47 }
 0x894   : > { %8919 = vmatprep.subr.mxu1 %v8122_v32  ;;  %9523 = vmatprep.mubr.msk.f32.mxu0 %vm8507_vm2, %v14163_v39 }
 0x895   : > { %8920 = vmatpush1.msra.mxu1 %v8121_v1  ;;  %8737 = vmatmul.mubr.f32.gmra.mxu0 %v14448_v22 }
 0x896   : > { %8921 = vmatprep.subr.mxu1 %v8106_v21  ;;  %9525 = vmatprep.mubr.msk.f32.mxu1 %vm8507_vm2, %v14163_v39 }
 0x897   : > { %8922 = vmatpush1.msra.mxu1 %v8105_v43  ;;  %9526 = vmatprep.mubr.msk.f32.mxu0 %vm8507_vm2, %v14474_v15 }
 0x898   : > { %8923 = vmatprep.subr.mxu1 %v8090_v34  ;;  %8813 = vmatmul.mubr.f32.gmra.mxu1 %v14448_v22 }
 0x899   : > { %8924 = vmatpush1.msra.mxu1 %v8089_v44  ;;  %9528 = vmatprep.mubr.msk.f32.mxu1 %vm8507_vm2, %v14474_v15 }
 0x89a   : > { %v6585_v41 = vpop.permute.xlu0 %6584  ;;  %8925 = vmatprep.subr.mxu1 %v8074_v46 }
 0x89b   : > { %v6615_v39 = vsel %vm773_vm4, %v14233_v37, %v6585_v41  ;;  %8926 = vmatpush1.msra.mxu1 %v8073_v24 }
 0x89c   : > { %v6670_v17 = vmax.f32 %v13857_v11, %v6615_v39 }
 0x89e   : > { %v14595_v49 = vmax.f32 %v14248_v23, %v6670_v17  ;;  %v6587_v4 = vpop.permute.xlu1 %6586  ;;  %v6589_v55 = vpop.permute.xlu0 %6588 }
 0x89f   : > { %v6616_v22 = vsel %vm773_vm4, %v6585_v41, %v6587_v4  ;;  %v6617_v42 = vsel %vm773_vm4, %v6587_v4, %v6589_v55 }
 0x8a0   : > { %7770 = vst [vmem:[#allocation3 + $0xa88] sm:$0xff] %v14595_v49  ;;  %v6671_v15 = vmax.f32 %v14183_v25, %v6616_v22  ;;  %v6672_v9 = vmax.f32 %v14198_v14, %v6617_v42  ;;  %7728 = vrot.lane.b32.xlu0 %v14595_v49, %s9729_s22 }
 0x8a2   : > { %v14605_v11 = vmax.f32 %v14251_v40, %v6671_v15  ;;  %v14607_v37 = vmax.f32 %v6670_v17, %v6672_v9  ;;  %v6591_v23 = vpop.permute.xlu1 %6590 }
 0x8a3   : > { %v6618_v59 = vsel %vm773_vm4, %v6589_v55, %v6591_v23  ;;  %v6674_v10 = vmax.f32 %v14219_v5, %v6591_v23  ;;  %vm9394_vm4 = vcmask 23552  }
 0x8a4   : > { %7771 = vst [vmem:[#allocation3 + $0xa90] sm:$0xff] %v14605_v11  ;;  %7772 = vst [vmem:[#allocation3 + $0xa98] sm:$0xff] %v14607_v37  ;;  %v6673_v25 = vmax.f32 %v14202_v51, %v6618_v59  ;;  %8024 = vrot.lane.b32.xlu1 %v14605_v11, %s9729_s22  ;;  %7693 = vrot.lane.b32.xlu0 %v14595_v49, %s9730_s23  ;;  %v7400_v14 = vpop.permute.xlu0 %7399 }
 0x8a5   : > { %v14618_v40 = vmax.f32 %v6672_v9, %v6674_v10  ;;  %v7418_v50 = vsel %vm7401_vm15, %v14307_v6, %v7400_v14 }
 0x8a6   : > { %v14622_v52 = vmax.f32 %v6671_v15, %v6673_v25  ;;  %7751 = vst [vmem:[#allocation3 + $0x9f0] sm:$0xff] %v7418_v50  ;;  %v7723_v5 = vpop.permute.xlu1 %7722 }
 0x8a7   : > { %v7730_v12 = vsel %vm7401_vm15, %v7400_v14, %v7723_v5 }
 0x8a8   : > { %7752 = vst [vmem:[#allocation3 + $0x9f8] sm:$0xff] %v7730_v12  ;;  %7989 = vrot.lane.b32.xlu1 %v14605_v11, %s9730_s23  ;;  %8026 = vrot.lane.b32.xlu0 %v14607_v37, %s9729_s22  ;;  %v7310_v51 = vpop.permute.xlu0 %7309 }
 0x8a9   : > { %v7328_v3 = vsel %vm7311_vm0, %v14343_v38, %v7310_v51  ;;  %8860 = vmatprep.subr.mxu0 %v7730_v12 }
 0x8aa   : > { %7716 = vst [vmem:[#allocation3 + $0x960] sm:$0xff] %v7328_v3  ;;  %v7688_v6 = vpop.permute.xlu1 %7687  ;;  %8861 = vmatpush2.msra.mxu0 %v7418_v50  ;;  %v8359_v50 = vld [vmem:[#allocation3 + $0xa60] sm:$0xff] }
 0x8ab   : > { %v7695_v8 = vsel %vm7311_vm0, %v7310_v51, %v7688_v6  ;;  %v8343_v51 = vld [vmem:[#allocation3 + $0x9d0] sm:$0xff] }
 0x8ac   : > { %7717 = vst [vmem:[#allocation3 + $0x968] sm:$0xff] %v7695_v8  ;;  %8028 = vrot.lane.b32.xlu1 %v14622_v52, %s9729_s22  ;;  %7658 = vrot.lane.b32.xlu0 %v14595_v49, %s9726_s17  ;;  %v7725_v7 = vpop.permute.xlu0 %7724 }
 0x8ad   : > { %v7731_v62 = vsel %vm7401_vm15, %v7723_v5, %v7725_v7  ;;  %8862 = vmatprep.subr.mxu0 %v7695_v8  ;;  %v8496_v5 = vld [vmem:[%s15206_s4 + $0x8] sm:$0xff] }
 0x8ae   : > { %7753 = vst [vmem:[#allocation3 + $0xa00] sm:$0xff] %v7731_v62  ;;  %v14637_v20 = vpop.permute.xlu1 %7726  ;;  %8863 = vmatpush2.msra.mxu0 %v7328_v3 }
 0x8af   : > { %v7732_v38 = vsel %vm7401_vm15, %v7725_v7, %v14637_v20  ;;  %v8327_v7 = vld [vmem:[#allocation3 + $0x940] sm:$0xff] }
 0x8b0   : > { %7754 = vst [vmem:[#allocation3 + $0xa08] sm:$0xff] %v7732_v38  ;;  %7954 = vrot.lane.b32.xlu1 %v14605_v11, %s9726_s17  ;;  %7991 = vrot.lane.b32.xlu0 %v14607_v37, %s9730_s23  ;;  %v7220_v16 = vpop.permute.xlu0 %7219 }
 0x8b1   : > { %v14647_v45 = vsel %vm7221_vm12, %v14374_v29, %v7220_v16  ;;  %8937 = vmatprep.subr.mxu1 %v7732_v38  ;;  %v8362_v38 = vld [vmem:[#allocation3 + $0xa78] sm:$0xff] }
 0x8b2   : > { %v7653_v26 = vpop.permute.xlu1 %7652  ;;  %8938 = vmatpush2.msra.mxu1 %v7731_v62  ;;  %v14818_v62 = vld [vmem:[%s15205_s3] sm:$0xff] }
 0x8b3   : > { %v14650_v35 = vsel %vm7221_vm12, %v7220_v16, %v7653_v26 }
 0x8b4   : > { %7993 = vrot.lane.b32.xlu1 %v14622_v52, %s9730_s23  ;;  %7623 = vrot.lane.b32.xlu0 %v14595_v49, %s9727_s20  ;;  %v7690_v48 = vpop.permute.xlu0 %7689 }
 0x8b5   : > { %v7696_v31 = vsel %vm7311_vm0, %v7688_v6, %v7690_v48  ;;  %8864 = vmatprep.subr.mxu0 %v14650_v35  ;;  %v8328_v6 = vld [vmem:[#allocation3 + $0x948] sm:$0xff] }
 0x8b6   : > { %7718 = vst [vmem:[#allocation3 + $0x970] sm:$0xff] %v7696_v31  ;;  %v14658_v29 = vpop.permute.xlu1 %7691  ;;  %8865 = vmatpush2.msra.mxu0 %v14647_v45 }
 0x8b7   : > { %v7697_v19 = vsel %vm7311_vm0, %v7690_v48, %v14658_v29  ;;  %v8346_v48 = vld [vmem:[#allocation3 + $0x9e8] sm:$0xff] }
 0x8b8   : > { %7719 = vst [vmem:[#allocation3 + $0x978] sm:$0xff] %v7697_v19  ;;  %7919 = vrot.lane.b32.xlu1 %v14605_v11, %s9727_s20  ;;  %7956 = vrot.lane.b32.xlu0 %v14607_v37, %s9726_s17  ;;  %v7130_v33 = vpop.permute.xlu0 %7129 }
 0x8b9   : > { %v14669_v0 = vsel %vm7131_vm13, %v14411_v58, %v7130_v33  ;;  %8939 = vmatprep.subr.mxu1 %v7697_v19  ;;  %v8329_v19 = vld [vmem:[#allocation3 + $0x950] sm:$0xff] }
 0x8ba   : > { %8940 = vmatpush2.msra.mxu1 %v7696_v31 }
 0x8bb   : > { %v7618_v61 = vpop.permute.xlu1 %7617 }
 0x8bc   : > { %v14672_v63 = vsel %vm7131_vm13, %v7130_v33, %v7618_v61  ;;  %7958 = vrot.lane.b32.xlu1 %v14622_v52, %s9726_s17  ;;  %7588 = vrot.lane.b32.xlu0 %v14595_v49, %s9723_s6  ;;  %v8220_v33 = vld [vmem:[#allocation3 + $0x578] sm:$0xff] }
 0x8bd   : > { %v7655_v36 = vpop.permute.xlu0 %7654  ;;  %8866 = vmatprep.subr.mxu0 %v14672_v63 }
 0x8be   : > { %v14680_v53 = vsel %vm7221_vm12, %v7653_v26, %v7655_v36  ;;  %8867 = vmatpush2.msra.mxu0 %v14669_v0  ;;  %v8361_v26 = vld [vmem:[#allocation3 + $0xa70] sm:$0xff] }
 0x8bf   : > { %v14683_v58 = vpop.permute.xlu1 %7656 }
 0x8c0   : > { %v14687_v56 = vsel %vm7221_vm12, %v7655_v36, %v14683_v58  ;;  %7884 = vrot.lane.b32.xlu1 %v14605_v11, %s9723_s6  ;;  %7921 = vrot.lane.b32.xlu0 %v14607_v37, %s9727_s20  ;;  %v8188_v36 = vld [vmem:[#allocation3 + $0x458] sm:$0xff] }
 0x8c1   : > { %8941 = vmatprep.subr.mxu1 %v14687_v56 }
 0x8c2   : > { %v7041_v18 = vpop.permute.xlu0 %7040  ;;  %8942 = vmatpush2.msra.mxu1 %v14680_v53 }
 0x8c3   : > { %v14697_v27 = vsel %vm1683_vm9, %v14455_v30, %v7041_v18 }
 0x8c4   : > { %v7583_v2 = vpop.permute.xlu1 %7582  ;;  %7923 = vrot.lane.b32.xlu1 %v14622_v52, %s9727_s20  ;;  %7553 = vrot.lane.b32.xlu0 %v14595_v49, %s9721_s29 }
 0x8c5   : > { %v14704_v54 = vsel %vm1683_vm9, %v7041_v18, %v7583_v2  ;;  %v8171_v18 = vld [vmem:[#allocation3 + $0x3c0] sm:$0xff] }
 0x8c6   : > { %v7620_v13 = vpop.permute.xlu0 %7619  ;;  %8868 = vmatprep.subr.mxu0 %v14704_v54 }
 0x8c7   : > { %v14708_v47 = vsel %vm7131_vm13, %v7618_v61, %v7620_v13  ;;  %8869 = vmatpush2.msra.mxu0 %v14697_v27  ;;  %v8204_v61 = vld [vmem:[#allocation3 + $0x4e8] sm:$0xff] }
 0x8c8   : > { %7849 = vrot.lane.b32.xlu1 %v14605_v11, %s9721_s29  ;;  %7886 = vrot.lane.b32.xlu0 %v14607_v37, %s9723_s6 }
 0x8c9   : > { %v14715_v30 = vpop.permute.xlu1 %7621 }
 0x8ca   : > { %v14719_v32 = vsel %vm7131_vm13, %v7620_v13, %v14715_v30  ;;  %v6952_v1 = vpop.permute.xlu0 %6951  ;;  %v8221_v13 = vld [vmem:[#allocation3 + $0x580] sm:$0xff] }
 0x8cb   : > { %v14723_v21 = vsel %vm1319_vm7, %v14501_v60, %v6952_v1  ;;  %8943 = vmatprep.subr.mxu1 %v14719_v32 }
 0x8cc   : > { %7888 = vrot.lane.b32.xlu1 %v14622_v52, %s9723_s6  ;;  %7518 = vrot.lane.b32.xlu0 %v14595_v49, %s9728_s21 }
 0x8cd   : > { %v7548_v43 = vpop.permute.xlu1 %7547  ;;  %8944 = vmatpush2.msra.mxu1 %v14708_v47 }
 0x8ce   : > { %v14732_v34 = vsel %vm1319_vm7, %v6952_v1, %v7548_v43  ;;  %v7585_v44 = vpop.permute.xlu0 %7584  ;;  %v8139_v1 = vld [vmem:[#allocation3 + $0x2a0] sm:$0xff] }
 0x8cf   : > { %v14735_v46 = vsel %vm1683_vm9, %v7583_v2, %v7585_v44  ;;  %8870 = vmatprep.subr.mxu0 %v14732_v34  ;;  %v8222_v2 = vld [vmem:[#allocation3 + $0x588] sm:$0xff] }
 0x8d0   : > { %7814 = vrot.lane.b32.xlu1 %v14605_v11, %s9728_s21  ;;  %7851 = vrot.lane.b32.xlu0 %v14607_v37, %s9721_s29 }
 0x8d1   : > { %v14742_v60 = vpop.permute.xlu1 %7586  ;;  %8871 = vmatpush2.msra.mxu0 %v14723_v21 }
 0x8d2   : > { %v14747_v41 = vsel %vm1683_vm9, %v7585_v44, %v14742_v60  ;;  %v6862_v24 = vpop.permute.xlu0 %6861  ;;  %v8123_v44 = vld [vmem:[#allocation3 + $0x210] sm:$0xff] }
 0x8d3   : > { %v14751_v39 = vsel %vm6863_vm14, %v14533_v28, %v6862_v24  ;;  %8945 = vmatprep.subr.mxu1 %v14747_v41 }
 0x8d4   : > { %7853 = vrot.lane.b32.xlu1 %v14622_v52, %s9721_s29  ;;  %7483 = vrot.lane.b32.xlu0 %v14595_v49, %s9717_s25 }
 0x8d5   : > { %v7513_v17 = vpop.permute.xlu1 %7512  ;;  %8946 = vmatpush2.msra.mxu1 %v14735_v46 }
 0x8d6   : > { %v14760_v4 = vsel %vm6863_vm14, %v6862_v24, %v7513_v17  ;;  %v7550_v55 = vpop.permute.xlu0 %7549  ;;  %v8174_v24 = vld [vmem:[#allocation3 + $0x3d8] sm:$0xff] }
 0x8d7   : > { %v14763_v22 = vsel %vm1319_vm7, %v7548_v43, %v7550_v55  ;;  %8872 = vmatprep.subr.mxu0 %v14760_v4  ;;  %v8124_v43 = vld [vmem:[#allocation3 + $0x218] sm:$0xff] }
 0x8d8   : > { %7779 = vrot.lane.b32.xlu1 %v14605_v11, %s9717_s25  ;;  %7816 = vrot.lane.b32.xlu0 %v14607_v37, %s9728_s21  ;;  %v8495_v11 = vld [vmem:[%s15206_s4] sm:$0xff] }
 0x8d9   : > { %v14770_v28 = vpop.permute.xlu1 %7551  ;;  %8873 = vmatpush2.msra.mxu0 %v14751_v39 }
 0x8da   : > { %v14775_v49 = vsel %vm1319_vm7, %v7550_v55, %v14770_v28  ;;  %v6773_v42 = vpop.permute.xlu0 %6772  ;;  %v8158_v55 = vld [vmem:[#allocation3 + $0x348] sm:$0xff] }
 0x8db   : > { %v14779_v15 = vsel %vm591_vm3, %v14549_v57, %v6773_v42  ;;  %8947 = vmatprep.subr.mxu1 %v14775_v49 }
 0x8dc   : > { %7818 = vrot.lane.b32.xlu1 %v14622_v52, %s9728_s21  ;;  %7781 = vrot.lane.b32.xlu0 %v14607_v37, %s9717_s25  ;;  %v8360_v37 = vld [vmem:[#allocation3 + $0xa68] sm:$0xff] }
 0x8dd   : > { %v7478_v9 = vpop.permute.xlu1 %7477  ;;  %8948 = vmatpush2.msra.mxu1 %v14763_v22 }
 0x8de   : > { %v7485_v23 = vsel %vm591_vm3, %v6773_v42, %v7478_v9  ;;  %v7515_v59 = vpop.permute.xlu0 %7514  ;;  %v8076_v42 = vld [vmem:[#allocation3 + $0x68] sm:$0xff] }
 0x8df   : > { %v14792_v57 = vsel %vm6863_vm14, %v7513_v17, %v7515_v59  ;;  %8874 = vmatprep.subr.mxu0 %v7485_v23  ;;  %v8173_v17 = vld [vmem:[#allocation3 + $0x3d0] sm:$0xff] }
 0x8e0   : > { %7783 = vrot.lane.b32.xlu1 %v14622_v52, %s9717_s25  ;;  %8499 = vperm.xlu0 %9568, %v8495_v11   ;;  %v8344_v52 = vld [vmem:[#allocation3 + $0x9d8] sm:$0xff]  ;;  %v8141_v11 = vld [vmem:[#allocation3 + $0x2b0] sm:$0xff] }
 0x8e1   : > { %v14796_v10 = vpop.permute.xlu1 %7516  ;;  %8875 = vmatpush2.msra.mxu0 %v14779_v15 }
 0x8e2   : > { %v14801_v25 = vsel %vm6863_vm14, %v7515_v59, %v14796_v10  ;;  %v7480_v14 = vpop.permute.xlu0 %7479  ;;  %8876 = vmatprep.subr.mxu0 %v8360_v37  ;;  %v14850_v59 = vld [vmem:[%s15205_s3 + $0x18] sm:$0xff]  ;;  %v14857_v37 = vld [vmem:[%s15205_s3 + $0x10] sm:$0xff] }
 0x8e3   : > { %v14807_v12 = vsel %vm591_vm3, %v7478_v9, %v7480_v14  ;;  %8877 = vmatpush2.msra.mxu0 %v8359_v50  ;;  %8949 = vmatprep.subr.mxu1 %v14801_v25  ;;  %v8075_v9 = vld [vmem:[#allocation3 + $0x60] sm:$0xff]  ;;  %v8094_v50 = vld [vmem:[#allocation3 + $0x108] sm:$0xff] }
 0x8e4   : > { %8878 = vmatprep.subr.mxu0 %v8344_v52  ;;  %8950 = vmatpush2.msra.mxu1 %v14792_v57  ;;  %v8078_v52 = vld [vmem:[#allocation3 + $0x78] sm:$0xff] }
 0x8e5   : > { %v14811_v3 = vpop.permute.xlu1 %7481  ;;  %8879 = vmatpush2.msra.mxu0 %v8343_v51  ;;  %8504 = vperm.xlu1 %9569, %v8496_v5   ;;  %v9707_v5 = vld [vmem:[%s15205_s3 + $0x8] sm:$0xff]  ;;  %v8077_v51 = vld [vmem:[#allocation3 + $0x70] sm:$0xff] }
 0x8e6   : > { %v7487_v8 = vsel %vm591_vm3, %v7480_v14, %v14811_v3  ;;  %8880 = vmatprep.subr.mxu0 %v8328_v6  ;;  %v8109_v14 = vld [vmem:[#allocation3 + $0x190] sm:$0xff] }
 0x8e7   : > { %8881 = vmatpush2.msra.mxu0 %v8327_v7  ;;  %8951 = vmatprep.subr.mxu1 %v7487_v8 }
 0x8e8   : > { %8883 = vmatmul.mubr.f32.vlgmr.msra.gmra.mxu0 %v14818_v62  ;;  %8970 = vmatprep.subr.mxu0 %v14650_v35  ;;  %v8345_v35 = vld [vmem:[#allocation3 + $0x9e0] sm:$0xff] }
 0x8e9   : > { %8952 = vmatpush2.msra.mxu1 %v14807_v12  ;;  %8971 = vmatpush1.msra.mxu0 %v14647_v45  ;;  %v14824_v16 = vpop.f32.mrf.mxu1  ;;  %v8330_v45 = vld [vmem:[#allocation3 + $0x958] sm:$0xff] }
 0x8ea   : > { %8953 = vmatprep.subr.mxu1 %v8362_v38  ;;  %8972 = vmatprep.subr.mxu0 %v14672_v63  ;;  %v8203_v63 = vld [vmem:[#allocation3 + $0x4e0] sm:$0xff] }
 0x8eb   : > { %8954 = vmatpush2.msra.mxu1 %v8361_v26  ;;  %8973 = vmatpush1.msra.mxu0 %v14669_v0  ;;  %v8659_v31 = vpop.f32.mrf.mxu1  ;;  %v8219_v0 = vld [vmem:[#allocation3 + $0x570] sm:$0xff] }
 0x8ec   : > { %8955 = vmatprep.subr.mxu1 %v8346_v48  ;;  %8974 = vmatprep.subr.mxu0 %v14704_v54  ;;  %v8155_v54 = vld [vmem:[#allocation3 + $0x330] sm:$0xff] }
 0x8ed   : > { %8956 = vmatpush2.msra.mxu1 %v8345_v35  ;;  %8975 = vmatpush1.msra.mxu0 %v14697_v27  ;;  %v8156_v27 = vld [vmem:[#allocation3 + $0x338] sm:$0xff] }
 0x8ee   : > { %8957 = vmatprep.subr.mxu1 %v8330_v45  ;;  %8976 = vmatprep.subr.mxu0 %v14732_v34  ;;  %v8190_v34 = vld [vmem:[#allocation3 + $0x468] sm:$0xff] }
 0x8ef   : > { %8958 = vmatpush2.msra.mxu1 %v8329_v19  ;;  %8977 = vmatpush1.msra.mxu0 %v14723_v21  ;;  %v8205_v21 = vld [vmem:[#allocation3 + $0x4f0] sm:$0xff] }
 0x8f0   : > { %8960 = vmatmul.mubr.f32.vlgmr.msra.gmra.mxu1 %v14818_v62  ;;  %8978 = vmatprep.subr.mxu0 %v14760_v4  ;;  %v8092_v4 = vld [vmem:[#allocation3 + $0xf8] sm:$0xff] }
 0x8f1   : > { %9047 = vmatprep.subr.mxu1 %v14687_v56  ;;  %8979 = vmatpush1.msra.mxu0 %v14751_v39  ;;  %v8172_v56 = vld [vmem:[#allocation3 + $0x3c8] sm:$0xff]  ;;  %v8107_v39 = vld [vmem:[#allocation3 + $0x180] sm:$0xff] }
 0x8f2   : > { %9048 = vmatpush1.msra.mxu1 %v14680_v53  ;;  %8980 = vmatprep.subr.mxu0 %v7485_v23  ;;  %v8187_v53 = vld [vmem:[#allocation3 + $0x450] sm:$0xff]  ;;  %v8126_v23 = vld [vmem:[#allocation3 + $0x228] sm:$0xff] }
 0x8f3   : > { %9049 = vmatprep.subr.mxu1 %v14719_v32  ;;  %8981 = vmatpush1.msra.mxu0 %v14779_v15  ;;  %v8206_v32 = vld [vmem:[#allocation3 + $0x4f8] sm:$0xff] }
 0x8f4   : > { %9050 = vmatpush1.msra.mxu1 %v14708_v47  ;;  %8982 = vmatprep.subr.mxu0 %v8220_v33  ;;  %v8140_v47 = vld [vmem:[#allocation3 + $0x2a8] sm:$0xff]  ;;  %v8142_v15 = vld [vmem:[#allocation3 + $0x2b8] sm:$0xff] }
 0x8f5   : > { %9051 = vmatprep.subr.mxu1 %v14747_v41  ;;  %8983 = vmatpush1.msra.mxu0 %v8219_v0  ;;  %v8108_v41 = vld [vmem:[#allocation3 + $0x188] sm:$0xff] }
 0x8f6   : > { %9052 = vmatpush1.msra.mxu1 %v14735_v46  ;;  %8984 = vmatprep.subr.mxu0 %v8204_v61  ;;  %v8189_v46 = vld [vmem:[#allocation3 + $0x460] sm:$0xff] }
 0x8f7   : > { %9053 = vmatprep.subr.mxu1 %v14775_v49  ;;  %8985 = vmatpush1.msra.mxu0 %v8203_v63  ;;  %v8157_v49 = vld [vmem:[#allocation3 + $0x340] sm:$0xff] }
 0x8f8   : > { %9054 = vmatpush1.msra.mxu1 %v14763_v22  ;;  %8986 = vmatprep.subr.mxu0 %v8188_v36  ;;  %v8091_v22 = vld [vmem:[#allocation3 + $0xf0] sm:$0xff] }
 0x8f9   : > { %9055 = vmatprep.subr.mxu1 %v14801_v25  ;;  %8987 = vmatpush1.msra.mxu0 %v8187_v53  ;;  %v8110_v25 = vld [vmem:[#allocation3 + $0x198] sm:$0xff] }
 0x8fa   : > { %9056 = vmatpush1.msra.mxu1 %v14792_v57  ;;  %8988 = vmatprep.subr.mxu0 %v8172_v56  ;;  %v8125_v57 = vld [vmem:[#allocation3 + $0x220] sm:$0xff] }
 0x8fb   : > { %9057 = vmatprep.subr.mxu1 %v7487_v8  ;;  %8989 = vmatpush1.msra.mxu0 %v8171_v18 }
 0x8fc   : > { %9058 = vmatpush1.msra.mxu1 %v14807_v12  ;;  %8990 = vmatprep.subr.mxu0 %v8156_v27  ;;  %v8093_v12 = vld [vmem:[#allocation3 + $0x100] sm:$0xff] }
 0x8fd   : > { %9059 = vmatprep.subr.mxu1 %v8222_v2  ;;  %8991 = vmatpush1.msra.mxu0 %v8155_v54 }
 0x8fe   : > { %9060 = vmatpush1.msra.mxu1 %v8221_v13  ;;  %8992 = vmatprep.subr.mxu0 %v8140_v47 }
 0x8ff   : > { %9061 = vmatprep.subr.mxu1 %v8206_v32  ;;  %8993 = vmatpush1.msra.mxu0 %v8139_v1 }
 0x900   : > { %9062 = vmatpush1.msra.mxu1 %v8205_v21  ;;  %8994 = vmatprep.subr.mxu0 %v8124_v43 }
 0x901   : > { %9063 = vmatprep.subr.mxu1 %v8190_v34  ;;  %8995 = vmatpush1.msra.mxu0 %v8123_v44 }
 0x902   : > { %9064 = vmatpush1.msra.mxu1 %v8189_v46  ;;  %8996 = vmatprep.subr.mxu0 %v8108_v41 }
 0x903   : > { %9065 = vmatprep.subr.mxu1 %v8174_v24  ;;  %8997 = vmatpush1.msra.mxu0 %v8107_v39 }
 0x904   : > { %9066 = vmatpush1.msra.mxu1 %v8173_v17  ;;  %8998 = vmatprep.subr.mxu0 %v8092_v4 }
 0x905   : > { %9067 = vmatprep.subr.mxu1 %v8158_v55  ;;  %8999 = vmatpush1.msra.mxu0 %v8091_v22 }
 0x906   : > { %9068 = vmatpush1.msra.mxu1 %v8157_v49  ;;  %9000 = vmatprep.subr.mxu0 %v8076_v42 }
 0x907   : > { %9069 = vmatprep.subr.mxu1 %v8142_v15  ;;  %9001 = vmatpush1.msra.mxu0 %v8075_v9 }
 0x908   : > { %9070 = vmatpush1.msra.mxu1 %v8141_v11  ;;  %9527 = vmatprep.mubr.msk.f32.mxu0 %vm8507_vm2, %v14850_v59 }
 0x909   : > { %9071 = vmatprep.subr.mxu1 %v8126_v23  ;;  %8889 = vmatmul.mubr.f32.gmra.mxu0 %v14857_v37 }
 0x90a   : > { %9072 = vmatpush1.msra.mxu1 %v8125_v57  ;;  %9529 = vmatprep.mubr.msk.f32.mxu1 %vm8507_vm2, %v14850_v59 }
 0x90b   : > { %9073 = vmatprep.subr.mxu1 %v8110_v25  ;;  %8965 = vmatmul.mubr.f32.gmra.mxu1 %v14857_v37 }
 0x90c   : > { %9074 = vmatpush1.msra.mxu1 %v8109_v14  ;;  %9530 = vmatprep.mubr.msk.f32.mxu0 %vm8507_vm2, %v9707_v5 }
 0x90d   : > { %9075 = vmatprep.subr.mxu1 %v8094_v50  ;;  %9532 = vmatprep.mubr.msk.f32.mxu1 %vm8507_vm2, %v9707_v5 }
 0x90e   : > { %9076 = vmatpush1.msra.mxu1 %v8093_v12 }
 0x90f   : > { %9077 = vmatprep.subr.mxu1 %v8078_v52 }
 0x910   : > { %9078 = vmatpush1.msra.mxu1 %v8077_v51 }
 0x912   : > { %v7729_v6 = vpop.permute.xlu0 %7728 }
 0x913   : > { %v7733_v8 = vsel %vm7401_vm15, %v14637_v20, %v7729_v6 }
 0x916   : > { %v8025_v7 = vpop.permute.xlu1 %8024  ;;  %v7694_v38 = vpop.permute.xlu0 %7693 }
 0x917   : > { %v8032_v26 = vsel %vm7401_vm15, %v7729_v6, %v8025_v7  ;;  %v7698_v48 = vsel %vm7311_vm0, %v14658_v29, %v7694_v38 }
 0x918   : > { %9012 = vmatprep.subr.mxu0 %v8032_v26  ;;  %v8580_v26 = vpop.f32.mrf.mxu0 }
 0x919   : > { %9013 = vmatpush2.msra.mxu0 %v7733_v8 }
 0x91a   : > { %v7990_v31 = vpop.permute.xlu1 %7989  ;;  %v8027_v35 = vpop.permute.xlu0 %8026 }
 0x91b   : > { %v7997_v45 = vsel %vm7311_vm0, %v7694_v38, %v7990_v31  ;;  %v8033_v19 = vsel %vm7401_vm15, %v8025_v7, %v8027_v35 }
 0x91c   : > { %9014 = vmatprep.subr.mxu0 %v7997_v45  ;;  %v8363_v45 = vld [vmem:[#allocation3 + $0xa80] sm:$0xff] }
 0x91d   : > { %9015 = vmatpush2.msra.mxu0 %v7698_v48  ;;  %v8364_v48 = vld [vmem:[#allocation3 + $0xa88] sm:$0xff] }
 0x91e   : > { %v8029_v33 = vpop.permute.xlu1 %8028  ;;  %v7659_v0 = vpop.permute.xlu0 %7658 }
 0x91f   : > { %v8034_v20 = vsel %vm7401_vm15, %v8027_v35, %v8029_v33  ;;  %v7663_v61 = vsel %vm7221_vm12, %v14683_v58, %v7659_v0  ;;  %v8582_v33 = vpop.f32.mrf.mxu0 }
 0x920   : > { %9089 = vmatprep.subr.mxu1 %v8034_v20  ;;  %v14878_v63 = vpop.f32.mrf.mxu1  ;;  %v8347_v20 = vld [vmem:[#allocation3 + $0x9f0] sm:$0xff] }
 0x921   : > { %9090 = vmatpush2.msra.mxu1 %v8033_v19 }
 0x922   : > { %v7955_v29 = vpop.permute.xlu1 %7954  ;;  %v7992_v36 = vpop.permute.xlu0 %7991 }
 0x923   : > { %v7962_v53 = vsel %vm7221_vm12, %v7659_v0, %v7955_v29  ;;  %v7998_v56 = vsel %vm7311_vm0, %v7990_v31, %v7992_v36  ;;  %v8664_v18 = vpop.f32.mrf.mxu1  ;;  %v8348_v0 = vld [vmem:[#allocation3 + $0x9f8] sm:$0xff] }
 0x924   : > { %9016 = vmatprep.subr.mxu0 %v7962_v53  ;;  %v8366_v18 = vld [vmem:[#allocation3 + $0xa98] sm:$0xff] }
 0x925   : > { %9017 = vmatpush2.msra.mxu0 %v7663_v61  ;;  %v8332_v61 = vld [vmem:[#allocation3 + $0x968] sm:$0xff] }
 0x926   : > { %v7994_v27 = vpop.permute.xlu1 %7993  ;;  %v7624_v2 = vpop.permute.xlu0 %7623 }
 0x927   : > { %v7999_v54 = vsel %vm7311_vm0, %v7992_v36, %v7994_v27  ;;  %v7628_v58 = vsel %vm7131_vm13, %v14715_v30, %v7624_v2  ;;  %v8331_v36 = vld [vmem:[#allocation3 + $0x960] sm:$0xff]  ;;  %v8365_v27 = vld [vmem:[#allocation3 + $0xa90] sm:$0xff] }
 0x928   : > { %9091 = vmatprep.subr.mxu1 %v7999_v54  ;;  %v8350_v54 = vld [vmem:[#allocation3 + $0xa08] sm:$0xff] }
 0x929   : > { %9092 = vmatpush2.msra.mxu1 %v7998_v56  ;;  %v8586_v56 = vpop.f32.mrf.mxu0 }
 0x92a   : > { %v7920_v13 = vpop.permute.xlu1 %7919  ;;  %v7957_v47 = vpop.permute.xlu0 %7956 }
 0x92b   : > { %v7927_v32 = vsel %vm7131_vm13, %v7624_v2, %v7920_v13  ;;  %v7963_v1 = vsel %vm7221_vm12, %v7955_v29, %v7957_v47  ;;  %v8588_v2 = vpop.f32.mrf.mxu0 }
 0x92c   : > { %9018 = vmatprep.subr.mxu0 %v7927_v32  ;;  %v8333_v32 = vld [vmem:[#allocation3 + $0x970] sm:$0xff] }
 0x92d   : > { %9019 = vmatpush2.msra.mxu0 %v7628_v58  ;;  %v8349_v58 = vld [vmem:[#allocation3 + $0xa00] sm:$0xff] }
 0x92e   : > { %v7959_v21 = vpop.permute.xlu1 %7958  ;;  %v7589_v43 = vpop.permute.xlu0 %7588 }
 0x92f   : > { %v7964_v34 = vsel %vm7221_vm12, %v7957_v47, %v7959_v21  ;;  %v7593_v44 = vsel %vm1683_vm9, %v14742_v60, %v7589_v43  ;;  %v8334_v47 = vld [vmem:[#allocation3 + $0x978] sm:$0xff] }
 0x930   : > { %9093 = vmatprep.subr.mxu1 %v7964_v34 }
 0x931   : > { %9094 = vmatpush2.msra.mxu1 %v7963_v1 }
 0x932   : > { %v7885_v30 = vpop.permute.xlu1 %7884  ;;  %v7922_v46 = vpop.permute.xlu0 %7921 }
 0x933   : > { %v7892_v41 = vsel %vm1683_vm9, %v7589_v43, %v7885_v30  ;;  %v7928_v24 = vsel %vm7131_vm13, %v7920_v13, %v7922_v46 }
 0x934   : > { %9020 = vmatprep.subr.mxu0 %v7892_v41  ;;  %v8732_v21 = vpop.f32.mrf.mxu0 }
 0x935   : > { %9021 = vmatpush2.msra.mxu0 %v7593_v44 }
 0x936   : > { %v7924_v39 = vpop.permute.xlu1 %7923  ;;  %v7554_v17 = vpop.permute.xlu0 %7553 }
 0x937   : > { %v7929_v4 = vsel %vm7131_vm13, %v7922_v46, %v7924_v39  ;;  %v7558_v55 = vsel %vm1319_vm7, %v14770_v28, %v7554_v17  ;;  %v8734_v39 = vpop.f32.mrf.mxu0 }
 0x938   : > { %9095 = vmatprep.subr.mxu1 %v7929_v4 }
 0x939   : > { %9096 = vmatpush2.msra.mxu1 %v7928_v24 }
 0x93a   : > { %v7850_v60 = vpop.permute.xlu1 %7849  ;;  %v7887_v22 = vpop.permute.xlu0 %7886 }
 0x93b   : > { %v7857_v49 = vsel %vm1319_vm7, %v7554_v17, %v7850_v60  ;;  %v7893_v42 = vsel %vm1683_vm9, %v7885_v30, %v7887_v22 }
 0x93c   : > { %9022 = vmatprep.subr.mxu0 %v7857_v49  ;;  %v14897_v15 = vpop.f32.mrf.mxu1 }
 0x93d   : > { %9023 = vmatpush2.msra.mxu0 %v7558_v55 }
 0x93e   : > { %v7889_v9 = vpop.permute.xlu1 %7888  ;;  %v7519_v11 = vpop.permute.xlu0 %7518 }
 0x93f   : > { %v7894_v23 = vsel %vm1683_vm9, %v7887_v22, %v7889_v9  ;;  %v7523_v57 = vsel %vm6863_vm14, %v14796_v10, %v7519_v11  ;;  %v8811_v28 = vpop.f32.mrf.mxu1  ;;  %vm9409_vm9 = vcmask 64512  }
 0x940   : > { %9097 = vmatprep.subr.mxu1 %v7894_v23 }
 0x941   : > { %9098 = vmatpush2.msra.mxu1 %v7893_v42 }
 0x942   : > { %v7815_v25 = vpop.permute.xlu1 %7814  ;;  %v7852_v14 = vpop.permute.xlu0 %7851 }
 0x943   : > { %v7822_v50 = vsel %vm6863_vm14, %v7519_v11, %v7815_v25  ;;  %v7858_v5 = vsel %vm1319_vm7, %v7850_v60, %v7852_v14 }
 0x944   : > { %9024 = vmatprep.subr.mxu0 %v7822_v50 }
 0x945   : > { %9025 = vmatpush2.msra.mxu0 %v7523_v57 }
 0x946   : > { %v7854_v12 = vpop.permute.xlu1 %7853  ;;  %v7484_v52 = vpop.permute.xlu0 %7483 }
 0x947   : > { %v7859_v51 = vsel %vm1319_vm7, %v7852_v14, %v7854_v12  ;;  %v7488_v6 = vsel %vm591_vm3, %v14811_v3, %v7484_v52 }
 0x948   : > { %9099 = vmatprep.subr.mxu1 %v7859_v51 }
 0x949   : > { %9100 = vmatpush2.msra.mxu1 %v7858_v5 }
 0x94a   : > { %v7780_v10 = vpop.permute.xlu1 %7779  ;;  %v7817_v8 = vpop.permute.xlu0 %7816 }
 0x94b   : > { %v7787_v7 = vsel %vm591_vm3, %v7484_v52, %v7780_v10  ;;  %v7823_v38 = vsel %vm6863_vm14, %v7815_v25, %v7817_v8 }
 0x94c   : > { %9026 = vmatprep.subr.mxu0 %v7787_v7 }
 0x94d   : > { %9027 = vmatpush2.msra.mxu0 %v7488_v6 }
 0x94e   : > { %v7819_v31 = vpop.permute.xlu1 %7818  ;;  %v7782_v35 = vpop.permute.xlu0 %7781  ;;  %9028 = vmatprep.subr.mxu0 %v8364_v48 }
 0x94f   : > { %v7824_v19 = vsel %vm6863_vm14, %v7817_v8, %v7819_v31  ;;  %v7788_v3 = vsel %vm591_vm3, %v7780_v10, %v7782_v35  ;;  %9029 = vmatpush2.msra.mxu0 %v8363_v45 }
 0x950   : > { %9030 = vmatprep.subr.mxu0 %v8348_v0  ;;  %9101 = vmatprep.subr.mxu1 %v7824_v19 }
 0x951   : > { %9031 = vmatpush2.msra.mxu0 %v8347_v20  ;;  %9102 = vmatpush2.msra.mxu1 %v7823_v38 }
 0x952   : > { %v7784_v29 = vpop.permute.xlu1 %7783  ;;  %9032 = vmatprep.subr.mxu0 %v8332_v61 }
 0x953   : > { %v7789_v53 = vsel %vm591_vm3, %v7782_v35, %v7784_v29  ;;  %9033 = vmatpush2.msra.mxu0 %v8331_v36 }
 0x954   : > { %9035 = vmatmul.mubr.f32.vlgmr.msra.gmra.mxu0 %v14818_v62  ;;  %9103 = vmatprep.subr.mxu1 %v7789_v53 }
 0x955   : > { %9104 = vmatpush2.msra.mxu1 %v7788_v3  ;;  %9531 = vmatprep.mubr.msk.f32.mxu0 %vm8507_vm2, %v14850_v59  ;;  %v8738_v60 = vpop.f32.mrf.mxu0 }
 0x956   : > { %9105 = vmatprep.subr.mxu1 %v8366_v18 }
 0x957   : > { %9106 = vmatpush2.msra.mxu1 %v8365_v27  ;;  %v8740_v23 = vpop.f32.mrf.mxu0 }
 0x958   : > { %9041 = vmatmul.mubr.f32.gmra.mxu0 %v14857_v37  ;;  %9107 = vmatprep.subr.mxu1 %v8350_v54  ;;  %v8814_v13 = vpop.f32.mrf.mxu1 }
 0x959   : > { %9108 = vmatpush2.msra.mxu1 %v8349_v58 }
 0x95a   : > { %9109 = vmatprep.subr.mxu1 %v8334_v47  ;;  %v8816_v1 = vpop.f32.mrf.mxu1 }
 0x95b   : > { %v14916_v43 = vpop.permute.xlu0 %8499  ;;  %9110 = vmatpush2.msra.mxu1 %v8333_v32 }
 0x95c   : > { %v14919_v34 = vadd.f32 %v8582_v33, %v14916_v43  ;;  %v14922_v44 = vadd.f32 %v8580_v26, %v14916_v43  ;;  %9112 = vmatmul.mubr.f32.vlgmr.msra.gmra.mxu1 %v14818_v62  ;;  %v14930_v41 = vadd.f32 %v8732_v21, %v14916_v43  ;;  %v8658_v24 = vadd.f32 %v14824_v16, %v14916_v43 }
 0x95d   : > { %9533 = vmatprep.mubr.msk.f32.mxu1 %vm8507_vm2, %v14850_v59  ;;  %v8810_v4 = vadd.f32 %v14897_v15, %v14916_v43  ;;  %v14947_v16 = vadd.f32 %v8734_v39, %v14916_v43 }
 0x95e   : > { %v9123_v30 = vmax.f32 %v14919_v34, 0.0  ;;  %v9122_v46 = vmax.f32 %v14922_v44, 0.0  ;;  %v9125_v59 = vmax.f32 %v14930_v41, 0.0  ;;  %v9124_v17 = vmax.f32 %v8658_v24, 0.0 }
 0x95f   : > { %v9127_v22 = vmax.f32 %v8810_v4, 0.0  ;;  %v9126_v49 = vmax.f32 %v14947_v16, 0.0 }
 0x960   : > { %9172 = vrot.lane.b32.xlu1 %v9123_v30, %s9717_s25  ;;  %9170 = vrot.lane.b32.xlu0 %v9122_v46, %s9717_s25  ;;  %v14940_v62 = vpop.permute.xlu1 %8504 }
 0x961   : > { %9117 = vmatmul.mubr.f32.gmra.mxu1 %v14857_v37  ;;  %v14954_v55 = vadd.f32 %v8588_v2, %v14940_v62  ;;  %v14957_v37 = vadd.f32 %v8586_v56, %v14940_v62  ;;  %v14967_v9 = vadd.f32 %v8738_v60, %v14940_v62  ;;  %v8663_v11 = vadd.f32 %v14878_v63, %v14940_v62 }
 0x962   : > { %v14979_v25 = vadd.f32 %v8740_v23, %v14940_v62  ;;  %v8815_v14 = vadd.f32 %v8814_v13, %v14940_v62 }
 0x963   : > { %v9135_v42 = vmax.f32 %v14954_v55, 0.0  ;;  %v9134_v15 = vmax.f32 %v14957_v37, 0.0  ;;  %v9137_v57 = vmax.f32 %v14967_v9, 0.0  ;;  %v9136_v28 = vmax.f32 %v8663_v11, 0.0 }
 0x964   : > { %9176 = vrot.lane.b32.xlu1 %v9125_v59, %s9717_s25  ;;  %9174 = vrot.lane.b32.xlu0 %v9124_v17, %s9717_s25  ;;  %v9138_v63 = vmax.f32 %v14979_v25, 0.0  ;;  %v9139_v50 = vmax.f32 %v8815_v14, 0.0 }
 0x968   : > { %9180 = vrot.lane.b32.xlu1 %v9127_v22, %s9717_s25  ;;  %9178 = vrot.lane.b32.xlu0 %v9126_v49, %s9717_s25 }
 0x96c   : > { %9196 = vrot.lane.b32.xlu1 %v9135_v42, %s9717_s25  ;;  %9194 = vrot.lane.b32.xlu0 %v9134_v15, %s9717_s25 }
 0x970   : > { %9198 = vrot.lane.b32.xlu0 %v9136_v28, %s9717_s25  ;;  %9200 = vrot.lane.b32.xlu1 %v9137_v57, %s9717_s25 }
 0x974   : > { %9204 = vrot.lane.b32.xlu1 %v9139_v50, %s9717_s25  ;;  %9202 = vrot.lane.b32.xlu0 %v9138_v63, %s9717_s25 }
 0x9a8   : > { %v8884_v5 = vpop.f32.mrf.mxu0 }
 0x9a9   : > { %v14992_v12 = vadd.f32 %v8884_v5, %v14916_v43 }
 0x9aa   : > { %v8886_v52 = vpop.f32.mrf.mxu0 }
 0x9ab   : > { %v9128_v51 = vmax.f32 %v14992_v12, 0.0  ;;  %v14996_v6 = vadd.f32 %v8886_v52, %v14916_v43 }
 0x9ad   : > { %v9129_v10 = vmax.f32 %v14996_v6, 0.0  ;;  %9182 = vrot.lane.b32.xlu0 %v9128_v51, %s9717_s25 }
 0x9af   : > { %9184 = vrot.lane.b32.xlu1 %v9129_v10, %s9717_s25 }
 0x9b0   : > { %v8961_v8 = vpop.f32.mrf.mxu1 }
 0x9b1   : > { %v8962_v7 = vadd.f32 %v8961_v8, %v14916_v43 }
 0x9b2   : > { %v8963_v38 = vpop.f32.mrf.mxu1 }
 0x9b3   : > { %v9130_v26 = vmax.f32 %v8962_v7, 0.0 }
 0x9b5   : > { %9186 = vrot.lane.b32.xlu0 %v9130_v26, %s9717_s25 }
 0x9c9   : > { %v8890_v35 = vpop.f32.mrf.mxu0 }
 0x9ca   : > { %v15015_v56 = vadd.f32 %v8890_v35, %v14940_v62 }
 0x9cb   : > { %v8966_v48 = vpop.f32.mrf.mxu1  ;;  %v8892_v3 = vpop.f32.mrf.mxu0 }
 0x9cc   : > { %v9140_v13 = vmax.f32 %v15015_v56, 0.0  ;;  %v8967_v47 = vadd.f32 %v8966_v48, %v14940_v62  ;;  %v15028_v24 = vadd.f32 %v8892_v3, %v14940_v62 }
 0x9cd   : > { %v8968_v31 = vpop.f32.mrf.mxu1 }
 0x9ce   : > { %v9142_v17 = vmax.f32 %v8967_v47, 0.0 }
 0x9d2   : > { %v9173_v45 = vpop.permute.xlu1 %9172  ;;  %v9171_v19 = vpop.permute.xlu0 %9170 }
 0x9d3   : > { %v9218_v50 = vsel %vm591_vm3, %v9171_v19, %v9173_v45 }
 0x9d4   : > { %v15054_v8 = vmax.f32 %v9122_v46, %v9218_v50 }
 0x9d6   : > { %v9177_v20 = vpop.permute.xlu1 %9176  ;;  %v9175_v29 = vpop.permute.xlu0 %9174 }
 0x9da   : > { %v9181_v2 = vpop.permute.xlu1 %9180  ;;  %v9179_v58 = vpop.permute.xlu0 %9178 }
 0x9db   : > { %v9220_v26 = vsel %vm591_vm3, %v9177_v20, %v9179_v58  ;;  %v9221_v3 = vsel %vm591_vm3, %v9179_v58, %v9181_v2 }
 0x9dc   : > { %v15065_v31 = vmax.f32 %v9125_v59, %v9220_v26  ;;  %v9253_v59 = vmax.f32 %v9126_v49, %v9221_v3 }
 0x9de   : > { %v9197_v22 = vpop.permute.xlu1 %9196  ;;  %v9195_v11 = vpop.permute.xlu0 %9194 }
 0x9df   : > { %v9226_v44 = vsel %vm591_vm3, %v9195_v11, %v9197_v22 }
 0x9e2   : > { %v9199_v7 = vpop.permute.xlu0 %9198  ;;  %v9201_v38 = vpop.permute.xlu1 %9200 }
 0x9e6   : > { %v9205_v35 = vpop.permute.xlu1 %9204  ;;  %v9203_v19 = vpop.permute.xlu0 %9202 }
 0x9e7   : > { %v9228_v41 = vsel %vm591_vm3, %v9201_v38, %v9203_v19  ;;  %v9229_v16 = vsel %vm591_vm3, %v9203_v19, %v9205_v35 }
 0xa14   : > { %v9036_v33 = vpop.f32.mrf.mxu0 }
 0xa15   : > { %v15008_v0 = vadd.f32 %v9036_v33, %v14916_v43  ;;  %v15087_v33 = vmax.f32 %v9137_v57, %v9228_v41  ;;  %v9261_v57 = vmax.f32 %v9138_v63, %v9229_v16 }
 0xa16   : > { %v9038_v61 = vpop.f32.mrf.mxu0 }
 0xa17   : > { %v9131_v36 = vmax.f32 %v15008_v0, 0.0  ;;  %v15012_v53 = vadd.f32 %v9038_v61, %v14916_v43 }
 0xa18   : > { %v9042_v27 = vpop.f32.mrf.mxu0 }
 0xa19   : > { %v9132_v18 = vmax.f32 %v15012_v53, 0.0  ;;  %9188 = vrot.lane.b32.xlu1 %v9131_v36, %s9717_s25  ;;  %v15039_v23 = vadd.f32 %v9042_v27, %v14940_v62 }
 0xa1a   : > { %v9044_v1 = vpop.f32.mrf.mxu0 }
 0xa1b   : > { %9190 = vrot.lane.b32.xlu0 %v9132_v18, %s9717_s25  ;;  %v15034_v4 = vadd.f32 %v9044_v1, %v14940_v62  ;;  %v9143_v5 = vmax.f32 %v15039_v23, 0.0 }
 0xa1c   : > { %v9113_v54 = vpop.f32.mrf.mxu1 }
 0xa1d   : > { %v9114_v32 = vadd.f32 %v9113_v54, %v14916_v43  ;;  %v9141_v43 = vmax.f32 %v15028_v24, 0.0  ;;  %v9144_v14 = vmax.f32 %v15034_v4, 0.0 }
 0xa1e   : > { %v9115_v21 = vpop.f32.mrf.mxu1 }
 0xa1f   : > { %v9133_v39 = vmax.f32 %v9114_v32, 0.0  ;;  %9206 = vrot.lane.b32.xlu0 %v9140_v13, %s9717_s25  ;;  %v9183_v37 = vpop.permute.xlu0 %9182 }
 0xa21   : > { %v9118_v60 = vpop.f32.mrf.mxu1  ;;  %9192 = vrot.lane.b32.xlu1 %v9133_v39, %s9717_s25  ;;  %v9185_v34 = vpop.permute.xlu1 %9184 }
 0xa22   : > { %v9119_v52 = vadd.f32 %v9118_v60, %v14940_v62  ;;  %v9219_v62 = vsel %vm591_vm3, %v9173_v45, %v9175_v29  ;;  %v15076_v45 = vmax.f32 %v9134_v15, %v9226_v44  ;;  %v9222_v15 = vsel %vm591_vm3, %v9183_v37, %v9185_v34 }
 0xa23   : > { %9210 = vrot.lane.b32.xlu0 %v9142_v17, %s9717_s25  ;;  %v9120_v28 = vpop.f32.mrf.mxu1  ;;  %v9251_v46 = vmax.f32 %v9123_v30, %v9219_v62  ;;  %v9227_v30 = vsel %vm591_vm3, %v9197_v22, %v9199_v7  ;;  %v15098_v49 = vmax.f32 %v9128_v51, %v9222_v15 }
 0xa24   : > { %v9145_v48 = vmax.f32 %v9119_v52, 0.0  ;;  %v9259_v20 = vmax.f32 %v9135_v42, %v9227_v30 }
 0xa25   : > { %9208 = vrot.lane.b32.xlu1 %v9141_v43, %s9717_s25 }
 0xa27   : > { %9214 = vrot.lane.b32.xlu0 %v9144_v14, %s9717_s25  ;;  %v9187_v9 = vpop.permute.xlu0 %9186 }
 0xa28   : > { %v9223_v55 = vsel %vm591_vm3, %v9185_v34, %v9187_v9 }
 0xa29   : > { %9212 = vrot.lane.b32.xlu1 %v9143_v5, %s9717_s25  ;;  %v9255_v42 = vmax.f32 %v9129_v10, %v9223_v55 }
 0xa2b   : > { %9282 = vrot.lane.b32.xlu0 %v15054_v8, %s9721_s29 }
 0xa2d   : > { %9216 = vrot.lane.b32.xlu1 %v9145_v48, %s9717_s25 }
 0xa2f   : > { %9286 = vrot.lane.b32.xlu0 %v15065_v31, %s9721_s29 }
 0xa31   : > { %9284 = vrot.lane.b32.xlu1 %v9251_v46, %s9721_s29 }
 0xa33   : > { %9298 = vrot.lane.b32.xlu0 %v15076_v45, %s9721_s29 }
 0xa35   : > { %9288 = vrot.lane.b32.xlu1 %v9253_v59, %s9721_s29 }
 0xa37   : > { %9302 = vrot.lane.b32.xlu0 %v15087_v33, %s9721_s29 }
 0xa39   : > { %9300 = vrot.lane.b32.xlu1 %v9259_v20, %s9721_s29 }
 0xa3b   : > { %9290 = vrot.lane.b32.xlu0 %v15098_v49, %s9721_s29 }
 0xa3d   : > { %9304 = vrot.lane.b32.xlu1 %v9261_v57, %s9721_s29 }
 0xa41   : > { %9292 = vrot.lane.b32.xlu1 %v9255_v42, %s9721_s29 }
 0xa8b   : > { %v9189_v12 = vpop.permute.xlu1 %9188 }
 0xa8d   : > { %v9191_v51 = vpop.permute.xlu0 %9190 }
 0xa8e   : > { %v9224_v61 = vsel %vm591_vm3, %v9189_v12, %v9191_v51 }
 0xa8f   : > { %v9256_v25 = vmax.f32 %v9131_v36, %v9224_v61 }
 0xa91   : > { %9294 = vrot.lane.b32.xlu0 %v9256_v25, %s9721_s29  ;;  %v9207_v63 = vpop.permute.xlu0 %9206 }
 0xa93   : > { %v9193_v29 = vpop.permute.xlu1 %9192 }
 0xa94   : > { %v9225_v27 = vsel %vm591_vm3, %v9191_v51, %v9193_v29 }
 0xa95   : > { %v9257_v2 = vmax.f32 %v9132_v18, %v9225_v27  ;;  %v9211_v6 = vpop.permute.xlu0 %9210 }
 0xa97   : > { %v9209_v10 = vpop.permute.xlu1 %9208  ;;  %9296 = vrot.lane.b32.xlu1 %v9257_v2, %s9721_s29 }
 0xa98   : > { %v9230_v54 = vsel %vm591_vm3, %v9207_v63, %v9209_v10  ;;  %v9231_v58 = vsel %vm591_vm3, %v9209_v10, %v9211_v6 }
 0xa99   : > { %v15122_v0 = vmax.f32 %v9140_v13, %v9230_v54  ;;  %v9263_v36 = vmax.f32 %v9141_v43, %v9231_v58  ;;  %v9215_v47 = vpop.permute.xlu0 %9214 }
 0xa9b   : > { %v9213_v32 = vpop.permute.xlu1 %9212  ;;  %9306 = vrot.lane.b32.xlu0 %v15122_v0, %s9721_s29  ;;  %9308 = vrot.lane.b32.xlu1 %v9263_v36, %s9721_s29 }
 0xa9c   : > { %v9232_v53 = vsel %vm591_vm3, %v9213_v32, %v9215_v47 }
 0xa9d   : > { %v9264_v18 = vmax.f32 %v9143_v5, %v9232_v53  ;;  %v9283_v1 = vpop.permute.xlu0 %9282 }
 0xa9f   : > { %v9217_v21 = vpop.permute.xlu1 %9216  ;;  %9310 = vrot.lane.b32.xlu0 %v9264_v18, %s9721_s29 }
 0xaa0   : > { %v9233_v56 = vsel %vm591_vm3, %v9215_v47, %v9217_v21  ;;  %vm9391_vm3 = vcmask 15360  }
 0xaa1   : > { %v9265_v13 = vmax.f32 %v9144_v14, %v9233_v56  ;;  %v9287_v24 = vpop.permute.xlu0 %9286 }
 0xaa3   : > { %v9285_v39 = vpop.permute.xlu1 %9284  ;;  %9312 = vrot.lane.b32.xlu1 %v9265_v13, %s9721_s29 }
 0xaa4   : > { %v9314_v17 = vsel %vm1319_vm7, %v9283_v1, %v9285_v39 }
 0xaa5   : > { %v9330_v11 = vmax.f32 %v15054_v8, %v9314_v17  ;;  %v9299_v43 = vpop.permute.xlu0 %9298 }
 0xaa7   : > { %v9289_v60 = vpop.permute.xlu1 %9288 }
 0xaa8   : > { %v9315_v22 = vsel %vm1319_vm7, %v9287_v24, %v9289_v60 }
 0xaa9   : > { %v9331_v23 = vmax.f32 %v15065_v31, %v9315_v22  ;;  %v9303_v14 = vpop.permute.xlu0 %9302 }
 0xaab   : > { %v15141_v28 = vmax.f32 %v9330_v11, %v9331_v23  ;;  %v9301_v50 = vpop.permute.xlu1 %9300 }
 0xaac   : > { %v9318_v4 = vsel %vm1319_vm7, %v9299_v43, %v9301_v50 }
 0xaad   : > { %9344 = vrot.lane.b32.xlu0 %v15141_v28, %s9731_s9  ;;  %v9334_v7 = vmax.f32 %v15076_v45, %v9318_v4  ;;  %v9291_v26 = vpop.permute.xlu0 %9290 }
 0xaaf   : > { %v9305_v5 = vpop.permute.xlu1 %9304 }
 0xab0   : > { %v9319_v52 = vsel %vm1319_vm7, %v9303_v14, %v9305_v5 }
 0xab1   : > { %v9335_v38 = vmax.f32 %v15087_v33, %v9319_v52  ;;  %9350 = vrot.lane.b32.xlu0 %v15141_v28, %s9732_s10 }
 0xab3   : > { %v15149_v8 = vmax.f32 %v9334_v7, %v9335_v38  ;;  %v9293_v48 = vpop.permute.xlu1 %9292 }
 0xab4   : > { %v9316_v62 = vsel %vm1319_vm7, %v9291_v26, %v9293_v48 }
 0xab5   : > { %9356 = vrot.lane.b32.xlu0 %v15141_v28, %s9733_s11  ;;  %9346 = vrot.lane.b32.xlu1 %v15149_v8, %s9731_s9  ;;  %v9332_v35 = vmax.f32 %v15098_v49, %v9316_v62 }
 0xab9   : > { %9352 = vrot.lane.b32.xlu1 %v15149_v8, %s9732_s10 }
 0xabd   : > { %9358 = vrot.lane.b32.xlu1 %v15149_v8, %s9733_s11 }
 0xb03   : > { %v9295_v31 = vpop.permute.xlu0 %9294 }
 0xb09   : > { %v9297_v44 = vpop.permute.xlu1 %9296 }
 0xb0a   : > { %v9317_v46 = vsel %vm1319_vm7, %v9295_v31, %v9297_v44 }
 0xb0b   : > { %v9333_v19 = vmax.f32 %v9256_v25, %v9317_v46 }
 0xb0d   : > { %v9339_v3 = vmax.f32 %v9332_v35, %v9333_v19  ;;  %v9307_v45 = vpop.permute.xlu0 %9306  ;;  %v9309_v41 = vpop.permute.xlu1 %9308 }
 0xb0e   : > { %v9320_v59 = vsel %vm1319_vm7, %v9307_v45, %v9309_v41 }
 0xb0f   : > { %9364 = vrot.lane.b32.xlu0 %v9339_v3, %s9734_s12  ;;  %v9336_v37 = vmax.f32 %v15122_v0, %v9320_v59 }
 0xb11   : > { %v9311_v34 = vpop.permute.xlu0 %9310 }
 0xb13   : > { %9370 = vrot.lane.b32.xlu0 %v9339_v3, %s9735_s13 }
 0xb15   : > { %v9313_v30 = vpop.permute.xlu1 %9312 }
 0xb16   : > { %v9321_v33 = vsel %vm1319_vm7, %v9311_v34, %v9313_v30  ;;  %vm9403_vm7 = vcmask 48128  }
 0xb17   : > { %v9337_v15 = vmax.f32 %v9264_v18, %v9321_v33  ;;  %9376 = vrot.lane.b32.xlu0 %v9339_v3, %s9736_s14 }
 0xb19   : > { %v9341_v20 = vmax.f32 %v9336_v37, %v9337_v15 }
 0xb1b   : > { %7785 = vrot.lane.b32.xlu0 %v14618_v40, %s9717_s25  ;;  %9366 = vrot.lane.b32.xlu1 %v9341_v20, %s9734_s12  ;;  %s9537_s25 = sshll.u32 %s15215_s19, 4 }
 0xb1f   : > { %7855 = vrot.lane.b32.xlu0 %v14618_v40, %s9721_s29  ;;  %9372 = vrot.lane.b32.xlu1 %v9341_v20, %s9735_s13  ;;  %v9345_v16 = vpop.permute.xlu0 %9344 }
 0xb23   : > { %7925 = vrot.lane.b32.xlu0 %v14618_v40, %s9727_s20  ;;  %9378 = vrot.lane.b32.xlu1 %v9341_v20, %s9736_s14  ;;  %v9351_v49 = vpop.permute.xlu0 %9350 }
 0xb27   : > { %7995 = vrot.lane.b32.xlu0 %v14618_v40, %s9730_s23  ;;  %7820 = vrot.lane.b32.xlu1 %v14618_v40, %s9728_s21  ;;  %v9347_v9 = vpop.permute.xlu1 %9346  ;;  %v9357_v57 = vpop.permute.xlu0 %9356 }
 0xb28   : > { %v9390_v56 = vsel %vm9388_vm1, %v15149_v8, %v9347_v9 }
 0xb2b   : > { %9382 = vrot.lane.b32.xlu0 %v9339_v3, %s9737_s15  ;;  %7890 = vrot.lane.b32.xlu1 %v14618_v40, %s9723_s6  ;;  %v9353_v42 = vpop.permute.xlu1 %9352 }
 0xb2c   : > { %v9393_v13 = vsel %vm9391_vm3, %v9390_v56, %v9353_v42 }
 0xb2f   : > { %7960 = vrot.lane.b32.xlu1 %v14618_v40, %s9726_s17  ;;  %v9359_v51 = vpop.permute.xlu1 %9358  ;;  %s224_s17 = scalar_lea.vmem %s15207_s5, %s9537_s25 }
 0xb30   : > { %v9396_v39 = vsel %vm9394_vm4, %v9393_v13, %v9359_v51 }
 0xb33   : > { %8030 = vrot.lane.b32.xlu1 %v14618_v40, %s9729_s22  ;;  %v9389_v40 = vsel %vm9388_vm1, %v15141_v28, %v9345_v16 }
 0xb34   : > { %v9392_v10 = vsel %vm9391_vm3, %v9389_v40, %v9351_v49 }
 0xb35   : > { %v9395_v0 = vsel %vm9394_vm4, %v9392_v10, %v9357_v57 }
 0xb37   : > { %9384 = vrot.lane.b32.xlu1 %v9341_v20, %s9737_s15 }
 0xb81   : > { %v9365_v55 = vpop.permute.xlu0 %9364 }
 0xb82   : > { %v9398_v36 = vsel %vm9397_vm5, %v9395_v0, %v9365_v55 }
 0xb85   : > { %v9371_v12 = vpop.permute.xlu0 %9370 }
 0xb86   : > { %v9401_v47 = vsel %vm9400_vm6, %v9398_v36, %v9371_v12 }
 0xb89   : > { %v9377_v61 = vpop.permute.xlu0 %9376 }
 0xb8a   : > { %v9404_v32 = vsel %vm9403_vm7, %v9401_v47, %v9377_v61 }
 0xb8d   : > { %v9367_v25 = vpop.permute.xlu1 %9366  ;;  %v7786_v63 = vpop.permute.xlu0 %7785 }
 0xb8e   : > { %v9399_v17 = vsel %vm9397_vm5, %v9396_v39, %v9367_v25 }
 0xb91   : > { %v9373_v29 = vpop.permute.xlu1 %9372  ;;  %v7856_v27 = vpop.permute.xlu0 %7855 }
 0xb92   : > { %v9402_v60 = vsel %vm9400_vm6, %v9399_v17, %v9373_v29 }
 0xb95   : > { %v9379_v2 = vpop.permute.xlu1 %9378  ;;  %v7926_v6 = vpop.permute.xlu0 %7925 }
 0xb96   : > { %v9405_v22 = vsel %vm9403_vm7, %v9402_v60, %v9379_v2 }
 0xb99   : > { %v7821_v54 = vpop.permute.xlu1 %7820  ;;  %v7996_v58 = vpop.permute.xlu0 %7995 }
 0xb9d   : > { %v7891_v53 = vpop.permute.xlu1 %7890  ;;  %v9383_v18 = vpop.permute.xlu0 %9382 }
 0xb9e   : > { %v9407_v1 = vsel %vm9406_vm8, %v9404_v32, %v9383_v18 }
 0xb9f   : > { %9410 = vst.msk [vmem:[%s224_s17] sm:$0xff] %vm9409_vm9, %v9407_v1 }
 0xba1   : > { %v7961_v21 = vpop.permute.xlu1 %7960 }
 0xba5   : > { %v8031_v24 = vpop.permute.xlu1 %8030 }
 0xba9   : > { %v9385_v11 = vpop.permute.xlu1 %9384 }
 0xbaa   : > { %v9408_v43 = vsel %vm9406_vm8, %v9405_v22, %v9385_v11 }
 0xbab   : > { %9411 = vst.msk [vmem:[%s224_s17 + $0x8] sm:$0xff] %vm9409_vm9, %v9408_v43 }
 0xbac PF: > { %s15_s18 = sadd.s32 1, %s9714_s18  }
 0xbad   : > { %p12_p4 = scmp.ge.s32.totalorder %s15_s18, 4  }
 0xbaf   :  { %14 = sbr.rel (!%p12_p4) target bundleno = 1 (0x1), region = 70 }

</bundles_post_ra>
